<compile_context>
chip_gen: v7x
topology: tpu7x:2x2x1
jax: 0.10.0
libtpu: 0.0.40
codegen_flags: <defaults>
</compile_context>

<pallas_src>
import functools

import jax
import jax.numpy as jnp
from jax.experimental import pallas as pl
from jax.experimental.pallas import tpu as pltpu


# ----------------------------- Pallas kernels -----------------------------

def _pwff_kernel(x_ref, w1_ref, b1_ref, w2_ref, b2_ref, alpha_ref, o_ref):
    # ReZero residual of ActGLU(d_in, 2*d_in, relu) -> Dropout(id) -> Linear.
    x = x_ref[...]                                              # f32 (T, d_in)
    h = jnp.dot(x.astype(jnp.bfloat16), w1_ref[...],
                preferred_element_type=jnp.float32) + b1_ref[...]
    half = h.shape[-1] // 2
    glu = h[:, :half] * jnp.maximum(h[:, half:], 0.0)           # x * relu(gate)
    y = jnp.dot(glu.astype(jnp.bfloat16), w2_ref[...],
                preferred_element_type=jnp.float32) + b2_ref[...]
    o_ref[...] = x + alpha_ref[0, 0] * y


def _pwff_proj_kernel(x_ref, w1_ref, b1_ref, w2_ref, b2_ref, alpha_ref,
                      wp_ref, bp_ref, xo_ref, po_ref):
    # Fused: ReZero pwff residual + (concatenated) multi-head projection.
    x = x_ref[...]                                              # f32 (T, d_in)
    h = jnp.dot(x.astype(jnp.bfloat16), w1_ref[...],
                preferred_element_type=jnp.float32) + b1_ref[...]
    half = h.shape[-1] // 2
    glu = h[:, :half] * jnp.maximum(h[:, half:], 0.0)
    y = jnp.dot(glu.astype(jnp.bfloat16), w2_ref[...],
                preferred_element_type=jnp.float32) + b2_ref[...]
    xn = x + alpha_ref[0, 0] * y
    xo_ref[...] = xn
    proj = jnp.dot(xn.astype(jnp.bfloat16), wp_ref[...],
                   preferred_element_type=jnp.float32) + bp_ref[...]
    po_ref[...] = proj.astype(po_ref.dtype)                     # bf16 out


def _softmax_rows(s):
    m = jnp.max(s, axis=-1, keepdims=True)
    p = jnp.exp(s - m)
    return p * pl.reciprocal(jnp.sum(p, axis=-1, keepdims=True), approx=True)


def _attn_kernel(q_ref, kv_ref, ekv_ref, z_ref, *, n_heads, qk_dim, v_dim):
    # One dst-row tile per grid step; heads looped inside so the output block
    # is a lane-dense (Tdst, H*V) slab.
    H, QK, V = n_heads, qk_dim, v_dim
    voff = H * QK
    q = q_ref[...]          # (Td, H*QK)            bf16, dst rows
    kv = kv_ref[...]        # (Ns, H*QK + H*V)      bf16, all src rows  [k | v]
    ekv = ekv_ref[...]      # (Td, Ns, H*QK + H*V)  bf16                [ek| ev]

    z_parts = []
    for h in range(H):
        q_h = q[:, h * QK:(h + 1) * QK]
        k_h = kv[:, h * QK:(h + 1) * QK]
        v_h = kv[:, voff + h * V: voff + (h + 1) * V]
        ek_h = ekv[:, :, h * QK:(h + 1) * QK]
        ev_h = ekv[:, :, voff + h * V: voff + (h + 1) * V]

        # fn.v_dot_u('q','k'):  n2n[d,s] = <q[d], k[s]>
        n2n = jnp.dot(q_h, k_h.T, preferred_element_type=jnp.float32)
        # fn.v_dot_e('q','ek'): n2e[d,s] = <q[d], ek[d,s]>   (batched MXU dot)
        n2e = jnp.einsum('dxq,dsq->dxs', q_h[:, None, :], ek_h,
                         preferred_element_type=jnp.float32)[:, 0, :]
        # fn.e_dot_u('eq','k') is dead in the reference forward: e2n_attn is
        # built from 'n2e' there, so the eq path is dropped entirely.

        n2n_attn = _softmax_rows(n2n)                # f32 (Td, Ns)
        n2e_attn = _softmax_rows(n2e)                # f32 (Td, Ns)
        # wv = n2n_attn*v_src + n2e_attn*ev + e2n_attn*v_src, e2n_attn==n2e_attn
        w_uv = (n2n_attn + n2e_attn).astype(jnp.bfloat16)
        z_h = jnp.dot(w_uv, v_h, preferred_element_type=jnp.float32)
        z_h = z_h + jnp.einsum('dxs,dsv->dxv',
                               n2e_attn[:, None, :].astype(jnp.bfloat16), ev_h,
                               preferred_element_type=jnp.float32)[:, 0, :]
        z_parts.append(z_h)

    z_ref[...] = jnp.concatenate(z_parts, axis=-1)   # (Td, H*V) f32


def _mix_kernel(z_ref, gamma_ref, beta_ref, wm_ref, bm_ref, alpha_ref, n_ref,
                o_ref, *, n_groups):
    # GraphNormAndProj (group norm over the whole graph per head group, affine,
    # Linear(d_hidden -> d_in), ReLU, Dropout(id)) + ReZero residual on n.
    z = z_ref[...]                                   # (N, Hd) f32
    hd = z.shape[1]
    gs = hd // n_groups
    cnt = jnp.float32(z.shape[0] * gs)
    parts = []
    for g in range(n_groups):
        zg = z[:, g * gs:(g + 1) * gs]
        mean = jnp.sum(zg) / cnt
        c = zg - mean                                # two-pass variance (stable)
        var = jnp.sum(c * c) / cnt
        parts.append(c * jax.lax.rsqrt(var + 1e-5))
    zn = jnp.concatenate(parts, axis=-1) * gamma_ref[...] + beta_ref[...]
    y = jnp.maximum(
        jnp.dot(zn.astype(jnp.bfloat16), wm_ref[...],
                preferred_element_type=jnp.float32) + bm_ref[...], 0.0)
    o_ref[...] = n_ref[...] + alpha_ref[0, 0] * y


# ----------------------------- wrappers (glue) -----------------------------

_VMEM = pl.BlockSpec(memory_space=pltpu.MemorySpace.VMEM)
_SMEM = pl.BlockSpec(memory_space=pltpu.MemorySpace.SMEM)


def _pick_tile(rows, target):
    """Largest divisor of `rows` that is <= target and sublane friendly."""
    t = min(rows, target)
    if t == rows:
        return t
    for c in range(t, 0, -1):
        if rows % c == 0 and (c % 8 == 0 or c == rows):
            return c
    return rows


def pwff_residual(x, ff, alpha, row_tile):
    rows, d_in = x.shape
    w1, b1, w2, b2 = ff
    t = _pick_tile(rows, row_tile)
    return pl.pallas_call(
        _pwff_kernel,
        out_shape=jax.ShapeDtypeStruct((rows, d_in), jnp.float32),
        grid=(rows // t,),
        in_specs=[
            pl.BlockSpec((t, d_in), lambda i: (i, 0)),
            pl.BlockSpec(w1.shape, lambda i: (0, 0)),
            pl.BlockSpec(b1.shape, lambda i: (0, 0)),
            pl.BlockSpec(w2.shape, lambda i: (0, 0)),
            pl.BlockSpec(b2.shape, lambda i: (0, 0)),
            _SMEM,
        ],
        out_specs=pl.BlockSpec((t, d_in), lambda i: (i, 0)),
        compiler_params=pltpu.CompilerParams(dimension_semantics=("parallel",)),
        input_output_aliases={0: 0},
    )(x, w1, b1, w2, b2, alpha)


def pwff_proj(x, ff, alpha, wp, bp, row_tile):
    rows, d_in = x.shape
    w1, b1, w2, b2 = ff
    d_proj = wp.shape[1]
    t = _pick_tile(rows, row_tile)
    return pl.pallas_call(
        _pwff_proj_kernel,
        out_shape=(jax.ShapeDtypeStruct((rows, d_in), jnp.float32),
                   jax.ShapeDtypeStruct((rows, d_proj), jnp.bfloat16)),
        grid=(rows // t,),
        in_specs=[
            pl.BlockSpec((t, d_in), lambda i: (i, 0)),
            pl.BlockSpec(w1.shape, lambda i: (0, 0)),
            pl.BlockSpec(b1.shape, lambda i: (0, 0)),
            pl.BlockSpec(w2.shape, lambda i: (0, 0)),
            pl.BlockSpec(b2.shape, lambda i: (0, 0)),
            _SMEM,
            pl.BlockSpec(wp.shape, lambda i: (0, 0)),
            pl.BlockSpec(bp.shape, lambda i: (0, 0)),
        ],
        out_specs=(pl.BlockSpec((t, d_in), lambda i: (i, 0)),
                   pl.BlockSpec((t, d_proj), lambda i: (i, 0))),
        compiler_params=pltpu.CompilerParams(dimension_semantics=("parallel",)),
        input_output_aliases={0: 0},
    )(x, w1, b1, w2, b2, alpha, wp, bp)


def graph_attention(q, kv, ekv, n_heads, qk_dim, v_dim, dst_tile):
    n_nodes = kv.shape[0]
    hv = n_heads * v_dim
    t = _pick_tile(n_nodes, dst_tile)
    kernel = functools.partial(_attn_kernel, n_heads=n_heads, qk_dim=qk_dim,
                               v_dim=v_dim)
    return pl.pallas_call(
        kernel,
        out_shape=jax.ShapeDtypeStruct((n_nodes, hv), jnp.float32),
        grid=(n_nodes // t,),
        in_specs=[
            pl.BlockSpec((t, q.shape[1]), lambda i: (i, 0)),     # q: dst tile
            pl.BlockSpec(kv.shape, lambda i: (0, 0)),            # k|v: resident
            pl.BlockSpec((t, n_nodes, ekv.shape[-1]),
                         lambda i: (i, 0, 0)),                   # ek|ev: dst tile
        ],
        out_specs=pl.BlockSpec((t, hv), lambda i: (i, 0)),
        compiler_params=pltpu.CompilerParams(dimension_semantics=("parallel",)),
    )(q, kv, ekv)


def mix_residual(z, mix, alpha, n, n_groups):
    gamma, beta, wm, bm = mix
    kernel = functools.partial(_mix_kernel, n_groups=n_groups)
    return pl.pallas_call(
        kernel,
        out_shape=jax.ShapeDtypeStruct(n.shape, jnp.float32),
        in_specs=[_VMEM, _VMEM, _VMEM, _VMEM, _VMEM, _SMEM, _VMEM],
        out_specs=_VMEM,
        input_output_aliases={6: 0},
    )(z, gamma, beta, wm, bm, alpha, n)


def graph_net_block(n, e, p, *, n_heads, qk_dim, v_dim,
                    edge_tile=256, node_tile=128):
    """n: (N, d_in) node feats; e: (N*N, d_in) edge feats, idx = dst*N + src."""
    N = n.shape[0]
    H, QK, V = n_heads, qk_dim, v_dim

    # n = n + rezero(node_ff(n)), fused with [q|k|v] projection of the result.
    n, qkv = pwff_proj(n, p["node_ff"], p["node_alpha"],
                       p["wqkv"], p["bqkv"], node_tile)
    # e = e + rezero(edge_ff(e)), fused with [ek|ev] projection (eq dropped).
    e, ekv = pwff_proj(e, p["edge_ff"], p["edge_alpha"],
                       p["wekv"], p["bekv"], edge_tile)

    q = qkv[:, :H * QK]               # (N, H*QK)     bf16
    kv = qkv[:, H * QK:]              # (N, H*(QK+V)) bf16   [k | v]
    ekv3 = ekv.reshape(N, N, H * (QK + V))   # packed edge layout, free reshape

    # edge dots + edge softmax + weighted aggregation -> z (N, H*V), lane-dense
    z = graph_attention(q, kv, ekv3, H, QK, V, node_tile)

    # n = n + rezero(mix_nodes(z, batch_num_nodes))  (single graph of N nodes)
    n = mix_residual(z, p["mix"], p["node_alpha"], n, n_groups=H)

    # second point-wise FFs
    n = pwff_residual(n, p["node_ff2"], p["node_alpha"], node_tile)
    e = pwff_residual(e, p["edge_ff2"], p["edge_alpha"], edge_tile)
    return n, e


# ----------------------------- param init (deterministic) -----------------------------

def _lin(key, d_in, d_out, scale=0.02):
    kw, kb = jax.random.split(key)
    w = (scale * jax.random.normal(kw, (d_in, d_out), jnp.float32)
         ).astype(jnp.bfloat16)
    b = scale * jax.random.normal(kb, (1, d_out), jnp.float32)
    return w, b


def _pwff_params(key, d_in):
    k1, k2 = jax.random.split(key)
    w1, b1 = _lin(k1, d_in, 4 * d_in)        # ActGLU.proj: Linear(d_in, 2*(2*d_in))
    w2, b2 = _lin(k2, 2 * d_in, d_in)        # Linear(2*d_in, d_in)
    return (w1, b1, w2, b2)


def init_params(key, d_in, n_heads, qk_dim, v_dim):
    d_hidden = n_heads * v_dim
    keys = jax.random.split(key, 8)
    p = {
        "node_ff": _pwff_params(keys[0], d_in),
        "edge_ff": _pwff_params(keys[1], d_in),
        "node_ff2": _pwff_params(keys[2], d_in),
        "edge_ff2": _pwff_params(keys[3], d_in),
    }
    # fused node projection [q | k | v] and edge projection [ek | ev]
    p["wqkv"], p["bqkv"] = _lin(keys[4], d_in, n_heads * (2 * qk_dim + v_dim))
    p["wekv"], p["bekv"] = _lin(keys[5], d_in, n_heads * (qk_dim + v_dim))
    wm, bm = _lin(keys[6], d_hidden, d_in)
    gamma = jnp.ones((1, d_hidden), jnp.float32)
    beta = jnp.zeros((1, d_hidden), jnp.float32)
    p["mix"] = (gamma, beta, wm, bm)
    # ReZero gates (node_rezero shared 3x, edge_rezero 2x). Paper inits to 0;
    # use 0.1 so the kernel output is non-trivial.
    p["node_alpha"] = jnp.full((1, 1), 0.1, jnp.float32)
    p["edge_alpha"] = jnp.full((1, 1), 0.1, jnp.float32)
    return p


# ----------------------------- main -----------------------------

if __name__ == "__main__":
    d_in, n_heads, qk_dim, v_dim = 128, 4, 32, 32
    N = 16                     # nodes; fully connected with self-loops
    E = N * N                  # edges, index = dst*N + src

    key = jax.random.PRNGKey(0)
    kn, ke, kp = jax.random.split(key, 3)
    n = jax.random.normal(kn, (N, d_in), jnp.float32)
    e = jax.random.normal(ke, (E, d_in), jnp.float32)
    params = init_params(kp, d_in, n_heads, qk_dim, v_dim)

    fwd = jax.jit(functools.partial(
        graph_net_block, n_heads=n_heads, qk_dim=qk_dim, v_dim=v_dim,
        edge_tile=128, node_tile=128))
    n_out, e_out = fwd(n, e, params)
    jax.block_until_ready((n_out, e_out))
    assert n_out.shape == (N, d_in) and e_out.shape == (E, d_in)
    assert bool(jnp.all(jnp.isfinite(n_out))) and bool(jnp.all(jnp.isfinite(e_out)))
    print("KERNEL_OK")
</pallas_src>

<mosaic_0001>
module attributes {stable_mosaic.version = 11 : i64} {
  func.func @_pwff_proj_kernel(%arg0: i32, %arg1: memref<16x128xf32, #tpu.memory_space<vmem>>, %arg2: memref<128x512xbf16, #tpu.memory_space<vmem>>, %arg3: memref<1x512xf32, #tpu.memory_space<vmem>>, %arg4: memref<256x128xbf16, #tpu.memory_space<vmem>>, %arg5: memref<1x128xf32, #tpu.memory_space<vmem>>, %arg6: memref<1x1xf32, #tpu.memory_space<smem>>, %arg7: memref<128x384xbf16, #tpu.memory_space<vmem>>, %arg8: memref<1x384xf32, #tpu.memory_space<vmem>>, %arg9: memref<16x128xf32, #tpu.memory_space<vmem>>, %arg10: memref<16x384xbf16, #tpu.memory_space<vmem>>) attributes {dimension_semantics = [#tpu.dimension_semantics<parallel>], iteration_bounds = array<i64: 1>, scalar_prefetch = 0 : i64, scratch_operands = 0 : i64, tpu.core_type = #tpu.core_type<tc>, window_params = [{transform_indices = @transform_0, window_bounds = array<i64: 16, 128>}, {pipeline_mode = #tpu.pipeline_mode<synchronous>, transform_indices = @transform_1, window_bounds = array<i64: 128, 512>}, {pipeline_mode = #tpu.pipeline_mode<synchronous>, transform_indices = @transform_2, window_bounds = array<i64: 1, 512>}, {pipeline_mode = #tpu.pipeline_mode<synchronous>, transform_indices = @transform_3, window_bounds = array<i64: 256, 128>}, {pipeline_mode = #tpu.pipeline_mode<synchronous>, transform_indices = @transform_4, window_bounds = array<i64: 1, 128>}, {transform_indices = @transform_5, window_bounds = array<i64: 1, 1>}, {pipeline_mode = #tpu.pipeline_mode<synchronous>, transform_indices = @transform_6, window_bounds = array<i64: 128, 384>}, {pipeline_mode = #tpu.pipeline_mode<synchronous>, transform_indices = @transform_7, window_bounds = array<i64: 1, 384>}, {transform_indices = @transform_8, window_bounds = array<i64: 16, 128>}, {transform_indices = @transform_9, window_bounds = array<i64: 16, 384>}]} {
    %c0 = arith.constant 0 : index
    %c0_0 = arith.constant 0 : index
    %0 = vector.load %arg1[%c0, %c0_0] : memref<16x128xf32, #tpu.memory_space<vmem>>, vector<16x128xf32>
    %1 = arith.truncf %0 : vector<16x128xf32> to vector<16x128xbf16>
    %c0_1 = arith.constant 0 : index
    %c0_2 = arith.constant 0 : index
    %2 = vector.load %arg2[%c0_1, %c0_2] : memref<128x512xbf16, #tpu.memory_space<vmem>>, vector<128x512xbf16>
    %cst = arith.constant dense<0.000000e+00> : vector<16x512xf32>
    %3 = tpu.matmul %1, %2, %cst {dimension_numbers = #tpu.dot_dimension_numbers<[1], [0], [0], [1], [0, 0, 1, 1], [], []>} : vector<16x128xbf16>, vector<128x512xbf16>, vector<16x512xf32> -> vector<16x512xf32>
    %c0_3 = arith.constant 0 : index
    %c0_4 = arith.constant 0 : index
    %4 = vector.load %arg3[%c0_3, %c0_4] : memref<1x512xf32, #tpu.memory_space<vmem>>, vector<1x512xf32>
    %5 = vector.broadcast %4 : vector<1x512xf32> to vector<16x512xf32>
    %6 = arith.addf %3, %5 : vector<16x512xf32>
    %7 = vector.extract_strided_slice %6 {offsets = [0, 0], sizes = [16, 256], strides = [1, 1]} : vector<16x512xf32> to vector<16x256xf32>
    %8 = vector.extract_strided_slice %6 {offsets = [0, 256], sizes = [16, 256], strides = [1, 1]} : vector<16x512xf32> to vector<16x256xf32>
    %cst_5 = arith.constant 0.000000e+00 : f32
    %9 = vector.broadcast %cst_5 : f32 to vector<16x256xf32>
    %10 = arith.maximumf %8, %9 : vector<16x256xf32>
    %11 = arith.mulf %7, %10 : vector<16x256xf32>
    %12 = arith.truncf %11 : vector<16x256xf32> to vector<16x256xbf16>
    %c0_6 = arith.constant 0 : index
    %c0_7 = arith.constant 0 : index
    %13 = vector.load %arg4[%c0_6, %c0_7] : memref<256x128xbf16, #tpu.memory_space<vmem>>, vector<256x128xbf16>
    %cst_8 = arith.constant dense<0.000000e+00> : vector<16x128xf32>
    %14 = tpu.matmul %12, %13, %cst_8 {dimension_numbers = #tpu.dot_dimension_numbers<[1], [0], [0], [1], [0, 0, 1, 1], [], []>} : vector<16x256xbf16>, vector<256x128xbf16>, vector<16x128xf32> -> vector<16x128xf32>
    %c0_9 = arith.constant 0 : index
    %c0_10 = arith.constant 0 : index
    %15 = vector.load %arg5[%c0_9, %c0_10] : memref<1x128xf32, #tpu.memory_space<vmem>>, vector<1x128xf32>
    %16 = vector.broadcast %15 : vector<1x128xf32> to vector<16x128xf32>
    %17 = arith.addf %14, %16 : vector<16x128xf32>
    %c0_11 = arith.constant 0 : index
    %c0_12 = arith.constant 0 : index
    %18 = memref.load %arg6[%c0_11, %c0_12] : memref<1x1xf32, #tpu.memory_space<smem>>
    %19 = vector.broadcast %18 : f32 to vector<16x128xf32>
    %20 = arith.mulf %19, %17 : vector<16x128xf32>
    %21 = arith.addf %0, %20 : vector<16x128xf32>
    %c0_13 = arith.constant 0 : index
    %c0_14 = arith.constant 0 : index
    %22 = vector.load %arg9[%c0_13, %c0_14] : memref<16x128xf32, #tpu.memory_space<vmem>>, vector<16x128xf32>
    tpu.vector_store %arg9[%c0_13, %c0_14], %21 {strides = array<i32>} : memref<16x128xf32, #tpu.memory_space<vmem>>, vector<16x128xf32>,
    %23 = arith.truncf %21 : vector<16x128xf32> to vector<16x128xbf16>
    %c0_15 = arith.constant 0 : index
    %c0_16 = arith.constant 0 : index
    %24 = vector.load %arg7[%c0_15, %c0_16] : memref<128x384xbf16, #tpu.memory_space<vmem>>, vector<128x384xbf16>
    %cst_17 = arith.constant dense<0.000000e+00> : vector<16x384xf32>
    %25 = tpu.matmul %23, %24, %cst_17 {dimension_numbers = #tpu.dot_dimension_numbers<[1], [0], [0], [1], [0, 0, 1, 1], [], []>} : vector<16x128xbf16>, vector<128x384xbf16>, vector<16x384xf32> -> vector<16x384xf32>
    %c0_18 = arith.constant 0 : index
    %c0_19 = arith.constant 0 : index
    %26 = vector.load %arg8[%c0_18, %c0_19] : memref<1x384xf32, #tpu.memory_space<vmem>>, vector<1x384xf32>
    %27 = vector.broadcast %26 : vector<1x384xf32> to vector<16x384xf32>
    %28 = arith.addf %25, %27 : vector<16x384xf32>
    %29 = arith.truncf %28 : vector<16x384xf32> to vector<16x384xbf16>
    %c0_20 = arith.constant 0 : index
    %c0_21 = arith.constant 0 : index
    %30 = vector.load %arg10[%c0_20, %c0_21] : memref<16x384xbf16, #tpu.memory_space<vmem>>, vector<16x384xbf16>
    tpu.vector_store %arg10[%c0_20, %c0_21], %29 {strides = array<i32>} : memref<16x384xbf16, #tpu.memory_space<vmem>>, vector<16x384xbf16>,
    return
  }
  func.func @transform_0(%arg0: i32) -> (i32, i32) {
    %c0_i32 = arith.constant 0 : i32
    %c0_i32_0 = arith.constant 0 : i32
    return %arg0, %c0_i32 : i32, i32
  }
  func.func @transform_1(%arg0: i32) -> (i32, i32) {
    %c0_i32 = arith.constant 0 : i32
    %c0_i32_0 = arith.constant 0 : i32
    %c0_i32_1 = arith.constant 0 : i32
    return %c0_i32, %c0_i32_0 : i32, i32
  }
  func.func @transform_2(%arg0: i32) -> (i32, i32) {
    %c0_i32 = arith.constant 0 : i32
    %c0_i32_0 = arith.constant 0 : i32
    %c0_i32_1 = arith.constant 0 : i32
    return %c0_i32, %c0_i32_0 : i32, i32
  }
  func.func @transform_3(%arg0: i32) -> (i32, i32) {
    %c0_i32 = arith.constant 0 : i32
    %c0_i32_0 = arith.constant 0 : i32
    %c0_i32_1 = arith.constant 0 : i32
    return %c0_i32, %c0_i32_0 : i32, i32
  }
  func.func @transform_4(%arg0: i32) -> (i32, i32) {
    %c0_i32 = arith.constant 0 : i32
    %c0_i32_0 = arith.constant 0 : i32
    %c0_i32_1 = arith.constant 0 : i32
    return %c0_i32, %c0_i32_0 : i32, i32
  }
  func.func @transform_5(%arg0: i32) -> (i32, i32) {
    %c0_i32 = arith.constant 0 : i32
    %c0_i32_0 = arith.constant 0 : i32
    %c0_i32_1 = arith.constant 0 : i32
    return %c0_i32, %c0_i32_0 : i32, i32
  }
  func.func @transform_6(%arg0: i32) -> (i32, i32) {
    %c0_i32 = arith.constant 0 : i32
    %c0_i32_0 = arith.constant 0 : i32
    %c0_i32_1 = arith.constant 0 : i32
    return %c0_i32, %c0_i32_0 : i32, i32
  }
  func.func @transform_7(%arg0: i32) -> (i32, i32) {
    %c0_i32 = arith.constant 0 : i32
    %c0_i32_0 = arith.constant 0 : i32
    %c0_i32_1 = arith.constant 0 : i32
    return %c0_i32, %c0_i32_0 : i32, i32
  }
  func.func @transform_8(%arg0: i32) -> (i32, i32) {
    %c0_i32 = arith.constant 0 : i32
    %c0_i32_0 = arith.constant 0 : i32
    return %arg0, %c0_i32 : i32, i32
  }
  func.func @transform_9(%arg0: i32) -> (i32, i32) {
    %c0_i32 = arith.constant 0 : i32
    %c0_i32_0 = arith.constant 0 : i32
    return %arg0, %c0_i32 : i32, i32
  }
}

module attributes {stable_mosaic.version = 11 : i64} {
  func.func @_pwff_proj_kernel(%arg0: i32, %arg1: memref<128x128xf32, #tpu.memory_space<vmem>>, %arg2: memref<128x512xbf16, #tpu.memory_space<vmem>>, %arg3: memref<1x512xf32, #tpu.memory_space<vmem>>, %arg4: memref<256x128xbf16, #tpu.memory_space<vmem>>, %arg5: memref<1x128xf32, #tpu.memory_space<vmem>>, %arg6: memref<1x1xf32, #tpu.memory_space<smem>>, %arg7: memref<128x256xbf16, #tpu.memory_space<vmem>>, %arg8: memref<1x256xf32, #tpu.memory_space<vmem>>, %arg9: memref<128x128xf32, #tpu.memory_space<vmem>>, %arg10: memref<128x256xbf16, #tpu.memory_space<vmem>>) attributes {dimension_semantics = [#tpu.dimension_semantics<parallel>], iteration_bounds = array<i64: 2>, scalar_prefetch = 0 : i64, scratch_operands = 0 : i64, tpu.core_type = #tpu.core_type<tc>, window_params = [{transform_indices = @transform_0, window_bounds = array<i64: 128, 128>}, {pipeline_mode = #tpu.pipeline_mode<synchronous>, transform_indices = @transform_1, window_bounds = array<i64: 128, 512>}, {pipeline_mode = #tpu.pipeline_mode<synchronous>, transform_indices = @transform_2, window_bounds = array<i64: 1, 512>}, {pipeline_mode = #tpu.pipeline_mode<synchronous>, transform_indices = @transform_3, window_bounds = array<i64: 256, 128>}, {pipeline_mode = #tpu.pipeline_mode<synchronous>, transform_indices = @transform_4, window_bounds = array<i64: 1, 128>}, {transform_indices = @transform_5, window_bounds = array<i64: 1, 1>}, {pipeline_mode = #tpu.pipeline_mode<synchronous>, transform_indices = @transform_6, window_bounds = array<i64: 128, 256>}, {pipeline_mode = #tpu.pipeline_mode<synchronous>, transform_indices = @transform_7, window_bounds = array<i64: 1, 256>}, {transform_indices = @transform_8, window_bounds = array<i64: 128, 128>}, {transform_indices = @transform_9, window_bounds = array<i64: 128, 256>}]} {
    %c0 = arith.constant 0 : index
    %c0_0 = arith.constant 0 : index
    %0 = vector.load %arg1[%c0, %c0_0] : memref<128x128xf32, #tpu.memory_space<vmem>>, vector<128x128xf32>
    %1 = arith.truncf %0 : vector<128x128xf32> to vector<128x128xbf16>
    %c0_1 = arith.constant 0 : index
    %c0_2 = arith.constant 0 : index
    %2 = vector.load %arg2[%c0_1, %c0_2] : memref<128x512xbf16, #tpu.memory_space<vmem>>, vector<128x512xbf16>
    %cst = arith.constant dense<0.000000e+00> : vector<128x512xf32>
    %3 = tpu.matmul %1, %2, %cst {dimension_numbers = #tpu.dot_dimension_numbers<[1], [0], [0], [1], [0, 0, 1, 1], [], []>} : vector<128x128xbf16>, vector<128x512xbf16>, vector<128x512xf32> -> vector<128x512xf32>
    %c0_3 = arith.constant 0 : index
    %c0_4 = arith.constant 0 : index
    %4 = vector.load %arg3[%c0_3, %c0_4] : memref<1x512xf32, #tpu.memory_space<vmem>>, vector<1x512xf32>
    %5 = vector.broadcast %4 : vector<1x512xf32> to vector<128x512xf32>
    %6 = arith.addf %3, %5 : vector<128x512xf32>
    %7 = vector.extract_strided_slice %6 {offsets = [0, 0], sizes = [128, 256], strides = [1, 1]} : vector<128x512xf32> to vector<128x256xf32>
    %8 = vector.extract_strided_slice %6 {offsets = [0, 256], sizes = [128, 256], strides = [1, 1]} : vector<128x512xf32> to vector<128x256xf32>
    %cst_5 = arith.constant 0.000000e+00 : f32
    %9 = vector.broadcast %cst_5 : f32 to vector<128x256xf32>
    %10 = arith.maximumf %8, %9 : vector<128x256xf32>
    %11 = arith.mulf %7, %10 : vector<128x256xf32>
    %12 = arith.truncf %11 : vector<128x256xf32> to vector<128x256xbf16>
    %c0_6 = arith.constant 0 : index
    %c0_7 = arith.constant 0 : index
    %13 = vector.load %arg4[%c0_6, %c0_7] : memref<256x128xbf16, #tpu.memory_space<vmem>>, vector<256x128xbf16>
    %cst_8 = arith.constant dense<0.000000e+00> : vector<128x128xf32>
    %14 = tpu.matmul %12, %13, %cst_8 {dimension_numbers = #tpu.dot_dimension_numbers<[1], [0], [0], [1], [0, 0, 1, 1], [], []>} : vector<128x256xbf16>, vector<256x128xbf16>, vector<128x128xf32> -> vector<128x128xf32>
    %c0_9 = arith.constant 0 : index
    %c0_10 = arith.constant 0 : index
    %15 = vector.load %arg5[%c0_9, %c0_10] : memref<1x128xf32, #tpu.memory_space<vmem>>, vector<1x128xf32>
    %16 = vector.broadcast %15 : vector<1x128xf32> to vector<128x128xf32>
    %17 = arith.addf %14, %16 : vector<128x128xf32>
    %c0_11 = arith.constant 0 : index
    %c0_12 = arith.constant 0 : index
    %18 = memref.load %arg6[%c0_11, %c0_12] : memref<1x1xf32, #tpu.memory_space<smem>>
    %19 = vector.broadcast %18 : f32 to vector<128x128xf32>
    %20 = arith.mulf %19, %17 : vector<128x128xf32>
    %21 = arith.addf %0, %20 : vector<128x128xf32>
    %c0_13 = arith.constant 0 : index
    %c0_14 = arith.constant 0 : index
    %22 = vector.load %arg9[%c0_13, %c0_14] : memref<128x128xf32, #tpu.memory_space<vmem>>, vector<128x128xf32>
    tpu.vector_store %arg9[%c0_13, %c0_14], %21 {strides = array<i32>} : memref<128x128xf32, #tpu.memory_space<vmem>>, vector<128x128xf32>,
    %23 = arith.truncf %21 : vector<128x128xf32> to vector<128x128xbf16>
    %c0_15 = arith.constant 0 : index
    %c0_16 = arith.constant 0 : index
    %24 = vector.load %arg7[%c0_15, %c0_16] : memref<128x256xbf16, #tpu.memory_space<vmem>>, vector<128x256xbf16>
    %cst_17 = arith.constant dense<0.000000e+00> : vector<128x256xf32>
    %25 = tpu.matmul %23, %24, %cst_17 {dimension_numbers = #tpu.dot_dimension_numbers<[1], [0], [0], [1], [0, 0, 1, 1], [], []>} : vector<128x128xbf16>, vector<128x256xbf16>, vector<128x256xf32> -> vector<128x256xf32>
    %c0_18 = arith.constant 0 : index
    %c0_19 = arith.constant 0 : index
    %26 = vector.load %arg8[%c0_18, %c0_19] : memref<1x256xf32, #tpu.memory_space<vmem>>, vector<1x256xf32>
    %27 = vector.broadcast %26 : vector<1x256xf32> to vector<128x256xf32>
    %28 = arith.addf %25, %27 : vector<128x256xf32>
    %29 = arith.truncf %28 : vector<128x256xf32> to vector<128x256xbf16>
    %c0_20 = arith.constant 0 : index
    %c0_21 = arith.constant 0 : index
    %30 = vector.load %arg10[%c0_20, %c0_21] : memref<128x256xbf16, #tpu.memory_space<vmem>>, vector<128x256xbf16>
    tpu.vector_store %arg10[%c0_20, %c0_21], %29 {strides = array<i32>} : memref<128x256xbf16, #tpu.memory_space<vmem>>, vector<128x256xbf16>,
    return
  }
  func.func @transform_0(%arg0: i32) -> (i32, i32) {
    %c0_i32 = arith.constant 0 : i32
    %c0_i32_0 = arith.constant 0 : i32
    return %arg0, %c0_i32 : i32, i32
  }
  func.func @transform_1(%arg0: i32) -> (i32, i32) {
    %c0_i32 = arith.constant 0 : i32
    %c0_i32_0 = arith.constant 0 : i32
    %c0_i32_1 = arith.constant 0 : i32
    return %c0_i32, %c0_i32_0 : i32, i32
  }
  func.func @transform_2(%arg0: i32) -> (i32, i32) {
    %c0_i32 = arith.constant 0 : i32
    %c0_i32_0 = arith.constant 0 : i32
    %c0_i32_1 = arith.constant 0 : i32
    return %c0_i32, %c0_i32_0 : i32, i32
  }
  func.func @transform_3(%arg0: i32) -> (i32, i32) {
    %c0_i32 = arith.constant 0 : i32
    %c0_i32_0 = arith.constant 0 : i32
    %c0_i32_1 = arith.constant 0 : i32
    return %c0_i32, %c0_i32_0 : i32, i32
  }
  func.func @transform_4(%arg0: i32) -> (i32, i32) {
    %c0_i32 = arith.constant 0 : i32
    %c0_i32_0 = arith.constant 0 : i32
    %c0_i32_1 = arith.constant 0 : i32
    return %c0_i32, %c0_i32_0 : i32, i32
  }
  func.func @transform_5(%arg0: i32) -> (i32, i32) {
    %c0_i32 = arith.constant 0 : i32
    %c0_i32_0 = arith.constant 0 : i32
    %c0_i32_1 = arith.constant 0 : i32
    return %c0_i32, %c0_i32_0 : i32, i32
  }
  func.func @transform_6(%arg0: i32) -> (i32, i32) {
    %c0_i32 = arith.constant 0 : i32
    %c0_i32_0 = arith.constant 0 : i32
    %c0_i32_1 = arith.constant 0 : i32
    return %c0_i32, %c0_i32_0 : i32, i32
  }
  func.func @transform_7(%arg0: i32) -> (i32, i32) {
    %c0_i32 = arith.constant 0 : i32
    %c0_i32_0 = arith.constant 0 : i32
    %c0_i32_1 = arith.constant 0 : i32
    return %c0_i32, %c0_i32_0 : i32, i32
  }
  func.func @transform_8(%arg0: i32) -> (i32, i32) {
    %c0_i32 = arith.constant 0 : i32
    %c0_i32_0 = arith.constant 0 : i32
    return %arg0, %c0_i32 : i32, i32
  }
  func.func @transform_9(%arg0: i32) -> (i32, i32) {
    %c0_i32 = arith.constant 0 : i32
    %c0_i32_0 = arith.constant 0 : i32
    return %arg0, %c0_i32 : i32, i32
  }
}

module attributes {stable_mosaic.version = 11 : i64} {
  func.func @_attn_kernel(%arg0: i32, %arg1: memref<16x128xbf16, #tpu.memory_space<vmem>>, %arg2: memref<16x256xbf16, #tpu.memory_space<vmem>>, %arg3: memref<16x16x256xbf16, #tpu.memory_space<vmem>>, %arg4: memref<16x128xf32, #tpu.memory_space<vmem>>) attributes {dimension_semantics = [#tpu.dimension_semantics<parallel>], iteration_bounds = array<i64: 1>, scalar_prefetch = 0 : i64, scratch_operands = 0 : i64, tpu.core_type = #tpu.core_type<tc>, window_params = [{transform_indices = @transform_0, window_bounds = array<i64: 16, 128>}, {pipeline_mode = #tpu.pipeline_mode<synchronous>, transform_indices = @transform_1, window_bounds = array<i64: 16, 256>}, {transform_indices = @transform_2, window_bounds = array<i64: 16, 16, 256>}, {transform_indices = @transform_3, window_bounds = array<i64: 16, 128>}]} {
    %c0 = arith.constant 0 : index
    %c0_0 = arith.constant 0 : index
    %0 = vector.load %arg1[%c0, %c0_0] : memref<16x128xbf16, #tpu.memory_space<vmem>>, vector<16x128xbf16>
    %c0_1 = arith.constant 0 : index
    %c0_2 = arith.constant 0 : index
    %1 = vector.load %arg2[%c0_1, %c0_2] : memref<16x256xbf16, #tpu.memory_space<vmem>>, vector<16x256xbf16>
    %c0_3 = arith.constant 0 : index
    %c0_4 = arith.constant 0 : index
    %c0_5 = arith.constant 0 : index
    %2 = vector.load %arg3[%c0_3, %c0_4, %c0_5] : memref<16x16x256xbf16, #tpu.memory_space<vmem>>, vector<16x16x256xbf16>
    %3 = vector.extract_strided_slice %0 {offsets = [0, 0], sizes = [16, 32], strides = [1, 1]} : vector<16x128xbf16> to vector<16x32xbf16>
    %4 = vector.extract_strided_slice %1 {offsets = [0, 0], sizes = [16, 32], strides = [1, 1]} : vector<16x256xbf16> to vector<16x32xbf16>
    %5 = vector.extract_strided_slice %1 {offsets = [0, 128], sizes = [16, 32], strides = [1, 1]} : vector<16x256xbf16> to vector<16x32xbf16>
    %6 = vector.extract_strided_slice %2 {offsets = [0, 0, 0], sizes = [16, 16, 32], strides = [1, 1, 1]} : vector<16x16x256xbf16> to vector<16x16x32xbf16>
    %7 = vector.extract_strided_slice %2 {offsets = [0, 0, 128], sizes = [16, 16, 32], strides = [1, 1, 1]} : vector<16x16x256xbf16> to vector<16x16x32xbf16>
    %8 = tpu.transpose %4, [1, 0] : vector<16x32xbf16> -> vector<32x16xbf16>
    %cst = arith.constant dense<0.000000e+00> : vector<16x16xf32>
    %9 = tpu.matmul %3, %8, %cst {dimension_numbers = #tpu.dot_dimension_numbers<[1], [0], [0], [1], [0, 0, 1, 1], [], []>} : vector<16x32xbf16>, vector<32x16xbf16>, vector<16x16xf32> -> vector<16x16xf32>
    %10 = vector.shape_cast %3 : vector<16x32xbf16> to vector<16x1x32xbf16>
    "tpu.trace_start"() <{level = 10 : i32, message = "dxq,dsq->dxs"}> : () -> ()
    %cst_6 = arith.constant dense<0.000000e+00> : vector<16x1x16xf32>
    %11 = tpu.matmul %10, %6, %cst_6 {dimension_numbers = #tpu.dot_dimension_numbers<[2], [2], [1], [1], [0, 0, 0, 1, 1, 1], [0], [0]>} : vector<16x1x32xbf16>, vector<16x16x32xbf16>, vector<16x1x16xf32> -> vector<16x1x16xf32>
    "tpu.trace_stop"() : () -> ()
    %12 = vector.shape_cast %11 : vector<16x1x16xf32> to vector<16x16xf32>
    %cst_7 = arith.constant dense<0xFF800000> : vector<16xf32>
    %13 = vector.multi_reduction <maximumf>, %9, %cst_7 [1] : vector<16x16xf32> to vector<16xf32>
    %14 = vector.shape_cast %13 : vector<16xf32> to vector<16x1xf32>
    %15 = vector.broadcast %14 : vector<16x1xf32> to vector<16x16xf32>
    %16 = arith.subf %9, %15 : vector<16x16xf32>
    %17 = math.exp %16 : vector<16x16xf32>
    %cst_8 = arith.constant dense<0.000000e+00> : vector<16xf32>
    %18 = vector.multi_reduction <add>, %17, %cst_8 [1] : vector<16x16xf32> to vector<16xf32>
    %19 = vector.shape_cast %18 : vector<16xf32> to vector<16x1xf32>
    %20 = tpu.reciprocal %19 {approx = true} : vector<16x1xf32> -> vector<16x1xf32>
    %21 = vector.broadcast %20 : vector<16x1xf32> to vector<16x16xf32>
    %22 = arith.mulf %17, %21 : vector<16x16xf32>
    %cst_9 = arith.constant dense<0xFF800000> : vector<16xf32>
    %23 = vector.multi_reduction <maximumf>, %12, %cst_9 [1] : vector<16x16xf32> to vector<16xf32>
    %24 = vector.shape_cast %23 : vector<16xf32> to vector<16x1xf32>
    %25 = vector.broadcast %24 : vector<16x1xf32> to vector<16x16xf32>
    %26 = arith.subf %12, %25 : vector<16x16xf32>
    %27 = math.exp %26 : vector<16x16xf32>
    %cst_10 = arith.constant dense<0.000000e+00> : vector<16xf32>
    %28 = vector.multi_reduction <add>, %27, %cst_10 [1] : vector<16x16xf32> to vector<16xf32>
    %29 = vector.shape_cast %28 : vector<16xf32> to vector<16x1xf32>
    %30 = tpu.reciprocal %29 {approx = true} : vector<16x1xf32> -> vector<16x1xf32>
    %31 = vector.broadcast %30 : vector<16x1xf32> to vector<16x16xf32>
    %32 = arith.mulf %27, %31 : vector<16x16xf32>
    %33 = arith.addf %22, %32 : vector<16x16xf32>
    %34 = arith.truncf %33 : vector<16x16xf32> to vector<16x16xbf16>
    %cst_11 = arith.constant dense<0.000000e+00> : vector<16x32xf32>
    %35 = tpu.matmul %34, %5, %cst_11 {dimension_numbers = #tpu.dot_dimension_numbers<[1], [0], [0], [1], [0, 0, 1, 1], [], []>} : vector<16x16xbf16>, vector<16x32xbf16>, vector<16x32xf32> -> vector<16x32xf32>
    %36 = vector.shape_cast %32 : vector<16x16xf32> to vector<16x1x16xf32>
    %37 = arith.truncf %36 : vector<16x1x16xf32> to vector<16x1x16xbf16>
    "tpu.trace_start"() <{level = 10 : i32, message = "dxs,dsv->dxv"}> : () -> ()
    %cst_12 = arith.constant dense<0.000000e+00> : vector<16x1x32xf32>
    %38 = tpu.matmul %37, %7, %cst_12 {dimension_numbers = #tpu.dot_dimension_numbers<[2], [1], [1], [2], [0, 0, 0, 1, 1, 2], [0], [0]>} : vector<16x1x16xbf16>, vector<16x16x32xbf16>, vector<16x1x32xf32> -> vector<16x1x32xf32>
    "tpu.trace_stop"() : () -> ()
    %39 = vector.shape_cast %38 : vector<16x1x32xf32> to vector<16x32xf32>
    %40 = arith.addf %35, %39 : vector<16x32xf32>
    %41 = vector.extract_strided_slice %0 {offsets = [0, 32], sizes = [16, 32], strides = [1, 1]} : vector<16x128xbf16> to vector<16x32xbf16>
    %42 = vector.extract_strided_slice %1 {offsets = [0, 32], sizes = [16, 32], strides = [1, 1]} : vector<16x256xbf16> to vector<16x32xbf16>
    %43 = vector.extract_strided_slice %1 {offsets = [0, 160], sizes = [16, 32], strides = [1, 1]} : vector<16x256xbf16> to vector<16x32xbf16>
    %44 = vector.extract_strided_slice %2 {offsets = [0, 0, 32], sizes = [16, 16, 32], strides = [1, 1, 1]} : vector<16x16x256xbf16> to vector<16x16x32xbf16>
    %45 = vector.extract_strided_slice %2 {offsets = [0, 0, 160], sizes = [16, 16, 32], strides = [1, 1, 1]} : vector<16x16x256xbf16> to vector<16x16x32xbf16>
    %46 = tpu.transpose %42, [1, 0] : vector<16x32xbf16> -> vector<32x16xbf16>
    %cst_13 = arith.constant dense<0.000000e+00> : vector<16x16xf32>
    %47 = tpu.matmul %41, %46, %cst_13 {dimension_numbers = #tpu.dot_dimension_numbers<[1], [0], [0], [1], [0, 0, 1, 1], [], []>} : vector<16x32xbf16>, vector<32x16xbf16>, vector<16x16xf32> -> vector<16x16xf32>
    %48 = vector.shape_cast %41 : vector<16x32xbf16> to vector<16x1x32xbf16>
    "tpu.trace_start"() <{level = 10 : i32, message = "dxq,dsq->dxs"}> : () -> ()
    %cst_14 = arith.constant dense<0.000000e+00> : vector<16x1x16xf32>
    %49 = tpu.matmul %48, %44, %cst_14 {dimension_numbers = #tpu.dot_dimension_numbers<[2], [2], [1], [1], [0, 0, 0, 1, 1, 1], [0], [0]>} : vector<16x1x32xbf16>, vector<16x16x32xbf16>, vector<16x1x16xf32> -> vector<16x1x16xf32>
    "tpu.trace_stop"() : () -> ()
    %50 = vector.shape_cast %49 : vector<16x1x16xf32> to vector<16x16xf32>
    %cst_15 = arith.constant dense<0xFF800000> : vector<16xf32>
    %51 = vector.multi_reduction <maximumf>, %47, %cst_15 [1] : vector<16x16xf32> to vector<16xf32>
    %52 = vector.shape_cast %51 : vector<16xf32> to vector<16x1xf32>
    %53 = vector.broadcast %52 : vector<16x1xf32> to vector<16x16xf32>
    %54 = arith.subf %47, %53 : vector<16x16xf32>
    %55 = math.exp %54 : vector<16x16xf32>
    %cst_16 = arith.constant dense<0.000000e+00> : vector<16xf32>
    %56 = vector.multi_reduction <add>, %55, %cst_16 [1] : vector<16x16xf32> to vector<16xf32>
    %57 = vector.shape_cast %56 : vector<16xf32> to vector<16x1xf32>
    %58 = tpu.reciprocal %57 {approx = true} : vector<16x1xf32> -> vector<16x1xf32>
    %59 = vector.broadcast %58 : vector<16x1xf32> to vector<16x16xf32>
    %60 = arith.mulf %55, %59 : vector<16x16xf32>
    %cst_17 = arith.constant dense<0xFF800000> : vector<16xf32>
    %61 = vector.multi_reduction <maximumf>, %50, %cst_17 [1] : vector<16x16xf32> to vector<16xf32>
    %62 = vector.shape_cast %61 : vector<16xf32> to vector<16x1xf32>
    %63 = vector.broadcast %62 : vector<16x1xf32> to vector<16x16xf32>
    %64 = arith.subf %50, %63 : vector<16x16xf32>
    %65 = math.exp %64 : vector<16x16xf32>
    %cst_18 = arith.constant dense<0.000000e+00> : vector<16xf32>
    %66 = vector.multi_reduction <add>, %65, %cst_18 [1] : vector<16x16xf32> to vector<16xf32>
    %67 = vector.shape_cast %66 : vector<16xf32> to vector<16x1xf32>
    %68 = tpu.reciprocal %67 {approx = true} : vector<16x1xf32> -> vector<16x1xf32>
    %69 = vector.broadcast %68 : vector<16x1xf32> to vector<16x16xf32>
    %70 = arith.mulf %65, %69 : vector<16x16xf32>
    %71 = arith.addf %60, %70 : vector<16x16xf32>
    %72 = arith.truncf %71 : vector<16x16xf32> to vector<16x16xbf16>
    %cst_19 = arith.constant dense<0.000000e+00> : vector<16x32xf32>
    %73 = tpu.matmul %72, %43, %cst_19 {dimension_numbers = #tpu.dot_dimension_numbers<[1], [0], [0], [1], [0, 0, 1, 1], [], []>} : vector<16x16xbf16>, vector<16x32xbf16>, vector<16x32xf32> -> vector<16x32xf32>
    %74 = vector.shape_cast %70 : vector<16x16xf32> to vector<16x1x16xf32>
    %75 = arith.truncf %74 : vector<16x1x16xf32> to vector<16x1x16xbf16>
    "tpu.trace_start"() <{level = 10 : i32, message = "dxs,dsv->dxv"}> : () -> ()
    %cst_20 = arith.constant dense<0.000000e+00> : vector<16x1x32xf32>
    %76 = tpu.matmul %75, %45, %cst_20 {dimension_numbers = #tpu.dot_dimension_numbers<[2], [1], [1], [2], [0, 0, 0, 1, 1, 2], [0], [0]>} : vector<16x1x16xbf16>, vector<16x16x32xbf16>, vector<16x1x32xf32> -> vector<16x1x32xf32>
    "tpu.trace_stop"() : () -> ()
    %77 = vector.shape_cast %76 : vector<16x1x32xf32> to vector<16x32xf32>
    %78 = arith.addf %73, %77 : vector<16x32xf32>
    %79 = vector.extract_strided_slice %0 {offsets = [0, 64], sizes = [16, 32], strides = [1, 1]} : vector<16x128xbf16> to vector<16x32xbf16>
    %80 = vector.extract_strided_slice %1 {offsets = [0, 64], sizes = [16, 32], strides = [1, 1]} : vector<16x256xbf16> to vector<16x32xbf16>
    %81 = vector.extract_strided_slice %1 {offsets = [0, 192], sizes = [16, 32], strides = [1, 1]} : vector<16x256xbf16> to vector<16x32xbf16>
    %82 = vector.extract_strided_slice %2 {offsets = [0, 0, 64], sizes = [16, 16, 32], strides = [1, 1, 1]} : vector<16x16x256xbf16> to vector<16x16x32xbf16>
    %83 = vector.extract_strided_slice %2 {offsets = [0, 0, 192], sizes = [16, 16, 32], strides = [1, 1, 1]} : vector<16x16x256xbf16> to vector<16x16x32xbf16>
    %84 = tpu.transpose %80, [1, 0] : vector<16x32xbf16> -> vector<32x16xbf16>
    %cst_21 = arith.constant dense<0.000000e+00> : vector<16x16xf32>
    %85 = tpu.matmul %79, %84, %cst_21 {dimension_numbers = #tpu.dot_dimension_numbers<[1], [0], [0], [1], [0, 0, 1, 1], [], []>} : vector<16x32xbf16>, vector<32x16xbf16>, vector<16x16xf32> -> vector<16x16xf32>
    %86 = vector.shape_cast %79 : vector<16x32xbf16> to vector<16x1x32xbf16>
    "tpu.trace_start"() <{level = 10 : i32, message = "dxq,dsq->dxs"}> : () -> ()
    %cst_22 = arith.constant dense<0.000000e+00> : vector<16x1x16xf32>
    %87 = tpu.matmul %86, %82, %cst_22 {dimension_numbers = #tpu.dot_dimension_numbers<[2], [2], [1], [1], [0, 0, 0, 1, 1, 1], [0], [0]>} : vector<16x1x32xbf16>, vector<16x16x32xbf16>, vector<16x1x16xf32> -> vector<16x1x16xf32>
    "tpu.trace_stop"() : () -> ()
    %88 = vector.shape_cast %87 : vector<16x1x16xf32> to vector<16x16xf32>
    %cst_23 = arith.constant dense<0xFF800000> : vector<16xf32>
    %89 = vector.multi_reduction <maximumf>, %85, %cst_23 [1] : vector<16x16xf32> to vector<16xf32>
    %90 = vector.shape_cast %89 : vector<16xf32> to vector<16x1xf32>
    %91 = vector.broadcast %90 : vector<16x1xf32> to vector<16x16xf32>
    %92 = arith.subf %85, %91 : vector<16x16xf32>
    %93 = math.exp %92 : vector<16x16xf32>
    %cst_24 = arith.constant dense<0.000000e+00> : vector<16xf32>
    %94 = vector.multi_reduction <add>, %93, %cst_24 [1] : vector<16x16xf32> to vector<16xf32>
    %95 = vector.shape_cast %94 : vector<16xf32> to vector<16x1xf32>
    %96 = tpu.reciprocal %95 {approx = true} : vector<16x1xf32> -> vector<16x1xf32>
    %97 = vector.broadcast %96 : vector<16x1xf32> to vector<16x16xf32>
    %98 = arith.mulf %93, %97 : vector<16x16xf32>
    %cst_25 = arith.constant dense<0xFF800000> : vector<16xf32>
    %99 = vector.multi_reduction <maximumf>, %88, %cst_25 [1] : vector<16x16xf32> to vector<16xf32>
    %100 = vector.shape_cast %99 : vector<16xf32> to vector<16x1xf32>
    %101 = vector.broadcast %100 : vector<16x1xf32> to vector<16x16xf32>
    %102 = arith.subf %88, %101 : vector<16x16xf32>
    %103 = math.exp %102 : vector<16x16xf32>
    %cst_26 = arith.constant dense<0.000000e+00> : vector<16xf32>
    %104 = vector.multi_reduction <add>, %103, %cst_26 [1] : vector<16x16xf32> to vector<16xf32>
    %105 = vector.shape_cast %104 : vector<16xf32> to vector<16x1xf32>
    %106 = tpu.reciprocal %105 {approx = true} : vector<16x1xf32> -> vector<16x1xf32>
    %107 = vector.broadcast %106 : vector<16x1xf32> to vector<16x16xf32>
    %108 = arith.mulf %103, %107 : vector<16x16xf32>
    %109 = arith.addf %98, %108 : vector<16x16xf32>
    %110 = arith.truncf %109 : vector<16x16xf32> to vector<16x16xbf16>
    %cst_27 = arith.constant dense<0.000000e+00> : vector<16x32xf32>
    %111 = tpu.matmul %110, %81, %cst_27 {dimension_numbers = #tpu.dot_dimension_numbers<[1], [0], [0], [1], [0, 0, 1, 1], [], []>} : vector<16x16xbf16>, vector<16x32xbf16>, vector<16x32xf32> -> vector<16x32xf32>
    %112 = vector.shape_cast %108 : vector<16x16xf32> to vector<16x1x16xf32>
    %113 = arith.truncf %112 : vector<16x1x16xf32> to vector<16x1x16xbf16>
    "tpu.trace_start"() <{level = 10 : i32, message = "dxs,dsv->dxv"}> : () -> ()
    %cst_28 = arith.constant dense<0.000000e+00> : vector<16x1x32xf32>
    %114 = tpu.matmul %113, %83, %cst_28 {dimension_numbers = #tpu.dot_dimension_numbers<[2], [1], [1], [2], [0, 0, 0, 1, 1, 2], [0], [0]>} : vector<16x1x16xbf16>, vector<16x16x32xbf16>, vector<16x1x32xf32> -> vector<16x1x32xf32>
    "tpu.trace_stop"() : () -> ()
    %115 = vector.shape_cast %114 : vector<16x1x32xf32> to vector<16x32xf32>
    %116 = arith.addf %111, %115 : vector<16x32xf32>
    %117 = vector.extract_strided_slice %0 {offsets = [0, 96], sizes = [16, 32], strides = [1, 1]} : vector<16x128xbf16> to vector<16x32xbf16>
    %118 = vector.extract_strided_slice %1 {offsets = [0, 96], sizes = [16, 32], strides = [1, 1]} : vector<16x256xbf16> to vector<16x32xbf16>
    %119 = vector.extract_strided_slice %1 {offsets = [0, 224], sizes = [16, 32], strides = [1, 1]} : vector<16x256xbf16> to vector<16x32xbf16>
    %120 = vector.extract_strided_slice %2 {offsets = [0, 0, 96], sizes = [16, 16, 32], strides = [1, 1, 1]} : vector<16x16x256xbf16> to vector<16x16x32xbf16>
    %121 = vector.extract_strided_slice %2 {offsets = [0, 0, 224], sizes = [16, 16, 32], strides = [1, 1, 1]} : vector<16x16x256xbf16> to vector<16x16x32xbf16>
    %122 = tpu.transpose %118, [1, 0] : vector<16x32xbf16> -> vector<32x16xbf16>
    %cst_29 = arith.constant dense<0.000000e+00> : vector<16x16xf32>
    %123 = tpu.matmul %117, %122, %cst_29 {dimension_numbers = #tpu.dot_dimension_numbers<[1], [0], [0], [1], [0, 0, 1, 1], [], []>} : vector<16x32xbf16>, vector<32x16xbf16>, vector<16x16xf32> -> vector<16x16xf32>
    %124 = vector.shape_cast %117 : vector<16x32xbf16> to vector<16x1x32xbf16>
    "tpu.trace_start"() <{level = 10 : i32, message = "dxq,dsq->dxs"}> : () -> ()
    %cst_30 = arith.constant dense<0.000000e+00> : vector<16x1x16xf32>
    %125 = tpu.matmul %124, %120, %cst_30 {dimension_numbers = #tpu.dot_dimension_numbers<[2], [2], [1], [1], [0, 0, 0, 1, 1, 1], [0], [0]>} : vector<16x1x32xbf16>, vector<16x16x32xbf16>, vector<16x1x16xf32> -> vector<16x1x16xf32>
    "tpu.trace_stop"() : () -> ()
    %126 = vector.shape_cast %125 : vector<16x1x16xf32> to vector<16x16xf32>
    %cst_31 = arith.constant dense<0xFF800000> : vector<16xf32>
    %127 = vector.multi_reduction <maximumf>, %123, %cst_31 [1] : vector<16x16xf32> to vector<16xf32>
    %128 = vector.shape_cast %127 : vector<16xf32> to vector<16x1xf32>
    %129 = vector.broadcast %128 : vector<16x1xf32> to vector<16x16xf32>
    %130 = arith.subf %123, %129 : vector<16x16xf32>
    %131 = math.exp %130 : vector<16x16xf32>
    %cst_32 = arith.constant dense<0.000000e+00> : vector<16xf32>
    %132 = vector.multi_reduction <add>, %131, %cst_32 [1] : vector<16x16xf32> to vector<16xf32>
    %133 = vector.shape_cast %132 : vector<16xf32> to vector<16x1xf32>
    %134 = tpu.reciprocal %133 {approx = true} : vector<16x1xf32> -> vector<16x1xf32>
    %135 = vector.broadcast %134 : vector<16x1xf32> to vector<16x16xf32>
    %136 = arith.mulf %131, %135 : vector<16x16xf32>
    %cst_33 = arith.constant dense<0xFF800000> : vector<16xf32>
    %137 = vector.multi_reduction <maximumf>, %126, %cst_33 [1] : vector<16x16xf32> to vector<16xf32>
    %138 = vector.shape_cast %137 : vector<16xf32> to vector<16x1xf32>
    %139 = vector.broadcast %138 : vector<16x1xf32> to vector<16x16xf32>
    %140 = arith.subf %126, %139 : vector<16x16xf32>
    %141 = math.exp %140 : vector<16x16xf32>
    %cst_34 = arith.constant dense<0.000000e+00> : vector<16xf32>
    %142 = vector.multi_reduction <add>, %141, %cst_34 [1] : vector<16x16xf32> to vector<16xf32>
    %143 = vector.shape_cast %142 : vector<16xf32> to vector<16x1xf32>
    %144 = tpu.reciprocal %143 {approx = true} : vector<16x1xf32> -> vector<16x1xf32>
    %145 = vector.broadcast %144 : vector<16x1xf32> to vector<16x16xf32>
    %146 = arith.mulf %141, %145 : vector<16x16xf32>
    %147 = arith.addf %136, %146 : vector<16x16xf32>
    %148 = arith.truncf %147 : vector<16x16xf32> to vector<16x16xbf16>
    %cst_35 = arith.constant dense<0.000000e+00> : vector<16x32xf32>
    %149 = tpu.matmul %148, %119, %cst_35 {dimension_numbers = #tpu.dot_dimension_numbers<[1], [0], [0], [1], [0, 0, 1, 1], [], []>} : vector<16x16xbf16>, vector<16x32xbf16>, vector<16x32xf32> -> vector<16x32xf32>
    %150 = vector.shape_cast %146 : vector<16x16xf32> to vector<16x1x16xf32>
    %151 = arith.truncf %150 : vector<16x1x16xf32> to vector<16x1x16xbf16>
    "tpu.trace_start"() <{level = 10 : i32, message = "dxs,dsv->dxv"}> : () -> ()
    %cst_36 = arith.constant dense<0.000000e+00> : vector<16x1x32xf32>
    %152 = tpu.matmul %151, %121, %cst_36 {dimension_numbers = #tpu.dot_dimension_numbers<[2], [1], [1], [2], [0, 0, 0, 1, 1, 2], [0], [0]>} : vector<16x1x16xbf16>, vector<16x16x32xbf16>, vector<16x1x32xf32> -> vector<16x1x32xf32>
    "tpu.trace_stop"() : () -> ()
    %153 = vector.shape_cast %152 : vector<16x1x32xf32> to vector<16x32xf32>
    %154 = arith.addf %149, %153 : vector<16x32xf32>
    %155 = tpu.concatenate %40, %78, %116, %154 in 1 : vector<16x32xf32>, vector<16x32xf32>, vector<16x32xf32>, vector<16x32xf32> -> vector<16x128xf32>
    %c0_37 = arith.constant 0 : index
    %c0_38 = arith.constant 0 : index
    %156 = vector.load %arg4[%c0_37, %c0_38] : memref<16x128xf32, #tpu.memory_space<vmem>>, vector<16x128xf32>
    tpu.vector_store %arg4[%c0_37, %c0_38], %155 {strides = array<i32>} : memref<16x128xf32, #tpu.memory_space<vmem>>, vector<16x128xf32>,
    return
  }
  func.func @transform_0(%arg0: i32) -> (i32, i32) {
    %c0_i32 = arith.constant 0 : i32
    %c0_i32_0 = arith.constant 0 : i32
    return %arg0, %c0_i32 : i32, i32
  }
  func.func @transform_1(%arg0: i32) -> (i32, i32) {
    %c0_i32 = arith.constant 0 : i32
    %c0_i32_0 = arith.constant 0 : i32
    %c0_i32_1 = arith.constant 0 : i32
    return %c0_i32, %c0_i32_0 : i32, i32
  }
  func.func @transform_2(%arg0: i32) -> (i32, i32, i32) {
    %c0_i32 = arith.constant 0 : i32
    %c0_i32_0 = arith.constant 0 : i32
    %c0_i32_1 = arith.constant 0 : i32
    return %arg0, %c0_i32, %c0_i32_0 : i32, i32, i32
  }
  func.func @transform_3(%arg0: i32) -> (i32, i32) {
    %c0_i32 = arith.constant 0 : i32
    %c0_i32_0 = arith.constant 0 : i32
    return %arg0, %c0_i32 : i32, i32
  }
}

module attributes {stable_mosaic.version = 11 : i64} {
  func.func @_mix_kernel(%arg0: memref<16x128xf32, #tpu.memory_space<vmem>>, %arg1: memref<1x128xf32, #tpu.memory_space<vmem>>, %arg2: memref<1x128xf32, #tpu.memory_space<vmem>>, %arg3: memref<128x128xbf16, #tpu.memory_space<vmem>>, %arg4: memref<1x128xf32, #tpu.memory_space<vmem>>, %arg5: memref<1x1xf32, #tpu.memory_space<smem>>, %arg6: memref<16x128xf32, #tpu.memory_space<vmem>>, %arg7: memref<16x128xf32, #tpu.memory_space<vmem>>) attributes {dimension_semantics = [], scalar_prefetch = 0 : i64, scratch_operands = 0 : i64, tpu.core_type = #tpu.core_type<tc>} {
    %c0 = arith.constant 0 : index
    %c0_0 = arith.constant 0 : index
    %0 = vector.load %arg0[%c0, %c0_0] : memref<16x128xf32, #tpu.memory_space<vmem>>, vector<16x128xf32>
    %1 = vector.extract_strided_slice %0 {offsets = [0, 0], sizes = [16, 32], strides = [1, 1]} : vector<16x128xf32> to vector<16x32xf32>
    %2 = vector.shape_cast %1 : vector<16x32xf32> to vector<1x16x32xf32>
    %cst = arith.constant dense<0.000000e+00> : vector<1xf32>
    %3 = vector.multi_reduction <add>, %2, %cst [1, 2] : vector<1x16x32xf32> to vector<1xf32>
    %4 = vector.shape_cast %3 : vector<1xf32> to vector<1x1x1xf32>
    %5 = vector.extract %4[0, 0, 0] : f32 from vector<1x1x1xf32>
    %cst_1 = arith.constant 5.120000e+02 : f32
    %6 = arith.divf %5, %cst_1 : f32
    %7 = vector.broadcast %6 : f32 to vector<16x32xf32>
    %8 = arith.subf %1, %7 : vector<16x32xf32>
    %9 = arith.mulf %8, %8 : vector<16x32xf32>
    %10 = vector.shape_cast %9 : vector<16x32xf32> to vector<1x16x32xf32>
    %cst_2 = arith.constant dense<0.000000e+00> : vector<1xf32>
    %11 = vector.multi_reduction <add>, %10, %cst_2 [1, 2] : vector<1x16x32xf32> to vector<1xf32>
    %12 = vector.shape_cast %11 : vector<1xf32> to vector<1x1x1xf32>
    %13 = vector.extract %12[0, 0, 0] : f32 from vector<1x1x1xf32>
    %cst_3 = arith.constant 5.120000e+02 : f32
    %14 = arith.divf %13, %cst_3 : f32
    %cst_4 = arith.constant 9.99999974E-6 : f32
    %15 = arith.addf %14, %cst_4 : f32
    %16 = math.rsqrt %15 : f32
    %17 = vector.broadcast %16 : f32 to vector<16x32xf32>
    %18 = arith.mulf %8, %17 : vector<16x32xf32>
    %19 = vector.extract_strided_slice %0 {offsets = [0, 32], sizes = [16, 32], strides = [1, 1]} : vector<16x128xf32> to vector<16x32xf32>
    %20 = vector.shape_cast %19 : vector<16x32xf32> to vector<1x16x32xf32>
    %cst_5 = arith.constant dense<0.000000e+00> : vector<1xf32>
    %21 = vector.multi_reduction <add>, %20, %cst_5 [1, 2] : vector<1x16x32xf32> to vector<1xf32>
    %22 = vector.shape_cast %21 : vector<1xf32> to vector<1x1x1xf32>
    %23 = vector.extract %22[0, 0, 0] : f32 from vector<1x1x1xf32>
    %cst_6 = arith.constant 5.120000e+02 : f32
    %24 = arith.divf %23, %cst_6 : f32
    %25 = vector.broadcast %24 : f32 to vector<16x32xf32>
    %26 = arith.subf %19, %25 : vector<16x32xf32>
    %27 = arith.mulf %26, %26 : vector<16x32xf32>
    %28 = vector.shape_cast %27 : vector<16x32xf32> to vector<1x16x32xf32>
    %cst_7 = arith.constant dense<0.000000e+00> : vector<1xf32>
    %29 = vector.multi_reduction <add>, %28, %cst_7 [1, 2] : vector<1x16x32xf32> to vector<1xf32>
    %30 = vector.shape_cast %29 : vector<1xf32> to vector<1x1x1xf32>
    %31 = vector.extract %30[0, 0, 0] : f32 from vector<1x1x1xf32>
    %cst_8 = arith.constant 5.120000e+02 : f32
    %32 = arith.divf %31, %cst_8 : f32
    %cst_9 = arith.constant 9.99999974E-6 : f32
    %33 = arith.addf %32, %cst_9 : f32
    %34 = math.rsqrt %33 : f32
    %35 = vector.broadcast %34 : f32 to vector<16x32xf32>
    %36 = arith.mulf %26, %35 : vector<16x32xf32>
    %37 = vector.extract_strided_slice %0 {offsets = [0, 64], sizes = [16, 32], strides = [1, 1]} : vector<16x128xf32> to vector<16x32xf32>
    %38 = vector.shape_cast %37 : vector<16x32xf32> to vector<1x16x32xf32>
    %cst_10 = arith.constant dense<0.000000e+00> : vector<1xf32>
    %39 = vector.multi_reduction <add>, %38, %cst_10 [1, 2] : vector<1x16x32xf32> to vector<1xf32>
    %40 = vector.shape_cast %39 : vector<1xf32> to vector<1x1x1xf32>
    %41 = vector.extract %40[0, 0, 0] : f32 from vector<1x1x1xf32>
    %cst_11 = arith.constant 5.120000e+02 : f32
    %42 = arith.divf %41, %cst_11 : f32
    %43 = vector.broadcast %42 : f32 to vector<16x32xf32>
    %44 = arith.subf %37, %43 : vector<16x32xf32>
    %45 = arith.mulf %44, %44 : vector<16x32xf32>
    %46 = vector.shape_cast %45 : vector<16x32xf32> to vector<1x16x32xf32>
    %cst_12 = arith.constant dense<0.000000e+00> : vector<1xf32>
    %47 = vector.multi_reduction <add>, %46, %cst_12 [1, 2] : vector<1x16x32xf32> to vector<1xf32>
    %48 = vector.shape_cast %47 : vector<1xf32> to vector<1x1x1xf32>
    %49 = vector.extract %48[0, 0, 0] : f32 from vector<1x1x1xf32>
    %cst_13 = arith.constant 5.120000e+02 : f32
    %50 = arith.divf %49, %cst_13 : f32
    %cst_14 = arith.constant 9.99999974E-6 : f32
    %51 = arith.addf %50, %cst_14 : f32
    %52 = math.rsqrt %51 : f32
    %53 = vector.broadcast %52 : f32 to vector<16x32xf32>
    %54 = arith.mulf %44, %53 : vector<16x32xf32>
    %55 = vector.extract_strided_slice %0 {offsets = [0, 96], sizes = [16, 32], strides = [1, 1]} : vector<16x128xf32> to vector<16x32xf32>
    %56 = vector.shape_cast %55 : vector<16x32xf32> to vector<1x16x32xf32>
    %cst_15 = arith.constant dense<0.000000e+00> : vector<1xf32>
    %57 = vector.multi_reduction <add>, %56, %cst_15 [1, 2] : vector<1x16x32xf32> to vector<1xf32>
    %58 = vector.shape_cast %57 : vector<1xf32> to vector<1x1x1xf32>
    %59 = vector.extract %58[0, 0, 0] : f32 from vector<1x1x1xf32>
    %cst_16 = arith.constant 5.120000e+02 : f32
    %60 = arith.divf %59, %cst_16 : f32
    %61 = vector.broadcast %60 : f32 to vector<16x32xf32>
    %62 = arith.subf %55, %61 : vector<16x32xf32>
    %63 = arith.mulf %62, %62 : vector<16x32xf32>
    %64 = vector.shape_cast %63 : vector<16x32xf32> to vector<1x16x32xf32>
    %cst_17 = arith.constant dense<0.000000e+00> : vector<1xf32>
    %65 = vector.multi_reduction <add>, %64, %cst_17 [1, 2] : vector<1x16x32xf32> to vector<1xf32>
    %66 = vector.shape_cast %65 : vector<1xf32> to vector<1x1x1xf32>
    %67 = vector.extract %66[0, 0, 0] : f32 from vector<1x1x1xf32>
    %cst_18 = arith.constant 5.120000e+02 : f32
    %68 = arith.divf %67, %cst_18 : f32
    %cst_19 = arith.constant 9.99999974E-6 : f32
    %69 = arith.addf %68, %cst_19 : f32
    %70 = math.rsqrt %69 : f32
    %71 = vector.broadcast %70 : f32 to vector<16x32xf32>
    %72 = arith.mulf %62, %71 : vector<16x32xf32>
    %73 = tpu.concatenate %18, %36, %54, %72 in 1 : vector<16x32xf32>, vector<16x32xf32>, vector<16x32xf32>, vector<16x32xf32> -> vector<16x128xf32>
    %c0_20 = arith.constant 0 : index
    %c0_21 = arith.constant 0 : index
    %74 = vector.load %arg1[%c0_20, %c0_21] : memref<1x128xf32, #tpu.memory_space<vmem>>, vector<1x128xf32>
    %75 = vector.broadcast %74 : vector<1x128xf32> to vector<16x128xf32>
    %76 = arith.mulf %73, %75 : vector<16x128xf32>
    %c0_22 = arith.constant 0 : index
    %c0_23 = arith.constant 0 : index
    %77 = vector.load %arg2[%c0_22, %c0_23] : memref<1x128xf32, #tpu.memory_space<vmem>>, vector<1x128xf32>
    %78 = vector.broadcast %77 : vector<1x128xf32> to vector<16x128xf32>
    %79 = arith.addf %76, %78 : vector<16x128xf32>
    %80 = arith.truncf %79 : vector<16x128xf32> to vector<16x128xbf16>
    %c0_24 = arith.constant 0 : index
    %c0_25 = arith.constant 0 : index
    %81 = vector.load %arg3[%c0_24, %c0_25] : memref<128x128xbf16, #tpu.memory_space<vmem>>, vector<128x128xbf16>
    %cst_26 = arith.constant dense<0.000000e+00> : vector<16x128xf32>
    %82 = tpu.matmul %80, %81, %cst_26 {dimension_numbers = #tpu.dot_dimension_numbers<[1], [0], [0], [1], [0, 0, 1, 1], [], []>} : vector<16x128xbf16>, vector<128x128xbf16>, vector<16x128xf32> -> vector<16x128xf32>
    %c0_27 = arith.constant 0 : index
    %c0_28 = arith.constant 0 : index
    %83 = vector.load %arg4[%c0_27, %c0_28] : memref<1x128xf32, #tpu.memory_space<vmem>>, vector<1x128xf32>
    %84 = vector.broadcast %83 : vector<1x128xf32> to vector<16x128xf32>
    %85 = arith.addf %82, %84 : vector<16x128xf32>
    %cst_29 = arith.constant 0.000000e+00 : f32
    %86 = vector.broadcast %cst_29 : f32 to vector<16x128xf32>
    %87 = arith.maximumf %85, %86 : vector<16x128xf32>
    %c0_30 = arith.constant 0 : index
    %c0_31 = arith.constant 0 : index
    %88 = vector.load %arg6[%c0_30, %c0_31] : memref<16x128xf32, #tpu.memory_space<vmem>>, vector<16x128xf32>
    %c0_32 = arith.constant 0 : index
    %c0_33 = arith.constant 0 : index
    %89 = memref.load %arg5[%c0_32, %c0_33] : memref<1x1xf32, #tpu.memory_space<smem>>
    %90 = vector.broadcast %89 : f32 to vector<16x128xf32>
    %91 = arith.mulf %90, %87 : vector<16x128xf32>
    %92 = arith.addf %88, %91 : vector<16x128xf32>
    %c0_34 = arith.constant 0 : index
    %c0_35 = arith.constant 0 : index
    %93 = vector.load %arg7[%c0_34, %c0_35] : memref<16x128xf32, #tpu.memory_space<vmem>>, vector<16x128xf32>
    tpu.vector_store %arg7[%c0_34, %c0_35], %92 {strides = array<i32>} : memref<16x128xf32, #tpu.memory_space<vmem>>, vector<16x128xf32>,
    return
  }
}

module attributes {stable_mosaic.version = 11 : i64} {
  func.func @_pwff_kernel(%arg0: i32, %arg1: memref<128x128xf32, #tpu.memory_space<vmem>>, %arg2: memref<128x512xbf16, #tpu.memory_space<vmem>>, %arg3: memref<1x512xf32, #tpu.memory_space<vmem>>, %arg4: memref<256x128xbf16, #tpu.memory_space<vmem>>, %arg5: memref<1x128xf32, #tpu.memory_space<vmem>>, %arg6: memref<1x1xf32, #tpu.memory_space<smem>>, %arg7: memref<128x128xf32, #tpu.memory_space<vmem>>) attributes {dimension_semantics = [#tpu.dimension_semantics<parallel>], iteration_bounds = array<i64: 2>, scalar_prefetch = 0 : i64, scratch_operands = 0 : i64, tpu.core_type = #tpu.core_type<tc>, window_params = [{transform_indices = @transform_0, window_bounds = array<i64: 128, 128>}, {pipeline_mode = #tpu.pipeline_mode<synchronous>, transform_indices = @transform_1, window_bounds = array<i64: 128, 512>}, {pipeline_mode = #tpu.pipeline_mode<synchronous>, transform_indices = @transform_2, window_bounds = array<i64: 1, 512>}, {pipeline_mode = #tpu.pipeline_mode<synchronous>, transform_indices = @transform_3, window_bounds = array<i64: 256, 128>}, {pipeline_mode = #tpu.pipeline_mode<synchronous>, transform_indices = @transform_4, window_bounds = array<i64: 1, 128>}, {transform_indices = @transform_5, window_bounds = array<i64: 1, 1>}, {transform_indices = @transform_6, window_bounds = array<i64: 128, 128>}]} {
    %c0 = arith.constant 0 : index
    %c0_0 = arith.constant 0 : index
    %0 = vector.load %arg1[%c0, %c0_0] : memref<128x128xf32, #tpu.memory_space<vmem>>, vector<128x128xf32>
    %1 = arith.truncf %0 : vector<128x128xf32> to vector<128x128xbf16>
    %c0_1 = arith.constant 0 : index
    %c0_2 = arith.constant 0 : index
    %2 = vector.load %arg2[%c0_1, %c0_2] : memref<128x512xbf16, #tpu.memory_space<vmem>>, vector<128x512xbf16>
    %cst = arith.constant dense<0.000000e+00> : vector<128x512xf32>
    %3 = tpu.matmul %1, %2, %cst {dimension_numbers = #tpu.dot_dimension_numbers<[1], [0], [0], [1], [0, 0, 1, 1], [], []>} : vector<128x128xbf16>, vector<128x512xbf16>, vector<128x512xf32> -> vector<128x512xf32>
    %c0_3 = arith.constant 0 : index
    %c0_4 = arith.constant 0 : index
    %4 = vector.load %arg3[%c0_3, %c0_4] : memref<1x512xf32, #tpu.memory_space<vmem>>, vector<1x512xf32>
    %5 = vector.broadcast %4 : vector<1x512xf32> to vector<128x512xf32>
    %6 = arith.addf %3, %5 : vector<128x512xf32>
    %7 = vector.extract_strided_slice %6 {offsets = [0, 0], sizes = [128, 256], strides = [1, 1]} : vector<128x512xf32> to vector<128x256xf32>
    %8 = vector.extract_strided_slice %6 {offsets = [0, 256], sizes = [128, 256], strides = [1, 1]} : vector<128x512xf32> to vector<128x256xf32>
    %cst_5 = arith.constant 0.000000e+00 : f32
    %9 = vector.broadcast %cst_5 : f32 to vector<128x256xf32>
    %10 = arith.maximumf %8, %9 : vector<128x256xf32>
    %11 = arith.mulf %7, %10 : vector<128x256xf32>
    %12 = arith.truncf %11 : vector<128x256xf32> to vector<128x256xbf16>
    %c0_6 = arith.constant 0 : index
    %c0_7 = arith.constant 0 : index
    %13 = vector.load %arg4[%c0_6, %c0_7] : memref<256x128xbf16, #tpu.memory_space<vmem>>, vector<256x128xbf16>
    %cst_8 = arith.constant dense<0.000000e+00> : vector<128x128xf32>
    %14 = tpu.matmul %12, %13, %cst_8 {dimension_numbers = #tpu.dot_dimension_numbers<[1], [0], [0], [1], [0, 0, 1, 1], [], []>} : vector<128x256xbf16>, vector<256x128xbf16>, vector<128x128xf32> -> vector<128x128xf32>
    %c0_9 = arith.constant 0 : index
    %c0_10 = arith.constant 0 : index
    %15 = vector.load %arg5[%c0_9, %c0_10] : memref<1x128xf32, #tpu.memory_space<vmem>>, vector<1x128xf32>
    %16 = vector.broadcast %15 : vector<1x128xf32> to vector<128x128xf32>
    %17 = arith.addf %14, %16 : vector<128x128xf32>
    %c0_11 = arith.constant 0 : index
    %c0_12 = arith.constant 0 : index
    %18 = memref.load %arg6[%c0_11, %c0_12] : memref<1x1xf32, #tpu.memory_space<smem>>
    %19 = vector.broadcast %18 : f32 to vector<128x128xf32>
    %20 = arith.mulf %19, %17 : vector<128x128xf32>
    %21 = arith.addf %0, %20 : vector<128x128xf32>
    %c0_13 = arith.constant 0 : index
    %c0_14 = arith.constant 0 : index
    %22 = vector.load %arg7[%c0_13, %c0_14] : memref<128x128xf32, #tpu.memory_space<vmem>>, vector<128x128xf32>
    tpu.vector_store %arg7[%c0_13, %c0_14], %21 {strides = array<i32>} : memref<128x128xf32, #tpu.memory_space<vmem>>, vector<128x128xf32>,
    return
  }
  func.func @transform_0(%arg0: i32) -> (i32, i32) {
    %c0_i32 = arith.constant 0 : i32
    %c0_i32_0 = arith.constant 0 : i32
    return %arg0, %c0_i32 : i32, i32
  }
  func.func @transform_1(%arg0: i32) -> (i32, i32) {
    %c0_i32 = arith.constant 0 : i32
    %c0_i32_0 = arith.constant 0 : i32
    %c0_i32_1 = arith.constant 0 : i32
    return %c0_i32, %c0_i32_0 : i32, i32
  }
  func.func @transform_2(%arg0: i32) -> (i32, i32) {
    %c0_i32 = arith.constant 0 : i32
    %c0_i32_0 = arith.constant 0 : i32
    %c0_i32_1 = arith.constant 0 : i32
    return %c0_i32, %c0_i32_0 : i32, i32
  }
  func.func @transform_3(%arg0: i32) -> (i32, i32) {
    %c0_i32 = arith.constant 0 : i32
    %c0_i32_0 = arith.constant 0 : i32
    %c0_i32_1 = arith.constant 0 : i32
    return %c0_i32, %c0_i32_0 : i32, i32
  }
  func.func @transform_4(%arg0: i32) -> (i32, i32) {
    %c0_i32 = arith.constant 0 : i32
    %c0_i32_0 = arith.constant 0 : i32
    %c0_i32_1 = arith.constant 0 : i32
    return %c0_i32, %c0_i32_0 : i32, i32
  }
  func.func @transform_5(%arg0: i32) -> (i32, i32) {
    %c0_i32 = arith.constant 0 : i32
    %c0_i32_0 = arith.constant 0 : i32
    %c0_i32_1 = arith.constant 0 : i32
    return %c0_i32, %c0_i32_0 : i32, i32
  }
  func.func @transform_6(%arg0: i32) -> (i32, i32) {
    %c0_i32 = arith.constant 0 : i32
    %c0_i32_0 = arith.constant 0 : i32
    return %arg0, %c0_i32 : i32, i32
  }
}

module attributes {stable_mosaic.version = 11 : i64} {
  func.func @_pwff_kernel(%arg0: i32, %arg1: memref<16x128xf32, #tpu.memory_space<vmem>>, %arg2: memref<128x512xbf16, #tpu.memory_space<vmem>>, %arg3: memref<1x512xf32, #tpu.memory_space<vmem>>, %arg4: memref<256x128xbf16, #tpu.memory_space<vmem>>, %arg5: memref<1x128xf32, #tpu.memory_space<vmem>>, %arg6: memref<1x1xf32, #tpu.memory_space<smem>>, %arg7: memref<16x128xf32, #tpu.memory_space<vmem>>) attributes {dimension_semantics = [#tpu.dimension_semantics<parallel>], iteration_bounds = array<i64: 1>, scalar_prefetch = 0 : i64, scratch_operands = 0 : i64, tpu.core_type = #tpu.core_type<tc>, window_params = [{transform_indices = @transform_0, window_bounds = array<i64: 16, 128>}, {pipeline_mode = #tpu.pipeline_mode<synchronous>, transform_indices = @transform_1, window_bounds = array<i64: 128, 512>}, {pipeline_mode = #tpu.pipeline_mode<synchronous>, transform_indices = @transform_2, window_bounds = array<i64: 1, 512>}, {pipeline_mode = #tpu.pipeline_mode<synchronous>, transform_indices = @transform_3, window_bounds = array<i64: 256, 128>}, {pipeline_mode = #tpu.pipeline_mode<synchronous>, transform_indices = @transform_4, window_bounds = array<i64: 1, 128>}, {transform_indices = @transform_5, window_bounds = array<i64: 1, 1>}, {transform_indices = @transform_6, window_bounds = array<i64: 16, 128>}]} {
    %c0 = arith.constant 0 : index
    %c0_0 = arith.constant 0 : index
    %0 = vector.load %arg1[%c0, %c0_0] : memref<16x128xf32, #tpu.memory_space<vmem>>, vector<16x128xf32>
    %1 = arith.truncf %0 : vector<16x128xf32> to vector<16x128xbf16>
    %c0_1 = arith.constant 0 : index
    %c0_2 = arith.constant 0 : index
    %2 = vector.load %arg2[%c0_1, %c0_2] : memref<128x512xbf16, #tpu.memory_space<vmem>>, vector<128x512xbf16>
    %cst = arith.constant dense<0.000000e+00> : vector<16x512xf32>
    %3 = tpu.matmul %1, %2, %cst {dimension_numbers = #tpu.dot_dimension_numbers<[1], [0], [0], [1], [0, 0, 1, 1], [], []>} : vector<16x128xbf16>, vector<128x512xbf16>, vector<16x512xf32> -> vector<16x512xf32>
    %c0_3 = arith.constant 0 : index
    %c0_4 = arith.constant 0 : index
    %4 = vector.load %arg3[%c0_3, %c0_4] : memref<1x512xf32, #tpu.memory_space<vmem>>, vector<1x512xf32>
    %5 = vector.broadcast %4 : vector<1x512xf32> to vector<16x512xf32>
    %6 = arith.addf %3, %5 : vector<16x512xf32>
    %7 = vector.extract_strided_slice %6 {offsets = [0, 0], sizes = [16, 256], strides = [1, 1]} : vector<16x512xf32> to vector<16x256xf32>
    %8 = vector.extract_strided_slice %6 {offsets = [0, 256], sizes = [16, 256], strides = [1, 1]} : vector<16x512xf32> to vector<16x256xf32>
    %cst_5 = arith.constant 0.000000e+00 : f32
    %9 = vector.broadcast %cst_5 : f32 to vector<16x256xf32>
    %10 = arith.maximumf %8, %9 : vector<16x256xf32>
    %11 = arith.mulf %7, %10 : vector<16x256xf32>
    %12 = arith.truncf %11 : vector<16x256xf32> to vector<16x256xbf16>
    %c0_6 = arith.constant 0 : index
    %c0_7 = arith.constant 0 : index
    %13 = vector.load %arg4[%c0_6, %c0_7] : memref<256x128xbf16, #tpu.memory_space<vmem>>, vector<256x128xbf16>
    %cst_8 = arith.constant dense<0.000000e+00> : vector<16x128xf32>
    %14 = tpu.matmul %12, %13, %cst_8 {dimension_numbers = #tpu.dot_dimension_numbers<[1], [0], [0], [1], [0, 0, 1, 1], [], []>} : vector<16x256xbf16>, vector<256x128xbf16>, vector<16x128xf32> -> vector<16x128xf32>
    %c0_9 = arith.constant 0 : index
    %c0_10 = arith.constant 0 : index
    %15 = vector.load %arg5[%c0_9, %c0_10] : memref<1x128xf32, #tpu.memory_space<vmem>>, vector<1x128xf32>
    %16 = vector.broadcast %15 : vector<1x128xf32> to vector<16x128xf32>
    %17 = arith.addf %14, %16 : vector<16x128xf32>
    %c0_11 = arith.constant 0 : index
    %c0_12 = arith.constant 0 : index
    %18 = memref.load %arg6[%c0_11, %c0_12] : memref<1x1xf32, #tpu.memory_space<smem>>
    %19 = vector.broadcast %18 : f32 to vector<16x128xf32>
    %20 = arith.mulf %19, %17 : vector<16x128xf32>
    %21 = arith.addf %0, %20 : vector<16x128xf32>
    %c0_13 = arith.constant 0 : index
    %c0_14 = arith.constant 0 : index
    %22 = vector.load %arg7[%c0_13, %c0_14] : memref<16x128xf32, #tpu.memory_space<vmem>>, vector<16x128xf32>
    tpu.vector_store %arg7[%c0_13, %c0_14], %21 {strides = array<i32>} : memref<16x128xf32, #tpu.memory_space<vmem>>, vector<16x128xf32>,
    return
  }
  func.func @transform_0(%arg0: i32) -> (i32, i32) {
    %c0_i32 = arith.constant 0 : i32
    %c0_i32_0 = arith.constant 0 : i32
    return %arg0, %c0_i32 : i32, i32
  }
  func.func @transform_1(%arg0: i32) -> (i32, i32) {
    %c0_i32 = arith.constant 0 : i32
    %c0_i32_0 = arith.constant 0 : i32
    %c0_i32_1 = arith.constant 0 : i32
    return %c0_i32, %c0_i32_0 : i32, i32
  }
  func.func @transform_2(%arg0: i32) -> (i32, i32) {
    %c0_i32 = arith.constant 0 : i32
    %c0_i32_0 = arith.constant 0 : i32
    %c0_i32_1 = arith.constant 0 : i32
    return %c0_i32, %c0_i32_0 : i32, i32
  }
  func.func @transform_3(%arg0: i32) -> (i32, i32) {
    %c0_i32 = arith.constant 0 : i32
    %c0_i32_0 = arith.constant 0 : i32
    %c0_i32_1 = arith.constant 0 : i32
    return %c0_i32, %c0_i32_0 : i32, i32
  }
  func.func @transform_4(%arg0: i32) -> (i32, i32) {
    %c0_i32 = arith.constant 0 : i32
    %c0_i32_0 = arith.constant 0 : i32
    %c0_i32_1 = arith.constant 0 : i32
    return %c0_i32, %c0_i32_0 : i32, i32
  }
  func.func @transform_5(%arg0: i32) -> (i32, i32) {
    %c0_i32 = arith.constant 0 : i32
    %c0_i32_0 = arith.constant 0 : i32
    %c0_i32_1 = arith.constant 0 : i32
    return %c0_i32, %c0_i32_0 : i32, i32
  }
  func.func @transform_6(%arg0: i32) -> (i32, i32) {
    %c0_i32 = arith.constant 0 : i32
    %c0_i32_0 = arith.constant 0 : i32
    return %arg0, %c0_i32 : i32, i32
  }
}

</mosaic_0001>

<bundles_post_ra>
// kernel: graph_net_block.6
= control target key start
LH: loop header
LB: loop body
LE: loop exit
PB: predicated region body
PF: predicated region fallthrough
CT: control target
= control target key end

     0   :  { %16 = vsyncpa [#allocation4], 0  ;;  %s1097_s30 = smov [#allocation3]   ;;  %s1407_s0 = inlined_call_operand.vmem [shape: f32[16,128], index: 0, kind: input, shape index: {}, may-alias: {0,8}]   ;;  %s1408_s1 = inlined_call_operand.vmem [shape: bf16[128,512], index: 1, kind: input, shape index: {}]   ;;  %s1409_s2 = inlined_call_operand.vmem [shape: f32[1,512], index: 2, kind: input, shape index: {}]   ;;  %s1410_s3 = inlined_call_operand.hbm [shape: bf16[256,128], index: 3, kind: input, shape index: {}]   ;;  %s1411_s4 = inlined_call_operand.vmem [shape: f32[1,128], index: 4, kind: input, shape index: {}]   ;;  %s1412_s5 = inlined_call_operand.<no memory space> [shape: f32[1,1], index: 5, kind: input, shape index: {}]   ;;  %s1413_s6 = inlined_call_operand.vmem [shape: bf16[128,384], index: 6, kind: input, shape index: {}]   ;;  %s1414_s7 = inlined_call_operand.vmem [shape: f32[1,384], index: 7, kind: input, shape index: {}]   ;;  %s1415_s8 = inlined_call_operand.vmem [shape: f32[16,128], index: 8, kind: output, shape index: {0}, may-alias: {0,8}]   ;;  %s1416_s9 = inlined_call_operand.vmem [shape: bf16[16,384], index: 9, kind: output, shape index: {1}]  }
   0x1   :  { %s28_s10 = sshll.u32 %s1097_s30, 4  ;;  %s1073_s13 = scalar_lea.hbm %s1410_s3, 2048  ;;  %s29_s10 = int_to_ptr.vmem [resolvable:$true] %s28_s10 }
   0x2   :  { %p1074_p0 = scmp.ne.s32.totalorder %s1410_s3, %s1073_s13  ;;  %p1077_p1 = scmp.lt.u32.totalorder %s1073_s13, %s1410_s3 }
   0x4   :  { %p1079_p2 = pnand %p1077_p1, %p1074_p0 }
   0x6   :  { %1082 = shalt.err (!%p1079_p2)
}
   0x7   :  { %s1083_s18 = scalar_lea.vmem %s29_s10, 2048  ;;  %p1088_p4 = scmp.lt.s32.totalorder %s29_s10, %s29_s10 }
   0x8   :  { %p1084_p3 = scmp.ne.s32.totalorder %s29_s10, %s1083_s18  ;;  %p1089_p5 = scmp.lt.s32.totalorder %s1083_s18, %s1083_s18 }
   0xa   :  { %p1090_p6 = por %p1089_p5, %p1088_p4 }
   0xc   :  { %p1091_p7 = pnand %p1090_p6, %p1084_p3 }
   0xe   :  { %1094 = shalt.err (!%p1091_p7)
}
   0xf   :  { %s1098_s19 = smov 64   ;;  %s1099_s20 = smov 4  }
  0x10   :  { %34 = dma.hbm_to_vmem [thread:$0]  %s1410_s3, 2048, %s29_s10, [#allocation4], %s1098_s19, %s1098_s19, %s1099_s20  }
  0x11   :  { %1095 = dma.done.wait [#allocation4], 2048  }
  0x12   :  { %1096 = vsyncadd [#allocation4], 4294965248  ;;  %v1100_v0 = vmov 0   ;;  %v977_v1 = vld [vmem:[%s1408_s1 + $0x4] ss:$16 sps:$4 sm:$0xff]   ;;  %v1271_v34 = vld [vmem:[%s1407_s0 + $0x8] sm:$0xff]  ;;  %v84_v63 = vlaneseq }
  0x13   :  { %296 = vmatprep.mubr.bf16.mxu0 %v1100_v0  ;;  %339 = vmatprep.mubr.bf16.mxu1 %v1100_v0  ;;  %v979_v2 = vld [vmem:[%s1408_s1 + $0xc] ss:$16 sps:$4 sm:$0xff]   ;;  %v981_v3 = vld [vmem:[%s1408_s1] ss:$16 sps:$4 sm:$0xff]   ;;  %v982_v4 = vld [vmem:[%s1408_s1 + $0x8] ss:$16 sps:$4 sm:$0xff]  }
  0x14   :  { %264 = vmatprep.subr.bf16.mxu0 %v977_v1  ;;  %307 = vmatprep.subr.bf16.mxu1 %v979_v2  ;;  %v983_v5 = vld [vmem:[%s1408_s1 + $0x24] ss:$16 sps:$4 sm:$0xff]   ;;  %v985_v6 = vld [vmem:[%s1408_s1 + $0x2c] ss:$16 sps:$4 sm:$0xff]   ;;  %v987_v7 = vld [vmem:[%s1408_s1 + $0x20] ss:$16 sps:$4 sm:$0xff]  }
  0x15   :  { %265 = vmatpush1.bf16.msra.mxu0 %v981_v3  ;;  %308 = vmatpush1.bf16.msra.mxu1 %v982_v4  ;;  %v988_v8 = vld [vmem:[%s1408_s1 + $0x28] ss:$16 sps:$4 sm:$0xff]   ;;  %v989_v9 = vld [vmem:[%s1408_s1 + $0x44] ss:$16 sps:$4 sm:$0xff]   ;;  %v991_v10 = vld [vmem:[%s1408_s1 + $0x4c] ss:$16 sps:$4 sm:$0xff]  }
  0x16   :  { %266 = vmatprep.subr.bf16.mxu0 %v983_v5  ;;  %309 = vmatprep.subr.bf16.mxu1 %v985_v6  ;;  %v993_v11 = vld [vmem:[%s1408_s1 + $0x40] ss:$16 sps:$4 sm:$0xff]   ;;  %v994_v12 = vld [vmem:[%s1408_s1 + $0x48] ss:$16 sps:$4 sm:$0xff]   ;;  %v995_v13 = vld [vmem:[%s1408_s1 + $0x64] ss:$16 sps:$4 sm:$0xff]  }
  0x17   :  { %v997_v14 = vld [vmem:[%s1408_s1 + $0x6c] ss:$16 sps:$4 sm:$0xff]   ;;  %v999_v15 = vld [vmem:[%s1408_s1 + $0x60] ss:$16 sps:$4 sm:$0xff]   ;;  %v1000_v16 = vld [vmem:[%s1408_s1 + $0x68] ss:$16 sps:$4 sm:$0xff]  }
  0x18   :  { %v1001_v17 = vld [vmem:[%s1408_s1 + $0x84] ss:$16 sps:$4 sm:$0xff]   ;;  %v1003_v18 = vld [vmem:[%s1408_s1 + $0x8c] ss:$16 sps:$4 sm:$0xff]   ;;  %v1005_v19 = vld [vmem:[%s1408_s1 + $0x80] ss:$16 sps:$4 sm:$0xff]  }
  0x19   :  { %267 = vmatpush1.bf16.msra.mxu0 %v987_v7  ;;  %310 = vmatpush1.bf16.msra.mxu1 %v988_v8  ;;  %v1006_v20 = vld [vmem:[%s1408_s1 + $0x88] ss:$16 sps:$4 sm:$0xff]   ;;  %v1007_v21 = vld [vmem:[%s1408_s1 + $0xa4] ss:$16 sps:$4 sm:$0xff]   ;;  %v1009_v22 = vld [vmem:[%s1408_s1 + $0xac] ss:$16 sps:$4 sm:$0xff]  }
  0x1a   :  { %268 = vmatprep.subr.bf16.mxu0 %v989_v9  ;;  %311 = vmatprep.subr.bf16.mxu1 %v991_v10  ;;  %v1011_v23 = vld [vmem:[%s1408_s1 + $0xa0] ss:$16 sps:$4 sm:$0xff]   ;;  %v1012_v24 = vld [vmem:[%s1408_s1 + $0xa8] ss:$16 sps:$4 sm:$0xff]   ;;  %v1013_v25 = vld [vmem:[%s1408_s1 + $0xc4] ss:$16 sps:$4 sm:$0xff]  }
  0x1b   :  { %v1015_v26 = vld [vmem:[%s1408_s1 + $0xcc] ss:$16 sps:$4 sm:$0xff]   ;;  %v1017_v27 = vld [vmem:[%s1408_s1 + $0xc0] ss:$16 sps:$4 sm:$0xff]   ;;  %v1018_v28 = vld [vmem:[%s1408_s1 + $0xc8] ss:$16 sps:$4 sm:$0xff]  }
  0x1c   :  { %v1019_v29 = vld [vmem:[%s1408_s1 + $0xe4] ss:$16 sps:$4 sm:$0xff]   ;;  %v1021_v30 = vld [vmem:[%s1408_s1 + $0xec] ss:$16 sps:$4 sm:$0xff]   ;;  %v1023_v31 = vld [vmem:[%s1408_s1 + $0xe0] ss:$16 sps:$4 sm:$0xff]  }
  0x1d   :  { %269 = vmatpush1.bf16.msra.mxu0 %v993_v11  ;;  %312 = vmatpush1.bf16.msra.mxu1 %v994_v12  ;;  %v1024_v32 = vld [vmem:[%s1408_s1 + $0xe8] ss:$16 sps:$4 sm:$0xff]   ;;  %v1266_v33 = vld [vmem:[%s1407_s0] sm:$0xff]  ;;  %v1029_v40 = vld [vmem:[#allocation3 + $0x50] sm:$0xff]   ;;  %v1101_v54 = vmov 0.0   ;;  %vm1102_vm0 = vmmov 0  }
  0x1e   :  { %270 = vmatprep.subr.bf16.mxu0 %v995_v13  ;;  %313 = vmatprep.subr.bf16.mxu1 %v997_v14  ;;  %v1025_v35 = vld [vmem:[#allocation3 + $0x40] sm:$0xff]   ;;  %v49_v36 = vpack.c.bf16 %v1271_v34, %v1266_v33  ;;  %v1027_v38 = vld [vmem:[#allocation3 + $0x48] sm:$0xff]   ;;  %v1030_v41 = vld [vmem:[#allocation3 + $0x10] sm:$0xff]  }
  0x1f   :  { %v1026_v37 = vld [vmem:[#allocation3] sm:$0xff]   ;;  %v1028_v39 = vld [vmem:[#allocation3 + $0x8] sm:$0xff]   ;;  %v1031_v42 = vld [vmem:[#allocation3 + $0x58] sm:$0xff]  }
  0x20   :  { %v1032_v43 = vld [vmem:[#allocation3 + $0x18] sm:$0xff]   ;;  %v1033_v44 = vld [vmem:[#allocation3 + $0x60] sm:$0xff]   ;;  %v1035_v46 = vld [vmem:[#allocation3 + $0x68] sm:$0xff]  }
  0x21   :  { %271 = vmatpush1.bf16.msra.mxu0 %v999_v15  ;;  %314 = vmatpush1.bf16.msra.mxu1 %v1000_v16  ;;  %v1034_v45 = vld [vmem:[#allocation3 + $0x20] sm:$0xff]   ;;  %v1036_v47 = vld [vmem:[#allocation3 + $0x28] sm:$0xff]   ;;  %v1037_v48 = vld [vmem:[#allocation3 + $0x70] sm:$0xff]  }
  0x22   :  { %272 = vmatprep.subr.bf16.mxu0 %v1001_v17  ;;  %315 = vmatprep.subr.bf16.mxu1 %v1003_v18  ;;  %v1038_v49 = vld [vmem:[#allocation3 + $0x30] sm:$0xff]   ;;  %v1039_v50 = vld [vmem:[#allocation3 + $0x78] sm:$0xff]   ;;  %v1041_v52 = vld [vmem:[%s1413_s6] ss:$12 sps:$4 sm:$0xff]  }
  0x23   :  { %v1040_v51 = vld [vmem:[#allocation3 + $0x38] sm:$0xff]   ;;  %v1043_v53 = vld [vmem:[%s1413_s6 + $0x4] ss:$12 sps:$4 sm:$0xff]   ;;  %v1051_v57 = vld [vmem:[%s1413_s6 + $0x34] ss:$12 sps:$4 sm:$0xff]  }
  0x24   :  { %v1047_v55 = vld [vmem:[%s1413_s6 + $0x1c] ss:$12 sps:$4 sm:$0xff]   ;;  %v1045_v56 = vld [vmem:[%s1413_s6 + $0x18] ss:$12 sps:$4 sm:$0xff]   ;;  %v1057_v62 = vld [vmem:[%s1413_s6 + $0x60] ss:$12 sps:$4 sm:$0xff]  }
  0x25   :  { %273 = vmatpush1.bf16.msra.mxu0 %v1005_v19  ;;  %316 = vmatpush1.bf16.msra.mxu1 %v1006_v20  ;;  %v1049_v58 = vld [vmem:[%s1413_s6 + $0x30] ss:$12 sps:$4 sm:$0xff]   ;;  %v1055_v59 = vld [vmem:[%s1413_s6 + $0x4c] ss:$12 sps:$4 sm:$0xff]   ;;  %v1053_v60 = vld [vmem:[%s1413_s6 + $0x48] ss:$12 sps:$4 sm:$0xff]  }
  0x26   :  { %274 = vmatprep.subr.bf16.mxu0 %v1007_v21  ;;  %317 = vmatprep.subr.bf16.mxu1 %v1009_v22  ;;  %v1059_v61 = vld [vmem:[%s1413_s6 + $0x64] ss:$12 sps:$4 sm:$0xff]   ;;  %v82_v3 = vld [vmem:[%s1409_s2] sm:$0xf] }
  0x29   :  { %275 = vmatpush1.bf16.msra.mxu0 %v1011_v23  ;;  %318 = vmatpush1.bf16.msra.mxu1 %v1012_v24 }
  0x2a   :  { %276 = vmatprep.subr.bf16.mxu0 %v1013_v25  ;;  %319 = vmatprep.subr.bf16.mxu1 %v1015_v26 }
  0x2d   :  { %277 = vmatpush1.bf16.msra.mxu0 %v1017_v27  ;;  %320 = vmatpush1.bf16.msra.mxu1 %v1018_v28 }
  0x2e   :  { %278 = vmatprep.subr.bf16.mxu0 %v1019_v29  ;;  %321 = vmatprep.subr.bf16.mxu1 %v1021_v30 }
  0x31   :  { %279 = vmatpush1.bf16.msra.mxu0 %v1023_v31  ;;  %322 = vmatpush1.bf16.msra.mxu1 %v1024_v32 }
  0x32   :  { %920 = vmatprep.subr.bf16.mxu0 %v1025_v35  ;;  %722 = vmatprep.subr.bf16.mxu1 %v1043_v53  ;;  %v871_v53 = vld [vmem:[%s1411_s4] ss:$0 sm:$0xff] }
  0x34   :  { %297 = vmatmul.mubr.bf16.vlgmr.msra.gmra.mrb[0].mxu0 %v49_v36  ;;  %340 = vmatmul.mubr.bf16.vlgmr.msra.gmra.mrb[0].mxu1 %v49_v36 }
  0x35   :  { %921 = vmatpush3.bf16.msra.mxu0 %v1026_v37  ;;  %754 = vmatprep.mubr.bf16.mxu1 %v1100_v0  ;;  %v1307_v0 = vshrl.u32 %v84_v63, 7 }
  0x36   :  { %922 = vmatprep.subr.bf16.mxu0 %v1027_v38  ;;  %723 = vmatpush1.bf16.msra.mxu1 %v1041_v52  ;;  %v1044_v38 = vld [vmem:[%s1413_s6 + $0x8] ss:$12 sps:$4 sm:$0xff]  }
  0x37   :  { %724 = vmatprep.subr.bf16.mxu1 %v1047_v55  ;;  %v86_v1 = vsub.s32 0, %v1307_v0  ;;  %v94_v2 = vsub.s32 2, %v1307_v0  ;;  %v90_v4 = vsub.s32 1, %v1307_v0  ;;  %v98_v5 = vsub.s32 3, %v1307_v0 }
  0x39   :  { %923 = vmatpush3.bf16.msra.mxu0 %v1028_v39  ;;  %v87_v6 = vrot.slane %v82_v3, %v86_v1  ;;  %v95_v7 = vrot.slane %v82_v3, %v94_v2  ;;  %v91_v8 = vrot.slane %v82_v3, %v90_v4  ;;  %v99_v9 = vrot.slane %v82_v3, %v98_v5  ;;  %v1048_v39 = vld [vmem:[%s1413_s6 + $0x20] ss:$12 sps:$4 sm:$0xff]  }
  0x3a   :  { %924 = vmatprep.subr.bf16.mxu0 %v1029_v40  ;;  %725 = vmatpush1.bf16.msra.mxu1 %v1045_v56  ;;  %v1052_v40 = vld [vmem:[%s1413_s6 + $0x38] ss:$12 sps:$4 sm:$0xff]  }
  0x3b   :  { %726 = vmatprep.subr.bf16.mxu1 %v1051_v57 }
  0x3d   :  { %925 = vmatpush3.bf16.msra.mxu0 %v1030_v41  ;;  %v1056_v41 = vld [vmem:[%s1413_s6 + $0x50] ss:$12 sps:$4 sm:$0xff]  }
  0x3e   :  { %926 = vmatprep.subr.bf16.mxu0 %v1031_v42  ;;  %727 = vmatpush1.bf16.msra.mxu1 %v1049_v58  ;;  %v1060_v42 = vld [vmem:[%s1413_s6 + $0x68] ss:$12 sps:$4 sm:$0xff]   ;;  %v537_v58 = vstv %s1412_s5 }
  0x3f   :  { %728 = vmatprep.subr.bf16.mxu1 %v1055_v59 }
  0x41   :  { %927 = vmatpush3.bf16.msra.mxu0 %v1032_v43  ;;  %v1063_v43 = vld [vmem:[%s1413_s6 + $0x7c] ss:$12 sps:$4 sm:$0xff]  }
  0x42   :  { %928 = vmatprep.subr.bf16.mxu0 %v1033_v44  ;;  %729 = vmatpush1.bf16.msra.mxu1 %v1053_v60  ;;  %v1061_v44 = vld [vmem:[%s1413_s6 + $0x78] ss:$12 sps:$4 sm:$0xff]  }
  0x43   :  { %730 = vmatprep.subr.bf16.mxu1 %v1059_v61 }
  0x45   :  { %929 = vmatpush3.bf16.msra.mxu0 %v1034_v45  ;;  %v1064_v45 = vld [vmem:[%s1413_s6 + $0x80] ss:$12 sps:$4 sm:$0xff]  }
  0x46   :  { %930 = vmatprep.subr.bf16.mxu0 %v1035_v46  ;;  %731 = vmatpush1.bf16.msra.mxu1 %v1057_v62  ;;  %v1067_v46 = vld [vmem:[%s1413_s6 + $0x94] ss:$12 sps:$4 sm:$0xff]  }
  0x47   :  { %732 = vmatprep.subr.bf16.mxu1 %v1063_v43 }
  0x49   :  { %931 = vmatpush3.bf16.msra.mxu0 %v1036_v47  ;;  %v1065_v47 = vld [vmem:[%s1413_s6 + $0x90] ss:$12 sps:$4 sm:$0xff]  }
  0x4a   :  { %932 = vmatprep.subr.bf16.mxu0 %v1037_v48  ;;  %733 = vmatpush1.bf16.msra.mxu1 %v1061_v44  ;;  %v1068_v48 = vld [vmem:[%s1413_s6 + $0x98] ss:$12 sps:$4 sm:$0xff]  }
  0x4b   :  { %734 = vmatprep.subr.bf16.mxu1 %v1067_v46 }
  0x4d   :  { %933 = vmatpush3.bf16.msra.mxu0 %v1038_v49  ;;  %v1071_v49 = vld [vmem:[%s1413_s6 + $0xac] ss:$12 sps:$4 sm:$0xff]  }
  0x4e   :  { %934 = vmatprep.subr.bf16.mxu0 %v1039_v50  ;;  %735 = vmatpush1.bf16.msra.mxu1 %v1065_v47  ;;  %v1069_v50 = vld [vmem:[%s1413_s6 + $0xa8] ss:$12 sps:$4 sm:$0xff]  }
  0x4f   :  { %736 = vmatprep.subr.bf16.mxu1 %v1071_v49 }
  0x51   :  { %935 = vmatpush3.bf16.msra.mxu0 %v1040_v51  ;;  %v1072_v51 = vld [vmem:[%s1413_s6 + $0xb0] ss:$12 sps:$4 sm:$0xff]  }
  0x52   :  { %951 = vmatprep.subr.bf16.mxu0 %v1101_v54  ;;  %737 = vmatpush1.bf16.msra.mxu1 %v1069_v50 }
 0x107   :  { %v298_v10 = vpop.f32.mrb[0].mxu0  ;;  %v341_v11 = vpop.f32.mrb[0].mxu1 }
 0x108   :  { %v299_v12 = vadd.f32 %v298_v10, %v87_v6  ;;  %v342_v13 = vadd.f32 %v341_v11, %v95_v7  ;;  %v300_v14 = vpop.f32.mrb[1].mxu0  ;;  %v343_v15 = vpop.f32.mrb[1].mxu1 }
 0x109   :  { %v301_v16 = vadd.f32 %v300_v14, %v91_v8  ;;  %v344_v17 = vadd.f32 %v343_v15, %v99_v9  ;;  %v302_v18 = vpop.f32.mrb[2].mxu0  ;;  %v345_v19 = vpop.f32.mrb[2].mxu1 }
 0x10a   :  { %v350_v20 = vmax.f32 %v342_v13, 0.0  ;;  %v346_v21 = vadd.f32 %v345_v19, %v95_v7  ;;  %v304_v22 = vpop.f32.mrb[3].mxu0  ;;  %v347_v23 = vpop.f32.mrb[3].mxu1  ;;  %v303_v27 = vadd.f32 %v302_v18, %v87_v6  ;;  %v577_v7 = vld [vmem:[%s1414_s7] sm:$0x7] }
 0x10b   :  { %v351_v24 = vmax.f32 %v344_v17, 0.0  ;;  %v348_v25 = vadd.f32 %v347_v23, %v99_v9  ;;  %v305_v30 = vadd.f32 %v304_v22, %v91_v8  ;;  %v590_v8 = vrot.slane %v577_v7, %v94_v2 }
 0x10c   :  { %v354_v26 = vmul.f32 %v350_v20, %v299_v12  ;;  %v352_v28 = vmax.f32 %v346_v21, 0.0 }
 0x10d   :  { %v355_v29 = vmul.f32 %v351_v24, %v301_v16  ;;  %v353_v31 = vmax.f32 %v348_v25, 0.0 }
 0x10e   :  { %v356_v32 = vmul.f32 %v352_v28, %v303_v27 }
 0x10f   :  { %v357_v35 = vmul.f32 %v353_v31, %v305_v30 }
 0x110   :  { %v358_v36 = vpack.c.bf16 %v356_v32, %v354_v26 }
 0x111   :  { %v359_v37 = vpack.c.bf16 %v357_v35, %v355_v29 }
 0x113   :  { %527 = vmatprep.mubr.bf16.mxu0 %v359_v37 }
 0x114   :  { %528 = vmatmul.mubr.bf16.vlgmr.msra.gmra.mrb[4].mxu0 %v358_v36 }
 0x115   :  { %952 = vmatpush3.bf16.msra.mxu0 %v1044_v38  ;;  %967 = vmatprep.mubr.msk.bf16.mxu0 %vm1102_vm0, %v1101_v54 }
 0x116   :  { %953 = vmatprep.subr.bf16.mxu0 %v1101_v54 }
 0x119   :  { %954 = vmatpush3.bf16.msra.mxu0 %v1048_v39 }
 0x11a   :  { %955 = vmatprep.subr.bf16.mxu0 %v1101_v54 }
 0x11d   :  { %956 = vmatpush3.bf16.msra.mxu0 %v1052_v40 }
 0x11e   :  { %957 = vmatprep.subr.bf16.mxu0 %v1101_v54 }
 0x121   :  { %958 = vmatpush3.bf16.msra.mxu0 %v1056_v41 }
 0x122   :  { %959 = vmatprep.subr.bf16.mxu0 %v1101_v54 }
 0x125   :  { %960 = vmatpush3.bf16.msra.mxu0 %v1060_v42 }
 0x126   :  { %961 = vmatprep.subr.bf16.mxu0 %v1101_v54 }
 0x129   :  { %962 = vmatpush3.bf16.msra.mxu0 %v1064_v45 }
 0x12a   :  { %963 = vmatprep.subr.bf16.mxu0 %v1101_v54 }
 0x12d   :  { %964 = vmatpush3.bf16.msra.mxu0 %v1068_v48 }
 0x12e   :  { %965 = vmatprep.subr.bf16.mxu0 %v1101_v54 }
 0x131   :  { %966 = vmatpush3.bf16.msra.mxu0 %v1072_v51 }
 0x1e7   :  { %v936_v52 = vpop.f32.mrb[4].mxu0 }
 0x1e8   :  { %v937_v55 = vpop.f32.mrb[5].mxu0 }
 0x1e9   :  { %v938_v56 = vadd.f32 %v937_v55, %v936_v52  ;;  %v939_v57 = vpop.f32.mrb[6].mxu0 }
 0x1ea   :  { %v940_v59 = vpop.f32.mrb[7].mxu0 }
 0x1eb   :  { %v530_v60 = vadd.f32 %v938_v56, %v871_v53  ;;  %v941_v61 = vadd.f32 %v940_v59, %v939_v57 }
 0x1ed   :  { %v538_v62 = vmul.f32 %v537_v58, %v530_v60  ;;  %v533_v63 = vadd.f32 %v941_v61, %v871_v53 }
 0x1ef   :  { %v540_v3 = vadd.f32 %v538_v62, %v1266_v33  ;;  %v539_v54 = vmul.f32 %v537_v58, %v533_v63  ;;  %v582_v33 = vrot.slane %v577_v7, %v86_v1 }
 0x1f1   :  { %542 = vst [vmem:[%s1415_s8] sm:$0xff] %v540_v3  ;;  %v541_v5 = vadd.f32 %v539_v54, %v1271_v34  ;;  %v586_v34 = vrot.slane %v577_v7, %v90_v4 }
 0x1f3   :  { %543 = vst [vmem:[%s1415_s8 + $0x8] sm:$0xff] %v541_v5  ;;  %v544_v6 = vpack.c.bf16 %v541_v5, %v540_v3 }
 0x1f5   :  { %755 = vmatmul.mubr.bf16.vlgmr.msra.gmra.mrb[4].mxu1 %v544_v6  ;;  %968 = vmatmul.mubr.bf16.vlgmr.msra.gmra.mrb[8].mxu0 %v544_v6 }
 0x2c8   :  { %v756_v9 = vpop.f32.mrb[4].mxu1  ;;  %v799_v10 = vpop.f32.mrb[8].mxu0 }
 0x2c9   :  { %v757_v11 = vadd.f32 %v756_v9, %v582_v33  ;;  %v800_v12 = vadd.f32 %v799_v10, %v590_v8  ;;  %v758_v13 = vpop.f32.mrb[5].mxu1  ;;  %v969_v14 = vpop.f32.mrb[9].mxu0 }
 0x2ca   :  { %v759_v15 = vadd.f32 %v758_v13, %v586_v34  ;;  %v760_v16 = vpop.f32.mrb[6].mxu1  ;;  %v802_v17 = vpop.f32.mrb[10].mxu0 }
 0x2cb   :  { %v917_v18 = vpack.c.bf16 %v800_v12, %v800_v12  ;;  %v761_v19 = vadd.f32 %v760_v16, %v582_v33  ;;  %v803_v20 = vadd.f32 %v802_v17, %v590_v8  ;;  %v762_v21 = vpop.f32.mrb[7].mxu1  ;;  %v970_v1 = vpop.f32.mrb[11].mxu0 }
 0x2cc   :  { %v916_v22 = vpack.c.bf16 %v759_v15, %v757_v11  ;;  %v763_v23 = vadd.f32 %v762_v21, %v586_v34 }
 0x2cd   :  { %827 = vst [vmem:[%s1416_s9 + $0x8] sm:$0xf] %v917_v18  ;;  %v919_v0 = vpack.c.bf16 %v803_v20, %v803_v20 }
 0x2ce   :  { %826 = vst [vmem:[%s1416_s9] sm:$0xff] %v916_v22  ;;  %v918_v2 = vpack.c.bf16 %v763_v23, %v761_v19 }
 0x2cf   :  { %829 = vst [vmem:[%s1416_s9 + $0x14] sm:$0xf] %v919_v0 }
 0x2d0   :  { %828 = vst [vmem:[%s1416_s9 + $0xc] sm:$0xff] %v918_v2 }
 0x2d1   :  { %838 = vsyncpa [#allocation4], 1 }

// kernel: graph_net_block.9
= control target key start
LH: loop header
LB: loop body
LE: loop exit
PB: predicated region body
PF: predicated region fallthrough
CT: control target
= control target key end

     0   :  { %vm30_vm0 = vcmask 261120   ;;  %s483_s28 = smov 96   ;;  %s484_s13 = smov 64   ;;  %vm245_vm1 = vcmask 523264   ;;  %vm487_vm2 = vmmov 0   ;;  %vm248_vm3 = vcmask 785408   ;;  %s651_s0 = inlined_call_operand.vmem [shape: f32[16,128], index: 0, kind: input, shape index: {}]   ;;  %s652_s3 = inlined_call_operand.vmem [shape: bf16[128,128], index: 3, kind: input, shape index: {}]   ;;  %s653_s1 = inlined_call_operand.vmem [shape: f32[1,128], index: 1, kind: input, shape index: {}]   ;;  %s654_s2 = inlined_call_operand.vmem [shape: f32[1,128], index: 2, kind: input, shape index: {}]   ;;  %s655_s4 = inlined_call_operand.vmem [shape: f32[1,128], index: 4, kind: input, shape index: {}]   ;;  %s656_s5 = inlined_call_operand.<no memory space> [shape: f32[1,1], index: 5, kind: input, shape index: {}]   ;;  %s657_s6 = inlined_call_operand.vmem [shape: f32[16,128], index: 6, kind: input, shape index: {}, may-alias: {6,7}]   ;;  %s658_s7 = inlined_call_operand.vmem [shape: f32[16,128], index: 7, kind: output, shape index: {}, may-alias: {6,7}]  }
   0x1   :  { %v531_v0 = vld [vmem:[%s651_s0] sm:$0xff]  ;;  %v536_v1 = vld [vmem:[%s651_s0 + $0x8] sm:$0xff]  ;;  %s485_s14 = smov 32  }
   0x2   :  { %v31_v2 = vsel %vm30_vm0, %v531_v0, 0.0  ;;  %v32_v3 = vsel %vm30_vm0, %v536_v1, 0.0  ;;  %75 = vrot.lane.b32.xlu1 %v531_v0, %s483_s28 }
   0x3   :  { %v33_v4 = vadd.f32 %v32_v3, %v31_v2 }
   0x5   :  { %34 = vadd.xlane.f32.xlu0 %v33_v4 }
   0x6   :  { %77 = vrot.lane.b32.xlu1 %v536_v1, %s483_s28 }
  0x74   :  { %v76_v12 = vpop.permute.xlu1 %75 }
  0x75   :  { %v81_v21 = vsel %vm30_vm0, %v76_v12, 0.0 }
  0x78   :  { %v78_v16 = vpop.permute.xlu1 %77 }
  0x79   :  { %v82_v22 = vsel %vm30_vm0, %v78_v16, 0.0 }
  0x7a   :  { %v83_v24 = vadd.f32 %v82_v22, %v81_v21 }
  0x92   :  { %v35_v5 = vpop.xlane.xlu0 %34 }
  0x93   :  { %v36_v6 = vrot.slane %v35_v5, 4 }
  0x95   :  { %v37_v7 = vadd.f32 %v36_v6, %v35_v5 }
  0x97   :  { %v38_v8 = vrot.slane %v37_v7, 2 }
  0x99   :  { %v39_v9 = vadd.f32 %v38_v8, %v37_v7 }
  0x9b   :  { %v40_v10 = vrot.slane %v39_v9, 1 }
  0x9d   :  { %v41_v11 = vadd.f32 %v40_v10, %v39_v9 }
  0x9f   :  { %438 = vpush %v41_v11 }
  0xd0   :  { %s439_s0 = spop %438 }
  0xd1   :  { %s45_s29 = smul.f32 0.001953125, %s439_s0 }
  0xd3   :  { %v46_v13 = vstv %s45_s29 }
  0xd4   :  { %v547_v14 = vsub.f32 %v531_v0, %v46_v13  ;;  %v550_v15 = vsub.f32 %v536_v1, %v46_v13 }
  0xd6   :  { %v49_v17 = vmul.f32 %v547_v14, %v547_v14  ;;  %v50_v18 = vmul.f32 %v550_v15, %v550_v15 }
  0xd8   :  { %v51_v19 = vsel %vm30_vm0, %v49_v17, 0.0  ;;  %v52_v20 = vsel %vm30_vm0, %v50_v18, 0.0 }
  0xd9   :  { %v53_v23 = vadd.f32 %v52_v20, %v51_v19 }
  0xdb   :  { %54 = vadd.xlane.f32.xlu0 %v53_v23 }
  0xdf   :  { %84 = vadd.xlane.f32.xlu0 %v83_v24 }
 0x168   :  { %v55_v25 = vpop.xlane.xlu0 %54 }
 0x169   :  { %v56_v26 = vrot.slane %v55_v25, 4 }
 0x16b   :  { %v57_v27 = vadd.f32 %v56_v26, %v55_v25 }
 0x16c   :  { %v85_v32 = vpop.xlane.xlu0 %84 }
 0x16d   :  { %v58_v28 = vrot.slane %v57_v27, 2  ;;  %v86_v33 = vrot.slane %v85_v32, 4 }
 0x16f   :  { %v59_v29 = vadd.f32 %v58_v28, %v57_v27  ;;  %v87_v34 = vadd.f32 %v86_v33, %v85_v32 }
 0x171   :  { %v60_v30 = vrot.slane %v59_v29, 1  ;;  %v88_v35 = vrot.slane %v87_v34, 2 }
 0x173   :  { %v61_v31 = vadd.f32 %v60_v30, %v59_v29  ;;  %v89_v37 = vadd.f32 %v88_v35, %v87_v34 }
 0x175   :  { %440 = vpush %v61_v31  ;;  %v90_v38 = vrot.slane %v89_v37, 1 }
 0x177   :  { %v91_v40 = vadd.f32 %v90_v38, %v89_v37 }
 0x1a6   :  { %s441_s30 = spop %440 }
 0x1a7   :  { %s65_s8 = smul.f32 0.001953125, %s441_s30 }
 0x1a9   :  { %s66_s9 = sadd.f32 1e-05, %s65_s8 }
 0x1ab   :  { %v67_v36 = vstv %s66_s9 }
 0x1ac   :  { %475 = vrsqrt.f32 %v67_v36 }
 0x1b6   :  { %v476_v39 = vpop.eup %475 }
 0x1b7   :  { %442 = vpush %v476_v39 }
 0x1b8   :  { %444 = vpush %v91_v40 }
 0x1e8   :  { %s560_s10 = spop %442 }
 0x1e9   :  { %s445_s11 = spop %444  ;;  %v70_v10 = vstv %s560_s10 }
 0x1ea   :  { %s95_s12 = smul.f32 0.001953125, %s445_s11  ;;  %v71_v12 = vmul.f32 %v70_v10, %v547_v14  ;;  %v72_v13 = vmul.f32 %v70_v10, %v550_v15 }
 0x1ec   :  { %v96_v41 = vstv %s95_s12 }
 0x1ed   :  { %v97_v42 = vsub.f32 %v531_v0, %v96_v41  ;;  %v98_v43 = vsub.f32 %v536_v1, %v96_v41 }
 0x1ef   :  { %v100_v44 = vmul.f32 %v98_v43, %v98_v43  ;;  %v99_v45 = vmul.f32 %v97_v42, %v97_v42 }
 0x1f1   :  { %105 = vrot.lane.b32.xlu0 %v100_v44, %s483_s28  ;;  %103 = vrot.lane.b32.xlu1 %v99_v45, %s483_s28 }
 0x1f5   :  { %131 = vrot.lane.b32.xlu0 %v531_v0, %s484_s13 }
 0x1f9   :  { %133 = vrot.lane.b32.xlu0 %v536_v1, %s484_s13 }
 0x263   :  { %v106_v46 = vpop.permute.xlu0 %105  ;;  %v104_v47 = vpop.permute.xlu1 %103 }
 0x264   :  { %v110_v48 = vsel %vm30_vm0, %v106_v46, 0.0  ;;  %v109_v49 = vsel %vm30_vm0, %v104_v47, 0.0 }
 0x265   :  { %v111_v50 = vadd.f32 %v110_v48, %v109_v49 }
 0x267   :  { %112 = vadd.xlane.f32.xlu1 %v111_v50  ;;  %v132_v51 = vpop.permute.xlu0 %131 }
 0x268   :  { %v137_v52 = vsel %vm30_vm0, %v132_v51, 0.0 }
 0x26b   :  { %v134_v53 = vpop.permute.xlu0 %133 }
 0x26c   :  { %v138_v54 = vsel %vm30_vm0, %v134_v53, 0.0 }
 0x26d   :  { %v139_v55 = vadd.f32 %v138_v54, %v137_v52 }
 0x26f   :  { %140 = vadd.xlane.f32.xlu0 %v139_v55 }
 0x285   :  { %187 = vrot.lane.b32.xlu0 %v531_v0, %s485_s14 }
 0x289   :  { %189 = vrot.lane.b32.xlu0 %v536_v1, %s485_s14 }
 0x2f4   :  { %v113_v56 = vpop.xlane.xlu1 %112 }
 0x2f5   :  { %v114_v57 = vrot.slane %v113_v56, 4 }
 0x2f7   :  { %v115_v58 = vadd.f32 %v114_v57, %v113_v56 }
 0x2f9   :  { %v116_v59 = vrot.slane %v115_v58, 2 }
 0x2fb   :  { %v117_v60 = vadd.f32 %v116_v59, %v115_v58 }
 0x2fc   :  { %v141_v63 = vpop.xlane.xlu0 %140 }
 0x2fd   :  { %v118_v61 = vrot.slane %v117_v60, 1  ;;  %v142_v2 = vrot.slane %v141_v63, 4 }
 0x2ff   :  { %v119_v62 = vadd.f32 %v118_v61, %v117_v60  ;;  %v143_v3 = vadd.f32 %v142_v2, %v141_v63  ;;  %v486_v2 = vmov 0.0  }
 0x300   :  { %v188_v18 = vpop.permute.xlu0 %187  ;;  %418 = vmatprep.subr.bf16.mxu0 %v486_v2  ;;  %434 = vmatprep.mubr.msk.bf16.mxu0 %vm487_vm2, %v486_v2 }
 0x301   :  { %446 = vpush %v119_v62  ;;  %v144_v4 = vrot.slane %v143_v3, 2  ;;  %v193_v23 = vsel %vm30_vm0, %v188_v18, 0.0 }
 0x303   :  { %v145_v6 = vadd.f32 %v144_v4, %v143_v3  ;;  %v469_v3 = vld [vmem:[%s652_s3 + $0x10] sm:$0xff]   ;;  %v470_v4 = vld [vmem:[%s652_s3 + $0x18] sm:$0xff]  }
 0x304   :  { %v190_v26 = vpop.permute.xlu0 %189 }
 0x305   :  { %v146_v7 = vrot.slane %v145_v6, 1  ;;  %v194_v14 = vsel %vm30_vm0, %v190_v26, 0.0  ;;  %v399_v26 = vld [vmem:[%s654_s2] ss:$0 sm:$0xff] }
 0x306   :  { %v195_v15 = vadd.f32 %v194_v14, %v193_v23  ;;  %v398_v23 = vld [vmem:[%s653_s1] ss:$0 sm:$0xff] }
 0x307   :  { %v147_v9 = vadd.f32 %v146_v7, %v145_v6  ;;  %v472_v6 = vld [vmem:[%s652_s3 + $0x28] sm:$0xff]  }
 0x308   :  { %196 = vadd.xlane.f32.xlu0 %v195_v15 }
 0x332   :  { %s447_s15 = spop %446 }
 0x333   :  { %s123_s16 = smul.f32 0.001953125, %s447_s15 }
 0x335   :  { %s124_s17 = sadd.f32 1e-05, %s123_s16 }
 0x337   :  { %v125_v5 = vstv %s124_s17 }
 0x338   :  { %477 = vrsqrt.f32 %v125_v5  ;;  %v471_v5 = vld [vmem:[%s652_s3 + $0x20] sm:$0xff]  }
 0x342   :  { %v478_v8 = vpop.eup %477 }
 0x343   :  { %448 = vpush %v478_v8 }
 0x344   :  { %450 = vpush %v147_v9  ;;  %v473_v9 = vld [vmem:[%s652_s3 + $0x30] sm:$0xff]  }
 0x374   :  { %s449_s18 = spop %448 }
 0x375   :  { %v128_v11 = vstv %s449_s18  ;;  %s451_s19 = spop %450 }
 0x376   :  { %v129_v16 = vmul.f32 %v128_v11, %v97_v42  ;;  %v130_v17 = vmul.f32 %v128_v11, %v98_v43  ;;  %s151_s20 = smul.f32 0.001953125, %s451_s19 }
 0x378   :  { %v243_v19 = vsel %vm30_vm0, %v71_v12, %v129_v16  ;;  %v244_v20 = vsel %vm30_vm0, %v72_v13, %v130_v17  ;;  %v152_v21 = vstv %s151_s20  ;;  %v474_v12 = vld [vmem:[%s652_s3 + $0x38] sm:$0xff]  }
 0x379   :  { %v153_v22 = vsub.f32 %v531_v0, %v152_v21  ;;  %v154_v24 = vsub.f32 %v536_v1, %v152_v21 }
 0x37b   :  { %v155_v25 = vmul.f32 %v153_v22, %v153_v22  ;;  %v156_v27 = vmul.f32 %v154_v24, %v154_v24 }
 0x37d   :  { %159 = vrot.lane.b32.xlu1 %v155_v25, %s484_s13 }
 0x381   :  { %161 = vrot.lane.b32.xlu1 %v156_v27, %s484_s13 }
 0x395   :  { %v197_v40 = vpop.xlane.xlu0 %196 }
 0x396   :  { %v198_v41 = vrot.slane %v197_v40, 4 }
 0x398   :  { %v199_v42 = vadd.f32 %v198_v41, %v197_v40 }
 0x39a   :  { %v200_v43 = vrot.slane %v199_v42, 2 }
 0x39c   :  { %v201_v45 = vadd.f32 %v200_v43, %v199_v42  ;;  %v385_v42 = vld [vmem:[%s657_s6 + $0x8] sm:$0xff] }
 0x39e   :  { %v202_v46 = vrot.slane %v201_v45, 1 }
 0x3a0   :  { %v203_v48 = vadd.f32 %v202_v46, %v201_v45 }
 0x3ef   :  { %v160_v28 = vpop.permute.xlu1 %159 }
 0x3f0   :  { %v165_v30 = vsel %vm30_vm0, %v160_v28, 0.0 }
 0x3f3   :  { %v162_v29 = vpop.permute.xlu1 %161 }
 0x3f4   :  { %v166_v31 = vsel %vm30_vm0, %v162_v29, 0.0 }
 0x3f5   :  { %v167_v32 = vadd.f32 %v166_v31, %v165_v30  ;;  %v400_v30 = vld [vmem:[%s655_s4] ss:$0 sm:$0xff] }
 0x3f7   :  { %168 = vadd.xlane.f32.xlu1 %v167_v32 }
 0x484   :  { %v169_v33 = vpop.xlane.xlu1 %168 }
 0x485   :  { %v170_v34 = vrot.slane %v169_v33, 4 }
 0x487   :  { %v171_v35 = vadd.f32 %v170_v34, %v169_v33  ;;  %v387_v34 = vstv %s656_s5 }
 0x489   :  { %v172_v36 = vrot.slane %v171_v35, 2 }
 0x48b   :  { %v173_v37 = vadd.f32 %v172_v36, %v171_v35 }
 0x48d   :  { %v174_v38 = vrot.slane %v173_v37, 1 }
 0x48f   :  { %v175_v39 = vadd.f32 %v174_v38, %v173_v37 }
 0x491   :  { %452 = vpush %v175_v39  ;;  %v384_v39 = vld [vmem:[%s657_s6] sm:$0xff] }
 0x4c2   :  { %s453_s21 = spop %452 }
 0x4c3   :  { %s179_s22 = smul.f32 0.001953125, %s453_s21 }
 0x4c5   :  { %s180_s23 = sadd.f32 1e-05, %s179_s22 }
 0x4c7   :  { %v181_v44 = vstv %s180_s23 }
 0x4c8   :  { %479 = vrsqrt.f32 %v181_v44 }
 0x4d2   :  { %v480_v47 = vpop.eup %479 }
 0x4d3   :  { %454 = vpush %v480_v47 }
 0x4d4   :  { %456 = vpush %v203_v48 }
 0x504   :  { %s455_s24 = spop %454 }
 0x505   :  { %v184_v49 = vstv %s455_s24  ;;  %s457_s25 = spop %456 }
 0x506   :  { %v185_v50 = vmul.f32 %v184_v49, %v153_v22  ;;  %v186_v51 = vmul.f32 %v184_v49, %v154_v24  ;;  %s207_s26 = smul.f32 0.001953125, %s457_s25 }
 0x508   :  { %v591_v52 = vsel %vm245_vm1, %v243_v19, %v185_v50  ;;  %v593_v53 = vsel %vm245_vm1, %v244_v20, %v186_v51  ;;  %v208_v54 = vstv %s207_s26 }
 0x509   :  { %v209_v55 = vsub.f32 %v531_v0, %v208_v54  ;;  %v210_v56 = vsub.f32 %v536_v1, %v208_v54  ;;  %v467_v0 = vld [vmem:[%s652_s3] sm:$0xff]   ;;  %v468_v1 = vld [vmem:[%s652_s3 + $0x8] sm:$0xff]  }
 0x50a   :  { %419 = vmatpush3.bf16.msra.mxu0 %v467_v0 }
 0x50b   :  { %v211_v57 = vmul.f32 %v209_v55, %v209_v55  ;;  %v212_v58 = vmul.f32 %v210_v56, %v210_v56  ;;  %420 = vmatprep.subr.bf16.mxu0 %v486_v2 }
 0x50d   :  { %215 = vrot.lane.b32.xlu1 %v211_v57, %s485_s14 }
 0x50e   :  { %421 = vmatpush3.bf16.msra.mxu0 %v468_v1 }
 0x50f   :  { %422 = vmatprep.subr.bf16.mxu0 %v486_v2 }
 0x511   :  { %217 = vrot.lane.b32.xlu1 %v212_v58, %s485_s14 }
 0x512   :  { %423 = vmatpush3.bf16.msra.mxu0 %v469_v3 }
 0x513   :  { %424 = vmatprep.subr.bf16.mxu0 %v486_v2 }
 0x516   :  { %425 = vmatpush3.bf16.msra.mxu0 %v470_v4 }
 0x517   :  { %426 = vmatprep.subr.bf16.mxu0 %v486_v2 }
 0x51a   :  { %427 = vmatpush3.bf16.msra.mxu0 %v471_v5 }
 0x51b   :  { %428 = vmatprep.subr.bf16.mxu0 %v486_v2 }
 0x51e   :  { %429 = vmatpush3.bf16.msra.mxu0 %v472_v6 }
 0x51f   :  { %430 = vmatprep.subr.bf16.mxu0 %v486_v2 }
 0x522   :  { %431 = vmatpush3.bf16.msra.mxu0 %v473_v9 }
 0x523   :  { %432 = vmatprep.subr.bf16.mxu0 %v486_v2 }
 0x526   :  { %433 = vmatpush3.bf16.msra.mxu0 %v474_v12 }
 0x57f   :  { %v216_v59 = vpop.permute.xlu1 %215 }
 0x580   :  { %v221_v61 = vsel %vm30_vm0, %v216_v59, 0.0 }
 0x583   :  { %v218_v60 = vpop.permute.xlu1 %217 }
 0x584   :  { %v222_v62 = vsel %vm30_vm0, %v218_v60, 0.0 }
 0x585   :  { %v223_v63 = vadd.f32 %v222_v62, %v221_v61 }
 0x587   :  { %224 = vadd.xlane.f32.xlu1 %v223_v63 }
 0x614   :  { %v225_v7 = vpop.xlane.xlu1 %224 }
 0x615   :  { %v226_v8 = vrot.slane %v225_v7, 4 }
 0x617   :  { %v227_v10 = vadd.f32 %v226_v8, %v225_v7 }
 0x619   :  { %v228_v11 = vrot.slane %v227_v10, 2 }
 0x61b   :  { %v229_v13 = vadd.f32 %v228_v11, %v227_v10 }
 0x61d   :  { %v230_v16 = vrot.slane %v229_v13, 1 }
 0x61f   :  { %v231_v17 = vadd.f32 %v230_v16, %v229_v13 }
 0x621   :  { %458 = vpush %v231_v17 }
 0x652   :  { %s459_s19 = spop %458 }
 0x653   :  { %s235_s20 = smul.f32 0.001953125, %s459_s19 }
 0x655   :  { %s236_s21 = sadd.f32 1e-05, %s235_s20 }
 0x657   :  { %v237_v18 = vstv %s236_s21 }
 0x658   :  { %481 = vrsqrt.f32 %v237_v18 }
 0x662   :  { %v482_v19 = vpop.eup %481 }
 0x663   :  { %460 = vpush %v482_v19 }
 0x694   :  { %s461_s22 = spop %460 }
 0x695   :  { %v240_v20 = vstv %s461_s22 }
 0x696   :  { %v241_v21 = vmul.f32 %v240_v20, %v209_v55  ;;  %v242_v22 = vmul.f32 %v240_v20, %v210_v56 }
 0x698   :  { %v249_v24 = vsel %vm248_vm3, %v591_v52, %v241_v21  ;;  %v250_v25 = vsel %vm248_vm3, %v593_v53, %v242_v22 }
 0x699   :  { %v258_v14 = vmul.f32 %v398_v23, %v249_v24  ;;  %v259_v15 = vmul.f32 %v398_v23, %v250_v25 }
 0x69b   :  { %v267_v27 = vadd.f32 %v399_v26, %v258_v14  ;;  %v268_v28 = vadd.f32 %v399_v26, %v259_v15 }
 0x69d   :  { %v269_v29 = vpack.c.bf16 %v268_v28, %v267_v27 }
 0x69f   :  { %435 = vmatmul.mubr.bf16.vlgmr.msra.gmra.mrb[0].mxu0 %v269_v29 }
 0x772   :  { %v375_v31 = vpop.f32.mrb[0].mxu0 }
 0x773   :  { %v376_v32 = vadd.f32 %v400_v30, %v375_v31  ;;  %v436_v33 = vpop.f32.mrb[1].mxu0 }
 0x774   :  { %v378_v35 = vpop.f32.mrb[2].mxu0 }
 0x775   :  { %v382_v36 = vmax.f32 %v376_v32, 0.0  ;;  %v379_v37 = vadd.f32 %v400_v30, %v378_v35  ;;  %v437_v38 = vpop.f32.mrb[3].mxu0 }
 0x777   :  { %v388_v40 = vmul.f32 %v387_v34, %v382_v36  ;;  %v383_v41 = vmax.f32 %v379_v37, 0.0 }
 0x779   :  { %v390_v43 = vadd.f32 %v388_v40, %v384_v39  ;;  %v389_v44 = vmul.f32 %v387_v34, %v383_v41 }
 0x77b   :  { %392 = vst [vmem:[%s658_s7] sm:$0xff] %v390_v43  ;;  %v391_v45 = vadd.f32 %v389_v44, %v385_v42 }
 0x77d   :  { %393 = vst [vmem:[%s658_s7 + $0x8] sm:$0xff] %v391_v45 }

// kernel: graph_net_block.7
= control target key start
LH: loop header
LB: loop body
LE: loop exit
PB: predicated region body
PF: predicated region fallthrough
CT: control target
= control target key end

     0   :  { %s2545_s0 = inlined_call_operand.vmem [shape: f32[256,128], index: 0, kind: input, shape index: {}, may-alias: {0,8}]   ;;  %s2546_s1 = inlined_call_operand.vmem [shape: bf16[128,512], index: 1, kind: input, shape index: {}]   ;;  %s2547_s2 = inlined_call_operand.vmem [shape: f32[1,512], index: 2, kind: input, shape index: {}]   ;;  %s2548_s3 = inlined_call_operand.vmem [shape: bf16[256,128], index: 3, kind: input, shape index: {}]   ;;  %s2549_s4 = inlined_call_operand.vmem [shape: f32[1,128], index: 4, kind: input, shape index: {}]   ;;  %s2550_s5 = inlined_call_operand.<no memory space> [shape: f32[1,1], index: 5, kind: input, shape index: {}]   ;;  %s2551_s6 = inlined_call_operand.hbm [shape: bf16[128,256], index: 6, kind: input, shape index: {}]   ;;  %s2552_s7 = inlined_call_operand.vmem [shape: f32[1,256], index: 7, kind: input, shape index: {}]   ;;  %s2553_s8 = inlined_call_operand.vmem [shape: f32[256,128], index: 8, kind: output, shape index: {0}, may-alias: {0,8}]   ;;  %s2554_s9 = inlined_call_operand.vmem [shape: bf16[256,256], index: 9, kind: output, shape index: {1}]  }
   0x1   :  { %15 = sst [smem:[#allocation2]] %s2550_s5 }
   0x2   :  { %16 = vsyncpa [#allocation4], 0  ;;  %s2025_s11 = smov 0  }
   0x3 LB: > { %s1640_s12 = sadd.s32 4294967295, %s1966_s11   ;;  %p1642_p0 = scmp.ge.s32.totalorder %s1966_s11, 1  ;;  %s1966_s11 = sphi %s2025_s11, %s22_s11  }
   0x4   : > { %p252_p1 = scmp.lt.s32.totalorder %s1966_s11, 3  ;;  %s1968_s13 = smov [#allocation3]  }
   0x5   : > { %s279_s14 = sshll.u32 %s1968_s13, 4  ;;  %p2039_p3 = scmp.eq.s32.totalorder %s1640_s12, 0  ;;  %s280_s14 = int_to_ptr.vmem [resolvable:$true] %s279_s14 }
   0x6   : > { %p2033_p2 = pnand %p1642_p0, %p252_p1  ;;  %s1928_s19 = scalar_lea.hbm %s2551_s6, 2048 }
   0x7   : > { %s2559_s5 = scalar_select %p2039_p3, 1, 0 }
   0x8   : > { %s2558_s15 = scalar_select %p2033_p2, 1, 0 }
   0x9   : > { %p1822_p4 = pneg %p2033_p2  ;;  %p1929_p6 = scmp.ne.s32.totalorder %s2551_s6, %s1928_s19 }
   0xa   : > { %p1935_p10 = scmp.lt.u32.totalorder %s1928_s19, %s2551_s6 }
   0xb   : > { %p2047_p5 = pnand %p2039_p3, %p1822_p4 }
   0xd   : > { %p1930_p7 = pneg %p2047_p5 }
   0xf   : > { %p1931_p8 = pnand %p1930_p7, %p1929_p6 }
  0x11   : > { %p1932_p9 = pneg %p1931_p8 }
  0x13   : > { %p1937_p11 = pnand %p1935_p10, %p1932_p9 }
  0x15   : > { %1940 = shalt.err (!%p1937_p11)
}
  0x16   : > { %s1941_s24 = scalar_lea.vmem %s280_s14, 2048  ;;  %p1949_p1 = scmp.lt.s32.totalorder %s280_s14, %s280_s14 }
  0x17   : > { %p1942_p12 = scmp.ne.s32.totalorder %s280_s14, %s1941_s24  ;;  %p1950_p4 = scmp.lt.s32.totalorder %s1941_s24, %s1941_s24 }
  0x19   : > { %p1944_p13 = pnand %p1942_p12, %p1930_p7  ;;  %p1951_p3 = por %p1950_p4, %p1949_p1 }
  0x1b   : > { %p1945_p0 = pneg %p1944_p13 }
  0x1d   : > { %p1952_p2 = pnand %p1951_p3, %p1945_p0 }
  0x1f   : > { %1955 = shalt.err (!%p1952_p2)
}
  0x20   : > { %s1969_s25 = smov 128   ;;  %s1970_s26 = smov 8  }
  0x21   : > { %1825 = dma.hbm_to_vmem [thread:$0]  (!%p2047_p5), %s2551_s6, 2048, %s280_s14, [#allocation4], %s1969_s25, %s1969_s25, %s1970_s26  }
  0x22   : > { %p2561_p6 = scmp.ne.s32.totalorder %s2558_s15, 0 }
  0x23   : > { %p2562_p8 = scmp.ne.s32.totalorder (!%p2561_p6), %s2559_s5, 0 }
  0x24   : > { %307 = sbr.rel (%p2561_p6) target bundleno = 803 (0x323), region = 52 }
  0x2b   : > { %1961 = dma.done.wait (%p2562_p8), [#allocation4], 2048  }
  0x2c   : > { %1963 = vsyncadd (%p2562_p8), [#allocation4], 4294965248  ;;  %v1971_v0 = vmov 0   ;;  %v1840_v1 = vld [vmem:[%s2546_s1 + $0x4] ss:$16 sps:$4 sm:$0xff]   ;;  %s1647_s17 = sshll.u32 %s1640_s12, 4 }
  0x2d   : > { %639 = vmatprep.mubr.bf16.mxu0 %v1971_v0  ;;  %752 = vmatprep.mubr.bf16.mxu1 %v1971_v0  ;;  %v1842_v2 = vld [vmem:[%s2546_s1 + $0xc] ss:$16 sps:$4 sm:$0xff]   ;;  %v1844_v3 = vld [vmem:[%s2546_s1] ss:$16 sps:$4 sm:$0xff]   ;;  %v1845_v4 = vld [vmem:[%s2546_s1 + $0x8] ss:$16 sps:$4 sm:$0xff]  }
  0x2e   : > { %607 = vmatprep.subr.bf16.mxu0 %v1840_v1  ;;  %720 = vmatprep.subr.bf16.mxu1 %v1842_v2  ;;  %v1846_v5 = vld [vmem:[%s2546_s1 + $0x24] ss:$16 sps:$4 sm:$0xff]   ;;  %v1848_v6 = vld [vmem:[%s2546_s1 + $0x2c] ss:$16 sps:$4 sm:$0xff]   ;;  %v1850_v7 = vld [vmem:[%s2546_s1 + $0x20] ss:$16 sps:$4 sm:$0xff]  }
  0x2f   : > { %608 = vmatpush1.bf16.msra.mxu0 %v1844_v3  ;;  %721 = vmatpush1.bf16.msra.mxu1 %v1845_v4  ;;  %v1851_v8 = vld [vmem:[%s2546_s1 + $0x28] ss:$16 sps:$4 sm:$0xff]   ;;  %v1852_v9 = vld [vmem:[%s2546_s1 + $0x44] ss:$16 sps:$4 sm:$0xff]   ;;  %v1854_v10 = vld [vmem:[%s2546_s1 + $0x4c] ss:$16 sps:$4 sm:$0xff]  }
  0x30   : > { %609 = vmatprep.subr.bf16.mxu0 %v1846_v5  ;;  %722 = vmatprep.subr.bf16.mxu1 %v1848_v6  ;;  %v1856_v11 = vld [vmem:[%s2546_s1 + $0x40] ss:$16 sps:$4 sm:$0xff]   ;;  %v1857_v12 = vld [vmem:[%s2546_s1 + $0x48] ss:$16 sps:$4 sm:$0xff]   ;;  %v1858_v13 = vld [vmem:[%s2546_s1 + $0x64] ss:$16 sps:$4 sm:$0xff]  }
  0x31   : > { %v1860_v14 = vld [vmem:[%s2546_s1 + $0x6c] ss:$16 sps:$4 sm:$0xff]   ;;  %v1862_v15 = vld [vmem:[%s2546_s1 + $0x60] ss:$16 sps:$4 sm:$0xff]   ;;  %v1863_v16 = vld [vmem:[%s2546_s1 + $0x68] ss:$16 sps:$4 sm:$0xff]  }
  0x32   : > { %v1864_v17 = vld [vmem:[%s2546_s1 + $0x84] ss:$16 sps:$4 sm:$0xff]   ;;  %v1866_v18 = vld [vmem:[%s2546_s1 + $0x8c] ss:$16 sps:$4 sm:$0xff]   ;;  %p350_p2 = scmp.lt.s32.totalorder %s1647_s17, 31  ;;  %s1145_s10 = sld [smem:[#allocation2]] }
  0x33   : > { %610 = vmatpush1.bf16.msra.mxu0 %v1850_v7  ;;  %723 = vmatpush1.bf16.msra.mxu1 %v1851_v8  ;;  %v1868_v19 = vld [vmem:[%s2546_s1 + $0x80] ss:$16 sps:$4 sm:$0xff]   ;;  %v1869_v20 = vld [vmem:[%s2546_s1 + $0x88] ss:$16 sps:$4 sm:$0xff]   ;;  %v1870_v21 = vld [vmem:[%s2546_s1 + $0xa4] ss:$16 sps:$4 sm:$0xff]  }
  0x34   : > { %611 = vmatprep.subr.bf16.mxu0 %v1852_v9  ;;  %724 = vmatprep.subr.bf16.mxu1 %v1854_v10  ;;  %v1872_v22 = vld [vmem:[%s2546_s1 + $0xac] ss:$16 sps:$4 sm:$0xff]   ;;  %s2564_s17 = smov (!%p350_p2, %s1647_s17), 31  ;;  %v1874_v23 = vld [vmem:[%s2546_s1 + $0xa0] ss:$16 sps:$4 sm:$0xff]  }
  0x35   : > { %v1875_v24 = vld [vmem:[%s2546_s1 + $0xa8] ss:$16 sps:$4 sm:$0xff]   ;;  %v1876_v25 = vld [vmem:[%s2546_s1 + $0xc4] ss:$16 sps:$4 sm:$0xff]   ;;  %v1878_v26 = vld [vmem:[%s2546_s1 + $0xcc] ss:$16 sps:$4 sm:$0xff]  }
  0x36   : > { %s2155_s22 = sshll.u32 %s2564_s17, 3  ;;  %v1880_v27 = vld [vmem:[%s2546_s1 + $0xc0] ss:$16 sps:$4 sm:$0xff]   ;;  %v1881_v28 = vld [vmem:[%s2546_s1 + $0xc8] ss:$16 sps:$4 sm:$0xff]  }
  0x37   : > { %612 = vmatpush1.bf16.msra.mxu0 %v1856_v11  ;;  %725 = vmatpush1.bf16.msra.mxu1 %v1857_v12  ;;  %s2167_s28 = scalar_lea.vmem %s2545_s0, %s2155_s22  ;;  %v1882_v29 = vld [vmem:[%s2546_s1 + $0xe4] ss:$16 sps:$4 sm:$0xff]   ;;  %v1884_v30 = vld [vmem:[%s2546_s1 + $0xec] ss:$16 sps:$4 sm:$0xff]   ;;  %v1886_v31 = vld [vmem:[%s2546_s1 + $0xe0] ss:$16 sps:$4 sm:$0xff]   ;;  %s2407_s16 = scalar_lea.vmem %s2553_s8, %s2155_s22 }
  0x38   : > { %613 = vmatprep.subr.bf16.mxu0 %v1858_v13  ;;  %726 = vmatprep.subr.bf16.mxu1 %v1860_v14  ;;  %v1887_v32 = vld [vmem:[%s2546_s1 + $0xe8] ss:$16 sps:$4 sm:$0xff]   ;;  %v2182_v33 = vld [vmem:[%s2167_s28] sm:$0xff]  ;;  %v2199_v39 = vld [vmem:[%s2167_s28 + $0x10] sm:$0xff]  ;;  %s2494_s23 = scalar_lea.vmem %s2554_s9, %s2155_s22 }
  0x39   : > { %v2185_v34 = vld [vmem:[%s2167_s28 + $0x8] sm:$0xff]  ;;  %v1888_v35 = vld [vmem:[%s2548_s3 + $0x40] sm:$0xff]   ;;  %v2204_v40 = vld [vmem:[%s2167_s28 + $0x18] sm:$0xff] }
  0x3a   : > { %v385_v36 = vpack.c.bf16 %v2185_v34, %v2182_v33  ;;  %v1889_v37 = vld [vmem:[%s2548_s3] sm:$0xff]   ;;  %v1890_v38 = vld [vmem:[%s2548_s3 + $0x48] sm:$0xff]   ;;  %v1892_v42 = vld [vmem:[%s2548_s3 + $0x50] sm:$0xff]   ;;  %v386_v43 = vpack.c.bf16 %v2204_v40, %v2199_v39 }
  0x3b   : > { %614 = vmatpush1.bf16.msra.mxu0 %v1862_v15  ;;  %727 = vmatpush1.bf16.msra.mxu1 %v1863_v16  ;;  %v1891_v41 = vld [vmem:[%s2548_s3 + $0x8] sm:$0xff]   ;;  %v1893_v44 = vld [vmem:[%s2548_s3 + $0x10] sm:$0xff]   ;;  %v1894_v45 = vld [vmem:[%s2548_s3 + $0x58] sm:$0xff]  }
  0x3c   : > { %615 = vmatprep.subr.bf16.mxu0 %v1864_v17  ;;  %728 = vmatprep.subr.bf16.mxu1 %v1866_v18  ;;  %v2221_v46 = vld [vmem:[%s2167_s28 + $0x20] sm:$0xff]  ;;  %v2224_v47 = vld [vmem:[%s2167_s28 + $0x28] sm:$0xff]  ;;  %v1895_v48 = vld [vmem:[%s2548_s3 + $0x18] sm:$0xff]  }
  0x3d   : > { %v1896_v49 = vld [vmem:[%s2548_s3 + $0x60] sm:$0xff]   ;;  %v387_v50 = vpack.c.bf16 %v2224_v47, %v2221_v46  ;;  %v1898_v52 = vld [vmem:[%s2548_s3 + $0x68] sm:$0xff]   ;;  %v2245_v53 = vld [vmem:[%s2167_s28 + $0x30] sm:$0xff] }
  0x3e   : > { %v1897_v51 = vld [vmem:[%s2548_s3 + $0x20] sm:$0xff]   ;;  %v2248_v54 = vld [vmem:[%s2167_s28 + $0x38] sm:$0xff]  ;;  %v1899_v55 = vld [vmem:[%s2548_s3 + $0x28] sm:$0xff]  }
  0x3f   : > { %616 = vmatpush1.bf16.msra.mxu0 %v1868_v19  ;;  %729 = vmatpush1.bf16.msra.mxu1 %v1869_v20  ;;  %v1900_v56 = vld [vmem:[%s2548_s3 + $0x70] sm:$0xff]   ;;  %v388_v57 = vpack.c.bf16 %v2248_v54, %v2245_v53  ;;  %v2264_v59 = vld [vmem:[%s2167_s28 + $0x40] sm:$0xff]  ;;  %v2267_v60 = vld [vmem:[%s2167_s28 + $0x48] sm:$0xff] }
  0x40   : > { %617 = vmatprep.subr.bf16.mxu0 %v1870_v21  ;;  %730 = vmatprep.subr.bf16.mxu1 %v1872_v22  ;;  %v1901_v58 = vld [vmem:[%s2548_s3 + $0x30] sm:$0xff]   ;;  %v389_v61 = vpack.c.bf16 %v2267_v60, %v2264_v59  ;;  %v2277_v63 = vld [vmem:[%s2167_s28 + $0x58] sm:$0xff]  ;;  %v2284_v2 = vld [vmem:[%s2167_s28 + $0x60] sm:$0xff] }
  0x41   : > { %v2274_v62 = vld [vmem:[%s2167_s28 + $0x50] sm:$0xff]  ;;  %v2287_v3 = vld [vmem:[%s2167_s28 + $0x68] sm:$0xff]  ;;  %v2297_v6 = vld [vmem:[%s2167_s28 + $0x78] sm:$0xff] }
  0x42   : > { %v390_v1 = vpack.c.bf16 %v2277_v63, %v2274_v62  ;;  %v391_v4 = vpack.c.bf16 %v2287_v3, %v2284_v2  ;;  %v2294_v5 = vld [vmem:[%s2167_s28 + $0x70] sm:$0xff]  ;;  %v1902_v8 = vld [vmem:[%s2548_s3 + $0x78] sm:$0xff]   ;;  %v1904_v10 = vld [vmem:[#allocation3] ss:$8 sps:$4 sm:$0xff]  }
  0x43   : > { %618 = vmatpush1.bf16.msra.mxu0 %v1874_v23  ;;  %731 = vmatpush1.bf16.msra.mxu1 %v1875_v24  ;;  %v392_v7 = vpack.c.bf16 %v2297_v6, %v2294_v5  ;;  %v1903_v9 = vld [vmem:[%s2548_s3 + $0x38] sm:$0xff]   ;;  %v1906_v11 = vld [vmem:[#allocation3 + $0x4] ss:$8 sps:$4 sm:$0xff]   ;;  %v1910_v15 = vld [vmem:[#allocation3 + $0x20] ss:$8 sps:$4 sm:$0xff]   ;;  %v427_v24 = vlaneseq }
  0x44   : > { %619 = vmatprep.subr.bf16.mxu0 %v1876_v25  ;;  %732 = vmatprep.subr.bf16.mxu1 %v1878_v26  ;;  %v1909_v12 = vld [vmem:[#allocation3 + $0x14] ss:$8 sps:$4 sm:$0xff]   ;;  %v1907_v13 = vld [vmem:[#allocation3 + $0x10] ss:$8 sps:$4 sm:$0xff]   ;;  %v1912_v14 = vld [vmem:[#allocation3 + $0x24] ss:$8 sps:$4 sm:$0xff]  }
  0x45   : > { %v1915_v16 = vld [vmem:[#allocation3 + $0x34] ss:$8 sps:$4 sm:$0xff]   ;;  %v1913_v17 = vld [vmem:[#allocation3 + $0x30] ss:$8 sps:$4 sm:$0xff]   ;;  %v1918_v18 = vld [vmem:[#allocation3 + $0x44] ss:$8 sps:$4 sm:$0xff]  }
  0x46   : > { %v1916_v19 = vld [vmem:[#allocation3 + $0x40] ss:$8 sps:$4 sm:$0xff]   ;;  %v1921_v20 = vld [vmem:[#allocation3 + $0x54] ss:$8 sps:$4 sm:$0xff]   ;;  %v1919_v21 = vld [vmem:[#allocation3 + $0x50] ss:$8 sps:$4 sm:$0xff]  }
  0x47   : > { %620 = vmatpush1.bf16.msra.mxu0 %v1880_v27  ;;  %733 = vmatpush1.bf16.msra.mxu1 %v1881_v28  ;;  %v1924_v22 = vld [vmem:[#allocation3 + $0x64] ss:$8 sps:$4 sm:$0xff]   ;;  %v1922_v23 = vld [vmem:[#allocation3 + $0x60] ss:$8 sps:$4 sm:$0xff]   ;;  %v2308_v25 = vshrl.u32 %v427_v24, 7 }
  0x48   : > { %621 = vmatprep.subr.bf16.mxu0 %v1882_v29  ;;  %734 = vmatprep.subr.bf16.mxu1 %v1884_v30  ;;  %v425_v28 = vld [vmem:[%s2547_s2] sm:$0xf] }
  0x49   : > { %v429_v26 = vsub.s32 0, %v2308_v25  ;;  %v437_v27 = vsub.s32 2, %v2308_v25  ;;  %v433_v29 = vsub.s32 1, %v2308_v25  ;;  %v441_v30 = vsub.s32 3, %v2308_v25 }
  0x4b   : > { %622 = vmatpush1.bf16.msra.mxu0 %v1886_v31  ;;  %735 = vmatpush1.bf16.msra.mxu1 %v1887_v32  ;;  %v2319_v31 = vrot.slane %v425_v28, %v429_v26  ;;  %v2321_v32 = vrot.slane %v425_v28, %v437_v27 }
  0x4c   : > { %1754 = vmatprep.subr.bf16.mxu0 %v1888_v35  ;;  %1311 = vmatprep.subr.bf16.mxu1 %v1906_v11  ;;  %v2325_v35 = vrot.slane %v425_v28, %v433_v29 }
  0x4e   : > { %640 = vmatmul.mubr.bf16.vlgmr.msra.gmra.mrb[0].mxu0 %v385_v36  ;;  %753 = vmatmul.mubr.bf16.vlgmr.msra.gmra.mrb[0].mxu1 %v385_v36  ;;  %v2327_v36 = vrot.slane %v425_v28, %v441_v30 }
  0x4f   : > { %649 = vmatprep.mubr.bf16.mxu0 %v1971_v0  ;;  %762 = vmatprep.mubr.bf16.mxu1 %v1971_v0 }
  0x50   : > { %1755 = vmatpush3.bf16.msra.mxu0 %v1889_v37  ;;  %1312 = vmatpush1.bf16.msra.mxu1 %v1904_v10 }
  0x51   : > { %1756 = vmatprep.subr.bf16.mxu0 %v1890_v38  ;;  %1313 = vmatprep.subr.bf16.mxu1 %v1909_v12 }
  0x54   : > { %1757 = vmatpush3.bf16.msra.mxu0 %v1891_v41  ;;  %1314 = vmatpush1.bf16.msra.mxu1 %v1907_v13 }
  0x55   : > { %1758 = vmatprep.subr.bf16.mxu0 %v1892_v42  ;;  %1315 = vmatprep.subr.bf16.mxu1 %v1912_v14 }
  0x56   : > { %650 = vmatmul.mubr.bf16.gmra.mrb[4].mxu0 %v386_v43  ;;  %763 = vmatmul.mubr.bf16.gmra.mrb[4].mxu1 %v386_v43 }
  0x57   : > { %659 = vmatprep.mubr.bf16.mxu0 %v1971_v0  ;;  %772 = vmatprep.mubr.bf16.mxu1 %v1971_v0 }
  0x58   : > { %1759 = vmatpush3.bf16.msra.mxu0 %v1893_v44  ;;  %1316 = vmatpush1.bf16.msra.mxu1 %v1910_v15 }
  0x59   : > { %1760 = vmatprep.subr.bf16.mxu0 %v1894_v45  ;;  %1317 = vmatprep.subr.bf16.mxu1 %v1915_v16 }
  0x5c   : > { %1761 = vmatpush3.bf16.msra.mxu0 %v1895_v48  ;;  %1318 = vmatpush1.bf16.msra.mxu1 %v1913_v17 }
  0x5d   : > { %1762 = vmatprep.subr.bf16.mxu0 %v1896_v49  ;;  %1319 = vmatprep.subr.bf16.mxu1 %v1918_v18 }
  0x5e   : > { %660 = vmatmul.mubr.bf16.gmra.mrb[8].mxu0 %v387_v50  ;;  %773 = vmatmul.mubr.bf16.gmra.mrb[8].mxu1 %v387_v50 }
  0x5f   : > { %669 = vmatprep.mubr.bf16.mxu0 %v1971_v0  ;;  %782 = vmatprep.mubr.bf16.mxu1 %v1971_v0 }
  0x60   : > { %1763 = vmatpush3.bf16.msra.mxu0 %v1897_v51  ;;  %1320 = vmatpush1.bf16.msra.mxu1 %v1916_v19 }
  0x61   : > { %1764 = vmatprep.subr.bf16.mxu0 %v1898_v52  ;;  %1321 = vmatprep.subr.bf16.mxu1 %v1921_v20 }
  0x64   : > { %1765 = vmatpush3.bf16.msra.mxu0 %v1899_v55  ;;  %1322 = vmatpush1.bf16.msra.mxu1 %v1919_v21 }
  0x65   : > { %1766 = vmatprep.subr.bf16.mxu0 %v1900_v56  ;;  %1323 = vmatprep.subr.bf16.mxu1 %v1924_v22 }
  0x66   : > { %670 = vmatmul.mubr.bf16.gmra.mrb[12].mxu0 %v388_v57  ;;  %783 = vmatmul.mubr.bf16.gmra.mrb[12].mxu1 %v388_v57 }
  0x67   : > { %679 = vmatprep.mubr.bf16.mxu0 %v1971_v0  ;;  %792 = vmatprep.mubr.bf16.mxu1 %v1971_v0 }
  0x68   : > { %1767 = vmatpush3.bf16.msra.mxu0 %v1901_v58  ;;  %1324 = vmatpush1.bf16.msra.mxu1 %v1922_v23 }
  0x69   : > { %1768 = vmatprep.subr.bf16.mxu0 %v1902_v8 }
  0x6c   : > { %1769 = vmatpush3.bf16.msra.mxu0 %v1903_v9 }
  0x6e   : > { %680 = vmatmul.mubr.bf16.gmra.mrb[16].mxu0 %v389_v61  ;;  %793 = vmatmul.mubr.bf16.gmra.mrb[16].mxu1 %v389_v61 }
  0x6f   : > { %689 = vmatprep.mubr.bf16.mxu0 %v1971_v0  ;;  %802 = vmatprep.mubr.bf16.mxu1 %v1971_v0 }
  0x76   : > { %690 = vmatmul.mubr.bf16.gmra.mrb[20].mxu0 %v390_v1  ;;  %803 = vmatmul.mubr.bf16.gmra.mrb[20].mxu1 %v390_v1 }
  0x77   : > { %699 = vmatprep.mubr.bf16.mxu0 %v1971_v0  ;;  %812 = vmatprep.mubr.bf16.mxu1 %v1971_v0 }
  0x7e   : > { %700 = vmatmul.mubr.bf16.gmra.mrb[24].mxu0 %v391_v4  ;;  %813 = vmatmul.mubr.bf16.gmra.mrb[24].mxu1 %v391_v4 }
  0x7f   : > { %709 = vmatprep.mubr.bf16.mxu0 %v1971_v0  ;;  %822 = vmatprep.mubr.bf16.mxu1 %v1971_v0 }
  0x86   : > { %710 = vmatmul.mubr.bf16.gmra.mrb[28].mxu0 %v392_v7  ;;  %823 = vmatmul.mubr.bf16.gmra.mrb[28].mxu1 %v392_v7 }
  0x87   : > { %1343 = vmatprep.mubr.bf16.mxu1 %v1971_v0 }
 0x121   : > { %v641_v37 = vpop.f32.mrb[0].mxu0  ;;  %v754_v38 = vpop.f32.mrb[0].mxu1 }
 0x122   : > { %v642_v41 = vadd.f32 %v641_v37, %v2319_v31  ;;  %v755_v42 = vadd.f32 %v754_v38, %v2321_v32  ;;  %v643_v43 = vpop.f32.mrb[1].mxu0  ;;  %v756_v44 = vpop.f32.mrb[1].mxu1 }
 0x123   : > { %v644_v45 = vadd.f32 %v643_v43, %v2325_v35  ;;  %v757_v48 = vadd.f32 %v756_v44, %v2327_v36  ;;  %v645_v49 = vpop.f32.mrb[2].mxu0  ;;  %v758_v50 = vpop.f32.mrb[2].mxu1 }
 0x124   : > { %v833_v51 = vmax.f32 %v755_v42, 0.0  ;;  %v759_v52 = vadd.f32 %v758_v50, %v2321_v32  ;;  %v647_v55 = vpop.f32.mrb[3].mxu0  ;;  %v760_v56 = vpop.f32.mrb[3].mxu1  ;;  %v646_v1 = vadd.f32 %v645_v49, %v2319_v31 }
 0x125   : > { %v834_v57 = vmax.f32 %v757_v48, 0.0  ;;  %v761_v58 = vadd.f32 %v760_v56, %v2327_v36  ;;  %v648_v8 = vadd.f32 %v647_v55, %v2325_v35 }
 0x126   : > { %v865_v61 = vmul.f32 %v833_v51, %v642_v41  ;;  %v835_v4 = vmax.f32 %v759_v52, 0.0 }
 0x127   : > { %v866_v7 = vmul.f32 %v834_v57, %v644_v45  ;;  %v836_v9 = vmax.f32 %v761_v58, 0.0 }
 0x128   : > { %v867_v10 = vmul.f32 %v835_v4, %v646_v1 }
 0x129   : > { %v868_v11 = vmul.f32 %v836_v9, %v648_v8  ;;  %v651_v12 = vpop.f32.mrb[4].mxu0  ;;  %v764_v13 = vpop.f32.mrb[4].mxu1 }
 0x12a   : > { %v897_v14 = vpack.c.bf16 %v867_v10, %v865_v61  ;;  %v652_v15 = vadd.f32 %v651_v12, %v2319_v31  ;;  %v765_v16 = vadd.f32 %v764_v13, %v2321_v32  ;;  %v653_v17 = vpop.f32.mrb[5].mxu0  ;;  %v766_v18 = vpop.f32.mrb[5].mxu1 }
 0x12b   : > { %v654_v19 = vadd.f32 %v653_v17, %v2325_v35  ;;  %v767_v20 = vadd.f32 %v766_v18, %v2327_v36  ;;  %v655_v21 = vpop.f32.mrb[6].mxu0  ;;  %v768_v22 = vpop.f32.mrb[6].mxu1  ;;  %v898_v23 = vpack.c.bf16 %v868_v11, %v866_v7 }
 0x12c   : > { %v837_v24 = vmax.f32 %v765_v16, 0.0  ;;  %v769_v27 = vadd.f32 %v768_v22, %v2321_v32  ;;  %v657_v28 = vpop.f32.mrb[7].mxu0  ;;  %v770_v30 = vpop.f32.mrb[7].mxu1  ;;  %v656_v42 = vadd.f32 %v655_v21, %v2319_v31 }
 0x12d   : > { %v838_v37 = vmax.f32 %v767_v20, 0.0  ;;  %v771_v38 = vadd.f32 %v770_v30, %v2327_v36  ;;  %1080 = vmatprep.mubr.bf16.mxu0 %v898_v23  ;;  %v658_v45 = vadd.f32 %v657_v28, %v2325_v35 }
 0x12e   : > { %v869_v41 = vmul.f32 %v837_v24, %v652_v15  ;;  %v839_v43 = vmax.f32 %v769_v27, 0.0  ;;  %1081 = vmatmul.mubr.bf16.vlgmr.msra.gmra.mrb[32].mxu0 %v897_v14 }
 0x12f   : > { %v870_v44 = vmul.f32 %v838_v37, %v654_v19  ;;  %v840_v48 = vmax.f32 %v771_v38, 0.0 }
 0x130   : > { %v871_v49 = vmul.f32 %v839_v43, %v656_v42 }
 0x131   : > { %v872_v50 = vmul.f32 %v840_v48, %v658_v45  ;;  %v661_v51 = vpop.f32.mrb[8].mxu0  ;;  %v774_v52 = vpop.f32.mrb[8].mxu1 }
 0x132   : > { %v662_v55 = vadd.f32 %v661_v51, %v2319_v31  ;;  %v775_v56 = vadd.f32 %v774_v52, %v2321_v32  ;;  %v663_v57 = vpop.f32.mrb[9].mxu0  ;;  %v776_v58 = vpop.f32.mrb[9].mxu1  ;;  %v899_v61 = vpack.c.bf16 %v871_v49, %v869_v41 }
 0x133   : > { %v664_v1 = vadd.f32 %v663_v57, %v2325_v35  ;;  %v777_v4 = vadd.f32 %v776_v58, %v2327_v36  ;;  %v665_v7 = vpop.f32.mrb[10].mxu0  ;;  %v778_v8 = vpop.f32.mrb[10].mxu1  ;;  %v900_v9 = vpack.c.bf16 %v872_v50, %v870_v44 }
 0x134   : > { %v841_v10 = vmax.f32 %v775_v56, 0.0  ;;  %v779_v11 = vadd.f32 %v778_v8, %v2321_v32  ;;  %v667_v12 = vpop.f32.mrb[11].mxu0  ;;  %v780_v13 = vpop.f32.mrb[11].mxu1  ;;  %v666_v17 = vadd.f32 %v665_v7, %v2319_v31 }
 0x135   : > { %v842_v14 = vmax.f32 %v777_v4, 0.0  ;;  %v781_v15 = vadd.f32 %v780_v13, %v2327_v36  ;;  %1088 = vmatprep.mubr.bf16.mxu0 %v900_v9  ;;  %v668_v20 = vadd.f32 %v667_v12, %v2325_v35 }
 0x136   : > { %v873_v16 = vmul.f32 %v841_v10, %v662_v55  ;;  %v843_v18 = vmax.f32 %v779_v11, 0.0  ;;  %1089 = vmatmul.mubr.bf16.gmra.mrb[36].mxu0 %v899_v61 }
 0x137   : > { %v874_v19 = vmul.f32 %v842_v14, %v664_v1  ;;  %v844_v21 = vmax.f32 %v781_v15, 0.0 }
 0x138   : > { %v875_v22 = vmul.f32 %v843_v18, %v666_v17 }
 0x139   : > { %v876_v23 = vmul.f32 %v844_v21, %v668_v20  ;;  %v671_v24 = vpop.f32.mrb[12].mxu0  ;;  %v784_v27 = vpop.f32.mrb[12].mxu1 }
 0x13a   : > { %v672_v28 = vadd.f32 %v671_v24, %v2319_v31  ;;  %v785_v30 = vadd.f32 %v784_v27, %v2321_v32  ;;  %v673_v37 = vpop.f32.mrb[13].mxu0  ;;  %v786_v38 = vpop.f32.mrb[13].mxu1  ;;  %v901_v41 = vpack.c.bf16 %v875_v22, %v873_v16 }
 0x13b   : > { %v674_v42 = vadd.f32 %v673_v37, %v2325_v35  ;;  %v787_v43 = vadd.f32 %v786_v38, %v2327_v36  ;;  %v675_v44 = vpop.f32.mrb[14].mxu0  ;;  %v788_v45 = vpop.f32.mrb[14].mxu1  ;;  %v902_v48 = vpack.c.bf16 %v876_v23, %v874_v19 }
 0x13c   : > { %v845_v49 = vmax.f32 %v785_v30, 0.0  ;;  %v789_v50 = vadd.f32 %v788_v45, %v2321_v32  ;;  %v677_v51 = vpop.f32.mrb[15].mxu0  ;;  %v790_v52 = vpop.f32.mrb[15].mxu1  ;;  %v676_v58 = vadd.f32 %v675_v44, %v2319_v31 }
 0x13d   : > { %v846_v55 = vmax.f32 %v787_v43, 0.0  ;;  %v791_v56 = vadd.f32 %v790_v52, %v2327_v36  ;;  %1096 = vmatprep.mubr.bf16.mxu0 %v902_v48  ;;  %v678_v4 = vadd.f32 %v677_v51, %v2325_v35 }
 0x13e   : > { %v877_v57 = vmul.f32 %v845_v49, %v672_v28  ;;  %v847_v61 = vmax.f32 %v789_v50, 0.0  ;;  %1097 = vmatmul.mubr.bf16.gmra.mrb[40].mxu0 %v901_v41 }
 0x13f   : > { %v878_v1 = vmul.f32 %v846_v55, %v674_v42  ;;  %v848_v7 = vmax.f32 %v791_v56, 0.0 }
 0x140   : > { %v879_v8 = vmul.f32 %v847_v61, %v676_v58 }
 0x141   : > { %v880_v9 = vmul.f32 %v848_v7, %v678_v4  ;;  %v681_v10 = vpop.f32.mrb[16].mxu0  ;;  %v794_v11 = vpop.f32.mrb[16].mxu1 }
 0x142   : > { %v682_v12 = vadd.f32 %v681_v10, %v2319_v31  ;;  %v795_v13 = vadd.f32 %v794_v11, %v2321_v32  ;;  %v683_v14 = vpop.f32.mrb[17].mxu0  ;;  %v796_v15 = vpop.f32.mrb[17].mxu1  ;;  %v903_v16 = vpack.c.bf16 %v879_v8, %v877_v57 }
 0x143   : > { %v684_v17 = vadd.f32 %v683_v14, %v2325_v35  ;;  %v797_v18 = vadd.f32 %v796_v15, %v2327_v36  ;;  %v685_v19 = vpop.f32.mrb[18].mxu0  ;;  %v798_v20 = vpop.f32.mrb[18].mxu1  ;;  %v904_v21 = vpack.c.bf16 %v880_v9, %v878_v1 }
 0x144   : > { %v849_v22 = vmax.f32 %v795_v13, 0.0  ;;  %v799_v23 = vadd.f32 %v798_v20, %v2321_v32  ;;  %v687_v24 = vpop.f32.mrb[19].mxu0  ;;  %v800_v27 = vpop.f32.mrb[19].mxu1  ;;  %v686_v38 = vadd.f32 %v685_v19, %v2319_v31 }
 0x145   : > { %v850_v28 = vmax.f32 %v797_v18, 0.0  ;;  %v801_v30 = vadd.f32 %v800_v27, %v2327_v36  ;;  %1104 = vmatprep.mubr.bf16.mxu0 %v904_v21  ;;  %v688_v43 = vadd.f32 %v687_v24, %v2325_v35 }
 0x146   : > { %v881_v37 = vmul.f32 %v849_v22, %v682_v12  ;;  %v851_v41 = vmax.f32 %v799_v23, 0.0  ;;  %1105 = vmatmul.mubr.bf16.gmra.mrb[44].mxu0 %v903_v16 }
 0x147   : > { %v882_v42 = vmul.f32 %v850_v28, %v684_v17  ;;  %v852_v44 = vmax.f32 %v801_v30, 0.0 }
 0x148   : > { %v883_v45 = vmul.f32 %v851_v41, %v686_v38 }
 0x149   : > { %v884_v48 = vmul.f32 %v852_v44, %v688_v43  ;;  %v691_v49 = vpop.f32.mrb[20].mxu0  ;;  %v804_v50 = vpop.f32.mrb[20].mxu1 }
 0x14a   : > { %v692_v51 = vadd.f32 %v691_v49, %v2319_v31  ;;  %v805_v52 = vadd.f32 %v804_v50, %v2321_v32  ;;  %v693_v55 = vpop.f32.mrb[21].mxu0  ;;  %v806_v56 = vpop.f32.mrb[21].mxu1  ;;  %v905_v57 = vpack.c.bf16 %v883_v45, %v881_v37 }
 0x14b   : > { %v694_v58 = vadd.f32 %v693_v55, %v2325_v35  ;;  %v807_v61 = vadd.f32 %v806_v56, %v2327_v36  ;;  %v695_v1 = vpop.f32.mrb[22].mxu0  ;;  %v808_v4 = vpop.f32.mrb[22].mxu1  ;;  %v906_v7 = vpack.c.bf16 %v884_v48, %v882_v42 }
 0x14c   : > { %v853_v8 = vmax.f32 %v805_v52, 0.0  ;;  %v809_v9 = vadd.f32 %v808_v4, %v2321_v32  ;;  %v697_v10 = vpop.f32.mrb[23].mxu0  ;;  %v810_v11 = vpop.f32.mrb[23].mxu1  ;;  %v696_v15 = vadd.f32 %v695_v1, %v2319_v31 }
 0x14d   : > { %v854_v12 = vmax.f32 %v807_v61, 0.0  ;;  %v811_v13 = vadd.f32 %v810_v11, %v2327_v36  ;;  %1112 = vmatprep.mubr.bf16.mxu0 %v906_v7  ;;  %v698_v18 = vadd.f32 %v697_v10, %v2325_v35 }
 0x14e   : > { %v885_v14 = vmul.f32 %v853_v8, %v692_v51  ;;  %v855_v16 = vmax.f32 %v809_v9, 0.0  ;;  %1113 = vmatmul.mubr.bf16.gmra.mrb[48].mxu0 %v905_v57 }
 0x14f   : > { %v886_v17 = vmul.f32 %v854_v12, %v694_v58  ;;  %v856_v19 = vmax.f32 %v811_v13, 0.0 }
 0x150   : > { %v887_v20 = vmul.f32 %v855_v16, %v696_v15 }
 0x151   : > { %v888_v21 = vmul.f32 %v856_v19, %v698_v18  ;;  %v701_v22 = vpop.f32.mrb[24].mxu0  ;;  %v814_v23 = vpop.f32.mrb[24].mxu1 }
 0x152   : > { %v702_v24 = vadd.f32 %v701_v22, %v2319_v31  ;;  %v815_v27 = vadd.f32 %v814_v23, %v2321_v32  ;;  %v703_v28 = vpop.f32.mrb[25].mxu0  ;;  %v816_v30 = vpop.f32.mrb[25].mxu1  ;;  %v907_v37 = vpack.c.bf16 %v887_v20, %v885_v14 }
 0x153   : > { %v704_v38 = vadd.f32 %v703_v28, %v2325_v35  ;;  %v817_v41 = vadd.f32 %v816_v30, %v2327_v36  ;;  %v705_v42 = vpop.f32.mrb[26].mxu0  ;;  %v818_v43 = vpop.f32.mrb[26].mxu1  ;;  %v908_v44 = vpack.c.bf16 %v888_v21, %v886_v17 }
 0x154   : > { %v857_v45 = vmax.f32 %v815_v27, 0.0  ;;  %v819_v48 = vadd.f32 %v818_v43, %v2321_v32  ;;  %v707_v49 = vpop.f32.mrb[27].mxu0  ;;  %v820_v50 = vpop.f32.mrb[27].mxu1  ;;  %v706_v56 = vadd.f32 %v705_v42, %v2319_v31 }
 0x155   : > { %v858_v51 = vmax.f32 %v817_v41, 0.0  ;;  %v821_v52 = vadd.f32 %v820_v50, %v2327_v36  ;;  %1120 = vmatprep.mubr.bf16.mxu0 %v908_v44  ;;  %v708_v61 = vadd.f32 %v707_v49, %v2325_v35  ;;  %v1925_v49 = vld [vmem:[#allocation3 + $0x70] ss:$8 sps:$4 sm:$0xff]  }
 0x156   : > { %v889_v55 = vmul.f32 %v857_v45, %v702_v24  ;;  %v859_v57 = vmax.f32 %v819_v48, 0.0  ;;  %1121 = vmatmul.mubr.bf16.gmra.mrb[52].mxu0 %v907_v37 }
 0x157   : > { %v890_v58 = vmul.f32 %v858_v51, %v704_v38  ;;  %v860_v1 = vmax.f32 %v821_v52, 0.0  ;;  %v2398_v52 = vstv %s1145_s10 }
 0x158   : > { %v891_v4 = vmul.f32 %v859_v57, %v706_v56 }
 0x159   : > { %v892_v7 = vmul.f32 %v860_v1, %v708_v61  ;;  %v711_v8 = vpop.f32.mrb[28].mxu0  ;;  %v824_v9 = vpop.f32.mrb[28].mxu1 }
 0x15a   : > { %v712_v10 = vadd.f32 %v711_v8, %v2319_v31  ;;  %v825_v11 = vadd.f32 %v824_v9, %v2321_v32  ;;  %v713_v12 = vpop.f32.mrb[29].mxu0  ;;  %v826_v13 = vpop.f32.mrb[29].mxu1  ;;  %v909_v14 = vpack.c.bf16 %v891_v4, %v889_v55 }
 0x15b   : > { %v714_v15 = vadd.f32 %v713_v12, %v2325_v35  ;;  %v827_v16 = vadd.f32 %v826_v13, %v2327_v36  ;;  %v715_v17 = vpop.f32.mrb[30].mxu0  ;;  %v828_v18 = vpop.f32.mrb[30].mxu1  ;;  %v910_v19 = vpack.c.bf16 %v892_v7, %v890_v58 }
 0x15c   : > { %v861_v20 = vmax.f32 %v825_v11, 0.0  ;;  %v829_v21 = vadd.f32 %v828_v18, %v2321_v32  ;;  %v717_v22 = vpop.f32.mrb[31].mxu0  ;;  %v830_v23 = vpop.f32.mrb[31].mxu1  ;;  %v716_v30 = vadd.f32 %v715_v17, %v2319_v31  ;;  %v1927_v32 = vld [vmem:[#allocation3 + $0x74] ss:$8 sps:$4 sm:$0xff]  }
 0x15d   : > { %v862_v24 = vmax.f32 %v827_v16, 0.0  ;;  %v831_v27 = vadd.f32 %v830_v23, %v2327_v36  ;;  %1128 = vmatprep.mubr.bf16.mxu0 %v910_v19  ;;  %v718_v41 = vadd.f32 %v717_v22, %v2325_v35  ;;  %1325 = vmatprep.subr.bf16.mxu1 %v1927_v32  ;;  %v2396_v31 = vld [vmem:[%s2549_s4] ss:$0 sm:$0xff] }
 0x15e   : > { %v893_v28 = vmul.f32 %v861_v20, %v712_v10  ;;  %v863_v37 = vmax.f32 %v829_v21, 0.0  ;;  %1129 = vmatmul.mubr.bf16.gmra.mrb[56].mxu0 %v909_v14  ;;  %1326 = vmatpush1.bf16.msra.mxu1 %v1925_v49 }
 0x15f   : > { %v894_v38 = vmul.f32 %v862_v24, %v714_v15  ;;  %v864_v42 = vmax.f32 %v831_v27, 0.0 }
 0x160   : > { %v895_v43 = vmul.f32 %v863_v37, %v716_v30 }
 0x161   : > { %v896_v44 = vmul.f32 %v864_v42, %v718_v41 }
 0x162   : > { %v911_v45 = vpack.c.bf16 %v895_v43, %v893_v28 }
 0x163   : > { %v912_v48 = vpack.c.bf16 %v896_v44, %v894_v38 }
 0x165   : > { %1136 = vmatprep.mubr.bf16.mxu0 %v912_v48 }
 0x166   : > { %1137 = vmatmul.mubr.bf16.gmra.mrb[60].mxu0 %v911_v45 }
 0x201   : > { %v1770_v36 = vpop.f32.mrb[32].mxu0 }
 0x202   : > { %v1771_v35 = vpop.f32.mrb[33].mxu0 }
 0x203   : > { %v1772_v50 = vadd.f32 %v1771_v35, %v1770_v36  ;;  %v1773_v51 = vpop.f32.mrb[34].mxu0 }
 0x204   : > { %v1774_v55 = vpop.f32.mrb[35].mxu0 }
 0x205   : > { %v1083_v56 = vadd.f32 %v1772_v50, %v2396_v31  ;;  %v1775_v57 = vadd.f32 %v1774_v55, %v1773_v51 }
 0x207   : > { %v1147_v58 = vmul.f32 %v2398_v52, %v1083_v56  ;;  %v1086_v61 = vadd.f32 %v1775_v57, %v2396_v31 }
 0x209   : > { %v1163_v1 = vadd.f32 %v1147_v58, %v2182_v33  ;;  %v1148_v4 = vmul.f32 %v2398_v52, %v1086_v61  ;;  %v1776_v7 = vpop.f32.mrb[36].mxu0 }
 0x20a   : > { %v1777_v8 = vpop.f32.mrb[37].mxu0 }
 0x20b   : > { %1179 = vst [vmem:[%s2407_s16] sm:$0xff] %v1163_v1  ;;  %v1164_v9 = vadd.f32 %v1148_v4, %v2185_v34  ;;  %v1778_v10 = vadd.f32 %v1777_v8, %v1776_v7  ;;  %v1779_v11 = vpop.f32.mrb[38].mxu0 }
 0x20c   : > { %v1780_v12 = vpop.f32.mrb[39].mxu0 }
 0x20d   : > { %1180 = vst [vmem:[%s2407_s16 + $0x8] sm:$0xff] %v1164_v9  ;;  %v1195_v13 = vpack.c.bf16 %v1164_v9, %v1163_v1  ;;  %v1091_v14 = vadd.f32 %v1778_v10, %v2396_v31  ;;  %v1781_v15 = vadd.f32 %v1780_v12, %v1779_v11 }
 0x20f   : > { %v1149_v16 = vmul.f32 %v2398_v52, %v1091_v14  ;;  %v1094_v33 = vadd.f32 %v1781_v15, %v2396_v31  ;;  %1344 = vmatmul.mubr.bf16.vlgmr.msra.gmra.mrb[32].mxu1 %v1195_v13 }
 0x210   : > { %1353 = vmatprep.mubr.bf16.mxu1 %v1971_v0 }
 0x211   : > { %v1150_v17 = vmul.f32 %v2398_v52, %v1094_v33  ;;  %v1782_v34 = vpop.f32.mrb[40].mxu0  ;;  %v1165_v18 = vadd.f32 %v1149_v16, %v2199_v39 }
 0x212   : > { %v1783_v19 = vpop.f32.mrb[41].mxu0 }
 0x213   : > { %v1784_v20 = vadd.f32 %v1783_v19, %v1782_v34  ;;  %v1785_v21 = vpop.f32.mrb[42].mxu0  ;;  %v1166_v22 = vadd.f32 %v1150_v17, %v2204_v40  ;;  %1181 = vst [vmem:[%s2407_s16 + $0x10] sm:$0xff] %v1165_v18 }
 0x214   : > { %v1786_v23 = vpop.f32.mrb[43].mxu0 }
 0x215   : > { %v1099_v24 = vadd.f32 %v1784_v20, %v2396_v31  ;;  %v1787_v27 = vadd.f32 %v1786_v23, %v1785_v21  ;;  %1182 = vst [vmem:[%s2407_s16 + $0x18] sm:$0xff] %v1166_v22  ;;  %v1196_v28 = vpack.c.bf16 %v1166_v22, %v1165_v18 }
 0x217   : > { %v1151_v30 = vmul.f32 %v2398_v52, %v1099_v24  ;;  %v1102_v37 = vadd.f32 %v1787_v27, %v2396_v31  ;;  %1354 = vmatmul.mubr.bf16.gmra.mrb[36].mxu1 %v1196_v28 }
 0x218   : > { %1363 = vmatprep.mubr.bf16.mxu1 %v1971_v0 }
 0x219   : > { %v1152_v39 = vmul.f32 %v2398_v52, %v1102_v37  ;;  %v1788_v38 = vpop.f32.mrb[44].mxu0  ;;  %v1167_v40 = vadd.f32 %v1151_v30, %v2221_v46 }
 0x21a   : > { %v1789_v41 = vpop.f32.mrb[45].mxu0 }
 0x21b   : > { %v1790_v42 = vadd.f32 %v1789_v41, %v1788_v38  ;;  %v1791_v43 = vpop.f32.mrb[46].mxu0  ;;  %v1168_v44 = vadd.f32 %v1152_v39, %v2224_v47  ;;  %1183 = vst [vmem:[%s2407_s16 + $0x20] sm:$0xff] %v1167_v40 }
 0x21c   : > { %v1792_v45 = vpop.f32.mrb[47].mxu0 }
 0x21d   : > { %v1107_v48 = vadd.f32 %v1790_v42, %v2396_v31  ;;  %v1793_v32 = vadd.f32 %v1792_v45, %v1791_v43  ;;  %1184 = vst [vmem:[%s2407_s16 + $0x28] sm:$0xff] %v1168_v44  ;;  %v1197_v49 = vpack.c.bf16 %v1168_v44, %v1167_v40 }
 0x21f   : > { %v1153_v36 = vmul.f32 %v2398_v52, %v1107_v48  ;;  %v1110_v35 = vadd.f32 %v1793_v32, %v2396_v31  ;;  %1364 = vmatmul.mubr.bf16.gmra.mrb[40].mxu1 %v1197_v49 }
 0x220   : > { %1373 = vmatprep.mubr.bf16.mxu1 %v1971_v0 }
 0x221   : > { %v1154_v46 = vmul.f32 %v2398_v52, %v1110_v35  ;;  %v1794_v50 = vpop.f32.mrb[48].mxu0  ;;  %v1169_v47 = vadd.f32 %v1153_v36, %v2245_v53 }
 0x222   : > { %v1795_v51 = vpop.f32.mrb[49].mxu0 }
 0x223   : > { %v1796_v55 = vadd.f32 %v1795_v51, %v1794_v50  ;;  %v1797_v56 = vpop.f32.mrb[50].mxu0  ;;  %v1170_v57 = vadd.f32 %v1154_v46, %v2248_v54  ;;  %1185 = vst [vmem:[%s2407_s16 + $0x30] sm:$0xff] %v1169_v47  ;;  %v1219_v46 = vld [vmem:[%s2552_s7] sm:$0x3] }
 0x224   : > { %v1798_v58 = vpop.f32.mrb[51].mxu0 }
 0x225   : > { %v1115_v61 = vadd.f32 %v1796_v55, %v2396_v31  ;;  %v1799_v1 = vadd.f32 %v1798_v58, %v1797_v56  ;;  %1186 = vst [vmem:[%s2407_s16 + $0x38] sm:$0xff] %v1170_v57  ;;  %v1198_v4 = vpack.c.bf16 %v1170_v57, %v1169_v47 }
 0x227   : > { %v1155_v7 = vmul.f32 %v2398_v52, %v1115_v61  ;;  %v1118_v8 = vadd.f32 %v1799_v1, %v2396_v31  ;;  %1374 = vmatmul.mubr.bf16.gmra.mrb[44].mxu1 %v1198_v4 }
 0x228   : > { %1383 = vmatprep.mubr.bf16.mxu1 %v1971_v0 }
 0x229   : > { %v1156_v53 = vmul.f32 %v2398_v52, %v1118_v8  ;;  %v1800_v9 = vpop.f32.mrb[52].mxu0  ;;  %v1171_v54 = vadd.f32 %v1155_v7, %v2264_v59 }
 0x22a   : > { %v1801_v10 = vpop.f32.mrb[53].mxu0 }
 0x22b   : > { %v1802_v11 = vadd.f32 %v1801_v10, %v1800_v9  ;;  %v1803_v12 = vpop.f32.mrb[54].mxu0  ;;  %v1172_v13 = vadd.f32 %v1156_v53, %v2267_v60  ;;  %1187 = vst [vmem:[%s2407_s16 + $0x40] sm:$0xff] %v1171_v54 }
 0x22c   : > { %v1804_v14 = vpop.f32.mrb[55].mxu0 }
 0x22d   : > { %v1123_v15 = vadd.f32 %v1802_v11, %v2396_v31  ;;  %v1805_v16 = vadd.f32 %v1804_v14, %v1803_v12  ;;  %1188 = vst [vmem:[%s2407_s16 + $0x48] sm:$0xff] %v1172_v13  ;;  %v1199_v33 = vpack.c.bf16 %v1172_v13, %v1171_v54 }
 0x22f   : > { %v1157_v17 = vmul.f32 %v2398_v52, %v1123_v15  ;;  %v1126_v34 = vadd.f32 %v1805_v16, %v2396_v31  ;;  %1384 = vmatmul.mubr.bf16.gmra.mrb[48].mxu1 %v1199_v33 }
 0x230   : > { %1393 = vmatprep.mubr.bf16.mxu1 %v1971_v0 }
 0x231   : > { %v1158_v59 = vmul.f32 %v2398_v52, %v1126_v34  ;;  %v1806_v18 = vpop.f32.mrb[56].mxu0  ;;  %v1173_v60 = vadd.f32 %v1157_v17, %v2274_v62 }
 0x232   : > { %v1807_v19 = vpop.f32.mrb[57].mxu0 }
 0x233   : > { %v1808_v20 = vadd.f32 %v1807_v19, %v1806_v18  ;;  %v1809_v21 = vpop.f32.mrb[58].mxu0  ;;  %v1174_v22 = vadd.f32 %v1158_v59, %v2277_v63  ;;  %1189 = vst [vmem:[%s2407_s16 + $0x50] sm:$0xff] %v1173_v60 }
 0x234   : > { %v1810_v23 = vpop.f32.mrb[59].mxu0 }
 0x235   : > { %v1131_v24 = vadd.f32 %v1808_v20, %v2396_v31  ;;  %v1811_v27 = vadd.f32 %v1810_v23, %v1809_v21  ;;  %1190 = vst [vmem:[%s2407_s16 + $0x58] sm:$0xff] %v1174_v22  ;;  %v1200_v28 = vpack.c.bf16 %v1174_v22, %v1173_v60 }
 0x237   : > { %v1159_v30 = vmul.f32 %v2398_v52, %v1131_v24  ;;  %v1134_v37 = vadd.f32 %v1811_v27, %v2396_v31  ;;  %1394 = vmatmul.mubr.bf16.gmra.mrb[52].mxu1 %v1200_v28 }
 0x238   : > { %1403 = vmatprep.mubr.bf16.mxu1 %v1971_v0 }
 0x239   : > { %v1160_v62 = vmul.f32 %v2398_v52, %v1134_v37  ;;  %v1812_v39 = vpop.f32.mrb[60].mxu0  ;;  %v1175_v63 = vadd.f32 %v1159_v30, %v2284_v2 }
 0x23a   : > { %v1813_v38 = vpop.f32.mrb[61].mxu0 }
 0x23b   : > { %v1814_v40 = vadd.f32 %v1813_v38, %v1812_v39  ;;  %v1815_v41 = vpop.f32.mrb[62].mxu0  ;;  %v1176_v42 = vadd.f32 %v1160_v62, %v2287_v3  ;;  %1191 = vst [vmem:[%s2407_s16 + $0x60] sm:$0xff] %v1175_v63 }
 0x23c   : > { %v1816_v43 = vpop.f32.mrb[63].mxu0 }
 0x23d   : > { %v1139_v44 = vadd.f32 %v1814_v40, %v2396_v31  ;;  %v1817_v45 = vadd.f32 %v1816_v43, %v1815_v41  ;;  %1192 = vst [vmem:[%s2407_s16 + $0x68] sm:$0xff] %v1176_v42  ;;  %v1201_v48 = vpack.c.bf16 %v1176_v42, %v1175_v63 }
 0x23f   : > { %v1161_v32 = vmul.f32 %v2398_v52, %v1139_v44  ;;  %v1142_v49 = vadd.f32 %v1817_v45, %v2396_v31  ;;  %1404 = vmatmul.mubr.bf16.gmra.mrb[56].mxu1 %v1201_v48  ;;  %v2482_v31 = vrot.slane %v1219_v46, %v429_v26 }
 0x240   : > { %1413 = vmatprep.mubr.bf16.mxu1 %v1971_v0  ;;  %v2486_v0 = vrot.slane %v1219_v46, %v433_v29 }
 0x241   : > { %v1162_v2 = vmul.f32 %v2398_v52, %v1142_v49  ;;  %v1177_v36 = vadd.f32 %v1161_v32, %v2294_v5 }
 0x243   : > { %v1178_v3 = vadd.f32 %v1162_v2, %v2297_v6  ;;  %1193 = vst [vmem:[%s2407_s16 + $0x70] sm:$0xff] %v1177_v36 }
 0x245   : > { %1194 = vst [vmem:[%s2407_s16 + $0x78] sm:$0xff] %v1178_v3  ;;  %v1202_v35 = vpack.c.bf16 %v1178_v3, %v1177_v36 }
 0x247   : > { %1414 = vmatmul.mubr.bf16.gmra.mrb[60].mxu1 %v1202_v35 }
 0x2e2   : > { %v1345_v52 = vpop.f32.mrb[32].mxu1 }
 0x2e3   : > { %v1346_v5 = vadd.f32 %v1345_v52, %v2482_v31  ;;  %v1347_v6 = vpop.f32.mrb[33].mxu1 }
 0x2e4   : > { %v1348_v50 = vadd.f32 %v1347_v6, %v2486_v0  ;;  %v1349_v47 = vpop.f32.mrb[34].mxu1 }
 0x2e5   : > { %v1350_v26 = vadd.f32 %v1349_v47, %v2482_v31  ;;  %v1351_v25 = vpop.f32.mrb[35].mxu1 }
 0x2e6   : > { %v1738_v29 = vpack.c.bf16 %v1348_v50, %v1346_v5  ;;  %v1352_v51 = vadd.f32 %v1351_v25, %v2486_v0 }
 0x2e8   : > { %1520 = vst [vmem:[%s2494_s23] sm:$0xff] %v1738_v29  ;;  %v1739_v55 = vpack.c.bf16 %v1352_v51, %v1350_v26 }
 0x2ea   : > { %1521 = vst [vmem:[%s2494_s23 + $0x8] sm:$0xff] %v1739_v55  ;;  %v1355_v56 = vpop.f32.mrb[36].mxu1 }
 0x2eb   : > { %v1356_v57 = vadd.f32 %v1355_v56, %v2482_v31  ;;  %v1357_v58 = vpop.f32.mrb[37].mxu1 }
 0x2ec   : > { %v1358_v61 = vadd.f32 %v1357_v58, %v2486_v0  ;;  %v1359_v1 = vpop.f32.mrb[38].mxu1 }
 0x2ed   : > { %v1360_v4 = vadd.f32 %v1359_v1, %v2482_v31  ;;  %v1361_v7 = vpop.f32.mrb[39].mxu1 }
 0x2ee   : > { %v1740_v8 = vpack.c.bf16 %v1358_v61, %v1356_v57  ;;  %v1362_v53 = vadd.f32 %v1361_v7, %v2486_v0 }
 0x2f0   : > { %1522 = vst [vmem:[%s2494_s23 + $0x10] sm:$0xff] %v1740_v8  ;;  %v1741_v9 = vpack.c.bf16 %v1362_v53, %v1360_v4 }
 0x2f2   : > { %1523 = vst [vmem:[%s2494_s23 + $0x18] sm:$0xff] %v1741_v9  ;;  %v1365_v54 = vpop.f32.mrb[40].mxu1 }
 0x2f3   : > { %v1366_v10 = vadd.f32 %v1365_v54, %v2482_v31  ;;  %v1367_v11 = vpop.f32.mrb[41].mxu1 }
 0x2f4   : > { %v1368_v12 = vadd.f32 %v1367_v11, %v2486_v0  ;;  %v1369_v13 = vpop.f32.mrb[42].mxu1 }
 0x2f5   : > { %v1370_v14 = vadd.f32 %v1369_v13, %v2482_v31  ;;  %v1371_v15 = vpop.f32.mrb[43].mxu1 }
 0x2f6   : > { %v1742_v16 = vpack.c.bf16 %v1368_v12, %v1366_v10  ;;  %v1372_v33 = vadd.f32 %v1371_v15, %v2486_v0 }
 0x2f8   : > { %1524 = vst [vmem:[%s2494_s23 + $0x20] sm:$0xff] %v1742_v16  ;;  %v1743_v17 = vpack.c.bf16 %v1372_v33, %v1370_v14 }
 0x2fa   : > { %1525 = vst [vmem:[%s2494_s23 + $0x28] sm:$0xff] %v1743_v17  ;;  %v1375_v34 = vpop.f32.mrb[44].mxu1 }
 0x2fb   : > { %v1376_v59 = vadd.f32 %v1375_v34, %v2482_v31  ;;  %v1377_v18 = vpop.f32.mrb[45].mxu1 }
 0x2fc   : > { %v1378_v60 = vadd.f32 %v1377_v18, %v2486_v0  ;;  %v1379_v19 = vpop.f32.mrb[46].mxu1 }
 0x2fd   : > { %v1380_v20 = vadd.f32 %v1379_v19, %v2482_v31  ;;  %v1381_v21 = vpop.f32.mrb[47].mxu1 }
 0x2fe   : > { %v1744_v22 = vpack.c.bf16 %v1378_v60, %v1376_v59  ;;  %v1382_v23 = vadd.f32 %v1381_v21, %v2486_v0 }
 0x300   : > { %1526 = vst [vmem:[%s2494_s23 + $0x30] sm:$0xff] %v1744_v22  ;;  %v1745_v24 = vpack.c.bf16 %v1382_v23, %v1380_v20 }
 0x302   : > { %1527 = vst [vmem:[%s2494_s23 + $0x38] sm:$0xff] %v1745_v24  ;;  %v1385_v27 = vpop.f32.mrb[48].mxu1 }
 0x303   : > { %v1386_v28 = vadd.f32 %v1385_v27, %v2482_v31  ;;  %v1387_v30 = vpop.f32.mrb[49].mxu1 }
 0x304   : > { %v1388_v37 = vadd.f32 %v1387_v30, %v2486_v0  ;;  %v1389_v62 = vpop.f32.mrb[50].mxu1 }
 0x305   : > { %v1390_v39 = vadd.f32 %v1389_v62, %v2482_v31  ;;  %v1391_v63 = vpop.f32.mrb[51].mxu1 }
 0x306   : > { %v1746_v38 = vpack.c.bf16 %v1388_v37, %v1386_v28  ;;  %v1392_v40 = vadd.f32 %v1391_v63, %v2486_v0 }
 0x308   : > { %1528 = vst [vmem:[%s2494_s23 + $0x40] sm:$0xff] %v1746_v38  ;;  %v1747_v41 = vpack.c.bf16 %v1392_v40, %v1390_v39 }
 0x30a   : > { %1529 = vst [vmem:[%s2494_s23 + $0x48] sm:$0xff] %v1747_v41  ;;  %v1395_v42 = vpop.f32.mrb[52].mxu1 }
 0x30b   : > { %v1396_v43 = vadd.f32 %v1395_v42, %v2482_v31  ;;  %v1397_v44 = vpop.f32.mrb[53].mxu1 }
 0x30c   : > { %v1398_v45 = vadd.f32 %v1397_v44, %v2486_v0  ;;  %v1399_v48 = vpop.f32.mrb[54].mxu1 }
 0x30d   : > { %v1400_v32 = vadd.f32 %v1399_v48, %v2482_v31  ;;  %v1401_v49 = vpop.f32.mrb[55].mxu1 }
 0x30e   : > { %v1748_v2 = vpack.c.bf16 %v1398_v45, %v1396_v43  ;;  %v1402_v36 = vadd.f32 %v1401_v49, %v2486_v0 }
 0x310   : > { %1530 = vst [vmem:[%s2494_s23 + $0x50] sm:$0xff] %v1748_v2  ;;  %v1749_v3 = vpack.c.bf16 %v1402_v36, %v1400_v32 }
 0x312   : > { %1531 = vst [vmem:[%s2494_s23 + $0x58] sm:$0xff] %v1749_v3  ;;  %v1405_v35 = vpop.f32.mrb[56].mxu1 }
 0x313   : > { %v1406_v46 = vadd.f32 %v1405_v35, %v2482_v31  ;;  %v1407_v52 = vpop.f32.mrb[57].mxu1 }
 0x314   : > { %v1408_v5 = vadd.f32 %v1407_v52, %v2486_v0  ;;  %v1409_v6 = vpop.f32.mrb[58].mxu1 }
 0x315   : > { %v1410_v50 = vadd.f32 %v1409_v6, %v2482_v31  ;;  %v1411_v47 = vpop.f32.mrb[59].mxu1 }
 0x316   : > { %v1750_v26 = vpack.c.bf16 %v1408_v5, %v1406_v46  ;;  %v1412_v25 = vadd.f32 %v1411_v47, %v2486_v0 }
 0x318   : > { %1532 = vst [vmem:[%s2494_s23 + $0x60] sm:$0xff] %v1750_v26  ;;  %v1751_v29 = vpack.c.bf16 %v1412_v25, %v1410_v50 }
 0x31a   : > { %1533 = vst [vmem:[%s2494_s23 + $0x68] sm:$0xff] %v1751_v29  ;;  %v1415_v51 = vpop.f32.mrb[60].mxu1 }
 0x31b   : > { %v1416_v55 = vadd.f32 %v1415_v51, %v2482_v31  ;;  %v1417_v56 = vpop.f32.mrb[61].mxu1 }
 0x31c   : > { %v1418_v57 = vadd.f32 %v1417_v56, %v2486_v0  ;;  %v1419_v58 = vpop.f32.mrb[62].mxu1 }
 0x31d   : > { %v1420_v61 = vadd.f32 %v1419_v58, %v2482_v31  ;;  %v1421_v1 = vpop.f32.mrb[63].mxu1 }
 0x31e   : > { %v1752_v4 = vpack.c.bf16 %v1418_v57, %v1416_v55  ;;  %v1422_v7 = vadd.f32 %v1421_v1, %v2486_v0 }
 0x320   : > { %1534 = vst [vmem:[%s2494_s23 + $0x70] sm:$0xff] %v1752_v4  ;;  %v1753_v8 = vpack.c.bf16 %v1422_v7, %v1420_v61 }
 0x322   : > { %1535 = vst [vmem:[%s2494_s23 + $0x78] sm:$0xff] %v1753_v8 }
 0x323 PF: > { %s22_s11 = sadd.s32 1, %s1966_s11  }
 0x324   : > { %p19_p3 = scmp.ge.s32.totalorder %s22_s11, 4  }
 0x326   :  { %21 = sbr.rel (!%p19_p3) target bundleno = 3 (0x3), region = 99 }
 0x32d   :  { %1577 = vsyncpa [#allocation4], 1 }
 0x32e   :  { %1579 = vsyncpa [#allocation4 + $0x1], 1 }

// kernel: graph_net_block.10
= control target key start
LH: loop header
LB: loop body
LE: loop exit
PB: predicated region body
PF: predicated region fallthrough
CT: control target
= control target key end

     0   :  { %v662_v1 = vmov 0   ;;  %v62_v52 = vlaneseq  ;;  %s871_s1 = inlined_call_operand.vmem [shape: bf16[128,512], index: 1, kind: input, shape index: {}]   ;;  %s872_s3 = inlined_call_operand.vmem [shape: bf16[256,128], index: 3, kind: input, shape index: {}]   ;;  %s873_s0 = inlined_call_operand.vmem [shape: f32[16,128], index: 0, kind: input, shape index: {}, may-alias: {0,6}]   ;;  %s874_s2 = inlined_call_operand.vmem [shape: f32[1,512], index: 2, kind: input, shape index: {}]   ;;  %s875_s4 = inlined_call_operand.vmem [shape: f32[1,128], index: 4, kind: input, shape index: {}]   ;;  %s876_s5 = inlined_call_operand.<no memory space> [shape: f32[1,1], index: 5, kind: input, shape index: {}]   ;;  %s877_s6 = inlined_call_operand.vmem [shape: f32[16,128], index: 6, kind: output, shape index: {}, may-alias: {0,6}]  }
   0x1   :  { %v598_v0 = vld [vmem:[%s871_s1 + $0x4] ss:$16 sps:$4 sm:$0xff]   ;;  %274 = vmatprep.mubr.bf16.mxu0 %v662_v1  ;;  %317 = vmatprep.mubr.bf16.mxu1 %v662_v1  ;;  %v600_v2 = vld [vmem:[%s871_s1 + $0xc] ss:$16 sps:$4 sm:$0xff]   ;;  %v602_v3 = vld [vmem:[%s871_s1] ss:$16 sps:$4 sm:$0xff]  }
   0x2   :  { %242 = vmatprep.subr.bf16.mxu0 %v598_v0  ;;  %v603_v4 = vld [vmem:[%s871_s1 + $0x8] ss:$16 sps:$4 sm:$0xff]   ;;  %285 = vmatprep.subr.bf16.mxu1 %v600_v2  ;;  %v604_v5 = vld [vmem:[%s871_s1 + $0x24] ss:$16 sps:$4 sm:$0xff]   ;;  %v606_v6 = vld [vmem:[%s871_s1 + $0x2c] ss:$16 sps:$4 sm:$0xff]  }
   0x3   :  { %243 = vmatpush1.bf16.msra.mxu0 %v602_v3  ;;  %286 = vmatpush1.bf16.msra.mxu1 %v603_v4  ;;  %v608_v7 = vld [vmem:[%s871_s1 + $0x20] ss:$16 sps:$4 sm:$0xff]   ;;  %v609_v8 = vld [vmem:[%s871_s1 + $0x28] ss:$16 sps:$4 sm:$0xff]   ;;  %v610_v9 = vld [vmem:[%s871_s1 + $0x44] ss:$16 sps:$4 sm:$0xff]  }
   0x4   :  { %244 = vmatprep.subr.bf16.mxu0 %v604_v5  ;;  %287 = vmatprep.subr.bf16.mxu1 %v606_v6  ;;  %v612_v10 = vld [vmem:[%s871_s1 + $0x4c] ss:$16 sps:$4 sm:$0xff]   ;;  %v614_v11 = vld [vmem:[%s871_s1 + $0x40] ss:$16 sps:$4 sm:$0xff]   ;;  %v615_v12 = vld [vmem:[%s871_s1 + $0x48] ss:$16 sps:$4 sm:$0xff]  }
   0x5   :  { %v616_v13 = vld [vmem:[%s871_s1 + $0x64] ss:$16 sps:$4 sm:$0xff]   ;;  %v618_v14 = vld [vmem:[%s871_s1 + $0x6c] ss:$16 sps:$4 sm:$0xff]   ;;  %v620_v15 = vld [vmem:[%s871_s1 + $0x60] ss:$16 sps:$4 sm:$0xff]  }
   0x6   :  { %v621_v16 = vld [vmem:[%s871_s1 + $0x68] ss:$16 sps:$4 sm:$0xff]   ;;  %v622_v17 = vld [vmem:[%s871_s1 + $0x84] ss:$16 sps:$4 sm:$0xff]   ;;  %v624_v18 = vld [vmem:[%s871_s1 + $0x8c] ss:$16 sps:$4 sm:$0xff]  }
   0x7   :  { %245 = vmatpush1.bf16.msra.mxu0 %v608_v7  ;;  %288 = vmatpush1.bf16.msra.mxu1 %v609_v8  ;;  %v626_v19 = vld [vmem:[%s871_s1 + $0x80] ss:$16 sps:$4 sm:$0xff]   ;;  %v627_v20 = vld [vmem:[%s871_s1 + $0x88] ss:$16 sps:$4 sm:$0xff]   ;;  %v628_v21 = vld [vmem:[%s871_s1 + $0xa4] ss:$16 sps:$4 sm:$0xff]  }
   0x8   :  { %246 = vmatprep.subr.bf16.mxu0 %v610_v9  ;;  %289 = vmatprep.subr.bf16.mxu1 %v612_v10  ;;  %v630_v22 = vld [vmem:[%s871_s1 + $0xac] ss:$16 sps:$4 sm:$0xff]   ;;  %v632_v23 = vld [vmem:[%s871_s1 + $0xa0] ss:$16 sps:$4 sm:$0xff]   ;;  %v633_v24 = vld [vmem:[%s871_s1 + $0xa8] ss:$16 sps:$4 sm:$0xff]  }
   0x9   :  { %v634_v25 = vld [vmem:[%s871_s1 + $0xc4] ss:$16 sps:$4 sm:$0xff]   ;;  %v636_v26 = vld [vmem:[%s871_s1 + $0xcc] ss:$16 sps:$4 sm:$0xff]   ;;  %v638_v27 = vld [vmem:[%s871_s1 + $0xc0] ss:$16 sps:$4 sm:$0xff]  }
   0xa   :  { %v639_v28 = vld [vmem:[%s871_s1 + $0xc8] ss:$16 sps:$4 sm:$0xff]   ;;  %v640_v29 = vld [vmem:[%s871_s1 + $0xe4] ss:$16 sps:$4 sm:$0xff]   ;;  %v642_v30 = vld [vmem:[%s871_s1 + $0xec] ss:$16 sps:$4 sm:$0xff]  }
   0xb   :  { %247 = vmatpush1.bf16.msra.mxu0 %v614_v11  ;;  %290 = vmatpush1.bf16.msra.mxu1 %v615_v12  ;;  %v644_v31 = vld [vmem:[%s871_s1 + $0xe0] ss:$16 sps:$4 sm:$0xff]   ;;  %v645_v32 = vld [vmem:[%s871_s1 + $0xe8] ss:$16 sps:$4 sm:$0xff]   ;;  %v63_v53 = vshrl.u32 %v62_v52, 7 }
   0xc   :  { %248 = vmatprep.subr.bf16.mxu0 %v616_v13  ;;  %291 = vmatprep.subr.bf16.mxu1 %v618_v14  ;;  %v797_v33 = vld [vmem:[%s873_s0] sm:$0xff]  ;;  %v802_v34 = vld [vmem:[%s873_s0 + $0x8] sm:$0xff]  ;;  %v650_v40 = vld [vmem:[%s872_s3 + $0x50] sm:$0xff]  }
   0xd   :  { %v646_v35 = vld [vmem:[%s872_s3 + $0x40] sm:$0xff]   ;;  %v27_v36 = vpack.c.bf16 %v802_v34, %v797_v33  ;;  %v648_v38 = vld [vmem:[%s872_s3 + $0x48] sm:$0xff]   ;;  %v651_v41 = vld [vmem:[%s872_s3 + $0x10] sm:$0xff]   ;;  %v64_v54 = vsub.s32 0, %v63_v53  ;;  %v72_v55 = vsub.s32 2, %v63_v53  ;;  %v68_v57 = vsub.s32 1, %v63_v53 }
   0xe   :  { %v647_v37 = vld [vmem:[%s872_s3] sm:$0xff]   ;;  %v649_v39 = vld [vmem:[%s872_s3 + $0x8] sm:$0xff]   ;;  %v652_v42 = vld [vmem:[%s872_s3 + $0x58] sm:$0xff]   ;;  %v76_v58 = vsub.s32 3, %v63_v53 }
   0xf   :  { %249 = vmatpush1.bf16.msra.mxu0 %v620_v15  ;;  %292 = vmatpush1.bf16.msra.mxu1 %v621_v16  ;;  %v653_v43 = vld [vmem:[%s872_s3 + $0x18] sm:$0xff]   ;;  %v654_v44 = vld [vmem:[%s872_s3 + $0x60] sm:$0xff]   ;;  %v656_v46 = vld [vmem:[%s872_s3 + $0x68] sm:$0xff]  }
  0x10   :  { %250 = vmatprep.subr.bf16.mxu0 %v622_v17  ;;  %293 = vmatprep.subr.bf16.mxu1 %v624_v18  ;;  %v655_v45 = vld [vmem:[%s872_s3 + $0x20] sm:$0xff]   ;;  %v657_v47 = vld [vmem:[%s872_s3 + $0x28] sm:$0xff]   ;;  %v658_v48 = vld [vmem:[%s872_s3 + $0x70] sm:$0xff]  }
  0x11   :  { %v659_v49 = vld [vmem:[%s872_s3 + $0x30] sm:$0xff]   ;;  %v660_v50 = vld [vmem:[%s872_s3 + $0x78] sm:$0xff]   ;;  %v60_v56 = vld [vmem:[%s874_s2] sm:$0xf] }
  0x12   :  { %v661_v51 = vld [vmem:[%s872_s3 + $0x38] sm:$0xff]   ;;  %v65_v59 = vrot.slane %v60_v56, %v64_v54  ;;  %v73_v60 = vrot.slane %v60_v56, %v72_v55  ;;  %v69_v61 = vrot.slane %v60_v56, %v68_v57  ;;  %v77_v62 = vrot.slane %v60_v56, %v76_v58 }
  0x13   :  { %251 = vmatpush1.bf16.msra.mxu0 %v626_v19  ;;  %294 = vmatpush1.bf16.msra.mxu1 %v627_v20 }
  0x14   :  { %252 = vmatprep.subr.bf16.mxu0 %v628_v21  ;;  %295 = vmatprep.subr.bf16.mxu1 %v630_v22 }
  0x17   :  { %253 = vmatpush1.bf16.msra.mxu0 %v632_v23  ;;  %296 = vmatpush1.bf16.msra.mxu1 %v633_v24 }
  0x18   :  { %254 = vmatprep.subr.bf16.mxu0 %v634_v25  ;;  %297 = vmatprep.subr.bf16.mxu1 %v636_v26  ;;  %v558_v26 = vld [vmem:[%s875_s4] ss:$0 sm:$0xff] }
  0x1b   :  { %255 = vmatpush1.bf16.msra.mxu0 %v638_v27  ;;  %298 = vmatpush1.bf16.msra.mxu1 %v639_v28 }
  0x1c   :  { %256 = vmatprep.subr.bf16.mxu0 %v640_v29  ;;  %299 = vmatprep.subr.bf16.mxu1 %v642_v30  ;;  %v515_v30 = vstv %s876_s5 }
  0x1f   :  { %257 = vmatpush1.bf16.msra.mxu0 %v644_v31  ;;  %300 = vmatpush1.bf16.msra.mxu1 %v645_v32 }
  0x20   :  { %575 = vmatprep.subr.bf16.mxu0 %v646_v35 }
  0x22   :  { %275 = vmatmul.mubr.bf16.vlgmr.msra.gmra.mrb[0].mxu0 %v27_v36  ;;  %318 = vmatmul.mubr.bf16.vlgmr.msra.gmra.mrb[0].mxu1 %v27_v36 }
  0x23   :  { %576 = vmatpush3.bf16.msra.mxu0 %v647_v37 }
  0x24   :  { %577 = vmatprep.subr.bf16.mxu0 %v648_v38 }
  0x27   :  { %578 = vmatpush3.bf16.msra.mxu0 %v649_v39 }
  0x28   :  { %579 = vmatprep.subr.bf16.mxu0 %v650_v40 }
  0x2b   :  { %580 = vmatpush3.bf16.msra.mxu0 %v651_v41 }
  0x2c   :  { %581 = vmatprep.subr.bf16.mxu0 %v652_v42 }
  0x2f   :  { %582 = vmatpush3.bf16.msra.mxu0 %v653_v43 }
  0x30   :  { %583 = vmatprep.subr.bf16.mxu0 %v654_v44 }
  0x33   :  { %584 = vmatpush3.bf16.msra.mxu0 %v655_v45 }
  0x34   :  { %585 = vmatprep.subr.bf16.mxu0 %v656_v46 }
  0x37   :  { %586 = vmatpush3.bf16.msra.mxu0 %v657_v47 }
  0x38   :  { %587 = vmatprep.subr.bf16.mxu0 %v658_v48 }
  0x3b   :  { %588 = vmatpush3.bf16.msra.mxu0 %v659_v49 }
  0x3c   :  { %589 = vmatprep.subr.bf16.mxu0 %v660_v50 }
  0x3f   :  { %590 = vmatpush3.bf16.msra.mxu0 %v661_v51 }
  0xf5   :  { %v276_v63 = vpop.f32.mrb[0].mxu0  ;;  %v319_v0 = vpop.f32.mrb[0].mxu1 }
  0xf6   :  { %v277_v1 = vadd.f32 %v276_v63, %v65_v59  ;;  %v320_v2 = vadd.f32 %v319_v0, %v73_v60  ;;  %v278_v3 = vpop.f32.mrb[1].mxu0  ;;  %v321_v4 = vpop.f32.mrb[1].mxu1 }
  0xf7   :  { %v279_v5 = vadd.f32 %v278_v3, %v69_v61  ;;  %v322_v6 = vadd.f32 %v321_v4, %v77_v62  ;;  %v280_v7 = vpop.f32.mrb[2].mxu0  ;;  %v323_v8 = vpop.f32.mrb[2].mxu1 }
  0xf8   :  { %v328_v9 = vmax.f32 %v320_v2, 0.0  ;;  %v324_v10 = vadd.f32 %v323_v8, %v73_v60  ;;  %v282_v11 = vpop.f32.mrb[3].mxu0  ;;  %v325_v12 = vpop.f32.mrb[3].mxu1  ;;  %v281_v16 = vadd.f32 %v280_v7, %v65_v59 }
  0xf9   :  { %v329_v13 = vmax.f32 %v322_v6, 0.0  ;;  %v326_v14 = vadd.f32 %v325_v12, %v77_v62  ;;  %v283_v19 = vadd.f32 %v282_v11, %v69_v61 }
  0xfa   :  { %v332_v15 = vmul.f32 %v328_v9, %v277_v1  ;;  %v330_v17 = vmax.f32 %v324_v10, 0.0 }
  0xfb   :  { %v333_v18 = vmul.f32 %v329_v13, %v279_v5  ;;  %v331_v20 = vmax.f32 %v326_v14, 0.0 }
  0xfc   :  { %v334_v21 = vmul.f32 %v330_v17, %v281_v16 }
  0xfd   :  { %v335_v22 = vmul.f32 %v331_v20, %v283_v19 }
  0xfe   :  { %v336_v23 = vpack.c.bf16 %v334_v21, %v332_v15 }
  0xff   :  { %v337_v24 = vpack.c.bf16 %v335_v22, %v333_v18 }
 0x101   :  { %505 = vmatprep.mubr.bf16.mxu0 %v337_v24 }
 0x102   :  { %506 = vmatmul.mubr.bf16.vlgmr.msra.gmra.mrb[4].mxu0 %v336_v23 }
 0x1d5   :  { %v591_v25 = vpop.f32.mrb[4].mxu0 }
 0x1d6   :  { %v592_v27 = vpop.f32.mrb[5].mxu0 }
 0x1d7   :  { %v593_v28 = vadd.f32 %v592_v27, %v591_v25  ;;  %v594_v29 = vpop.f32.mrb[6].mxu0 }
 0x1d8   :  { %v595_v31 = vpop.f32.mrb[7].mxu0 }
 0x1d9   :  { %v508_v32 = vadd.f32 %v593_v28, %v558_v26  ;;  %v596_v35 = vadd.f32 %v595_v31, %v594_v29 }
 0x1db   :  { %v516_v36 = vmul.f32 %v515_v30, %v508_v32  ;;  %v511_v37 = vadd.f32 %v596_v35, %v558_v26 }
 0x1dd   :  { %v518_v38 = vadd.f32 %v516_v36, %v797_v33  ;;  %v517_v39 = vmul.f32 %v515_v30, %v511_v37 }
 0x1df   :  { %520 = vst [vmem:[%s877_s6] sm:$0xff] %v518_v38  ;;  %v519_v40 = vadd.f32 %v517_v39, %v802_v34 }
 0x1e1   :  { %521 = vst [vmem:[%s877_s6 + $0x8] sm:$0xff] %v519_v40 }

// kernel: graph_net_block.11
= control target key start
LH: loop header
LB: loop body
LE: loop exit
PB: predicated region body
PF: predicated region fallthrough
CT: control target
= control target key end

     0   :  { %s1399_s23 = smov 0   ;;  %s1883_s0 = inlined_call_operand.vmem [shape: f32[256,128], index: 0, kind: input, shape index: {}, may-alias: {0,6}]   ;;  %s1884_s1 = inlined_call_operand.vmem [shape: bf16[128,512], index: 1, kind: input, shape index: {}]   ;;  %s1885_s2 = inlined_call_operand.vmem [shape: f32[1,512], index: 2, kind: input, shape index: {}]   ;;  %s1886_s3 = inlined_call_operand.vmem [shape: bf16[256,128], index: 3, kind: input, shape index: {}]   ;;  %s1887_s4 = inlined_call_operand.vmem [shape: f32[1,128], index: 4, kind: input, shape index: {}]   ;;  %s1888_s5 = inlined_call_operand.<no memory space> [shape: f32[1,1], index: 5, kind: input, shape index: {}]   ;;  %s1889_s6 = inlined_call_operand.vmem [shape: f32[256,128], index: 6, kind: output, shape index: {}, may-alias: {0,6}]  }
   0x1   :  { %11 = sst [smem:[#allocation2]] %s1888_s5 }
   0x2 LB: > { %s1139_s24 = sadd.s32 4294967295, %s1358_s23   ;;  %p1143_p0 = scmp.ge.s32.totalorder %s1358_s23, 1  ;;  %s1358_s23 = sphi %s1399_s23, %s17_s23  }
   0x3   : > { %p214_p1 = scmp.lt.s32.totalorder %s1358_s23, 3 }
   0x5   : > { %p215_p2 = pnand %p1143_p0, %p214_p1 }
   0x7   : > { %218 = sbr.rel (%p215_p2) target bundleno = 584 (0x248), region = 44 }
   0xe   : > { %v1288_v0 = vld [vmem:[%s1884_s1 + $0x4] ss:$16 sps:$4 sm:$0xff]   ;;  %v1290_v1 = vld [vmem:[%s1884_s1] ss:$16 sps:$4 sm:$0xff]   ;;  %v1360_v2 = vmov 0   ;;  %s1144_s14 = sshll.u32 %s1139_s24, 4 }
   0xf   : > { %567 = vmatprep.mubr.bf16.mxu1 %v1360_v2  ;;  %527 = vmatprep.mubr.bf16.mxu0 %v1360_v2  ;;  %v1291_v3 = vld [vmem:[%s1884_s1 + $0x24] ss:$16 sps:$4 sm:$0xff]   ;;  %v1293_v4 = vld [vmem:[%s1884_s1 + $0x20] ss:$16 sps:$4 sm:$0xff]   ;;  %p245_p3 = scmp.lt.s32.totalorder %s1144_s14, 31  ;;  %v1338_v59 = vld [vmem:[%s1886_s3 + $0x48] sm:$0xff]  }
  0x10   : > { %1263 = vmatprep.subr.bf16.mxu1 %v1288_v0  ;;  %495 = vmatprep.subr.bf16.mxu0 %v1288_v0  ;;  %v1294_v5 = vld [vmem:[%s1884_s1 + $0x44] ss:$16 sps:$4 sm:$0xff]   ;;  %v1296_v6 = vld [vmem:[%s1884_s1 + $0x40] ss:$16 sps:$4 sm:$0xff]   ;;  %v1314_v19 = vld [vmem:[%s1884_s1 + $0xc] ss:$16 sps:$4 sm:$0xff]  }
  0x11   : > { %1271 = vmatpush1.bf16.msra.mxu1 %v1290_v1  ;;  %496 = vmatpush1.bf16.msra.mxu0 %v1290_v1  ;;  %v1297_v7 = vld [vmem:[%s1884_s1 + $0x64] ss:$16 sps:$4 sm:$0xff]   ;;  %v1299_v8 = vld [vmem:[%s1884_s1 + $0x60] ss:$16 sps:$4 sm:$0xff]   ;;  %s1912_s14 = smov (!%p245_p3, %s1144_s14), 31  ;;  %v1339_v60 = vld [vmem:[%s1886_s3 + $0x8] sm:$0xff]  }
  0x12   : > { %1264 = vmatprep.subr.bf16.mxu1 %v1291_v3  ;;  %497 = vmatprep.subr.bf16.mxu0 %v1291_v3  ;;  %v1300_v9 = vld [vmem:[%s1884_s1 + $0x84] ss:$16 sps:$4 sm:$0xff]   ;;  %v1302_v10 = vld [vmem:[%s1884_s1 + $0x80] ss:$16 sps:$4 sm:$0xff]   ;;  %s1145_s26 = sshll.u32 %s1912_s14, 3  ;;  %v1342_v63 = vld [vmem:[%s1886_s3 + $0x58] sm:$0xff]  }
  0x13   : > { %v1303_v11 = vld [vmem:[%s1884_s1 + $0xa4] ss:$16 sps:$4 sm:$0xff]   ;;  %v1305_v12 = vld [vmem:[%s1884_s1 + $0xa0] ss:$16 sps:$4 sm:$0xff]   ;;  %s1456_s30 = scalar_lea.vmem %s1883_s0, %s1145_s26  ;;  %v1312_v22 = vld [vmem:[%s1884_s1 + $0x8] ss:$16 sps:$4 sm:$0xff]   ;;  %s1817_s20 = scalar_lea.vmem %s1889_s6, %s1145_s26 }
  0x14   : > { %v1306_v13 = vld [vmem:[%s1884_s1 + $0xc4] ss:$16 sps:$4 sm:$0xff]   ;;  %v1308_v14 = vld [vmem:[%s1884_s1 + $0xc0] ss:$16 sps:$4 sm:$0xff]   ;;  %v1471_v18 = vld [vmem:[%s1456_s30 + $0x48] sm:$0xff]  ;;  %s1033_s15 = sld [smem:[#allocation2]] }
  0x15   : > { %1272 = vmatpush1.bf16.msra.mxu1 %v1293_v4  ;;  %498 = vmatpush1.bf16.msra.mxu0 %v1293_v4  ;;  %v1309_v15 = vld [vmem:[%s1884_s1 + $0xe4] ss:$16 sps:$4 sm:$0xff]   ;;  %v1311_v16 = vld [vmem:[%s1884_s1 + $0xe0] ss:$16 sps:$4 sm:$0xff]   ;;  %1897 = vst [vmem:[#allocation3_spill] sm:$0xff] %v1471_v18  ;;  %v1480_v21 = vld [vmem:[%s1456_s30 + $0x8] sm:$0xff] }
  0x16   : > { %1265 = vmatprep.subr.bf16.mxu1 %v1294_v5  ;;  %499 = vmatprep.subr.bf16.mxu0 %v1294_v5  ;;  %v1468_v17 = vld [vmem:[%s1456_s30 + $0x40] sm:$0xff]  ;;  %v1317_v24 = vld [vmem:[%s1884_s1 + $0x2c] ss:$16 sps:$4 sm:$0xff]   ;;  %v1315_v26 = vld [vmem:[%s1884_s1 + $0x28] ss:$16 sps:$4 sm:$0xff]  }
  0x17   : > { %v1477_v20 = vld [vmem:[%s1456_s30] sm:$0xff]  ;;  %v1487_v23 = vpack.c.bf16 %v1471_v18, %v1468_v17  ;;  %v1500_v27 = vld [vmem:[%s1456_s30 + $0x50] sm:$0xff]  ;;  %v1503_v28 = vld [vmem:[%s1456_s30 + $0x58] sm:$0xff] }
  0x18   : > { %v1494_v25 = vpack.c.bf16 %v1480_v21, %v1477_v20  ;;  %1898 = vst [vmem:[#allocation4_spill] sm:$0xff] %v1500_v27  ;;  %1899 = vst [vmem:[#allocation5_spill] sm:$0xff] %v1503_v28  ;;  %v1506_v29 = vld [vmem:[%s1456_s30 + $0x10] sm:$0xff]  ;;  %v1509_v30 = vld [vmem:[%s1456_s30 + $0x18] sm:$0xff]  ;;  %v278_v32 = vpack.c.bf16 %v1503_v28, %v1500_v27 }
  0x19   : > { %1273 = vmatpush1.bf16.msra.mxu1 %v1296_v6  ;;  %500 = vmatpush1.bf16.msra.mxu0 %v1296_v6  ;;  %v1320_v31 = vld [vmem:[%s1884_s1 + $0x4c] ss:$16 sps:$4 sm:$0xff]   ;;  %v274_v33 = vpack.c.bf16 %v1509_v30, %v1506_v29  ;;  %v1318_v34 = vld [vmem:[%s1884_s1 + $0x48] ss:$16 sps:$4 sm:$0xff]   ;;  %v1532_v37 = vld [vmem:[%s1456_s30 + $0x60] sm:$0xff] }
  0x1a   : > { %1266 = vmatprep.subr.bf16.mxu1 %v1297_v7  ;;  %501 = vmatprep.subr.bf16.mxu0 %v1297_v7  ;;  %v1323_v35 = vld [vmem:[%s1884_s1 + $0x6c] ss:$16 sps:$4 sm:$0xff]   ;;  %v1321_v36 = vld [vmem:[%s1884_s1 + $0x68] ss:$16 sps:$4 sm:$0xff]   ;;  %1900 = vst [vmem:[#allocation6_spill] sm:$0xff] %v1532_v37  ;;  %v1539_v39 = vld [vmem:[%s1456_s30 + $0x20] sm:$0xff] }
  0x1b   : > { %v1536_v38 = vld [vmem:[%s1456_s30 + $0x68] sm:$0xff]  ;;  %v1562_v47 = vld [vmem:[%s1456_s30 + $0x70] sm:$0xff]  ;;  %v1566_v48 = vld [vmem:[%s1456_s30 + $0x78] sm:$0xff] }
  0x1c   : > { %1901 = vst [vmem:[#allocation7_spill] sm:$0xff] %v1536_v38  ;;  %v1542_v40 = vld [vmem:[%s1456_s30 + $0x28] sm:$0xff]  ;;  %v279_v42 = vpack.c.bf16 %v1536_v38, %v1532_v37  ;;  %1902 = vst [vmem:[#allocation8_spill] sm:$0xff] %v1562_v47  ;;  %v1569_v49 = vld [vmem:[%s1456_s30 + $0x30] sm:$0xff]  ;;  %v280_v52 = vpack.c.bf16 %v1566_v48, %v1562_v47 }
  0x1d   : > { %1274 = vmatpush1.bf16.msra.mxu1 %v1299_v8  ;;  %502 = vmatpush1.bf16.msra.mxu0 %v1299_v8  ;;  %v1326_v41 = vld [vmem:[%s1884_s1 + $0x8c] ss:$16 sps:$4 sm:$0xff]   ;;  %v275_v43 = vpack.c.bf16 %v1542_v40, %v1539_v39  ;;  %v1324_v44 = vld [vmem:[%s1884_s1 + $0x88] ss:$16 sps:$4 sm:$0xff]   ;;  %1903 = vst [vmem:[#allocation9_spill] sm:$0xff] %v1566_v48  ;;  %v1336_v57 = vld [vmem:[%s1886_s3 + $0x40] sm:$0xff]  }
  0x1e   : > { %1267 = vmatprep.subr.bf16.mxu1 %v1300_v9  ;;  %503 = vmatprep.subr.bf16.mxu0 %v1300_v9  ;;  %v1329_v45 = vld [vmem:[%s1884_s1 + $0xac] ss:$16 sps:$4 sm:$0xff]   ;;  %v1327_v46 = vld [vmem:[%s1884_s1 + $0xa8] ss:$16 sps:$4 sm:$0xff]   ;;  %v1337_v58 = vld [vmem:[%s1886_s3] sm:$0xff]  }
  0x1f   : > { %v1572_v50 = vld [vmem:[%s1456_s30 + $0x38] sm:$0xff]  ;;  %v1340_v61 = vld [vmem:[%s1886_s3 + $0x50] sm:$0xff]   ;;  %v1344_v1 = vld [vmem:[%s1886_s3 + $0x60] sm:$0xff]  }
  0x20   : > { %v1332_v51 = vld [vmem:[%s1884_s1 + $0xcc] ss:$16 sps:$4 sm:$0xff]   ;;  %v276_v53 = vpack.c.bf16 %v1572_v50, %v1569_v49  ;;  %v1330_v54 = vld [vmem:[%s1884_s1 + $0xc8] ss:$16 sps:$4 sm:$0xff]   ;;  %v1341_v62 = vld [vmem:[%s1886_s3 + $0x10] sm:$0xff]  }
  0x21   : > { %1275 = vmatpush1.bf16.msra.mxu1 %v1302_v10  ;;  %504 = vmatpush1.bf16.msra.mxu0 %v1302_v10  ;;  %v1335_v55 = vld [vmem:[%s1884_s1 + $0xec] ss:$16 sps:$4 sm:$0xff]   ;;  %v1333_v56 = vld [vmem:[%s1884_s1 + $0xe8] ss:$16 sps:$4 sm:$0xff]   ;;  %v1348_v5 = vld [vmem:[%s1886_s3 + $0x70] sm:$0xff]  }
  0x22   : > { %1268 = vmatprep.subr.bf16.mxu1 %v1303_v11  ;;  %505 = vmatprep.subr.bf16.mxu0 %v1303_v11  ;;  %v1343_v0 = vld [vmem:[%s1886_s3 + $0x18] sm:$0xff]   ;;  %v1346_v3 = vld [vmem:[%s1886_s3 + $0x68] sm:$0xff]   ;;  %v1349_v6 = vld [vmem:[%s1886_s3 + $0x30] sm:$0xff]  }
  0x23   : > { %v1347_v4 = vld [vmem:[%s1886_s3 + $0x28] sm:$0xff]   ;;  %v1350_v7 = vld [vmem:[%s1886_s3 + $0x78] sm:$0xff]  }
  0x24   : > { %v1351_v8 = vld [vmem:[%s1886_s3 + $0x38] sm:$0xff]  }
  0x25   : > { %1276 = vmatpush1.bf16.msra.mxu1 %v1305_v12  ;;  %506 = vmatpush1.bf16.msra.mxu0 %v1305_v12 }
  0x26   : > { %1269 = vmatprep.subr.bf16.mxu1 %v1306_v13  ;;  %507 = vmatprep.subr.bf16.mxu0 %v1306_v13 }
  0x29   : > { %1277 = vmatpush1.bf16.msra.mxu1 %v1308_v14  ;;  %508 = vmatpush1.bf16.msra.mxu0 %v1308_v14 }
  0x2a   : > { %1270 = vmatprep.subr.bf16.mxu1 %v1309_v15  ;;  %509 = vmatprep.subr.bf16.mxu0 %v1309_v15 }
  0x2d   : > { %1278 = vmatpush1.bf16.msra.mxu1 %v1311_v16  ;;  %510 = vmatpush1.bf16.msra.mxu0 %v1311_v16 }
  0x2e   : > { %608 = vmatprep.subr.bf16.mxu1 %v1314_v19  ;;  %1199 = vmatprep.subr.bf16.mxu0 %v1336_v57 }
  0x30   : > { %568 = vmatmul.mubr.bf16.vlgmr.msra.gmra.mrb[0].mxu1 %v1487_v23  ;;  %528 = vmatmul.mubr.bf16.vlgmr.msra.gmra.mrb[0].mxu0 %v1494_v25 }
  0x31   : > { %609 = vmatpush1.bf16.msra.mxu1 %v1312_v22  ;;  %577 = vmatprep.mubr.bf16.mxu1 %v1360_v2 }
  0x32   : > { %610 = vmatprep.subr.bf16.mxu1 %v1317_v24  ;;  %537 = vmatprep.mubr.bf16.mxu0 %v1360_v2 }
  0x33   : > { %1200 = vmatpush3.bf16.msra.mxu0 %v1337_v58 }
  0x34   : > { %1201 = vmatprep.subr.bf16.mxu0 %v1338_v59 }
  0x35   : > { %611 = vmatpush1.bf16.msra.mxu1 %v1315_v26 }
  0x36   : > { %612 = vmatprep.subr.bf16.mxu1 %v1320_v31 }
  0x37   : > { %1202 = vmatpush3.bf16.msra.mxu0 %v1339_v60 }
  0x38   : > { %578 = vmatmul.mubr.bf16.gmra.mrb[4].mxu1 %v278_v32  ;;  %538 = vmatmul.mubr.bf16.gmra.mrb[4].mxu0 %v274_v33 }
  0x39   : > { %613 = vmatpush1.bf16.msra.mxu1 %v1318_v34  ;;  %587 = vmatprep.mubr.bf16.mxu1 %v1360_v2 }
  0x3a   : > { %614 = vmatprep.subr.bf16.mxu1 %v1323_v35  ;;  %547 = vmatprep.mubr.bf16.mxu0 %v1360_v2 }
  0x3b   : > { %1203 = vmatprep.subr.bf16.mxu0 %v1340_v61 }
  0x3c   : > { %1204 = vmatpush3.bf16.msra.mxu0 %v1341_v62  ;;  %v313_v62 = vld [vmem:[%s1885_s2] sm:$0xf] }
  0x3d   : > { %615 = vmatpush1.bf16.msra.mxu1 %v1321_v36  ;;  %1205 = vmatprep.subr.bf16.mxu0 %v1342_v63 }
  0x3e   : > { %616 = vmatprep.subr.bf16.mxu1 %v1326_v41 }
  0x40   : > { %588 = vmatmul.mubr.bf16.gmra.mrb[8].mxu1 %v279_v42  ;;  %548 = vmatmul.mubr.bf16.gmra.mrb[8].mxu0 %v275_v43 }
  0x41   : > { %617 = vmatpush1.bf16.msra.mxu1 %v1324_v44  ;;  %597 = vmatprep.mubr.bf16.mxu1 %v1360_v2 }
  0x42   : > { %618 = vmatprep.subr.bf16.mxu1 %v1329_v45  ;;  %557 = vmatprep.mubr.bf16.mxu0 %v1360_v2 }
  0x43   : > { %1206 = vmatpush3.bf16.msra.mxu0 %v1343_v0 }
  0x44   : > { %1207 = vmatprep.subr.bf16.mxu0 %v1344_v1 }
  0x45   : > { %619 = vmatpush1.bf16.msra.mxu1 %v1327_v46 }
  0x46   : > { %620 = vmatprep.subr.bf16.mxu1 %v1332_v51 }
  0x48   : > { %598 = vmatmul.mubr.bf16.gmra.mrb[12].mxu1 %v280_v52  ;;  %558 = vmatmul.mubr.bf16.gmra.mrb[12].mxu0 %v276_v53 }
  0x49   : > { %621 = vmatpush1.bf16.msra.mxu1 %v1330_v54  ;;  %640 = vmatprep.mubr.bf16.mxu1 %v1360_v2 }
  0x4a   : > { %622 = vmatprep.subr.bf16.mxu1 %v1335_v55 }
  0x4d   : > { %623 = vmatpush1.bf16.msra.mxu1 %v1333_v56 }
  0x50   : > { %641 = vmatmul.mubr.bf16.vlgmr.msra.gmra.mrb[16].mxu1 %v1494_v25 }
  0x51   : > { %650 = vmatprep.mubr.bf16.mxu1 %v1360_v2 }
  0x58   : > { %651 = vmatmul.mubr.bf16.gmra.mrb[20].mxu1 %v274_v33 }
  0x59   : > { %660 = vmatprep.mubr.bf16.mxu1 %v1360_v2 }
  0x60   : > { %661 = vmatmul.mubr.bf16.gmra.mrb[24].mxu1 %v275_v43  ;;  %v315_v43 = vlaneseq }
  0x61   : > { %670 = vmatprep.mubr.bf16.mxu1 %v1360_v2 }
  0x62   : > { %v316_v46 = vshrl.u32 %v315_v43, 7 }
  0x64   : > { %v325_v54 = vsub.s32 2, %v316_v46  ;;  %v329_v57 = vsub.s32 3, %v316_v46  ;;  %v317_v59 = vsub.s32 0, %v316_v46  ;;  %v321_v63 = vsub.s32 1, %v316_v46 }
  0x66   : > { %v1704_v0 = vrot.slane %v313_v62, %v325_v54  ;;  %v1706_v1 = vrot.slane %v313_v62, %v329_v57 }
  0x68   : > { %671 = vmatmul.mubr.bf16.gmra.mrb[28].mxu1 %v276_v53 }
  0x69   : > { %680 = vmatprep.mubr.bf16.mxu1 %v1360_v2 }
  0x70   : > { %681 = vmatmul.mubr.bf16.gmra.mrb[32].mxu1 %v1487_v23 }
  0x71   : > { %690 = vmatprep.mubr.bf16.mxu1 %v1360_v2 }
  0x78   : > { %691 = vmatmul.mubr.bf16.gmra.mrb[36].mxu1 %v278_v32 }
  0x79   : > { %700 = vmatprep.mubr.bf16.mxu1 %v1360_v2 }
  0x80   : > { %701 = vmatmul.mubr.bf16.gmra.mrb[40].mxu1 %v279_v42 }
  0x81   : > { %710 = vmatprep.mubr.bf16.mxu1 %v1360_v2  ;;  %v1345_v2 = vld [vmem:[%s1886_s3 + $0x20] sm:$0xff]  }
  0x82   : > { %1208 = vmatpush3.bf16.msra.mxu0 %v1345_v2  ;;  %v1708_v2 = vrot.slane %v313_v62, %v317_v59 }
  0x83   : > { %1209 = vmatprep.subr.bf16.mxu0 %v1346_v3  ;;  %v1710_v3 = vrot.slane %v313_v62, %v321_v63 }
  0x86   : > { %1210 = vmatpush3.bf16.msra.mxu0 %v1347_v4 }
  0x87   : > { %1211 = vmatprep.subr.bf16.mxu0 %v1348_v5 }
  0x88   : > { %711 = vmatmul.mubr.bf16.gmra.mrb[44].mxu1 %v280_v52 }
  0x8a   : > { %1212 = vmatpush3.bf16.msra.mxu0 %v1349_v6 }
  0x8b   : > { %1213 = vmatprep.subr.bf16.mxu0 %v1350_v7 }
  0x8e   : > { %1214 = vmatpush3.bf16.msra.mxu0 %v1351_v8 }
 0x103   : > { %v1649_v9 = vpop.f32.mrb[0].mxu1  ;;  %v529_v10 = vpop.f32.mrb[0].mxu0 }
 0x104   : > { %v1651_v11 = vpop.f32.mrb[1].mxu1  ;;  %v531_v12 = vpop.f32.mrb[1].mxu0  ;;  %v530_v5 = vadd.f32 %v529_v10, %v1708_v2 }
 0x105   : > { %v1653_v13 = vpop.f32.mrb[2].mxu1  ;;  %v533_v14 = vpop.f32.mrb[2].mxu0  ;;  %v532_v8 = vadd.f32 %v531_v12, %v1710_v3 }
 0x106   : > { %v1655_v15 = vpop.f32.mrb[3].mxu1  ;;  %v535_v16 = vpop.f32.mrb[3].mxu0  ;;  %v534_v63 = vadd.f32 %v533_v14, %v1708_v2 }
 0x10b   : > { %v1657_v19 = vpop.f32.mrb[4].mxu1  ;;  %v539_v22 = vpop.f32.mrb[4].mxu0 }
 0x10c   : > { %v1659_v23 = vpop.f32.mrb[5].mxu1  ;;  %v541_v24 = vpop.f32.mrb[5].mxu0 }
 0x10d   : > { %v1661_v25 = vpop.f32.mrb[6].mxu1  ;;  %v1663_v26 = vpop.f32.mrb[6].mxu0 }
 0x10e   : > { %v1665_v31 = vpop.f32.mrb[7].mxu1  ;;  %v1667_v32 = vpop.f32.mrb[7].mxu0 }
 0x113   : > { %v1669_v33 = vpop.f32.mrb[8].mxu1  ;;  %v1671_v34 = vpop.f32.mrb[8].mxu0 }
 0x114   : > { %v1673_v35 = vpop.f32.mrb[9].mxu1  ;;  %v1675_v36 = vpop.f32.mrb[9].mxu0 }
 0x115   : > { %v1677_v41 = vpop.f32.mrb[10].mxu1  ;;  %v1679_v42 = vpop.f32.mrb[10].mxu0 }
 0x116   : > { %v1681_v44 = vpop.f32.mrb[11].mxu1  ;;  %v1683_v45 = vpop.f32.mrb[11].mxu0 }
 0x11b   : > { %v1685_v51 = vpop.f32.mrb[12].mxu1  ;;  %v1687_v52 = vpop.f32.mrb[12].mxu0 }
 0x11c   : > { %v1689_v53 = vpop.f32.mrb[13].mxu1  ;;  %v1691_v55 = vpop.f32.mrb[13].mxu0 }
 0x11d   : > { %v1693_v56 = vpop.f32.mrb[14].mxu1  ;;  %v1695_v58 = vpop.f32.mrb[14].mxu0 }
 0x11e   : > { %v1697_v60 = vpop.f32.mrb[15].mxu1  ;;  %v1699_v61 = vpop.f32.mrb[15].mxu0 }
 0x123   : > { %v642_v4 = vpop.f32.mrb[16].mxu1 }
 0x124   : > { %v643_v6 = vadd.f32 %v642_v4, %v1704_v0  ;;  %v644_v7 = vpop.f32.mrb[17].mxu1  ;;  %v536_v4 = vadd.f32 %v535_v16, %v1710_v3 }
 0x125   : > { %v645_v43 = vadd.f32 %v644_v7, %v1706_v1  ;;  %v646_v48 = vpop.f32.mrb[18].mxu1 }
 0x126   : > { %v721_v46 = vmax.f32 %v643_v6, 0.0  ;;  %v647_v54 = vadd.f32 %v646_v48, %v1704_v0  ;;  %v648_v57 = vpop.f32.mrb[19].mxu1  ;;  %v540_v6 = vadd.f32 %v539_v22, %v1708_v2 }
 0x127   : > { %v722_v47 = vmax.f32 %v645_v43, 0.0  ;;  %v649_v59 = vadd.f32 %v648_v57, %v1706_v1  ;;  %v542_v43 = vadd.f32 %v541_v24, %v1710_v3 }
 0x128   : > { %v753_v62 = vmul.f32 %v721_v46, %v530_v5  ;;  %v723_v38 = vmax.f32 %v647_v54, 0.0 }
 0x129   : > { %v754_v10 = vmul.f32 %v722_v47, %v532_v8  ;;  %v724_v37 = vmax.f32 %v649_v59, 0.0 }
 0x12a   : > { %v755_v28 = vmul.f32 %v723_v38, %v534_v63  ;;  %v544_v38 = vadd.f32 %v1663_v26, %v1708_v2  ;;  %v550_v63 = vadd.f32 %v1671_v34, %v1708_v2  ;;  %v552_v26 = vadd.f32 %v1675_v36, %v1710_v3 }
 0x12b   : > { %v756_v12 = vmul.f32 %v724_v37, %v536_v4  ;;  %v652_v27 = vpop.f32.mrb[20].mxu1  ;;  %v556_v36 = vadd.f32 %v1683_v45, %v1710_v3 }
 0x12c   : > { %v785_v7 = vpack.c.bf16 %v755_v28, %v753_v62  ;;  %v653_v48 = vadd.f32 %v652_v27, %v1704_v0  ;;  %v654_v18 = vpop.f32.mrb[21].mxu1 }
 0x12d   : > { %v655_v5 = vadd.f32 %v654_v18, %v1706_v1  ;;  %v656_v46 = vpop.f32.mrb[22].mxu1  ;;  %v786_v14 = vpack.c.bf16 %v756_v12, %v754_v10  ;;  %v546_v18 = vadd.f32 %v1667_v32, %v1710_v3 }
 0x12e   : > { %v725_v54 = vmax.f32 %v653_v48, 0.0  ;;  %v657_v47 = vadd.f32 %v656_v46, %v1704_v0  ;;  %v658_v16 = vpop.f32.mrb[23].mxu1 }
 0x12f   : > { %v726_v8 = vmax.f32 %v655_v5, 0.0  ;;  %v659_v37 = vadd.f32 %v658_v16, %v1706_v1  ;;  %968 = vmatprep.mubr.bf16.mxu0 %v786_v14 }
 0x130   : > { %v757_v28 = vmul.f32 %v725_v54, %v540_v6  ;;  %v727_v27 = vmax.f32 %v657_v47, 0.0  ;;  %969 = vmatmul.mubr.bf16.vlgmr.msra.gmra.mrb[16].mxu0 %v785_v7  ;;  %v554_v54 = vadd.f32 %v1679_v42, %v1708_v2  ;;  %v562_v42 = vadd.f32 %v1691_v55, %v1710_v3 }
 0x131   : > { %v758_v22 = vmul.f32 %v726_v8, %v542_v43  ;;  %v728_v24 = vmax.f32 %v659_v37, 0.0  ;;  %v566_v55 = vadd.f32 %v1699_v61, %v1710_v3  ;;  %v572_v61 = vadd.f32 %v1651_v11, %v1710_v3 }
 0x132   : > { %v759_v57 = vmul.f32 %v727_v27, %v544_v38  ;;  %v560_v27 = vadd.f32 %v1687_v52, %v1708_v2 }
 0x133   : > { %v760_v59 = vmul.f32 %v728_v24, %v546_v18  ;;  %v662_v62 = vpop.f32.mrb[24].mxu1 }
 0x134   : > { %v663_v10 = vadd.f32 %v662_v62, %v1704_v0  ;;  %v664_v4 = vpop.f32.mrb[25].mxu1  ;;  %v787_v12 = vpack.c.bf16 %v759_v57, %v757_v28 }
 0x135   : > { %v665_v7 = vadd.f32 %v664_v4, %v1706_v1  ;;  %v666_v6 = vpop.f32.mrb[26].mxu1  ;;  %v788_v48 = vpack.c.bf16 %v760_v59, %v758_v22 }
 0x136   : > { %v729_v43 = vmax.f32 %v663_v10, 0.0  ;;  %v667_v32 = vadd.f32 %v666_v6, %v1704_v0  ;;  %v668_v5 = vpop.f32.mrb[27].mxu1 }
 0x137   : > { %v730_v46 = vmax.f32 %v665_v7, 0.0  ;;  %v669_v14 = vadd.f32 %v668_v5, %v1706_v1  ;;  %976 = vmatprep.mubr.bf16.mxu0 %v788_v48 }
 0x138   : > { %v761_v34 = vmul.f32 %v729_v43, %v550_v63  ;;  %v731_v47 = vmax.f32 %v667_v32, 0.0  ;;  %977 = vmatmul.mubr.bf16.gmra.mrb[20].mxu0 %v787_v12 }
 0x139   : > { %v762_v16 = vmul.f32 %v730_v46, %v552_v26  ;;  %v732_v8 = vmax.f32 %v669_v14, 0.0  ;;  %v564_v26 = vadd.f32 %v1695_v58, %v1708_v2  ;;  %v570_v58 = vadd.f32 %v1649_v9, %v1708_v2 }
 0x13a   : > { %v763_v37 = vmul.f32 %v731_v47, %v554_v54  ;;  %v576_v9 = vadd.f32 %v1655_v15, %v1710_v3 }
 0x13b   : > { %v764_v28 = vmul.f32 %v732_v8, %v556_v36  ;;  %v672_v38 = vpop.f32.mrb[28].mxu1 }
 0x13c   : > { %v673_v22 = vadd.f32 %v672_v38, %v1704_v0  ;;  %v674_v18 = vpop.f32.mrb[29].mxu1  ;;  %v789_v24 = vpack.c.bf16 %v763_v37, %v761_v34 }
 0x13d   : > { %v675_v57 = vadd.f32 %v674_v18, %v1706_v1  ;;  %v676_v59 = vpop.f32.mrb[30].mxu1  ;;  %v790_v62 = vpack.c.bf16 %v764_v28, %v762_v16 }
 0x13e   : > { %v733_v63 = vmax.f32 %v673_v22, 0.0  ;;  %v677_v45 = vadd.f32 %v676_v59, %v1704_v0  ;;  %v678_v10 = vpop.f32.mrb[31].mxu1 }
 0x13f   : > { %v734_v4 = vmax.f32 %v675_v57, 0.0  ;;  %v679_v12 = vadd.f32 %v678_v10, %v1706_v1  ;;  %984 = vmatprep.mubr.bf16.mxu0 %v790_v62 }
 0x140   : > { %v765_v52 = vmul.f32 %v733_v63, %v560_v27  ;;  %v735_v7 = vmax.f32 %v677_v45, 0.0  ;;  %985 = vmatmul.mubr.bf16.gmra.mrb[24].mxu0 %v789_v24  ;;  %v574_v27 = vadd.f32 %v1653_v13, %v1708_v2  ;;  %v580_v13 = vadd.f32 %v1657_v19, %v1708_v2 }
 0x141   : > { %v766_v6 = vmul.f32 %v734_v4, %v562_v42  ;;  %v736_v48 = vmax.f32 %v679_v12, 0.0  ;;  %v586_v19 = vadd.f32 %v1665_v31, %v1710_v3 }
 0x142   : > { %v767_v43 = vmul.f32 %v735_v7, %v564_v26  ;;  %v582_v7 = vadd.f32 %v1659_v23, %v1710_v3 }
 0x143   : > { %v768_v32 = vmul.f32 %v736_v48, %v566_v55  ;;  %v682_v5 = vpop.f32.mrb[32].mxu1  ;;  %v584_v48 = vadd.f32 %v1661_v25, %v1708_v2  ;;  %v590_v25 = vadd.f32 %v1669_v33, %v1708_v2  ;;  %v596_v33 = vadd.f32 %v1681_v44, %v1710_v3 }
 0x144   : > { %v683_v46 = vadd.f32 %v682_v5, %v1704_v0  ;;  %v684_v14 = vpop.f32.mrb[33].mxu1  ;;  %v791_v34 = vpack.c.bf16 %v767_v43, %v765_v52 }
 0x145   : > { %v685_v54 = vadd.f32 %v684_v14, %v1706_v1  ;;  %v686_v47 = vpop.f32.mrb[34].mxu1  ;;  %v792_v16 = vpack.c.bf16 %v768_v32, %v766_v6 }
 0x146   : > { %v737_v36 = vmax.f32 %v683_v46, 0.0  ;;  %v687_v8 = vadd.f32 %v686_v47, %v1704_v0  ;;  %v688_v37 = vpop.f32.mrb[35].mxu1 }
 0x147   : > { %v738_v28 = vmax.f32 %v685_v54, 0.0  ;;  %v689_v38 = vadd.f32 %v688_v37, %v1706_v1  ;;  %992 = vmatprep.mubr.bf16.mxu0 %v792_v16 }
 0x148   : > { %v769_v22 = vmul.f32 %v737_v36, %v570_v58  ;;  %v739_v18 = vmax.f32 %v687_v8, 0.0  ;;  %993 = vmatmul.mubr.bf16.gmra.mrb[28].mxu0 %v791_v34 }
 0x149   : > { %v770_v24 = vmul.f32 %v738_v28, %v572_v61  ;;  %v740_v42 = vmax.f32 %v689_v38, 0.0  ;;  %v592_v28 = vadd.f32 %v1673_v35, %v1710_v3 }
 0x14a   : > { %v771_v57 = vmul.f32 %v739_v18, %v574_v27 }
 0x14b   : > { %v772_v59 = vmul.f32 %v740_v42, %v576_v9  ;;  %v692_v62 = vpop.f32.mrb[36].mxu1 }
 0x14c   : > { %v693_v11 = vadd.f32 %v692_v62, %v1704_v0  ;;  %v694_v63 = vpop.f32.mrb[37].mxu1  ;;  %v793_v45 = vpack.c.bf16 %v771_v57, %v769_v22  ;;  %v594_v22 = vadd.f32 %v1677_v41, %v1708_v2  ;;  %v600_v41 = vadd.f32 %v1685_v51, %v1708_v2 }
 0x14d   : > { %v695_v10 = vadd.f32 %v694_v63, %v1706_v1  ;;  %v696_v4 = vpop.f32.mrb[38].mxu1  ;;  %v794_v12 = vpack.c.bf16 %v772_v59, %v770_v24  ;;  %v606_v51 = vadd.f32 %v1697_v60, %v1710_v3  ;;  %v1807_v60 = vstv %s1033_s15 }
 0x14e   : > { %v741_v52 = vmax.f32 %v693_v11, 0.0  ;;  %v697_v26 = vadd.f32 %v696_v4, %v1704_v0  ;;  %v698_v15 = vpop.f32.mrb[39].mxu1 }
 0x14f   : > { %v742_v6 = vmax.f32 %v695_v10, 0.0  ;;  %v699_v55 = vadd.f32 %v698_v15, %v1706_v1  ;;  %1000 = vmatprep.mubr.bf16.mxu0 %v794_v12 }
 0x150   : > { %v773_v43 = vmul.f32 %v741_v52, %v580_v13  ;;  %v743_v32 = vmax.f32 %v697_v26, 0.0  ;;  %1001 = vmatmul.mubr.bf16.gmra.mrb[32].mxu0 %v793_v45  ;;  %v602_v52 = vadd.f32 %v1689_v53, %v1710_v3 }
 0x151   : > { %v774_v5 = vmul.f32 %v742_v6, %v582_v7  ;;  %v744_v46 = vmax.f32 %v699_v55, 0.0  ;;  %v604_v7 = vadd.f32 %v1693_v56, %v1708_v2  ;;  %v1805_v56 = vld [vmem:[%s1887_s4] ss:$0 sm:$0xff] }
 0x152   : > { %v775_v14 = vmul.f32 %v743_v32, %v584_v48 }
 0x153   : > { %v776_v34 = vmul.f32 %v744_v46, %v586_v19  ;;  %v702_v54 = vpop.f32.mrb[40].mxu1 }
 0x154   : > { %v703_v23 = vadd.f32 %v702_v54, %v1704_v0  ;;  %v704_v47 = vpop.f32.mrb[41].mxu1  ;;  %v795_v16 = vpack.c.bf16 %v775_v14, %v773_v43 }
 0x155   : > { %v705_v58 = vadd.f32 %v704_v47, %v1706_v1  ;;  %v706_v36 = vpop.f32.mrb[42].mxu1  ;;  %v796_v8 = vpack.c.bf16 %v776_v34, %v774_v5 }
 0x156   : > { %v745_v37 = vmax.f32 %v703_v23, 0.0  ;;  %v707_v61 = vadd.f32 %v706_v36, %v1704_v0  ;;  %v708_v31 = vpop.f32.mrb[43].mxu1 }
 0x157   : > { %v746_v38 = vmax.f32 %v705_v58, 0.0  ;;  %v709_v27 = vadd.f32 %v708_v31, %v1706_v1  ;;  %1008 = vmatprep.mubr.bf16.mxu0 %v796_v8 }
 0x158   : > { %v777_v18 = vmul.f32 %v745_v37, %v590_v25  ;;  %v747_v9 = vmax.f32 %v707_v61, 0.0  ;;  %1009 = vmatmul.mubr.bf16.gmra.mrb[36].mxu0 %v795_v16 }
 0x159   : > { %v778_v24 = vmul.f32 %v746_v38, %v592_v28  ;;  %v748_v42 = vmax.f32 %v709_v27, 0.0 }
 0x15a   : > { %v779_v57 = vmul.f32 %v747_v9, %v594_v22 }
 0x15b   : > { %v780_v59 = vmul.f32 %v748_v42, %v596_v33  ;;  %v712_v62 = vpop.f32.mrb[44].mxu1 }
 0x15c   : > { %v713_v35 = vadd.f32 %v712_v62, %v1704_v0  ;;  %v714_v11 = vpop.f32.mrb[45].mxu1  ;;  %v797_v63 = vpack.c.bf16 %v779_v57, %v777_v18 }
 0x15d   : > { %v715_v45 = vadd.f32 %v714_v11, %v1706_v1  ;;  %v716_v10 = vpop.f32.mrb[46].mxu1  ;;  %v798_v4 = vpack.c.bf16 %v780_v59, %v778_v24 }
 0x15e   : > { %v749_v12 = vmax.f32 %v713_v35, 0.0  ;;  %v717_v13 = vadd.f32 %v716_v10, %v1704_v0  ;;  %v718_v44 = vpop.f32.mrb[47].mxu1 }
 0x15f   : > { %v750_v26 = vmax.f32 %v715_v45, 0.0  ;;  %v719_v15 = vadd.f32 %v718_v44, %v1706_v1  ;;  %1016 = vmatprep.mubr.bf16.mxu0 %v798_v4 }
 0x160   : > { %v781_v6 = vmul.f32 %v749_v12, %v600_v41  ;;  %v751_v55 = vmax.f32 %v717_v13, 0.0  ;;  %1017 = vmatmul.mubr.bf16.gmra.mrb[40].mxu0 %v797_v63 }
 0x161   : > { %v782_v48 = vmul.f32 %v750_v26, %v602_v52  ;;  %v752_v43 = vmax.f32 %v719_v15, 0.0 }
 0x162   : > { %v783_v0 = vmul.f32 %v751_v55, %v604_v7 }
 0x163   : > { %v784_v32 = vmul.f32 %v752_v43, %v606_v51 }
 0x164   : > { %v799_v19 = vpack.c.bf16 %v783_v0, %v781_v6 }
 0x165   : > { %v800_v53 = vpack.c.bf16 %v784_v32, %v782_v48 }
 0x167   : > { %1024 = vmatprep.mubr.bf16.mxu0 %v800_v53 }
 0x168   : > { %1025 = vmatmul.mubr.bf16.gmra.mrb[44].mxu0 %v799_v19 }
 0x203   : > { %v1215_v1 = vpop.f32.mrb[16].mxu0 }
 0x204   : > { %v1216_v2 = vpop.f32.mrb[17].mxu0 }
 0x205   : > { %v1217_v5 = vadd.f32 %v1216_v2, %v1215_v1  ;;  %v1218_v46 = vpop.f32.mrb[18].mxu0 }
 0x206   : > { %v1219_v3 = vpop.f32.mrb[19].mxu0 }
 0x207   : > { %v971_v14 = vadd.f32 %v1217_v5, %v1805_v56  ;;  %v1220_v34 = vadd.f32 %v1219_v3, %v1218_v46 }
 0x209   : > { %v1035_v54 = vmul.f32 %v1807_v60, %v971_v14  ;;  %v974_v23 = vadd.f32 %v1220_v34, %v1805_v56 }
 0x20b   : > { %v1051_v47 = vadd.f32 %v1035_v54, %v1477_v20  ;;  %v1036_v16 = vmul.f32 %v1807_v60, %v974_v23  ;;  %v1221_v58 = vpop.f32.mrb[20].mxu0  ;;  %v1905_v23 = vld [vmem:[#allocation4_spill] sm:$0xff] }
 0x20c   : > { %v1222_v36 = vpop.f32.mrb[21].mxu0 }
 0x20d   : > { %1067 = vst [vmem:[%s1817_s20] sm:$0xff] %v1051_v47  ;;  %v1052_v8 = vadd.f32 %v1036_v16, %v1480_v21  ;;  %v1223_v25 = vadd.f32 %v1222_v36, %v1221_v58  ;;  %v1224_v37 = vpop.f32.mrb[22].mxu0 }
 0x20e   : > { %v1225_v61 = vpop.f32.mrb[23].mxu0 }
 0x20f   : > { %1068 = vst [vmem:[%s1817_s20 + $0x8] sm:$0xff] %v1052_v8  ;;  %v979_v31 = vadd.f32 %v1223_v25, %v1805_v56  ;;  %v1226_v28 = vadd.f32 %v1225_v61, %v1224_v37  ;;  %v1906_v8 = vld [vmem:[#allocation5_spill] sm:$0xff] }
 0x211   : > { %v1037_v38 = vmul.f32 %v1807_v60, %v979_v31  ;;  %v982_v20 = vadd.f32 %v1226_v28, %v1805_v56 }
 0x213   : > { %v1053_v27 = vadd.f32 %v1037_v38, %v1506_v29  ;;  %v1038_v22 = vmul.f32 %v1807_v60, %v982_v20  ;;  %v1227_v18 = vpop.f32.mrb[24].mxu0 }
 0x214   : > { %v1228_v9 = vpop.f32.mrb[25].mxu0 }
 0x215   : > { %1069 = vst [vmem:[%s1817_s20 + $0x10] sm:$0xff] %v1053_v27  ;;  %v1054_v21 = vadd.f32 %v1038_v22, %v1509_v30  ;;  %v1229_v33 = vadd.f32 %v1228_v9, %v1227_v18  ;;  %v1230_v24 = vpop.f32.mrb[26].mxu0  ;;  %v1907_v22 = vld [vmem:[#allocation6_spill] sm:$0xff] }
 0x216   : > { %v1231_v42 = vpop.f32.mrb[27].mxu0 }
 0x217   : > { %1070 = vst [vmem:[%s1817_s20 + $0x18] sm:$0xff] %v1054_v21  ;;  %v987_v57 = vadd.f32 %v1229_v33, %v1805_v56  ;;  %v1232_v59 = vadd.f32 %v1231_v42, %v1230_v24  ;;  %v1908_v24 = vld [vmem:[#allocation7_spill] sm:$0xff] }
 0x219   : > { %v1039_v62 = vmul.f32 %v1807_v60, %v987_v57  ;;  %v990_v29 = vadd.f32 %v1232_v59, %v1805_v56 }
 0x21b   : > { %v1055_v35 = vadd.f32 %v1039_v62, %v1539_v39  ;;  %v1040_v11 = vmul.f32 %v1807_v60, %v990_v29  ;;  %v1233_v63 = vpop.f32.mrb[28].mxu0 }
 0x21c   : > { %v1234_v45 = vpop.f32.mrb[29].mxu0 }
 0x21d   : > { %1071 = vst [vmem:[%s1817_s20 + $0x20] sm:$0xff] %v1055_v35  ;;  %v1056_v30 = vadd.f32 %v1040_v11, %v1542_v40  ;;  %v1235_v10 = vadd.f32 %v1234_v45, %v1233_v63  ;;  %v1236_v4 = vpop.f32.mrb[30].mxu0  ;;  %v1909_v45 = vld [vmem:[#allocation8_spill] sm:$0xff] }
 0x21e   : > { %v1237_v41 = vpop.f32.mrb[31].mxu0 }
 0x21f   : > { %1072 = vst [vmem:[%s1817_s20 + $0x28] sm:$0xff] %v1056_v30  ;;  %v995_v12 = vadd.f32 %v1235_v10, %v1805_v56  ;;  %v1238_v13 = vadd.f32 %v1237_v41, %v1236_v4  ;;  %v1910_v4 = vld [vmem:[#allocation9_spill] sm:$0xff] }
 0x221   : > { %v1041_v44 = vmul.f32 %v1807_v60, %v995_v12  ;;  %v998_v39 = vadd.f32 %v1238_v13, %v1805_v56 }
 0x223   : > { %v1057_v52 = vadd.f32 %v1041_v44, %v1569_v49  ;;  %v1042_v26 = vmul.f32 %v1807_v60, %v998_v39  ;;  %v1239_v15 = vpop.f32.mrb[32].mxu0 }
 0x224   : > { %v1240_v7 = vpop.f32.mrb[33].mxu0 }
 0x225   : > { %1073 = vst [vmem:[%s1817_s20 + $0x30] sm:$0xff] %v1057_v52  ;;  %v1058_v40 = vadd.f32 %v1042_v26, %v1572_v50  ;;  %v1241_v6 = vadd.f32 %v1240_v7, %v1239_v15  ;;  %v1242_v55 = vpop.f32.mrb[34].mxu0  ;;  %v1904_v50 = vld [vmem:[#allocation3_spill] sm:$0xff] }
 0x226   : > { %v1243_v51 = vpop.f32.mrb[35].mxu0 }
 0x227   : > { %1074 = vst [vmem:[%s1817_s20 + $0x38] sm:$0xff] %v1058_v40  ;;  %v1003_v48 = vadd.f32 %v1241_v6, %v1805_v56  ;;  %v1244_v43 = vadd.f32 %v1243_v51, %v1242_v55 }
 0x229   : > { %v1043_v0 = vmul.f32 %v1807_v60, %v1003_v48  ;;  %v1006_v49 = vadd.f32 %v1244_v43, %v1805_v56 }
 0x22b   : > { %v1059_v32 = vadd.f32 %v1043_v0, %v1468_v17  ;;  %v1044_v19 = vmul.f32 %v1807_v60, %v1006_v49  ;;  %v1245_v53 = vpop.f32.mrb[36].mxu0 }
 0x22c   : > { %v1246_v1 = vpop.f32.mrb[37].mxu0 }
 0x22d   : > { %1075 = vst [vmem:[%s1817_s20 + $0x40] sm:$0xff] %v1059_v32  ;;  %v1060_v2 = vadd.f32 %v1044_v19, %v1904_v50  ;;  %v1247_v5 = vadd.f32 %v1246_v1, %v1245_v53  ;;  %v1248_v46 = vpop.f32.mrb[38].mxu0 }
 0x22e   : > { %v1249_v3 = vpop.f32.mrb[39].mxu0 }
 0x22f   : > { %1076 = vst [vmem:[%s1817_s20 + $0x48] sm:$0xff] %v1060_v2  ;;  %v1011_v14 = vadd.f32 %v1247_v5, %v1805_v56  ;;  %v1250_v34 = vadd.f32 %v1249_v3, %v1248_v46 }
 0x231   : > { %v1045_v54 = vmul.f32 %v1807_v60, %v1011_v14  ;;  %v1014_v17 = vadd.f32 %v1250_v34, %v1805_v56 }
 0x233   : > { %v1061_v47 = vadd.f32 %v1045_v54, %v1905_v23  ;;  %v1046_v16 = vmul.f32 %v1807_v60, %v1014_v17  ;;  %v1251_v58 = vpop.f32.mrb[40].mxu0 }
 0x234   : > { %v1252_v36 = vpop.f32.mrb[41].mxu0 }
 0x235   : > { %1077 = vst [vmem:[%s1817_s20 + $0x50] sm:$0xff] %v1061_v47  ;;  %v1062_v25 = vadd.f32 %v1046_v16, %v1906_v8  ;;  %v1253_v37 = vadd.f32 %v1252_v36, %v1251_v58  ;;  %v1254_v61 = vpop.f32.mrb[42].mxu0 }
 0x236   : > { %v1255_v31 = vpop.f32.mrb[43].mxu0 }
 0x237   : > { %1078 = vst [vmem:[%s1817_s20 + $0x58] sm:$0xff] %v1062_v25  ;;  %v1019_v28 = vadd.f32 %v1253_v37, %v1805_v56  ;;  %v1256_v38 = vadd.f32 %v1255_v31, %v1254_v61 }
 0x239   : > { %v1047_v20 = vmul.f32 %v1807_v60, %v1019_v28  ;;  %v1022_v27 = vadd.f32 %v1256_v38, %v1805_v56 }
 0x23b   : > { %v1063_v18 = vadd.f32 %v1047_v20, %v1907_v22  ;;  %v1048_v9 = vmul.f32 %v1807_v60, %v1022_v27  ;;  %v1257_v21 = vpop.f32.mrb[44].mxu0 }
 0x23c   : > { %v1258_v33 = vpop.f32.mrb[45].mxu0 }
 0x23d   : > { %1079 = vst [vmem:[%s1817_s20 + $0x60] sm:$0xff] %v1063_v18  ;;  %v1064_v42 = vadd.f32 %v1048_v9, %v1908_v24  ;;  %v1259_v57 = vadd.f32 %v1258_v33, %v1257_v21  ;;  %v1260_v59 = vpop.f32.mrb[46].mxu0 }
 0x23e   : > { %v1261_v62 = vpop.f32.mrb[47].mxu0 }
 0x23f   : > { %1080 = vst [vmem:[%s1817_s20 + $0x68] sm:$0xff] %v1064_v42  ;;  %v1027_v29 = vadd.f32 %v1259_v57, %v1805_v56  ;;  %v1262_v35 = vadd.f32 %v1261_v62, %v1260_v59 }
 0x241   : > { %v1049_v11 = vmul.f32 %v1807_v60, %v1027_v29  ;;  %v1030_v63 = vadd.f32 %v1262_v35, %v1805_v56 }
 0x243   : > { %v1065_v30 = vadd.f32 %v1049_v11, %v1909_v45  ;;  %v1050_v10 = vmul.f32 %v1807_v60, %v1030_v63 }
 0x245   : > { %1081 = vst [vmem:[%s1817_s20 + $0x70] sm:$0xff] %v1065_v30  ;;  %v1066_v41 = vadd.f32 %v1050_v10, %v1910_v4 }
 0x247   : > { %1082 = vst [vmem:[%s1817_s20 + $0x78] sm:$0xff] %v1066_v41 }
 0x248 PF: > { %s17_s23 = sadd.s32 1, %s1358_s23  }
 0x249   : > { %p14_p4 = scmp.ge.s32.totalorder %s17_s23, 4  }
 0x24b   :  { %16 = sbr.rel (!%p14_p4) target bundleno = 2 (0x2), region = 74 }

// kernel: graph_net_block.8
= control target key start
LH: loop header
LB: loop body
LE: loop exit
PB: predicated region body
PF: predicated region fallthrough
CT: control target
= control target key end

     0   :  { %vm61_vm0 = vcmask 261120   ;;  %v13137_v0 = vmov 0.0   ;;  %v10249_v2 = vmov 1966171168   ;;  %v112_v4 = vlaneseq  ;;  %s10251_s26 = smov 96   ;;  %s10252_s4 = smov 64   ;;  %s13132_s1 = inlined_call_operand.vmem [shape: bf16[16,256], index: 1, kind: input, shape index: {}]   ;;  %s13133_s2 = inlined_call_operand.vmem [shape: bf16[16,16,256], index: 2, kind: input, shape index: {}]   ;;  %s13134_s0 = inlined_call_operand.vmem [shape: bf16[16,128], index: 0, kind: input, shape index: {}]   ;;  %s13135_s3 = inlined_call_operand.vmem [shape: f32[16,128], index: 3, kind: output, shape index: {}]  }
   0x1   :  { %9152 = vmatprep.subr.bf16.mxu0 %v13137_v0  ;;  %v10278_v1 = vld [vmem:[%s13132_s1] ss:$8 sps:$4 sm:$0xff]   ;;  %9158 = vmatprep.subr.bf16.mxu1 %v13137_v0  ;;  %v110_v3 = vunpack.c.l.s4 %v10249_v2  ;;  %vm10250_vm1 = vmmov 0   ;;  %v10304_v11 = vld [vmem:[%s13133_s2 + $0x10] sm:$0xff]  ;;  %v10309_v12 = vld [vmem:[%s13133_s2 + $0x18] sm:$0xff]  ;;  %vm1069_vm2 = vcmask 130048  }
   0x2   :  { %v10284_v5 = vld [vmem:[%s13133_s2] sm:$0xff]  ;;  %v10289_v6 = vld [vmem:[%s13133_s2 + $0x8] sm:$0xff]  ;;  %9154 = vmatprep.mubr.msk.bf16.mxu0 %vm10250_vm1, %v13137_v0  ;;  %9160 = vmatprep.mubr.msk.bf16.mxu1 %vm10250_vm1, %v13137_v0  ;;  %v66_v7 = vsel %vm61_vm0, %v10278_v1, 0  ;;  %v113_v10 = vshrl.u32 %v112_v4, 7  ;;  %v10326_v17 = vcombine.low %v10304_v11, %v10309_v12  ;;  %v10355_v27 = vld [vmem:[%s13133_s2 + $0x30] sm:$0xff]  ;;  %vm1109_vm3 = vcmask 1041409  }
   0x3   :  { %v10299_v8 = vcombine.low %v10284_v5, %v10289_v6  ;;  %v111_v9 = vunpack.c.0.s8 %v110_v3  ;;  %9153 = vmatpush3.bf16.xpose.msra.mxu0 %v66_v7  ;;  %v15_v13 = vld [vmem:[%s13134_s0] sm:$0xf]  ;;  %v10317_v14 = vld [vmem:[%s13134_s0 + $0x4] sm:$0xf]  ;;  %v10336_v19 = vld [vmem:[%s13133_s2 + $0x28] sm:$0xff]  ;;  %13224 = vst [vmem:[#allocation4_spill] sm:$0xff] %v10355_v27 }
   0x4   :  { %9164 = vmatprep.subr.bf16.mxu0 %v13137_v0  ;;  %v10331_v18 = vld [vmem:[%s13133_s2 + $0x20] sm:$0xff]  ;;  %13223 = vst [vmem:[#allocation3_spill] sm:$0xff] %v10336_v19  ;;  %v10339_v20 = vcombine.low %v15_v13, %v10317_v14  ;;  %v10343_v22 = vsub.s32 0, %v113_v10  ;;  %v243_v25 = vsel %vm61_vm0, %v10326_v17, 0  ;;  %v10360_v28 = vld [vmem:[%s13133_s2 + $0x38] sm:$0xff]  ;;  %v10385_v37 = vld [vmem:[%s13133_s2 + $0x48] sm:$0xff] }
   0x5   :  { %v187_v15 = vsel %vm61_vm0, %v10299_v8, 0  ;;  %v10321_v16 = vsub.s32 %v111_v9, %v113_v10  ;;  %13222 = vst [vmem:[#allocation2_spill] sm:$0xff] %v10331_v18  ;;  %v10350_v26 = vcombine.low %v10331_v18, %v10336_v19  ;;  %13225 = vst [vmem:[#allocation5_spill] sm:$0xff] %v10360_v28  ;;  %v10375_v35 = vcombine.low %v10355_v27, %v10360_v28  ;;  %v10380_v36 = vld [vmem:[%s13133_s2 + $0x40] sm:$0xff]  ;;  %v10404_v43 = vld [vmem:[%s13133_s2 + $0x50] sm:$0xff]  ;;  %s10253_s21 = smov 32  }
   0x6   :  { %9159 = vmatpush3.bf16.xpose.msra.mxu1 %v187_v15  ;;  %13226 = vst [vmem:[#allocation6_spill] sm:$0xff] %v10380_v36  ;;  %13227 = vst [vmem:[#allocation7_spill] sm:$0xff] %v10385_v37  ;;  %v10399_v42 = vcombine.low %v10380_v36, %v10385_v37  ;;  %v10409_v44 = vld [vmem:[%s13133_s2 + $0x58] sm:$0xff]  ;;  %v10428_v50 = vld [vmem:[%s13133_s2 + $0x60] sm:$0xff]  ;;  %vm1112_vm4 = vcmask 1042434   ;;  %vm1115_vm5 = vcmask 1043459  }
   0x7   :  { %v115_v21 = vrot.slane %v15_v13, %v10321_v16  ;;  %9170 = vmatprep.subr.bf16.mxu1 %v13137_v0  ;;  %v299_v33 = vsel %vm61_vm0, %v10350_v26, 0  ;;  %v355_v41 = vsel %vm61_vm0, %v10375_v35, 0  ;;  %13228 = vst [vmem:[#allocation8_spill] sm:$0xff] %v10404_v43  ;;  %13229 = vst [vmem:[#allocation9_spill] sm:$0xff] %v10409_v44  ;;  %v10423_v49 = vcombine.low %v10404_v43, %v10409_v44  ;;  %v10433_v51 = vld [vmem:[%s13133_s2 + $0x68] sm:$0xff]  ;;  %v10452_v57 = vld [vmem:[%s13133_s2 + $0x70] sm:$0xff] }
   0x8   :  { %v411_v48 = vsel %vm61_vm0, %v10399_v42, 0  ;;  %13230 = vst [vmem:[#allocation10_spill] sm:$0xff] %v10428_v50  ;;  %13231 = vst [vmem:[#allocation11_spill] sm:$0xff] %v10433_v51  ;;  %v10447_v56 = vcombine.low %v10428_v50, %v10433_v51  ;;  %v10457_v58 = vld [vmem:[%s13133_s2 + $0x78] sm:$0xff]  ;;  %v10476_v2 = vld [vmem:[%s13133_s2 + $0x80] sm:$0xff]  ;;  %v139_v4 = vrot.slane %v10317_v14, %v10321_v16  ;;  %vm1118_vm6 = vcmask 1044484  }
   0x9   :  { %v116_v23 = vcombine.high %v115_v21, %v115_v21  ;;  %v123_v24 = vrot.slane %v115_v21, %v10321_v16  ;;  %v467_v55 = vsel %vm61_vm0, %v10423_v49, 0  ;;  %13233 = vst [vmem:[#allocation13_spill] sm:$0xff] %v10452_v57  ;;  %13234 = vst [vmem:[#allocation14_spill] sm:$0xff] %v10457_v58  ;;  %v10471_v63 = vcombine.low %v10452_v57, %v10457_v58  ;;  %v10481_v3 = vld [vmem:[%s13133_s2 + $0x88] sm:$0xff]  ;;  %v10502_v15 = vld [vmem:[%s13133_s2 + $0x90] sm:$0xff] }
   0xa   :  { %9155 = vmatmul.mubr.msk.bf16.vlgmr.msra.gmra.mrb[0].mxu0 %vm61_vm0, %v10339_v20  ;;  %13232 = vst [vmem:[#allocation12_spill] sm:$0xff] %v10447_v56  ;;  %v523_v62 = vsel %vm61_vm0, %v10447_v56, 0  ;;  %13237 = vst [vmem:[#allocation17_spill] sm:$0xff] %v10476_v2  ;;  %v10497_v14 = vcombine.low %v10476_v2, %v10481_v3  ;;  %v10507_v21 = vld [vmem:[%s13133_s2 + $0x98] sm:$0xff]  ;;  %vm1121_vm7 = vcmask 1045509   ;;  %vm1124_vm8 = vcmask 1046534  }
   0xb   :  { %v130_v29 = vrot.slane %v116_v23, %v10321_v16  ;;  %v8656_v30 = vpack.i.b16 %v123_v24, %v123_v24  ;;  %v158_v31 = vunpack.i.h.s16 %v123_v24  ;;  %9165 = vmatpush3.bf16.xpose.msra.mxu0 %v243_v25  ;;  %9166 = vmatprep.mubr.msk.bf16.mxu0 %vm10250_vm1, %v13137_v0  ;;  %v131_v47 = vcombine.high %v123_v24, %v123_v24 }
   0xc   :  { %9176 = vmatprep.subr.bf16.mxu0 %v13137_v0  ;;  %13236 = vst [vmem:[#allocation16_spill] sm:$0xff] %v10471_v63  ;;  %13238 = vst [vmem:[#allocation18_spill] sm:$0xff] %v10481_v3  ;;  %v579_v13 = vsel %vm61_vm0, %v10471_v63, 0  ;;  %v147_v23 = vrot.slane %v139_v4, %v10321_v16  ;;  %vm1127_vm9 = vcmask 1047559   ;;  %vm8641_vm10 = vcmask 523264  }
   0xd   :  { %v10368_v32 = vrot.slane %v8656_v30, %v10343_v22  ;;  %v229_v34 = vpack.i.b16 %v158_v31, %v158_v31  ;;  %v8661_v39 = vpack.i.b16 %v130_v29, %v130_v29  ;;  %v160_v40 = vunpack.i.h.s16 %v130_v29  ;;  %13240 = vst [vmem:[#allocation20_spill] sm:$0xff] %v10497_v14  ;;  %13241 = vst [vmem:[#allocation21_spill] sm:$0xff] %v10502_v15  ;;  %v10527_v31 = vld [vmem:[%s13133_s2 + $0xa0] sm:$0xff] }
   0xe   :  { %v8666_v53 = vpack.i.b16 %v131_v47, %v131_v47  ;;  %v162_v54 = vunpack.i.h.s16 %v131_v47  ;;  %v132_v61 = vcombine.high %v130_v29, %v130_v29  ;;  %13242 = vst [vmem:[#allocation22_spill] sm:$0xff] %v10507_v21  ;;  %v635_v29 = vsel %vm61_vm0, %v10497_v14, 0  ;;  %13245 = vst [vmem:[#allocation25_spill] sm:$0xff] %v10527_v31 }
   0xf   :  { %9161 = vmatmul.mubr.msk.bf16.vlgmr.msra.gmra.mrb[0].mxu1 %vm61_vm0, %v10368_v32  ;;  %v10390_v38 = vrot.slane %v229_v34, %v10343_v22  ;;  %v10414_v45 = vrot.slane %v8661_v39, %v10343_v22  ;;  %v341_v46 = vpack.i.b16 %v160_v40, %v160_v40  ;;  %v10522_v30 = vcombine.low %v10502_v15, %v10507_v21 }
  0x10   :  { %9171 = vmatpush3.bf16.xpose.msra.mxu1 %v299_v33  ;;  %9172 = vmatprep.mubr.msk.bf16.mxu1 %vm10250_vm1, %v13137_v0  ;;  %v10462_v59 = vrot.slane %v8666_v53, %v10343_v22  ;;  %v453_v60 = vpack.i.b16 %v162_v54, %v162_v54  ;;  %v8671_v9 = vpack.i.b16 %v132_v61, %v132_v61  ;;  %v164_v10 = vunpack.i.h.s16 %v132_v61  ;;  %v10532_v33 = vld [vmem:[%s13133_s2 + $0xa8] sm:$0xff]  ;;  %v10556_v53 = vld [vmem:[%s13133_s2 + $0xb8] sm:$0xff] }
  0x11   :  { %9182 = vmatprep.subr.bf16.mxu1 %v13137_v0  ;;  %v10438_v52 = vrot.slane %v341_v46, %v10343_v22  ;;  %13244 = vst [vmem:[#allocation24_spill] sm:$0xff] %v10522_v30  ;;  %13246 = vst [vmem:[#allocation26_spill] sm:$0xff] %v10532_v33  ;;  %v140_v34 = vcombine.high %v139_v4, %v139_v4  ;;  %v8676_v40 = vpack.i.b16 %v147_v23, %v147_v23  ;;  %v10581_v4 = vld [vmem:[%s13133_s2 + $0xc8] sm:$0xff]  ;;  %vm8644_vm11 = vcmask 785408  }
  0x12   :  { %9167 = vmatmul.mubr.msk.bf16.vlgmr.msra.gmra.mrb[4].mxu0 %vm61_vm0, %v10390_v38  ;;  %13235 = vst [vmem:[#allocation15_spill] sm:$0xff] %v10462_v59  ;;  %v10488_v7 = vrot.slane %v453_v60, %v10343_v22  ;;  %v10513_v24 = vrot.slane %v8671_v9, %v10343_v22  ;;  %v565_v25 = vpack.i.b16 %v164_v10, %v164_v10  ;;  %v691_v46 = vsel %vm61_vm0, %v10522_v30, 0 }
  0x13   :  { %9177 = vmatpush3.bf16.xpose.msra.mxu0 %v355_v41  ;;  %9178 = vmatprep.mubr.msk.bf16.mxu0 %vm10250_vm1, %v13137_v0  ;;  %v166_v41 = vunpack.i.h.s16 %v147_v23  ;;  %v10546_v47 = vcombine.low %v10527_v31, %v10532_v33  ;;  %13250 = vst [vmem:[#allocation30_spill] sm:$0xff] %v10556_v53  ;;  %v154_v54 = vrot.slane %v140_v34, %v10321_v16  ;;  %v10576_v16 = vld [vmem:[%s13133_s2 + $0xc0] sm:$0xff]  ;;  %13254 = vst [vmem:[#allocation34_spill] sm:$0xff] %v10581_v4  ;;  %v10600_v34 = vld [vmem:[%s13133_s2 + $0xd0] sm:$0xff] }
  0x14   :  { %9188 = vmatprep.subr.bf16.mxu0 %v13137_v0  ;;  %13239 = vst [vmem:[#allocation19_spill] sm:$0xff] %v10488_v7  ;;  %13243 = vst [vmem:[#allocation23_spill] sm:$0xff] %v10513_v24  ;;  %v10537_v39 = vrot.slane %v565_v25, %v10343_v22 }
  0x15   :  { %13248 = vst [vmem:[#allocation28_spill] sm:$0xff] %v10546_v47  ;;  %v677_v60 = vpack.i.b16 %v166_v41, %v166_v41  ;;  %v747_v61 = vsel %vm61_vm0, %v10546_v47, 0  ;;  %13253 = vst [vmem:[#allocation33_spill] sm:$0xff] %v10576_v16  ;;  %v8681_v10 = vpack.i.b16 %v154_v54, %v154_v54 }
  0x16   :  { %13247 = vst [vmem:[#allocation27_spill] sm:$0xff] %v10537_v39  ;;  %13257 = vst [vmem:[#allocation37_spill] sm:$0xff] %v10600_v34 }
  0x17   :  { %9173 = vmatmul.mubr.msk.bf16.vlgmr.msra.gmra.mrb[4].mxu1 %vm61_vm0, %v10414_v45  ;;  %v10586_v9 = vrot.slane %v677_v60, %v10343_v22  ;;  %v10610_v41 = vrot.slane %v8681_v10, %v10343_v22  ;;  %v155_v60 = vcombine.high %v147_v23, %v147_v23  ;;  %v10624_v10 = vld [vmem:[%s13133_s2 + $0xe0] sm:$0xff]  ;;  %v10629_v23 = vld [vmem:[%s13133_s2 + $0xe8] sm:$0xff] }
  0x18   :  { %9183 = vmatpush3.bf16.xpose.msra.mxu1 %v411_v48  ;;  %9184 = vmatprep.mubr.msk.bf16.mxu1 %vm10250_vm1, %v13137_v0  ;;  %v10551_v48 = vld [vmem:[%s13133_s2 + $0xb0] sm:$0xff]  ;;  %13261 = vst [vmem:[#allocation41_spill] sm:$0xff] %v10624_v10  ;;  %13262 = vst [vmem:[#allocation42_spill] sm:$0xff] %v10629_v23 }
  0x19   :  { %9194 = vmatprep.subr.bf16.mxu1 %v13137_v0  ;;  %13249 = vst [vmem:[#allocation29_spill] sm:$0xff] %v10551_v48  ;;  %13255 = vst [vmem:[#allocation35_spill] sm:$0xff] %v10586_v9 }
  0x1a   :  { %9179 = vmatmul.mubr.msk.bf16.vlgmr.msra.gmra.mrb[8].mxu0 %vm61_vm0, %v10438_v52  ;;  %13259 = vst [vmem:[#allocation39_spill] sm:$0xff] %v10610_v41 }
  0x1b   :  { %9189 = vmatpush3.bf16.xpose.msra.mxu0 %v467_v55  ;;  %9190 = vmatprep.mubr.msk.bf16.mxu0 %vm10250_vm1, %v13137_v0  ;;  %v10562_v55 = vrot.slane %v8676_v40, %v10343_v22  ;;  %v10605_v40 = vld [vmem:[%s13133_s2 + $0xd8] sm:$0xff] }
  0x1c   :  { %9200 = vmatprep.subr.bf16.mxu0 %v13137_v0  ;;  %13258 = vst [vmem:[#allocation38_spill] sm:$0xff] %v10605_v40 }
  0x1d   :  { %13251 = vst [vmem:[#allocation31_spill] sm:$0xff] %v10562_v55 }
  0x1f   :  { %9185 = vmatmul.mubr.msk.bf16.vlgmr.msra.gmra.mrb[8].mxu1 %vm61_vm0, %v10462_v59 }
  0x20   :  { %9195 = vmatpush3.bf16.xpose.msra.mxu1 %v523_v62  ;;  %9196 = vmatprep.mubr.msk.bf16.mxu1 %vm10250_vm1, %v13137_v0  ;;  %v10571_v62 = vcombine.low %v10551_v48, %v10556_v53  ;;  %v156_v48 = vcombine.high %v154_v54, %v154_v54 }
  0x21   :  { %9206 = vmatprep.subr.bf16.mxu1 %v13137_v0 }
  0x22   :  { %9191 = vmatmul.mubr.msk.bf16.vlgmr.msra.gmra.mrb[12].mxu0 %vm61_vm0, %v10488_v7  ;;  %13252 = vst [vmem:[#allocation32_spill] sm:$0xff] %v10571_v62  ;;  %v803_v25 = vsel %vm61_vm0, %v10571_v62, 0 }
  0x23   :  { %9201 = vmatpush3.bf16.xpose.msra.mxu0 %v579_v13  ;;  %9202 = vmatprep.mubr.msk.bf16.mxu0 %vm10250_vm1, %v13137_v0  ;;  %v168_v13 = vunpack.i.h.s16 %v154_v54  ;;  %v172_v54 = vunpack.i.h.s16 %v156_v48 }
  0x24   :  { %9212 = vmatprep.subr.bf16.mxu0 %v13137_v0 }
  0x27   :  { %9197 = vmatmul.mubr.msk.bf16.vlgmr.msra.gmra.mrb[12].mxu1 %vm61_vm0, %v10513_v24 }
  0x28   :  { %9207 = vmatpush3.bf16.xpose.msra.mxu1 %v635_v29  ;;  %9208 = vmatprep.mubr.msk.bf16.mxu1 %vm10250_vm1, %v13137_v0  ;;  %v10595_v29 = vcombine.low %v10576_v16, %v10581_v4  ;;  %v10619_v4 = vcombine.low %v10600_v34, %v10605_v40  ;;  %v13264_v40 = vmov 0.0   ;;  %v10643_v16 = vcombine.low %v10624_v10, %v10629_v23 }
  0x29   :  { %9218 = vmatprep.subr.bf16.mxu1 %v13137_v0 }
  0x2a   :  { %9203 = vmatmul.mubr.msk.bf16.vlgmr.msra.gmra.mrb[16].mxu0 %vm61_vm0, %v10537_v39  ;;  %13256 = vst [vmem:[#allocation36_spill] sm:$0xff] %v10595_v29  ;;  %13260 = vst [vmem:[#allocation40_spill] sm:$0xff] %v10619_v4  ;;  %v915_v34 = vsel %vm61_vm0, %v10619_v4, 0  ;;  %v971_v23 = vsel %vm61_vm0, %v10643_v16, 0 }
  0x2b   :  { %9213 = vmatpush3.bf16.xpose.msra.mxu0 %v691_v46  ;;  %9214 = vmatprep.mubr.msk.bf16.mxu0 %vm10250_vm1, %v13137_v0  ;;  %v789_v46 = vpack.i.b16 %v168_v13, %v168_v13  ;;  %13265 = vst [vmem:[#allocation44_spill] sm:$0xff] %v10643_v16 }
  0x2c   :  { %9224 = vmatprep.subr.bf16.mxu0 %v13137_v0 }
  0x2d   :  { %v10634_v13 = vrot.slane %v789_v46, %v10343_v22  ;;  %v10648_v46 = vld [vmem:[%s13133_s2 + $0xf0] sm:$0xff] }
  0x2e   :  { %13266 = vst [vmem:[#allocation45_spill] sm:$0xff] %v10648_v46 }
  0x2f   :  { %9209 = vmatmul.mubr.msk.bf16.vlgmr.msra.gmra.mrb[16].mxu1 %vm61_vm0, %v10562_v55  ;;  %13263 = vst [vmem:[#allocation43_spill] sm:$0xff] %v10634_v13 }
  0x30   :  { %9219 = vmatpush3.bf16.xpose.msra.mxu1 %v747_v61  ;;  %9220 = vmatprep.mubr.msk.bf16.mxu1 %vm10250_vm1, %v13137_v0  ;;  %v859_v61 = vsel %vm61_vm0, %v10595_v29, 0 }
  0x31   :  { %9230 = vmatprep.subr.bf16.mxu1 %v13137_v0 }
  0x32   :  { %9215 = vmatmul.mubr.msk.bf16.vlgmr.msra.gmra.mrb[20].mxu0 %vm61_vm0, %v10586_v9 }
  0x33   :  { %9225 = vmatpush3.bf16.xpose.msra.mxu0 %v803_v25  ;;  %9226 = vmatprep.mubr.msk.bf16.mxu0 %vm10250_vm1, %v13137_v0  ;;  %v8686_v25 = vpack.i.b16 %v155_v60, %v155_v60 }
  0x34   :  { %9236 = vmatprep.subr.bf16.mxu0 %v13137_v0  ;;  %v170_v0 = vunpack.i.h.s16 %v155_v60  ;;  %v10653_v60 = vld [vmem:[%s13133_s2 + $0xf8] sm:$0xff] }
  0x35   :  { %13267 = vst [vmem:[#allocation46_spill] sm:$0xff] %v10653_v60  ;;  %v10667_v10 = vcombine.low %v10648_v46, %v10653_v60  ;;  %v1013_v46 = vpack.i.b16 %v172_v54, %v172_v54 }
  0x36   :  { %v901_v53 = vpack.i.b16 %v170_v0, %v170_v0  ;;  %v8691_v0 = vpack.i.b16 %v156_v48, %v156_v48 }
  0x37   :  { %9221 = vmatmul.mubr.msk.bf16.vlgmr.msra.gmra.mrb[20].mxu1 %vm61_vm0, %v10610_v41  ;;  %13269 = vst [vmem:[#allocation48_spill] sm:$0xff] %v10667_v10  ;;  %v10690_v48 = vrot.slane %v1013_v46, %v10343_v22 }
  0x38   :  { %9231 = vmatpush3.bf16.xpose.msra.mxu1 %v859_v61  ;;  %9232 = vmatprep.mubr.msk.bf16.mxu1 %vm10250_vm1, %v13264_v40  ;;  %v10658_v61 = vrot.slane %v8686_v25, %v10343_v22  ;;  %v10672_v25 = vrot.slane %v901_v53, %v10343_v22  ;;  %v10682_v60 = vrot.slane %v8691_v0, %v10343_v22 }
  0x39   :  { %9242 = vmatprep.subr.bf16.mxu1 %v13264_v40  ;;  %13272 = vst [vmem:[#allocation51_spill] sm:$0xff] %v10690_v48 }
  0x3a   :  { %9227 = vmatmul.mubr.msk.bf16.vlgmr.msra.gmra.mrb[24].mxu0 %vm61_vm0, %v10634_v13  ;;  %13268 = vst [vmem:[#allocation47_spill] sm:$0xff] %v10658_v61  ;;  %13270 = vst [vmem:[#allocation49_spill] sm:$0xff] %v10672_v25 }
  0x3b   :  { %9237 = vmatpush3.bf16.xpose.msra.mxu0 %v915_v34  ;;  %9238 = vmatprep.mubr.msk.bf16.mxu0 %vm10250_vm1, %v13264_v40  ;;  %v1027_v34 = vsel %vm61_vm0, %v10667_v10, 0  ;;  %13271 = vst [vmem:[#allocation50_spill] sm:$0xff] %v10682_v60 }
  0x3c   :  { %9248 = vmatprep.subr.bf16.mxu0 %v13264_v40 }
  0x3f   :  { %9233 = vmatmul.mubr.msk.bf16.vlgmr.msra.gmra.mrb[24].mxu1 %vm61_vm0, %v10658_v61 }
  0x40   :  { %9243 = vmatpush3.bf16.xpose.msra.mxu1 %v971_v23  ;;  %9244 = vmatprep.mubr.msk.bf16.mxu1 %vm10250_vm1, %v13264_v40 }
  0x41   :  { %9254 = vmatprep.subr.bf16.mxu1 %v13264_v40 }
  0x42   :  { %9239 = vmatmul.mubr.msk.bf16.vlgmr.msra.gmra.mrb[28].mxu0 %vm61_vm0, %v10672_v25 }
  0x43   :  { %9249 = vmatpush3.bf16.xpose.msra.mxu0 %v1027_v34  ;;  %9250 = vmatprep.mubr.msk.bf16.mxu0 %vm10250_vm1, %v13264_v40 }
  0x44   :  { %9260 = vmatprep.subr.bf16.mxu0 %v13264_v40 }
  0x47   :  { %9245 = vmatmul.mubr.msk.bf16.vlgmr.msra.gmra.mrb[28].mxu1 %vm61_vm0, %v10682_v60 }
  0x48   :  { %9256 = vmatprep.mubr.msk.bf16.mxu1 %vm10250_vm1, %v13264_v40 }
  0x4a   :  { %9251 = vmatmul.mubr.msk.bf16.vlgmr.msra.gmra.mrb[32].mxu0 %vm61_vm0, %v10690_v48 }
  0x4b   :  { %9262 = vmatprep.mubr.msk.bf16.mxu0 %vm10250_vm1, %v13264_v40 }
  0xdd   :  { %v10698_v53 = vpop.f32.mrb[0].mxu0 }
  0xde   :  { %v9156_v23 = vpop.f32.mrb[1].mxu0  ;;  %v1070_v0 = vsel %vm1069_vm2, %v10698_v53, -inf }
  0xdf   :  { %1071 = vmax.xlane.f32.xlu1 %v1070_v0  ;;  %v10702_v54 = vpop.f32.mrb[2].mxu0 }
  0xe0   :  { %v9157_v22 = vpop.f32.mrb[3].mxu0  ;;  %v1073_v33 = vsel %vm1069_vm2, %v10702_v54, -inf }
  0xe2   :  { %v10704_v46 = vpop.f32.mrb[0].mxu1 }
  0xe3   :  { %v9162_v34 = vpop.f32.mrb[1].mxu1  ;;  %1074 = vmax.xlane.f32.xlu1 %v1073_v33 }
  0xe4   :  { %v226_v31 = vpop.f32.mrb[2].mxu1 }
  0xe5   :  { %v9163_v21 = vpop.f32.mrb[3].mxu1  ;;  %v10708_v15 = vpop.f32.mrb[4].mxu0 }
  0xe6   :  { %v1108_v23 = vrot.slane %v10708_v15, 7  ;;  %v9168_v3 = vpop.f32.mrb[5].mxu0 }
  0xe7   :  { %v282_v2 = vpop.f32.mrb[6].mxu0 }
  0xe8   :  { %v1110_v0 = vsel %vm1109_vm3, %v1108_v23, %v10704_v46  ;;  %v9169_v22 = vpop.f32.mrb[7].mxu0 }
  0xea   :  { %v10713_v58 = vpop.f32.mrb[4].mxu1 }
  0xeb   :  { %v1111_v34 = vrot.slane %v10713_v58, 6  ;;  %v9174_v57 = vpop.f32.mrb[5].mxu1 }
  0xec   :  { %v338_v31 = vpop.f32.mrb[6].mxu1 }
  0xed   :  { %v1113_v21 = vsel %vm1112_vm4, %v1111_v34, %v1110_v0  ;;  %v9175_v33 = vpop.f32.mrb[7].mxu1  ;;  %v10717_v51 = vpop.f32.mrb[8].mxu0 }
  0xee   :  { %v1114_v3 = vrot.slane %v10717_v51, 5  ;;  %v9180_v2 = vpop.f32.mrb[9].mxu0 }
  0xef   :  { %v394_v50 = vpop.f32.mrb[10].mxu0 }
  0xf0   :  { %v9181_v18 = vpop.f32.mrb[11].mxu0  ;;  %v1116_v23 = vsel %vm1115_vm5, %v1114_v3, %v1113_v21 }
  0xf2   :  { %v10721_v22 = vpop.f32.mrb[8].mxu1 }
  0xf3   :  { %v1117_v48 = vrot.slane %v10721_v22, 4  ;;  %v9186_v57 = vpop.f32.mrb[9].mxu1 }
  0xf4   :  { %v450_v31 = vpop.f32.mrb[10].mxu1 }
  0xf5   :  { %v9187_v44 = vpop.f32.mrb[11].mxu1  ;;  %v1119_v0 = vsel %vm1118_vm6, %v1117_v48, %v1116_v23  ;;  %v10725_v34 = vpop.f32.mrb[12].mxu0 }
  0xf6   :  { %v1120_v33 = vrot.slane %v10725_v34, 3  ;;  %v9192_v2 = vpop.f32.mrb[13].mxu0 }
  0xf7   :  { %v506_v50 = vpop.f32.mrb[14].mxu0 }
  0xf8   :  { %v9193_v18 = vpop.f32.mrb[15].mxu0  ;;  %v1122_v21 = vsel %vm1121_vm7, %v1120_v33, %v1119_v0 }
  0xfa   :  { %v10729_v3 = vpop.f32.mrb[12].mxu1 }
  0xfb   :  { %v1123_v10 = vrot.slane %v10729_v3, 2  ;;  %v9198_v57 = vpop.f32.mrb[13].mxu1 }
  0xfc   :  { %v562_v31 = vpop.f32.mrb[14].mxu1 }
  0xfd   :  { %v9199_v44 = vpop.f32.mrb[15].mxu1  ;;  %v1125_v48 = vsel %vm1124_vm8, %v1123_v10, %v1122_v21  ;;  %v10733_v23 = vpop.f32.mrb[16].mxu0 }
  0xfe   :  { %v1126_v43 = vrot.slane %v10733_v23, 1  ;;  %v9204_v2 = vpop.f32.mrb[17].mxu0 }
  0xff   :  { %v618_v50 = vpop.f32.mrb[18].mxu0 }
 0x100   :  { %v9205_v18 = vpop.f32.mrb[19].mxu0  ;;  %v1128_v0 = vsel %vm1127_vm9, %v1126_v43, %v1125_v48 }
 0x101   :  { %v1145_v16 = vsel %vm1069_vm2, %v1128_v0, -inf }
 0x102   :  { %v10737_v33 = vpop.f32.mrb[16].mxu1  ;;  %1146 = vmax.xlane.f32.xlu0 %v1145_v16 }
 0x103   :  { %v9210_v37 = vpop.f32.mrb[17].mxu1 }
 0x104   :  { %v674_v57 = vpop.f32.mrb[18].mxu1 }
 0x105   :  { %v9211_v31 = vpop.f32.mrb[19].mxu1  ;;  %v10740_v44 = vpop.f32.mrb[20].mxu0 }
 0x106   :  { %v1129_v10 = vrot.slane %v10740_v44, 7  ;;  %v9216_v21 = vpop.f32.mrb[21].mxu0 }
 0x107   :  { %v730_v4 = vpop.f32.mrb[22].mxu0 }
 0x108   :  { %v1130_v2 = vsel %vm1109_vm3, %v1129_v10, %v10737_v33  ;;  %v9217_v50 = vpop.f32.mrb[23].mxu0 }
 0x10a   :  { %v10745_v18 = vpop.f32.mrb[20].mxu1 }
 0x10b   :  { %v1131_v43 = vrot.slane %v10745_v18, 6  ;;  %v9222_v48 = vpop.f32.mrb[21].mxu1 }
 0x10c   :  { %v786_v0 = vpop.f32.mrb[22].mxu1 }
 0x10d   :  { %v1132_v37 = vsel %vm1112_vm4, %v1131_v43, %v1130_v2  ;;  %v9223_v16 = vpop.f32.mrb[23].mxu1  ;;  %v10749_v57 = vpop.f32.mrb[24].mxu0 }
 0x10e   :  { %v1133_v31 = vrot.slane %v10749_v57, 5  ;;  %v9228_v36 = vpop.f32.mrb[25].mxu0 }
 0x10f   :  { %v842_v21 = vpop.f32.mrb[26].mxu0 }
 0x110   :  { %v1134_v4 = vsel %vm1115_vm5, %v1133_v31, %v1132_v37  ;;  %v9229_v29 = vpop.f32.mrb[27].mxu0 }
 0x112   :  { %v10753_v10 = vpop.f32.mrb[24].mxu1 }
 0x113   :  { %v1135_v50 = vrot.slane %v10753_v10, 4  ;;  %v9234_v28 = vpop.f32.mrb[25].mxu1 }
 0x114   :  { %v898_v62 = vpop.f32.mrb[26].mxu1 }
 0x115   :  { %v1136_v48 = vsel %vm1118_vm6, %v1135_v50, %v1134_v4  ;;  %v9235_v0 = vpop.f32.mrb[27].mxu1  ;;  %v10757_v2 = vpop.f32.mrb[28].mxu0 }
 0x116   :  { %v1137_v43 = vrot.slane %v10757_v2, 3  ;;  %v9240_v16 = vpop.f32.mrb[29].mxu0 }
 0x117   :  { %v954_v27 = vpop.f32.mrb[30].mxu0 }
 0x118   :  { %v9241_v36 = vpop.f32.mrb[31].mxu0  ;;  %v1138_v21 = vsel %vm1121_vm7, %v1137_v43, %v1136_v48 }
 0x11a   :  { %v10761_v37 = vpop.f32.mrb[28].mxu1 }
 0x11b   :  { %v1139_v29 = vrot.slane %v10761_v37, 2  ;;  %v9246_v31 = vpop.f32.mrb[29].mxu1 }
 0x11c   :  { %v1010_v47 = vpop.f32.mrb[30].mxu1 }
 0x11d   :  { %v9247_v28 = vpop.f32.mrb[31].mxu1  ;;  %v1140_v62 = vsel %vm1124_vm8, %v1139_v29, %v1138_v21  ;;  %v10765_v4 = vpop.f32.mrb[32].mxu0 }
 0x11e   :  { %v1141_v50 = vrot.slane %v10765_v4, 1  ;;  %v9252_v0 = vpop.f32.mrb[33].mxu0 }
 0x11f   :  { %v1066_v19 = vpop.f32.mrb[34].mxu0 }
 0x120   :  { %v9253_v16 = vpop.f32.mrb[35].mxu0  ;;  %v1142_v27 = vsel %vm1127_vm9, %v1141_v50, %v1140_v62 }
 0x121   :  { %v1148_v48 = vsel %vm1069_vm2, %v1142_v27, -inf }
 0x122   :  { %1149 = vmax.xlane.f32.xlu0 %v1148_v48 }
 0x16c   :  { %v1072_v56 = vpop.xlane.xlu1 %1071 }
 0x18f   :  { %v1147_v43 = vpop.xlane.xlu0 %1146 }
 0x190   :  { %v1153_v36 = vrot.slane %v1147_v43, 1  ;;  %v1154_v30 = vrot.slane %v1147_v43, 2  ;;  %v1155_v31 = vrot.slane %v1147_v43, 3  ;;  %v1156_v47 = vrot.slane %v1147_v43, 4 }
 0x191   :  { %v1183_v28 = vsub.f32 %v10704_v46, %v1147_v43  ;;  %v1157_v21 = vrot.slane %v1147_v43, 5  ;;  %v1158_v29 = vrot.slane %v1147_v43, 6  ;;  %v1159_v14 = vrot.slane %v1147_v43, 7 }
 0x192   :  { %v1184_v60 = vsub.f32 %v10708_v15, %v1153_v36  ;;  %v1185_v19 = vsub.f32 %v10713_v58, %v1154_v30  ;;  %v1186_v0 = vsub.f32 %v10717_v51, %v1155_v31  ;;  %v1187_v62 = vsub.f32 %v10721_v22, %v1156_v47 }
 0x193   :  { %v1199_v50 = vmul.f32 1.442695, %v1183_v28  ;;  %v1188_v16 = vsub.f32 %v10725_v34, %v1157_v21  ;;  %v1189_v27 = vsub.f32 %v10729_v3, %v1158_v29  ;;  %v1190_v46 = vsub.f32 %v10733_v23, %v1159_v14 }
 0x194   :  { %v1201_v48 = vmul.f32 1.442695, %v1184_v60  ;;  %v1203_v63 = vmul.f32 1.442695, %v1185_v19  ;;  %v1205_v25 = vmul.f32 1.442695, %v1186_v0  ;;  %v1076_v30 = vsub.f32 %v10698_v53, %v1072_v56 }
 0x195   :  { %9994 = vpow2.f32 %v1199_v50  ;;  %v1207_v43 = vmul.f32 1.442695, %v1187_v62  ;;  %v1209_v15 = vmul.f32 1.442695, %v1188_v16  ;;  %v1211_v58 = vmul.f32 1.442695, %v1189_v27 }
 0x196   :  { %9996 = vpow2.f32 %v1201_v48  ;;  %v1213_v51 = vmul.f32 1.442695, %v1190_v46  ;;  %v1078_v60 = vmul.f32 1.442695, %v1076_v30 }
 0x197   :  { %9998 = vpow2.f32 %v1203_v63 }
 0x198   :  { %10000 = vpow2.f32 %v1205_v25 }
 0x199   :  { %10002 = vpow2.f32 %v1207_v43 }
 0x19a   :  { %10004 = vpow2.f32 %v1209_v15 }
 0x19b   :  { %10006 = vpow2.f32 %v1211_v58 }
 0x19c   :  { %10008 = vpow2.f32 %v1213_v51 }
 0x19d   :  { %10010 = vpow2.f32 %v1078_v60 }
 0x19f   :  { %v10779_v22 = vpop.eup %9994 }
 0x1a0   :  { %v10781_v14 = vpop.eup %9996 }
 0x1a1   :  { %v10783_v34 = vpop.eup %9998  ;;  %v1247_v3 = vrot.slane %v10781_v14, 7 }
 0x1a2   :  { %v10786_v63 = vpop.eup %10000  ;;  %v1249_v25 = vrot.slane %v10783_v34, 6 }
 0x1a3   :  { %v10789_v23 = vpop.eup %10002  ;;  %v1248_v56 = vsel %vm1109_vm3, %v1247_v3, %v10779_v22  ;;  %v1251_v53 = vrot.slane %v10786_v63, 5 }
 0x1a4   :  { %v10794_v36 = vpop.eup %10004  ;;  %v1250_v31 = vsel %vm1112_vm4, %v1249_v25, %v1248_v56  ;;  %v1253_v47 = vrot.slane %v10789_v23, 4 }
 0x1a5   :  { %v10798_v28 = vpop.eup %10006  ;;  %v1252_v21 = vsel %vm1115_vm5, %v1251_v53, %v1250_v31  ;;  %v1255_v29 = vrot.slane %v10794_v36, 3 }
 0x1a6   :  { %v10802_v19 = vpop.eup %10008  ;;  %v1254_v0 = vsel %vm1118_vm6, %v1253_v47, %v1252_v21  ;;  %v1257_v62 = vrot.slane %v10798_v28, 2 }
 0x1a7   :  { %v1256_v50 = vsel %vm1121_vm7, %v1255_v29, %v1254_v0  ;;  %v1259_v16 = vrot.slane %v10802_v19, 1  ;;  %v10811_v43 = vpop.eup %10010 }
 0x1a8   :  { %v1258_v27 = vsel %vm1124_vm8, %v1257_v62, %v1256_v50  ;;  %v1082_v15 = vsel %vm1069_vm2, %v10811_v43, 0.0 }
 0x1a9   :  { %v1260_v48 = vsel %vm1127_vm9, %v1259_v16, %v1258_v27 }
 0x1aa   :  { %v1277_v46 = vsel %vm1069_vm2, %v1260_v48, 0.0 }
 0x1ab   :  { %1278 = vadd.xlane.f32.xlu0 %v1277_v46 }
 0x1af   :  { %1083 = vadd.xlane.f32.xlu0 %v1082_v15  ;;  %v1150_v58 = vpop.xlane.xlu0 %1149 }
 0x1b0   :  { %v1160_v51 = vrot.slane %v1150_v58, 1  ;;  %v1161_v30 = vrot.slane %v1150_v58, 2  ;;  %v1162_v60 = vrot.slane %v1150_v58, 3  ;;  %v1163_v3 = vrot.slane %v1150_v58, 4 }
 0x1b1   :  { %v1191_v25 = vsub.f32 %v10737_v33, %v1150_v58  ;;  %v1164_v56 = vrot.slane %v1150_v58, 5  ;;  %v1165_v53 = vrot.slane %v1150_v58, 6  ;;  %v1166_v31 = vrot.slane %v1150_v58, 7  ;;  %v1075_v58 = vpop.xlane.xlu1 %1074 }
 0x1b2   :  { %v1192_v47 = vsub.f32 %v10740_v44, %v1160_v51  ;;  %v1193_v21 = vsub.f32 %v10745_v18, %v1161_v30  ;;  %v1194_v29 = vsub.f32 %v10749_v57, %v1162_v60  ;;  %v1195_v0 = vsub.f32 %v10753_v10, %v1163_v3 }
 0x1b3   :  { %v1215_v62 = vmul.f32 1.442695, %v1191_v25  ;;  %v1196_v50 = vsub.f32 %v10757_v2, %v1164_v56  ;;  %v1197_v16 = vsub.f32 %v10761_v37, %v1165_v53  ;;  %v1198_v33 = vsub.f32 %v10765_v4, %v1166_v31 }
 0x1b4   :  { %v1217_v27 = vmul.f32 1.442695, %v1192_v47  ;;  %v1219_v48 = vmul.f32 1.442695, %v1193_v21  ;;  %v1221_v46 = vmul.f32 1.442695, %v1194_v29  ;;  %v1077_v10 = vsub.f32 %v10702_v54, %v1075_v58 }
 0x1b5   :  { %10012 = vpow2.f32 %v1215_v62  ;;  %v1223_v15 = vmul.f32 1.442695, %v1195_v0  ;;  %v1225_v44 = vmul.f32 1.442695, %v1196_v50  ;;  %v1227_v18 = vmul.f32 1.442695, %v1197_v16 }
 0x1b6   :  { %10014 = vpow2.f32 %v1217_v27  ;;  %v1229_v57 = vmul.f32 1.442695, %v1198_v33  ;;  %v1080_v2 = vmul.f32 1.442695, %v1077_v10  ;;  %v1398_v33 = vrot.slane %v10284_v5, 4 }
 0x1b7   :  { %10016 = vpow2.f32 %v1219_v48  ;;  %v1447_v58 = vrot.slane %v10304_v11, 4 }
 0x1b8   :  { %10018 = vpow2.f32 %v1221_v46  ;;  %v1399_v46 = vrot.slane %v10289_v6, 4 }
 0x1b9   :  { %10020 = vpow2.f32 %v1223_v15 }
 0x1ba   :  { %10022 = vpow2.f32 %v1225_v44 }
 0x1bb   :  { %10024 = vpow2.f32 %v1227_v18  ;;  %v8696_v18 = vcombine.low %v1398_v33, %v1399_v46  ;;  %v13285_v33 = vld [vmem:[#allocation6_spill] sm:$0xff]  ;;  %v13286_v46 = vld [vmem:[#allocation40_spill] sm:$0xff] }
 0x1bc   :  { %10026 = vpow2.f32 %v1229_v57 }
 0x1bd   :  { %10028 = vpow2.f32 %v1080_v2  ;;  %9255 = vmatpush3.bf16.msra.mxu1 %v8696_v18  ;;  %v13291_v18 = vld [vmem:[#allocation9_spill] sm:$0xff] }
 0x1be   :  { %9266 = vmatprep.subr.bf16.mxu1 %v13264_v40 }
 0x1bf   :  { %v10824_v37 = vpop.eup %10012 }
 0x1c0   :  { %v10826_v4 = vpop.eup %10014 }
 0x1c1   :  { %v10828_v51 = vpop.eup %10016  ;;  %v1261_v30 = vrot.slane %v10826_v4, 7 }
 0x1c2   :  { %v10831_v60 = vpop.eup %10018  ;;  %v1263_v3 = vrot.slane %v10828_v51, 6 }
 0x1c3   :  { %v10834_v25 = vpop.eup %10020  ;;  %v1262_v54 = vsel %vm1109_vm3, %v1261_v30, %v10824_v37  ;;  %v1265_v56 = vrot.slane %v10831_v60, 5 }
 0x1c4   :  { %v10839_v53 = vpop.eup %10022  ;;  %v1264_v31 = vsel %vm1112_vm4, %v1263_v3, %v1262_v54  ;;  %v1267_v47 = vrot.slane %v10834_v25, 4  ;;  %v13273_v3 = vld [vmem:[#allocation12_spill] sm:$0xff]  ;;  %v13274_v54 = vld [vmem:[#allocation49_spill] sm:$0xff] }
 0x1c5   :  { %v10843_v21 = vpop.eup %10024  ;;  %v1266_v29 = vsel %vm1115_vm5, %v1265_v56, %v1264_v31  ;;  %v1269_v0 = vrot.slane %v10839_v53, 3  ;;  %2278 = vrot.lane.b32.xlu0 %v10278_v1, %s10251_s26  ;;  %v1448_v1 = vrot.slane %v10309_v12, 4  ;;  %v13275_v56 = vld [vmem:[#allocation16_spill] sm:$0xff]  ;;  %v13276_v31 = vld [vmem:[#allocation50_spill] sm:$0xff] }
 0x1c6   :  { %v10849_v62 = vpop.eup %10026  ;;  %v1268_v50 = vsel %vm1118_vm6, %v1267_v47, %v1266_v29  ;;  %v1271_v16 = vrot.slane %v10843_v21, 2  ;;  %v13277_v47 = vld [vmem:[#allocation20_spill] sm:$0xff] }
 0x1c7   :  { %v1270_v27 = vsel %vm1121_vm7, %v1269_v0, %v1268_v50  ;;  %v1273_v48 = vrot.slane %v10849_v62, 1  ;;  %v8698_v10 = vcombine.low %v1447_v58, %v1448_v1  ;;  %v10864_v2 = vpop.eup %10028  ;;  %v13278_v29 = vld [vmem:[#allocation24_spill] sm:$0xff]  ;;  %v13279_v0 = vld [vmem:[#allocation3_spill] sm:$0xff] }
 0x1c8   :  { %v1272_v15 = vsel %vm1124_vm8, %v1271_v16, %v1270_v27  ;;  %v1085_v30 = vsel %vm1069_vm2, %v10864_v2, 0.0  ;;  %v13280_v50 = vld [vmem:[#allocation28_spill] sm:$0xff] }
 0x1c9   :  { %v1274_v44 = vsel %vm1127_vm9, %v1273_v48, %v1272_v15  ;;  %2327 = vrot.lane.b32.xlu0 %v10368_v32, %s10251_s26  ;;  %9261 = vmatpush3.bf16.msra.mxu0 %v8698_v10  ;;  %v13281_v16 = vld [vmem:[#allocation4_spill] sm:$0xff]  ;;  %v13283_v48 = vld [vmem:[#allocation5_spill] sm:$0xff]  ;;  %v13287_v15 = vld [vmem:[#allocation7_spill] sm:$0xff] }
 0x1ca   :  { %v1280_v57 = vsel %vm1069_vm2, %v1274_v44, 0.0  ;;  %9272 = vmatprep.subr.bf16.mxu0 %v13264_v40  ;;  %v13282_v27 = vld [vmem:[#allocation32_spill] sm:$0xff]  ;;  %v13293_v10 = vld [vmem:[#allocation2_spill] sm:$0xff] }
 0x1cb   :  { %1281 = vadd.xlane.f32.xlu1 %v1280_v57  ;;  %v13288_v58 = vld [vmem:[#allocation44_spill] sm:$0xff]  ;;  %v13292_v57 = vld [vmem:[#allocation51_spill] sm:$0xff] }
 0x1cc   :  { %v13289_v1 = vld [vmem:[#allocation8_spill] sm:$0xff] }
 0x1cd   :  { %2377 = vrot.lane.b32.xlu0 %v10390_v38, %s10251_s26  ;;  %v13290_v44 = vld [vmem:[#allocation48_spill] sm:$0xff] }
 0x1cf   :  { %1086 = vadd.xlane.f32.xlu1 %v1085_v30 }
 0x1d1   :  { %2427 = vrot.lane.b32.xlu0 %v10414_v45, %s10251_s26 }
 0x1d5   :  { %2477 = vrot.lane.b32.xlu0 %v10438_v52, %s10251_s26 }
 0x1d9   :  { %2527 = vrot.lane.b32.xlu0 %v10462_v59, %s10251_s26 }
 0x1dd   :  { %2577 = vrot.lane.b32.xlu0 %v10488_v7, %s10251_s26 }
 0x1e0   :  { %2329 = vrot.lane.b32.xlu1 %v10299_v8, %s10251_s26 }
 0x1e1   :  { %2627 = vrot.lane.b32.xlu0 %v10513_v24, %s10251_s26 }
 0x1e4   :  { %2276 = vrot.lane.b32.xlu1 %v10339_v20, %s10251_s26 }
 0x1e5   :  { %2677 = vrot.lane.b32.xlu0 %v10537_v39, %s10251_s26 }
 0x1e8   :  { %2379 = vrot.lane.b32.xlu1 %v10326_v17, %s10251_s26 }
 0x1e9   :  { %2727 = vrot.lane.b32.xlu0 %v10562_v55, %s10251_s26 }
 0x1ec   :  { %2429 = vrot.lane.b32.xlu1 %v10350_v26, %s10251_s26 }
 0x1ed   :  { %2777 = vrot.lane.b32.xlu0 %v10586_v9, %s10251_s26 }
 0x1f0   :  { %2479 = vrot.lane.b32.xlu1 %v10375_v35, %s10251_s26 }
 0x1f1   :  { %2827 = vrot.lane.b32.xlu0 %v10610_v41, %s10251_s26 }
 0x1f4   :  { %2529 = vrot.lane.b32.xlu1 %v10399_v42, %s10251_s26 }
 0x1f5   :  { %2877 = vrot.lane.b32.xlu0 %v10634_v13, %s10251_s26 }
 0x1f8   :  { %2579 = vrot.lane.b32.xlu1 %v10423_v49, %s10251_s26 }
 0x1f9   :  { %2927 = vrot.lane.b32.xlu0 %v10658_v61, %s10251_s26 }
 0x1fc   :  { %2629 = vrot.lane.b32.xlu1 %v13273_v3, %s10251_s26 }
 0x1fd   :  { %2977 = vrot.lane.b32.xlu0 %v13274_v54, %s10251_s26 }
 0x200   :  { %2679 = vrot.lane.b32.xlu1 %v13275_v56, %s10251_s26 }
 0x201   :  { %3027 = vrot.lane.b32.xlu0 %v13276_v31, %s10251_s26 }
 0x204   :  { %2729 = vrot.lane.b32.xlu1 %v13277_v47, %s10251_s26  ;;  %v13307_v47 = vld [vmem:[#allocation34_spill] sm:$0xff] }
 0x205   :  { %3450 = vrot.lane.b32.xlu0 %v10289_v6, %s10251_s26  ;;  %v13284_v6 = vld [vmem:[#allocation36_spill] sm:$0xff] }
 0x208   :  { %2779 = vrot.lane.b32.xlu1 %v13278_v29, %s10251_s26 }
 0x209   :  { %3556 = vrot.lane.b32.xlu0 %v13279_v0, %s10251_s26 }
 0x20c   :  { %2829 = vrot.lane.b32.xlu1 %v13280_v50, %s10251_s26  ;;  %v13306_v50 = vld [vmem:[#allocation33_spill] sm:$0xff] }
 0x20d   :  { %3607 = vrot.lane.b32.xlu0 %v13281_v16, %s10251_s26  ;;  %v1986_v29 = vrot.slane %v13306_v50, 4 }
 0x210   :  { %2879 = vrot.lane.b32.xlu1 %v13282_v27, %s10251_s26 }
 0x211   :  { %3609 = vrot.lane.b32.xlu0 %v13283_v48, %s10251_s26 }
 0x214   :  { %2929 = vrot.lane.b32.xlu1 %v13284_v6, %s10251_s26 }
 0x215   :  { %3660 = vrot.lane.b32.xlu0 %v13285_v33, %s10251_s26 }
 0x218   :  { %2979 = vrot.lane.b32.xlu1 %v13286_v46, %s10251_s26 }
 0x219   :  { %3662 = vrot.lane.b32.xlu0 %v13287_v15, %s10251_s26 }
 0x21c   :  { %3029 = vrot.lane.b32.xlu1 %v13288_v58, %s10251_s26  ;;  %v1497_v58 = vrot.slane %v13279_v0, 4 }
 0x21d   :  { %3713 = vrot.lane.b32.xlu0 %v13289_v1, %s10251_s26 }
 0x220   :  { %3079 = vrot.lane.b32.xlu1 %v13290_v44, %s10251_s26  ;;  %v1496_v44 = vrot.slane %v13293_v10, 4 }
 0x221   :  { %3715 = vrot.lane.b32.xlu0 %v13291_v18, %s10251_s26 }
 0x222   :  { %v8700_v6 = vcombine.low %v1496_v44, %v1497_v58  ;;  %v1595_v58 = vrot.slane %v13287_v15, 4  ;;  %v1644_v44 = vrot.slane %v13291_v18, 4 }
 0x224   :  { %3077 = vrot.lane.b32.xlu1 %v13292_v57, %s10251_s26  ;;  %v1545_v57 = vrot.slane %v13281_v16, 4 }
 0x228   :  { %3448 = vrot.lane.b32.xlu1 %v10284_v5, %s10251_s26  ;;  %v1546_v5 = vrot.slane %v13283_v48, 4  ;;  %v1594_v48 = vrot.slane %v13285_v33, 4 }
 0x22a   :  { %v8702_v27 = vcombine.low %v1545_v57, %v1546_v5  ;;  %v8704_v33 = vcombine.low %v1594_v48, %v1595_v58  ;;  %v13297_v48 = vld [vmem:[#allocation14_spill] sm:$0xff] }
 0x22b   :  { %v1742_v58 = vrot.slane %v13297_v48, 4 }
 0x22c   :  { %3501 = vrot.lane.b32.xlu1 %v10304_v11, %s10251_s26 }
 0x230   :  { %3503 = vrot.lane.b32.xlu1 %v10309_v12, %s10251_s26 }
 0x234   :  { %3554 = vrot.lane.b32.xlu1 %v13293_v10, %s10251_s26 }
 0x238   :  { %v1279_v30 = vpop.xlane.xlu0 %1278 }
 0x239   :  { %10030 = vrcp.f32 %v1279_v30 }
 0x243   :  { %v10960_v46 = vpop.eup %10030 }
 0x244   :  { %v10966_v11 = vmul.f32 %v10960_v46, %v10779_v22  ;;  %v1287_v12 = vrot.slane %v10960_v46, 1  ;;  %v1288_v0 = vrot.slane %v10960_v46, 2  ;;  %v1289_v22 = vrot.slane %v10960_v46, 3 }
 0x245   :  { %v1290_v15 = vrot.slane %v10960_v46, 4 }
 0x246   :  { %v1382_v30 = vpack.c.bf16 %v10966_v11, %v10966_v11  ;;  %v10972_v10 = vmul.f32 %v10781_v14, %v1287_v12  ;;  %v10985_v14 = vmul.f32 %v10783_v34, %v1288_v0  ;;  %v10993_v57 = vmul.f32 %v10786_v63, %v1289_v22  ;;  %v13294_v63 = vld [vmem:[#allocation10_spill] sm:$0xff]  ;;  %v13295_v12 = vld [vmem:[#allocation11_spill] sm:$0xff] }
 0x247   :  { %v1692_v18 = vrot.slane %v13294_v63, 4  ;;  %v11009_v0 = vmul.f32 %v10789_v23, %v1290_v15  ;;  %v13299_v63 = vld [vmem:[#allocation18_spill] sm:$0xff] }
 0x248   :  { %9257 = vmatmul.mubr.msk.bf16.vlgmr.msra.gmra.mrb[32].mxu1 %vm1069_vm2, %v1382_v30  ;;  %v1383_v16 = vpack.c.bf16 %v10972_v10, %v10972_v10  ;;  %v1384_v34 = vpack.c.bf16 %v10985_v14, %v10985_v14  ;;  %v1693_v30 = vrot.slane %v13295_v12, 4 }
 0x249   :  { %9267 = vmatpush3.bf16.msra.mxu1 %v8700_v6  ;;  %9268 = vmatprep.mubr.msk.bf16.mxu1 %vm10250_vm1, %v13264_v40  ;;  %v1643_v6 = vrot.slane %v13289_v1, 4  ;;  %v1291_v1 = vrot.slane %v10960_v46, 5  ;;  %v1386_v23 = vpack.c.bf16 %v11009_v0, %v11009_v0 }
 0x24a   :  { %9263 = vmatmul.mubr.msk.bf16.vlgmr.msra.gmra.mrb[36].mxu0 %vm1069_vm2, %v1383_v16  ;;  %9278 = vmatprep.subr.bf16.mxu1 %v13264_v40  ;;  %v13296_v16 = vld [vmem:[#allocation13_spill] sm:$0xff] }
 0x24b   :  { %9273 = vmatpush3.bf16.msra.mxu0 %v8702_v27  ;;  %9274 = vmatprep.mubr.msk.bf16.mxu0 %vm10250_vm1, %v13264_v40  ;;  %v8706_v5 = vcombine.low %v1643_v6, %v1644_v44  ;;  %v1385_v27 = vpack.c.bf16 %v10993_v57, %v10993_v57  ;;  %v1741_v22 = vrot.slane %v13296_v16, 4  ;;  %v11017_v6 = vmul.f32 %v10794_v36, %v1291_v1  ;;  %v13298_v36 = vld [vmem:[#allocation17_spill] sm:$0xff]  ;;  %v13301_v16 = vld [vmem:[#allocation22_spill] sm:$0xff] }
 0x24c   :  { %9284 = vmatprep.subr.bf16.mxu0 %v13264_v40  ;;  %v8708_v44 = vcombine.low %v1692_v18, %v1693_v30  ;;  %v1790_v1 = vrot.slane %v13298_v36, 4  ;;  %v1791_v18 = vrot.slane %v13299_v63, 4 }
 0x250   :  { %9269 = vmatmul.mubr.msk.bf16.vlgmr.msra.gmra.mrb[36].mxu1 %vm1069_vm2, %v1384_v34  ;;  %v8710_v34 = vcombine.low %v1741_v22, %v1742_v58  ;;  %v1840_v22 = vrot.slane %v13301_v16, 4 }
 0x251   :  { %9279 = vmatpush3.bf16.msra.mxu1 %v8704_v33  ;;  %9280 = vmatprep.mubr.msk.bf16.mxu1 %vm10250_vm1, %v13264_v40  ;;  %v1292_v33 = vrot.slane %v10960_v46, 6 }
 0x252   :  { %9275 = vmatmul.mubr.msk.bf16.vlgmr.msra.gmra.mrb[40].mxu0 %vm1069_vm2, %v1385_v27  ;;  %9290 = vmatprep.subr.bf16.mxu1 %v13264_v40  ;;  %v1293_v27 = vrot.slane %v10960_v46, 7  ;;  %v13300_v46 = vld [vmem:[#allocation21_spill] sm:$0xff] }
 0x253   :  { %9285 = vmatpush3.bf16.msra.mxu0 %v8706_v5  ;;  %9286 = vmatprep.mubr.msk.bf16.mxu0 %vm10250_vm1, %v13264_v40  ;;  %v1387_v5 = vpack.c.bf16 %v11017_v6, %v11017_v6  ;;  %v11033_v12 = vmul.f32 %v10798_v28, %v1292_v33  ;;  %v1839_v30 = vrot.slane %v13300_v46, 4 }
 0x254   :  { %9296 = vmatprep.subr.bf16.mxu0 %v13264_v40  ;;  %v11043_v58 = vmul.f32 %v10802_v19, %v1293_v27  ;;  %v13302_v19 = vld [vmem:[#allocation25_spill] sm:$0xff] }
 0x255   :  { %v1388_v28 = vpack.c.bf16 %v11033_v12, %v11033_v12 }
 0x256   :  { %v1389_v33 = vpack.c.bf16 %v11043_v58, %v11043_v58 }
 0x258   :  { %v1282_v15 = vpop.xlane.xlu1 %1281  ;;  %9281 = vmatmul.mubr.msk.bf16.vlgmr.msra.gmra.mrb[40].mxu1 %vm1069_vm2, %v1386_v23  ;;  %v8714_v23 = vcombine.low %v1839_v30, %v1840_v22 }
 0x259   :  { %10032 = vrcp.f32 %v1282_v15  ;;  %9291 = vmatpush3.bf16.msra.mxu1 %v8708_v44  ;;  %9292 = vmatprep.mubr.msk.bf16.mxu1 %vm10250_vm1, %v13264_v40  ;;  %v8712_v44 = vcombine.low %v1790_v1, %v1791_v18  ;;  %v1888_v15 = vrot.slane %v13302_v19, 4  ;;  %v13304_v1 = vld [vmem:[#allocation29_spill] sm:$0xff]  ;;  %v13305_v18 = vld [vmem:[#allocation30_spill] sm:$0xff] }
 0x25a   :  { %9287 = vmatmul.mubr.msk.bf16.vlgmr.msra.gmra.mrb[44].mxu0 %vm1069_vm2, %v1387_v5  ;;  %9302 = vmatprep.subr.bf16.mxu1 %v13264_v40  ;;  %v13303_v5 = vld [vmem:[#allocation26_spill] sm:$0xff]  ;;  %v1937_v63 = vrot.slane %v13304_v1, 4  ;;  %v1938_v46 = vrot.slane %v13305_v18, 4 }
 0x25b   :  { %9297 = vmatpush3.bf16.msra.mxu0 %v8710_v34  ;;  %9298 = vmatprep.mubr.msk.bf16.mxu0 %vm10250_vm1, %v13264_v40  ;;  %v1889_v27 = vrot.slane %v13303_v5, 4 }
 0x25c   :  { %v11040_v48 = vpop.xlane.xlu1 %1086  ;;  %9308 = vmatprep.subr.bf16.mxu0 %v13264_v40  ;;  %v8718_v19 = vcombine.low %v1937_v63, %v1938_v46  ;;  %v13308_v63 = vld [vmem:[#allocation37_spill] sm:$0xff] }
 0x25d   :  { %v2035_v46 = vrot.slane %v13308_v63, 4  ;;  %10034 = vrcp.f32 %v11040_v48 }
 0x260   :  { %9293 = vmatmul.mubr.msk.bf16.vlgmr.msra.gmra.mrb[44].mxu1 %vm1069_vm2, %v1388_v28  ;;  %v11051_v34 = vpop.permute.xlu1 %2329  ;;  %v8716_v28 = vcombine.low %v1888_v15, %v1889_v27  ;;  %v1987_v15 = vrot.slane %v13307_v47, 4  ;;  %v1084_v27 = vpop.xlane.xlu0 %1083 }
 0x261   :  { %9303 = vmatpush3.bf16.msra.mxu1 %v8712_v44  ;;  %9304 = vmatprep.mubr.msk.bf16.mxu1 %vm10250_vm1, %v13264_v40  ;;  %10036 = vrcp.f32 %v1084_v27 }
 0x262   :  { %9299 = vmatmul.mubr.msk.bf16.vlgmr.msra.gmra.mrb[48].mxu0 %vm1069_vm2, %v1389_v33  ;;  %9314 = vmatprep.subr.bf16.mxu1 %v13264_v40 }
 0x263   :  { %v11059_v36 = vpop.eup %10032  ;;  %9309 = vmatpush3.bf16.msra.mxu0 %v8714_v23  ;;  %9310 = vmatprep.mubr.msk.bf16.mxu0 %vm10250_vm1, %v13264_v40 }
 0x264   :  { %v1325_v30 = vmul.f32 %v11059_v36, %v10824_v37  ;;  %v1294_v16 = vrot.slane %v11059_v36, 1  ;;  %9320 = vmatprep.subr.bf16.mxu0 %v13264_v40  ;;  %v1295_v22 = vrot.slane %v11059_v36, 2  ;;  %v11070_v44 = vpop.permute.xlu1 %2276  ;;  %v1296_v37 = vrot.slane %v11059_v36, 3 }
 0x266   :  { %v1390_v23 = vpack.c.bf16 %v1325_v30, %v1325_v30  ;;  %v1326_v33 = vmul.f32 %v10826_v4, %v1294_v16  ;;  %v1327_v1 = vmul.f32 %v10828_v51, %v1295_v22  ;;  %v1349_v51 = vrot.slane %v10972_v10, 7  ;;  %v13309_v16 = vld [vmem:[#allocation38_spill] sm:$0xff] }
 0x267   :  { %v2036_v22 = vrot.slane %v13309_v16, 4  ;;  %v1328_v47 = vmul.f32 %v10831_v60, %v1296_v37  ;;  %v1351_v10 = vrot.slane %v10985_v14, 6  ;;  %v1298_v16 = vrot.slane %v11059_v36, 5  ;;  %v13310_v14 = vld [vmem:[#allocation41_spill] sm:$0xff] }
 0x268   :  { %9305 = vmatmul.mubr.msk.bf16.vlgmr.msra.gmra.mrb[48].mxu1 %vm1069_vm2, %v1390_v23  ;;  %v1391_v5 = vpack.c.bf16 %v1326_v33, %v1326_v33  ;;  %v1363_v18 = vrot.slane %v1326_v33, 7  ;;  %v11082_v4 = vpop.permute.xlu1 %2379  ;;  %v1365_v50 = vrot.slane %v1327_v1, 6  ;;  %v8720_v33 = vcombine.low %v1986_v29, %v1987_v15 }
 0x269   :  { %9315 = vmatpush3.bf16.msra.mxu1 %v8716_v28  ;;  %9316 = vmatprep.mubr.msk.bf16.mxu1 %vm10250_vm1, %v13264_v40  ;;  %v1297_v28 = vrot.slane %v11059_v36, 4  ;;  %v1350_v63 = vsel %vm1109_vm3, %v1349_v51, %v10966_v11  ;;  %v8722_v56 = vcombine.low %v2035_v46, %v2036_v22  ;;  %v1393_v37 = vpack.c.bf16 %v1328_v47, %v1328_v47  ;;  %v13311_v11 = vld [vmem:[#allocation42_spill] sm:$0xff]  ;;  %v13312_v51 = vld [vmem:[#allocation45_spill] sm:$0xff] }
 0x26a   :  { %9311 = vmatmul.mubr.msk.bf16.vlgmr.msra.gmra.mrb[52].mxu0 %vm1069_vm2, %v1391_v5  ;;  %9326 = vmatprep.subr.bf16.mxu1 %v13264_v40  ;;  %v1364_v23 = vsel %vm1109_vm3, %v1363_v18, %v1325_v30  ;;  %v11094_v5 = vpop.permute.xlu0 %2278  ;;  %v1367_v29 = vrot.slane %v1328_v47, 5  ;;  %v2085_v18 = vrot.slane %v13311_v11, 4  ;;  %v1352_v15 = vsel %vm1112_vm4, %v1351_v10, %v1350_v63  ;;  %v13313_v22 = vld [vmem:[#allocation46_spill] sm:$0xff] }
 0x26b   :  { %9321 = vmatpush3.bf16.msra.mxu0 %v8718_v19  ;;  %9322 = vmatprep.mubr.msk.bf16.mxu0 %vm10250_vm1, %v13264_v40  ;;  %v1392_v19 = vpack.c.bf16 %v1327_v1, %v1327_v1  ;;  %v1366_v60 = vsel %vm1112_vm4, %v1365_v50, %v1364_v23  ;;  %v1329_v31 = vmul.f32 %v10834_v25, %v1297_v28  ;;  %v2084_v1 = vrot.slane %v13310_v14, 4 }
 0x26c   :  { %9332 = vmatprep.subr.bf16.mxu0 %v13264_v40  ;;  %v11102_v30 = vpop.permute.xlu1 %2429  ;;  %v2133_v46 = vrot.slane %v13312_v51, 4  ;;  %v2134_v50 = vrot.slane %v13313_v22, 4  ;;  %v1299_v25 = vrot.slane %v11059_v36, 6  ;;  %v1353_v28 = vrot.slane %v10993_v57, 5  ;;  %v9993_v51 = vld [vmem:[%s13132_s1 + $0x4] ss:$8 sps:$4 sm:$0xff]  }
 0x26d   :  { %v1368_v23 = vsel %vm1115_vm5, %v1367_v29, %v1366_v60  ;;  %v1369_v10 = vrot.slane %v1329_v31, 4  ;;  %v8724_v63 = vcombine.low %v2084_v1, %v2085_v18  ;;  %v1355_v57 = vrot.slane %v11009_v0, 4 }
 0x26e   :  { %v11114_v47 = vpop.permute.xlu0 %2327  ;;  %v1394_v60 = vpack.c.bf16 %v1329_v31, %v1329_v31  ;;  %v1357_v1 = vrot.slane %v11017_v6, 3  ;;  %v1359_v6 = vrot.slane %v11033_v12, 2 }
 0x26f   :  { %v1370_v48 = vsel %vm1118_vm6, %v1369_v10, %v1368_v23  ;;  %v1361_v23 = vrot.slane %v11043_v58, 1 }
 0x270   :  { %9317 = vmatmul.mubr.msk.bf16.vlgmr.msra.gmra.mrb[52].mxu1 %vm1069_vm2, %v1392_v19  ;;  %v1354_v19 = vsel %vm1115_vm5, %v1353_v28, %v1352_v15  ;;  %v11128_v29 = vpop.permute.xlu1 %2479  ;;  %v10035_v15 = vpop.eup %10034 }
 0x271   :  { %9327 = vmatpush3.bf16.msra.mxu1 %v8720_v33  ;;  %9328 = vmatprep.mubr.msk.bf16.mxu1 %vm10250_vm1, %v13264_v40  ;;  %v1330_v33 = vmul.f32 %v10839_v53, %v1298_v16  ;;  %v8726_v53 = vcombine.low %v2133_v46, %v2134_v50  ;;  %v1356_v16 = vsel %vm1118_vm6, %v1355_v57, %v1354_v19  ;;  %v10037_v28 = vpop.eup %10036  ;;  %v2284_v19 = vsel %vm61_vm0, %v11094_v5, 0 }
 0x272   :  { %9323 = vmatmul.mubr.msk.bf16.vlgmr.msra.gmra.mrb[56].mxu0 %vm1069_vm2, %v1393_v37  ;;  %9338 = vmatprep.subr.bf16.mxu1 %v13264_v40  ;;  %v1300_v37 = vrot.slane %v11059_v36, 7  ;;  %v2378_v11 = vpop.permute.xlu0 %2377  ;;  %v1358_v36 = vsel %vm1121_vm7, %v1357_v1, %v1356_v16  ;;  %v2485_v16 = vsel %vm61_vm0, %v11128_v29, 0 }
 0x273   :  { %9333 = vmatpush3.bf16.msra.mxu0 %v8722_v56  ;;  %9334 = vmatprep.mubr.msk.bf16.mxu0 %vm10250_vm1, %v13264_v40  ;;  %v1331_v56 = vmul.f32 %v10843_v21, %v1299_v25  ;;  %v1371_v14 = vrot.slane %v1330_v33, 3  ;;  %v1395_v27 = vpack.c.bf16 %v1330_v33, %v1330_v33  ;;  %v1360_v50 = vsel %vm1124_vm8, %v1359_v6, %v1358_v36 }
 0x274   :  { %9344 = vmatprep.subr.bf16.mxu0 %v13264_v40  ;;  %v1332_v31 = vmul.f32 %v10849_v62, %v1300_v37  ;;  %v2530_v62 = vpop.permute.xlu1 %2529  ;;  %v1091_v33 = vmul.f32 %v10035_v15, %v10864_v2  ;;  %v1090_v37 = vmul.f32 %v10037_v28, %v10811_v43  ;;  %v2335_v43 = vsel %vm61_vm0, %v11051_v34, 0 }
 0x275   :  { %v1372_v21 = vsel %vm1121_vm7, %v1371_v14, %v1370_v48  ;;  %v1373_v0 = vrot.slane %v1331_v56, 2  ;;  %v1396_v22 = vpack.c.bf16 %v1331_v56, %v1331_v56  ;;  %v2385_v56 = vsel %vm61_vm0, %v11082_v4, 0 }
 0x276   :  { %v1375_v46 = vrot.slane %v1332_v31, 1  ;;  %v2428_v25 = vpop.permute.xlu0 %2427  ;;  %v1397_v10 = vpack.c.bf16 %v1332_v31, %v1332_v31  ;;  %v2435_v4 = vsel %vm61_vm0, %v11102_v30, 0 }
 0x277   :  { %v1374_v18 = vsel %vm1124_vm8, %v1373_v0, %v1372_v21 }
 0x278   :  { %9329 = vmatmul.mubr.msk.bf16.vlgmr.msra.gmra.mrb[56].mxu1 %vm1069_vm2, %v1394_v60  ;;  %v1376_v12 = vsel %vm1127_vm9, %v1375_v46, %v1374_v18  ;;  %v2580_v2 = vpop.permute.xlu1 %2579 }
 0x279   :  { %9339 = vmatpush3.bf16.msra.mxu1 %v8724_v63  ;;  %9340 = vmatprep.mubr.msk.bf16.mxu1 %vm10250_vm1, %v13264_v40  ;;  %v1362_v63 = vsel %vm1127_vm9, %v1361_v23, %v1360_v50  ;;  %v1380_v58 = vadd.f32 %v1376_v12, %v1091_v33  ;;  %v2585_v29 = vsel %vm61_vm0, %v2580_v2, 0 }
 0x27a   :  { %9335 = vmatmul.mubr.msk.bf16.vlgmr.msra.gmra.mrb[60].mxu0 %vm1069_vm2, %v1395_v27  ;;  %9350 = vmatprep.subr.bf16.mxu1 %v13264_v40  ;;  %v1379_v57 = vadd.f32 %v1362_v63, %v1090_v37  ;;  %v2478_v48 = vpop.permute.xlu0 %2477 }
 0x27b   :  { %9345 = vmatpush3.bf16.msra.mxu0 %v8726_v53  ;;  %9346 = vmatprep.mubr.msk.bf16.mxu0 %vm10250_vm1, %v13264_v40 }
 0x27c   :  { %9356 = vmatprep.subr.bf16.mxu0 %v13264_v40  ;;  %v1381_v5 = vpack.c.bf16 %v1380_v58, %v1379_v57  ;;  %v2630_v60 = vpop.permute.xlu1 %2629 }
 0x27d   :  { %v2635_v31 = vsel %vm61_vm0, %v2630_v60, 0 }
 0x27e   :  { %v2528_v14 = vpop.permute.xlu0 %2527 }
 0x280   :  { %9341 = vmatmul.mubr.msk.bf16.vlgmr.msra.gmra.mrb[60].mxu1 %vm1069_vm2, %v1396_v22  ;;  %v2680_v34 = vpop.permute.xlu1 %2679 }
 0x281   :  { %9351 = vmatpush3.bf16.msra.mxu1 %v9993_v51  ;;  %9352 = vmatprep.mubr.msk.bf16.mxu1 %vm10250_vm1, %v13264_v40  ;;  %v2685_v21 = vsel %vm61_vm0, %v2680_v34, 0 }
 0x282   :  { %9347 = vmatmul.mubr.msk.bf16.vlgmr.msra.gmra.mrb[64].mxu0 %vm1069_vm2, %v1397_v10  ;;  %9362 = vmatprep.subr.bf16.mxu1 %v13264_v40  ;;  %v2578_v53 = vpop.permute.xlu0 %2577 }
 0x283   :  { %9358 = vmatprep.mubr.msk.bf16.mxu0 %vm10250_vm1, %v13264_v40 }
 0x284   :  { %9357 = vmatpush3.bf16.xpose.msra.mxu0 %v2284_v19 }
 0x285   :  { %9368 = vmatprep.subr.bf16.mxu0 %v13264_v40 }
 0x286   :  { %v2628_v30 = vpop.permute.xlu0 %2627 }
 0x288   :  { %9353 = vmatmul.mubr.msk.bf16.vlgmr.msra.gmra.mrb[64].mxu1 %vm1069_vm2, %v1381_v5 }
 0x289   :  { %9364 = vmatprep.mubr.msk.bf16.mxu1 %vm10250_vm1, %v13264_v40 }
 0x28a   :  { %9363 = vmatpush3.bf16.xpose.msra.mxu1 %v2335_v43 }
 0x28b   :  { %9359 = vmatmul.mubr.msk.bf16.vlgmr.msra.gmra.mrb[68].mxu0 %vm61_vm0, %v11070_v44  ;;  %9374 = vmatprep.subr.bf16.mxu1 %v13264_v40  ;;  %v2730_v44 = vpop.permute.xlu1 %2729 }
 0x28c   :  { %9369 = vmatpush3.bf16.xpose.msra.mxu0 %v2385_v56  ;;  %9370 = vmatprep.mubr.msk.bf16.mxu0 %vm10250_vm1, %v13264_v40  ;;  %v2735_v6 = vsel %vm61_vm0, %v2730_v44, 0 }
 0x28d   :  { %9380 = vmatprep.subr.bf16.mxu0 %v13264_v40 }
 0x28f   :  { %v2780_v27 = vpop.permute.xlu1 %2779 }
 0x291   :  { %9365 = vmatmul.mubr.msk.bf16.vlgmr.msra.gmra.mrb[68].mxu1 %vm61_vm0, %v11114_v47  ;;  %v2535_v47 = vsel %vm61_vm0, %v2530_v62, 0  ;;  %v2785_v62 = vsel %vm61_vm0, %v2780_v27, 0 }
 0x292   :  { %9375 = vmatpush3.bf16.xpose.msra.mxu1 %v2435_v4  ;;  %9376 = vmatprep.mubr.msk.bf16.mxu1 %vm10250_vm1, %v13264_v40 }
 0x293   :  { %9371 = vmatmul.mubr.msk.bf16.vlgmr.msra.gmra.mrb[72].mxu0 %vm61_vm0, %v2378_v11  ;;  %9386 = vmatprep.subr.bf16.mxu1 %v13264_v40  ;;  %v2678_v11 = vpop.permute.xlu0 %2677  ;;  %v2830_v1 = vpop.permute.xlu1 %2829 }
 0x294   :  { %9381 = vmatpush3.bf16.xpose.msra.mxu0 %v2485_v16  ;;  %9382 = vmatprep.mubr.msk.bf16.mxu0 %vm10250_vm1, %v13264_v40  ;;  %v2835_v46 = vsel %vm61_vm0, %v2830_v1, 0 }
 0x295   :  { %9392 = vmatprep.subr.bf16.mxu0 %v13264_v40 }
 0x297   :  { %v2728_v0 = vpop.permute.xlu0 %2727  ;;  %v2880_v36 = vpop.permute.xlu1 %2879 }
 0x298   :  { %v2885_v22 = vsel %vm61_vm0, %v2880_v36, 0 }
 0x299   :  { %9377 = vmatmul.mubr.msk.bf16.vlgmr.msra.gmra.mrb[72].mxu1 %vm61_vm0, %v2428_v25 }
 0x29a   :  { %9387 = vmatpush3.bf16.xpose.msra.mxu1 %v2535_v47  ;;  %9388 = vmatprep.mubr.msk.bf16.mxu1 %vm10250_vm1, %v13264_v40 }
 0x29b   :  { %9383 = vmatmul.mubr.msk.bf16.vlgmr.msra.gmra.mrb[76].mxu0 %vm61_vm0, %v2478_v48  ;;  %9398 = vmatprep.subr.bf16.mxu1 %v13264_v40  ;;  %v2778_v18 = vpop.permute.xlu0 %2777  ;;  %v2930_v15 = vpop.permute.xlu1 %2929 }
 0x29c   :  { %9393 = vmatpush3.bf16.xpose.msra.mxu0 %v2585_v29  ;;  %9394 = vmatprep.mubr.msk.bf16.mxu0 %vm10250_vm1, %v13264_v40  ;;  %v2935_v28 = vsel %vm61_vm0, %v2930_v15, 0 }
 0x29d   :  { %9404 = vmatprep.subr.bf16.mxu0 %v13264_v40 }
 0x29f   :  { %v2828_v51 = vpop.permute.xlu0 %2827  ;;  %v2980_v50 = vpop.permute.xlu1 %2979 }
 0x2a0   :  { %v2985_v12 = vsel %vm61_vm0, %v2980_v50, 0 }
 0x2a1   :  { %9389 = vmatmul.mubr.msk.bf16.vlgmr.msra.gmra.mrb[76].mxu1 %vm61_vm0, %v2528_v14 }
 0x2a2   :  { %9399 = vmatpush3.bf16.xpose.msra.mxu1 %v2635_v31  ;;  %9400 = vmatprep.mubr.msk.bf16.mxu1 %vm10250_vm1, %v13264_v40 }
 0x2a3   :  { %9395 = vmatmul.mubr.msk.bf16.vlgmr.msra.gmra.mrb[80].mxu0 %vm61_vm0, %v2578_v53  ;;  %9410 = vmatprep.subr.bf16.mxu1 %v13264_v40  ;;  %v2878_v25 = vpop.permute.xlu0 %2877  ;;  %v3030_v23 = vpop.permute.xlu1 %3029 }
 0x2a4   :  { %9405 = vmatpush3.bf16.xpose.msra.mxu0 %v2685_v21  ;;  %9406 = vmatprep.mubr.msk.bf16.mxu0 %vm10250_vm1, %v13264_v40  ;;  %v3035_v19 = vsel %vm61_vm0, %v3030_v23, 0 }
 0x2a5   :  { %9416 = vmatprep.subr.bf16.mxu0 %v13264_v40 }
 0x2a7   :  { %v2928_v33 = vpop.permute.xlu0 %2927  ;;  %v3080_v10 = vpop.permute.xlu1 %3079 }
 0x2a8   :  { %v3085_v37 = vsel %vm61_vm0, %v3080_v10, 0 }
 0x2a9   :  { %9401 = vmatmul.mubr.msk.bf16.vlgmr.msra.gmra.mrb[80].mxu1 %vm61_vm0, %v2628_v30 }
 0x2aa   :  { %9411 = vmatpush3.bf16.xpose.msra.mxu1 %v2735_v6  ;;  %9412 = vmatprep.mubr.msk.bf16.mxu1 %vm10250_vm1, %v13264_v40 }
 0x2ab   :  { %9407 = vmatmul.mubr.msk.bf16.vlgmr.msra.gmra.mrb[84].mxu0 %vm61_vm0, %v2678_v11  ;;  %9422 = vmatprep.subr.bf16.mxu1 %v13264_v40  ;;  %v2978_v63 = vpop.permute.xlu0 %2977  ;;  %v3078_v2 = vpop.permute.xlu1 %3077 }
 0x2ac   :  { %9417 = vmatpush3.bf16.xpose.msra.mxu0 %v2785_v62  ;;  %9418 = vmatprep.mubr.msk.bf16.mxu0 %vm10250_vm1, %v13264_v40 }
 0x2ad   :  { %9428 = vmatprep.subr.bf16.mxu0 %v13264_v40 }
 0x2af   :  { %v3028_v58 = vpop.permute.xlu0 %3027  ;;  %v3449_v44 = vpop.permute.xlu1 %3448 }
 0x2b0   :  { %v3452_v29 = vrot.slane %v3449_v44, 4 }
 0x2b1   :  { %9413 = vmatmul.mubr.msk.bf16.vlgmr.msra.gmra.mrb[84].mxu1 %vm61_vm0, %v2728_v0 }
 0x2b2   :  { %9423 = vmatpush3.bf16.xpose.msra.mxu1 %v2835_v46  ;;  %9424 = vmatprep.mubr.msk.bf16.mxu1 %vm10250_vm1, %v13264_v40 }
 0x2b3   :  { %9419 = vmatmul.mubr.msk.bf16.vlgmr.msra.gmra.mrb[88].mxu0 %vm61_vm0, %v2778_v18  ;;  %9434 = vmatprep.subr.bf16.mxu1 %v13264_v40  ;;  %v3451_v27 = vpop.permute.xlu0 %3450  ;;  %v3502_v62 = vpop.permute.xlu1 %3501 }
 0x2b4   :  { %9429 = vmatpush3.bf16.xpose.msra.mxu0 %v2885_v22  ;;  %9430 = vmatprep.mubr.msk.bf16.mxu0 %vm10250_vm1, %v13264_v40  ;;  %v3453_v31 = vrot.slane %v3451_v27, 4  ;;  %v3505_v22 = vrot.slane %v3502_v62, 4 }
 0x2b5   :  { %9440 = vmatprep.subr.bf16.mxu0 %v13264_v40 }
 0x2b6   :  { %v8747_v15 = vcombine.low %v3452_v29, %v3453_v31 }
 0x2b9   :  { %9425 = vmatmul.mubr.msk.bf16.vlgmr.msra.gmra.mrb[88].mxu1 %vm61_vm0, %v2828_v51 }
 0x2ba   :  { %9435 = vmatpush3.bf16.xpose.msra.mxu1 %v2935_v28  ;;  %9436 = vmatprep.mubr.msk.bf16.mxu1 %vm10250_vm1, %v13264_v40 }
 0x2bb   :  { %9431 = vmatmul.mubr.msk.bf16.vlgmr.msra.gmra.mrb[92].mxu0 %vm61_vm0, %v2878_v25  ;;  %9446 = vmatprep.subr.bf16.mxu1 %v13264_v40  ;;  %v3504_v25 = vpop.permute.xlu1 %3503 }
 0x2bc   :  { %9441 = vmatpush3.bf16.xpose.msra.mxu0 %v2985_v12  ;;  %9442 = vmatprep.mubr.msk.bf16.mxu0 %vm10250_vm1, %v13264_v40  ;;  %v3506_v12 = vrot.slane %v3504_v25, 4 }
 0x2bd   :  { %9452 = vmatprep.subr.bf16.mxu0 %v13264_v40 }
 0x2c1   :  { %9437 = vmatmul.mubr.msk.bf16.vlgmr.msra.gmra.mrb[92].mxu1 %vm61_vm0, %v2928_v33 }
 0x2c2   :  { %9447 = vmatpush3.bf16.xpose.msra.mxu1 %v3035_v19  ;;  %9448 = vmatprep.mubr.msk.bf16.mxu1 %vm10250_vm1, %v13264_v40 }
 0x2c3   :  { %9443 = vmatmul.mubr.msk.bf16.vlgmr.msra.gmra.mrb[96].mxu0 %vm61_vm0, %v2978_v63  ;;  %9458 = vmatprep.subr.bf16.mxu1 %v13264_v40 }
 0x2c4   :  { %9453 = vmatpush3.bf16.xpose.msra.mxu0 %v3085_v37  ;;  %9454 = vmatprep.mubr.msk.bf16.mxu0 %vm10250_vm1, %v13264_v40 }
 0x2c5   :  { %9464 = vmatprep.subr.bf16.mxu0 %v13264_v40 }
 0x2c9   :  { %9449 = vmatmul.mubr.msk.bf16.vlgmr.msra.gmra.mrb[96].mxu1 %vm61_vm0, %v3028_v58 }
 0x2ca   :  { %9460 = vmatprep.mubr.msk.bf16.mxu1 %vm10250_vm1, %v13264_v40  ;;  %9459 = vmatpush3.bf16.msra.mxu1 %v8747_v15 }
 0x2cb   :  { %9455 = vmatmul.mubr.msk.bf16.vlgmr.msra.gmra.mrb[100].mxu0 %vm61_vm0, %v3078_v2  ;;  %9470 = vmatprep.subr.bf16.mxu1 %v13264_v40  ;;  %v8749_v2 = vcombine.low %v3505_v22, %v3506_v12 }
 0x2cc   :  { %9466 = vmatprep.mubr.msk.bf16.mxu0 %vm10250_vm1, %v13264_v40 }
 0x2cd   :  { %9465 = vmatpush3.bf16.msra.mxu0 %v8749_v2 }
 0x2ce   :  { %9476 = vmatprep.subr.bf16.mxu0 %v13264_v40 }
 0x31b   :  { %v1441_v57 = vpop.f32.mrb[32].mxu1 }
 0x31c   :  { %v9258_v48 = vpop.f32.mrb[33].mxu1 }
 0x31d   :  { %v1444_v5 = vpop.f32.mrb[34].mxu1  ;;  %v1490_v60 = vpop.f32.mrb[36].mxu0 }
 0x31e   :  { %v2202_v43 = vrot.slane %v1490_v60, 7  ;;  %v9259_v56 = vpop.f32.mrb[35].mxu1  ;;  %v9264_v14 = vpop.f32.mrb[37].mxu0 }
 0x31f   :  { %v1493_v34 = vpop.f32.mrb[38].mxu0 }
 0x320   :  { %v2203_v53 = vsel %vm1109_vm3, %v2202_v43, %v1441_v57  ;;  %v9265_v4 = vpop.f32.mrb[39].mxu0 }
 0x323   :  { %v1539_v16 = vpop.f32.mrb[36].mxu1 }
 0x324   :  { %v2204_v30 = vrot.slane %v1539_v16, 6  ;;  %v9270_v47 = vpop.f32.mrb[37].mxu1 }
 0x325   :  { %v1542_v11 = vpop.f32.mrb[38].mxu1  ;;  %v1588_v1 = vpop.f32.mrb[40].mxu0 }
 0x326   :  { %v2205_v21 = vsel %vm1112_vm4, %v2204_v30, %v2203_v53  ;;  %v2206_v0 = vrot.slane %v1588_v1, 5  ;;  %v9271_v36 = vpop.f32.mrb[39].mxu1  ;;  %v9276_v6 = vpop.f32.mrb[41].mxu0 }
 0x327   :  { %v1591_v18 = vpop.f32.mrb[42].mxu0 }
 0x328   :  { %v2207_v51 = vsel %vm1115_vm5, %v2206_v0, %v2205_v21  ;;  %v9277_v46 = vpop.f32.mrb[43].mxu0 }
 0x32b   :  { %v1637_v50 = vpop.f32.mrb[40].mxu1 }
 0x32c   :  { %v2208_v28 = vrot.slane %v1637_v50, 4  ;;  %v9282_v23 = vpop.f32.mrb[41].mxu1 }
 0x32d   :  { %v1640_v33 = vpop.f32.mrb[42].mxu1  ;;  %v1686_v10 = vpop.f32.mrb[44].mxu0 }
 0x32e   :  { %v2209_v19 = vsel %vm1118_vm6, %v2208_v28, %v2207_v51  ;;  %v2210_v63 = vrot.slane %v1686_v10, 3  ;;  %v9283_v37 = vpop.f32.mrb[43].mxu1  ;;  %v9288_v58 = vpop.f32.mrb[45].mxu0 }
 0x32f   :  { %v1689_v57 = vpop.f32.mrb[46].mxu0 }
 0x330   :  { %v2211_v48 = vsel %vm1121_vm7, %v2210_v63, %v2209_v19  ;;  %v9289_v5 = vpop.f32.mrb[47].mxu0 }
 0x333   :  { %v1735_v60 = vpop.f32.mrb[44].mxu1 }
 0x334   :  { %v2212_v43 = vrot.slane %v1735_v60, 2  ;;  %v9294_v56 = vpop.f32.mrb[45].mxu1 }
 0x335   :  { %v1738_v14 = vpop.f32.mrb[46].mxu1  ;;  %v1784_v34 = vpop.f32.mrb[48].mxu0 }
 0x336   :  { %v2214_v53 = vrot.slane %v1784_v34, 1  ;;  %v9295_v4 = vpop.f32.mrb[47].mxu1  ;;  %v9300_v16 = vpop.f32.mrb[49].mxu0  ;;  %v2213_v44 = vsel %vm1124_vm8, %v2212_v43, %v2211_v48 }
 0x337   :  { %v1787_v30 = vpop.f32.mrb[50].mxu0 }
 0x338   :  { %v9301_v47 = vpop.f32.mrb[51].mxu0  ;;  %v2215_v29 = vsel %vm1127_vm9, %v2214_v53, %v2213_v44 }
 0x33b   :  { %v1833_v27 = vpop.f32.mrb[48].mxu1 }
 0x33c   :  { %v9306_v11 = vpop.f32.mrb[49].mxu1 }
 0x33d   :  { %v1836_v1 = vpop.f32.mrb[50].mxu1  ;;  %v1882_v31 = vpop.f32.mrb[52].mxu0 }
 0x33e   :  { %v2216_v21 = vrot.slane %v1882_v31, 7  ;;  %v9307_v0 = vpop.f32.mrb[51].mxu1  ;;  %v9312_v36 = vpop.f32.mrb[53].mxu0 }
 0x33f   :  { %v1885_v6 = vpop.f32.mrb[54].mxu0 }
 0x340   :  { %v2217_v18 = vsel %vm1109_vm3, %v2216_v21, %v1833_v27  ;;  %v9313_v62 = vpop.f32.mrb[55].mxu0 }
 0x343   :  { %v1931_v15 = vpop.f32.mrb[52].mxu1 }
 0x344   :  { %v2218_v51 = vrot.slane %v1931_v15, 6  ;;  %v9318_v46 = vpop.f32.mrb[53].mxu1 }
 0x345   :  { %v1934_v22 = vpop.f32.mrb[54].mxu1  ;;  %v1980_v50 = vpop.f32.mrb[56].mxu0 }
 0x346   :  { %v2219_v25 = vsel %vm1112_vm4, %v2218_v51, %v2217_v18  ;;  %v2220_v28 = vrot.slane %v1980_v50, 5  ;;  %v9319_v23 = vpop.f32.mrb[55].mxu1  ;;  %v9324_v12 = vpop.f32.mrb[57].mxu0 }
 0x347   :  { %v1983_v33 = vpop.f32.mrb[58].mxu0 }
 0x348   :  { %v2221_v10 = vsel %vm1115_vm5, %v2220_v28, %v2219_v25  ;;  %v9325_v19 = vpop.f32.mrb[59].mxu0 }
 0x34b   :  { %v2029_v63 = vpop.f32.mrb[56].mxu1 }
 0x34c   :  { %v2222_v37 = vrot.slane %v2029_v63, 4  ;;  %v9330_v58 = vpop.f32.mrb[57].mxu1 }
 0x34d   :  { %v2032_v2 = vpop.f32.mrb[58].mxu1  ;;  %v2078_v57 = vpop.f32.mrb[60].mxu0 }
 0x34e   :  { %v2223_v48 = vsel %vm1118_vm6, %v2222_v37, %v2221_v10  ;;  %v2224_v5 = vrot.slane %v2078_v57, 3  ;;  %v9331_v60 = vpop.f32.mrb[59].mxu1  ;;  %v9336_v43 = vpop.f32.mrb[61].mxu0 }
 0x34f   :  { %v2081_v56 = vpop.f32.mrb[62].mxu0 }
 0x350   :  { %v2225_v14 = vsel %vm1121_vm7, %v2224_v5, %v2223_v48  ;;  %v9337_v34 = vpop.f32.mrb[63].mxu0 }
 0x353   :  { %v2127_v53 = vpop.f32.mrb[60].mxu1 }
 0x354   :  { %v2226_v4 = vrot.slane %v2127_v53, 2  ;;  %v9342_v16 = vpop.f32.mrb[61].mxu1 }
 0x355   :  { %v2130_v44 = vpop.f32.mrb[62].mxu1  ;;  %v2176_v30 = vpop.f32.mrb[64].mxu0 }
 0x356   :  { %v2228_v47 = vrot.slane %v2176_v30, 1  ;;  %v9343_v27 = vpop.f32.mrb[63].mxu1  ;;  %v9348_v11 = vpop.f32.mrb[65].mxu0  ;;  %v2227_v1 = vsel %vm1124_vm8, %v2226_v4, %v2225_v14 }
 0x357   :  { %v2179_v31 = vpop.f32.mrb[66].mxu0 }
 0x358   :  { %v9349_v21 = vpop.f32.mrb[67].mxu0  ;;  %v2229_v0 = vsel %vm1127_vm9, %v2228_v47, %v2227_v1 }
 0x35b   :  { %v2269_v36 = vpop.f32.mrb[64].mxu1 }
 0x35c   :  { %v11272_v6 = vadd.f32 %v2269_v36, %v2215_v29  ;;  %v9354_v18 = vpop.f32.mrb[65].mxu1 }
 0x35d   :  { %v2272_v62 = vpop.f32.mrb[66].mxu1 }
 0x35e   :  { %13314 = vst [vmem:[#allocation12_spill] sm:$0xff] %v11272_v6  ;;  %v11274_v15 = vadd.f32 %v2272_v62, %v2229_v0  ;;  %v11276_v51 = vpop.f32.mrb[68].mxu0  ;;  %v9355_v46 = vpop.f32.mrb[67].mxu1 }
 0x35f   :  { %v9360_v22 = vpop.f32.mrb[69].mxu0  ;;  %v3127_v50 = vsel %vm1069_vm2, %v11276_v51, -inf }
 0x360   :  { %13315 = vst [vmem:[#allocation3_spill] sm:$0xff] %v11274_v15  ;;  %3128 = vmax.xlane.f32.xlu0 %v3127_v50  ;;  %v11280_v25 = vpop.f32.mrb[70].mxu0 }
 0x361   :  { %v9361_v28 = vpop.f32.mrb[71].mxu0  ;;  %v3130_v23 = vsel %vm1069_vm2, %v11280_v25, -inf }
 0x364   :  { %v11284_v29 = vpop.f32.mrb[68].mxu1  ;;  %3131 = vmax.xlane.f32.xlu0 %v3130_v23 }
 0x365   :  { %v9366_v12 = vpop.f32.mrb[69].mxu1 }
 0x366   :  { %v2374_v33 = vpop.f32.mrb[70].mxu1  ;;  %v11286_v10 = vpop.f32.mrb[72].mxu0 }
 0x367   :  { %v3165_v19 = vrot.slane %v11286_v10, 7  ;;  %v9367_v63 = vpop.f32.mrb[71].mxu1  ;;  %v9372_v37 = vpop.f32.mrb[73].mxu0 }
 0x368   :  { %v2424_v58 = vpop.f32.mrb[74].mxu0 }
 0x369   :  { %v3166_v2 = vsel %vm1109_vm3, %v3165_v19, %v11284_v29  ;;  %v9373_v57 = vpop.f32.mrb[75].mxu0 }
 0x36c   :  { %v11291_v48 = vpop.f32.mrb[72].mxu1 }
 0x36d   :  { %v3167_v5 = vrot.slane %v11291_v48, 6  ;;  %v9378_v60 = vpop.f32.mrb[73].mxu1 }
 0x36e   :  { %v2474_v43 = vpop.f32.mrb[74].mxu1  ;;  %v11294_v56 = vpop.f32.mrb[76].mxu0 }
 0x36f   :  { %v3168_v14 = vsel %vm1112_vm4, %v3167_v5, %v3166_v2  ;;  %v3169_v34 = vrot.slane %v11294_v56, 5  ;;  %v9379_v53 = vpop.f32.mrb[75].mxu1  ;;  %v9384_v4 = vpop.f32.mrb[77].mxu0 }
 0x370   :  { %v2524_v16 = vpop.f32.mrb[78].mxu0 }
 0x371   :  { %v3170_v44 = vsel %vm1115_vm5, %v3169_v34, %v3168_v14  ;;  %v9385_v30 = vpop.f32.mrb[79].mxu0 }
 0x374   :  { %v11299_v47 = vpop.f32.mrb[76].mxu1 }
 0x375   :  { %v3171_v27 = vrot.slane %v11299_v47, 4  ;;  %v9390_v11 = vpop.f32.mrb[77].mxu1 }
 0x376   :  { %v2574_v1 = vpop.f32.mrb[78].mxu1  ;;  %v11302_v31 = vpop.f32.mrb[80].mxu0 }
 0x377   :  { %v3172_v21 = vsel %vm1118_vm6, %v3171_v27, %v3170_v44  ;;  %v3173_v0 = vrot.slane %v11302_v31, 3  ;;  %v9391_v36 = vpop.f32.mrb[79].mxu1  ;;  %v9396_v18 = vpop.f32.mrb[81].mxu0 }
 0x378   :  { %v2624_v62 = vpop.f32.mrb[82].mxu0 }
 0x379   :  { %v9397_v46 = vpop.f32.mrb[83].mxu0  ;;  %v3174_v22 = vsel %vm1121_vm7, %v3173_v0, %v3172_v21 }
 0x37c   :  { %v11307_v50 = vpop.f32.mrb[80].mxu1 }
 0x37d   :  { %v3175_v28 = vrot.slane %v11307_v50, 2  ;;  %v9402_v23 = vpop.f32.mrb[81].mxu1 }
 0x37e   :  { %v2674_v12 = vpop.f32.mrb[82].mxu1  ;;  %v11310_v33 = vpop.f32.mrb[84].mxu0 }
 0x37f   :  { %v3177_v19 = vrot.slane %v11310_v33, 1  ;;  %v9403_v63 = vpop.f32.mrb[83].mxu1  ;;  %v9408_v37 = vpop.f32.mrb[85].mxu0  ;;  %v3176_v58 = vsel %vm1124_vm8, %v3175_v28, %v3174_v22 }
 0x380   :  { %v2724_v2 = vpop.f32.mrb[86].mxu0 }
 0x381   :  { %v9409_v57 = vpop.f32.mrb[87].mxu0  ;;  %v3178_v5 = vsel %vm1127_vm9, %v3177_v19, %v3176_v58 }
 0x382   :  { %v3195_v60 = vsel %vm1069_vm2, %v3178_v5, -inf }
 0x383   :  { %3196 = vmax.xlane.f32.xlu0 %v3195_v60 }
 0x384   :  { %v11316_v43 = vpop.f32.mrb[84].mxu1 }
 0x385   :  { %v9414_v14 = vpop.f32.mrb[85].mxu1 }
 0x386   :  { %v11318_v34 = vpop.f32.mrb[88].mxu0  ;;  %v2774_v53 = vpop.f32.mrb[86].mxu1 }
 0x387   :  { %v3179_v4 = vrot.slane %v11318_v34, 7  ;;  %v9420_v16 = vpop.f32.mrb[89].mxu0  ;;  %v9415_v44 = vpop.f32.mrb[87].mxu1 }
 0x388   :  { %v2824_v30 = vpop.f32.mrb[90].mxu0 }
 0x389   :  { %v3180_v27 = vsel %vm1109_vm3, %v3179_v4, %v11316_v43  ;;  %v9421_v11 = vpop.f32.mrb[91].mxu0  ;;  %v10170_v30 = vld [vmem:[%s13133_s2 + $0x60] sm:$0xff] }
 0x38c   :  { %v11323_v1 = vpop.f32.mrb[88].mxu1 }
 0x38d   :  { %v3181_v21 = vrot.slane %v11323_v1, 6  ;;  %v9426_v0 = vpop.f32.mrb[89].mxu1 }
 0x38e   :  { %v11326_v36 = vpop.f32.mrb[92].mxu0  ;;  %v2874_v18 = vpop.f32.mrb[90].mxu1  ;;  %v10171_v0 = vld [vmem:[%s13133_s2 + $0x68] sm:$0xff] }
 0x38f   :  { %v3182_v62 = vsel %vm1112_vm4, %v3181_v21, %v3180_v27  ;;  %v3183_v46 = vrot.slane %v11326_v36, 5  ;;  %v9427_v22 = vpop.f32.mrb[91].mxu1  ;;  %v9432_v28 = vpop.f32.mrb[93].mxu0 }
 0x390   :  { %v2924_v23 = vpop.f32.mrb[94].mxu0 }
 0x391   :  { %v3184_v12 = vsel %vm1115_vm5, %v3183_v46, %v3182_v62  ;;  %v9433_v19 = vpop.f32.mrb[95].mxu0 }
 0x394   :  { %v11331_v63 = vpop.f32.mrb[92].mxu1 }
 0x395   :  { %v3185_v37 = vrot.slane %v11331_v63, 4  ;;  %v9438_v58 = vpop.f32.mrb[93].mxu1 }
 0x396   :  { %v11334_v2 = vpop.f32.mrb[96].mxu0  ;;  %v2974_v57 = vpop.f32.mrb[94].mxu1  ;;  %v10172_v58 = vld [vmem:[%s13133_s2 + $0x70] sm:$0xff] }
 0x397   :  { %v3186_v5 = vsel %vm1118_vm6, %v3185_v37, %v3184_v12  ;;  %v3187_v60 = vrot.slane %v11334_v2, 3  ;;  %v9439_v14 = vpop.f32.mrb[95].mxu1  ;;  %v9444_v53 = vpop.f32.mrb[97].mxu0 }
 0x398   :  { %v3024_v4 = vpop.f32.mrb[98].mxu0  ;;  %v10175_v14 = vld [vmem:[%s13133_s2 + $0x90] sm:$0xff]  ;;  %v10176_v53 = vld [vmem:[%s13133_s2 + $0x78] sm:$0xff] }
 0x399   :  { %v9445_v16 = vpop.f32.mrb[99].mxu0  ;;  %v3188_v44 = vsel %vm1121_vm7, %v3187_v60, %v3186_v5  ;;  %3766 = vrot.lane.b32.xlu0 %v10170_v30, %s10251_s26  ;;  %v10173_v5 = vld [vmem:[%s13133_s2 + $0x80] sm:$0xff]  ;;  %v10174_v60 = vld [vmem:[%s13133_s2 + $0x88] sm:$0xff]  ;;  %v11376_v4 = vpop.permute.xlu0 %3556 }
 0x39c   :  { %v11343_v27 = vpop.f32.mrb[96].mxu1 }
 0x39d   :  { %v3189_v11 = vrot.slane %v11343_v27, 2  ;;  %v9450_v21 = vpop.f32.mrb[97].mxu1  ;;  %3768 = vrot.lane.b32.xlu0 %v10171_v0, %s10251_s26  ;;  %v11378_v16 = vpop.permute.xlu0 %3607 }
 0x39e   :  { %v11350_v18 = vpop.f32.mrb[100].mxu0  ;;  %v3074_v62 = vpop.f32.mrb[98].mxu1 }
 0x39f   :  { %v3191_v46 = vrot.slane %v11350_v18, 1  ;;  %v3190_v22 = vsel %vm1124_vm8, %v3189_v11, %v3188_v44  ;;  %v9456_v28 = vpop.f32.mrb[101].mxu0  ;;  %v9451_v23 = vpop.f32.mrb[99].mxu1 }
 0x3a0   :  { %v3124_v12 = vpop.f32.mrb[102].mxu0 }
 0x3a1   :  { %v3192_v19 = vsel %vm1127_vm9, %v3191_v46, %v3190_v22  ;;  %v9457_v37 = vpop.f32.mrb[103].mxu0  ;;  %3819 = vrot.lane.b32.xlu0 %v10172_v58, %s10251_s26  ;;  %v11380_v44 = vpop.permute.xlu0 %3609 }
 0x3a2   :  { %v3198_v57 = vsel %vm1069_vm2, %v3192_v19, -inf }
 0x3a3   :  { %3199 = vmax.xlane.f32.xlu1 %v3198_v57 }
 0x3a5   :  { %3872 = vrot.lane.b32.xlu0 %v10173_v5, %s10251_s26  ;;  %v11382_v30 = vpop.permute.xlu0 %3660 }
 0x3a9   :  { %3874 = vrot.lane.b32.xlu0 %v10174_v60, %s10251_s26  ;;  %v11384_v11 = vpop.permute.xlu0 %3662 }
 0x3ad   :  { %3925 = vrot.lane.b32.xlu0 %v10175_v14, %s10251_s26  ;;  %v11386_v21 = vpop.permute.xlu0 %3713 }
 0x3b1   :  { %v11388_v0 = vpop.permute.xlu0 %3715 }
 0x3b2   :  { %13316 = vst [vmem:[#allocation4_spill] sm:$0xff] %v11388_v0 }
 0x3b4   :  { %3821 = vrot.lane.b32.xlu1 %v10176_v53, %s10251_s26 }
 0x3ed   :  { %v11390_v62 = vpop.xlane.xlu0 %3128 }
 0x3f1   :  { %v3132_v46 = vpop.xlane.xlu0 %3131 }
 0x3f2   :  { %v3134_v22 = vsub.f32 %v11280_v25, %v3132_v46 }
 0x3f4   :  { %v3137_v28 = vmul.f32 1.442695, %v3134_v22 }
 0x3f6   :  { %10038 = vpow2.f32 %v3137_v28  ;;  %v10177_v28 = vld [vmem:[%s13133_s2 + $0xa8] sm:$0xff] }
 0x400   :  { %v11393_v23 = vpop.eup %10038 }
 0x401   :  { %13317 = vst [vmem:[#allocation5_spill] sm:$0xff] %v11393_v23  ;;  %v3142_v12 = vsel %vm1069_vm2, %v11393_v23, 0.0 }
 0x402   :  { %3143 = vadd.xlane.f32.xlu1 %v3142_v12 }
 0x410   :  { %v3197_v19 = vpop.xlane.xlu0 %3196 }
 0x411   :  { %v3203_v37 = vrot.slane %v3197_v19, 1  ;;  %v3204_v58 = vrot.slane %v3197_v19, 2  ;;  %v3205_v57 = vrot.slane %v3197_v19, 3  ;;  %v3206_v5 = vrot.slane %v3197_v19, 4 }
 0x412   :  { %v3233_v60 = vsub.f32 %v11284_v29, %v3197_v19  ;;  %v3207_v14 = vrot.slane %v3197_v19, 5  ;;  %v3208_v53 = vrot.slane %v3197_v19, 6  ;;  %v3209_v15 = vrot.slane %v3197_v19, 7 }
 0x413   :  { %v3234_v25 = vsub.f32 %v11286_v10, %v3203_v37  ;;  %v3235_v46 = vsub.f32 %v11291_v48, %v3204_v58  ;;  %v3236_v22 = vsub.f32 %v11294_v56, %v3205_v57  ;;  %3980 = vrot.lane.b32.xlu1 %v10177_v28, %s10251_s26  ;;  %v3237_v12 = vsub.f32 %v11299_v47, %v3206_v5  ;;  %v10178_v37 = vld [vmem:[%s13133_s2 + $0xb8] sm:$0xff] }
 0x414   :  { %v3249_v6 = vmul.f32 1.442695, %v3233_v60  ;;  %v3238_v29 = vsub.f32 %v11302_v31, %v3207_v14  ;;  %v3239_v23 = vsub.f32 %v11307_v50, %v3208_v53  ;;  %v3240_v10 = vsub.f32 %v11310_v33, %v3209_v15 }
 0x415   :  { %v3251_v19 = vmul.f32 1.442695, %v3234_v25  ;;  %v3253_v0 = vmul.f32 1.442695, %v3235_v46  ;;  %v3255_v48 = vmul.f32 1.442695, %v3236_v22 }
 0x416   :  { %10040 = vpow2.f32 %v3249_v6  ;;  %v3257_v56 = vmul.f32 1.442695, %v3237_v12  ;;  %v3259_v47 = vmul.f32 1.442695, %v3238_v29  ;;  %v3261_v58 = vmul.f32 1.442695, %v3239_v23 }
 0x417   :  { %10042 = vpow2.f32 %v3251_v19  ;;  %4033 = vrot.lane.b32.xlu1 %v10178_v37, %s10251_s26  ;;  %v3263_v31 = vmul.f32 1.442695, %v3240_v10 }
 0x418   :  { %10044 = vpow2.f32 %v3253_v0 }
 0x419   :  { %10046 = vpow2.f32 %v3255_v48 }
 0x41a   :  { %10048 = vpow2.f32 %v3257_v56 }
 0x41b   :  { %10050 = vpow2.f32 %v3259_v47 }
 0x41c   :  { %10052 = vpow2.f32 %v3261_v58  ;;  %v11445_v58 = vpop.permute.xlu1 %3554 }
 0x41d   :  { %10054 = vpow2.f32 %v3263_v31 }
 0x420   :  { %v11413_v15 = vpop.eup %10040 }
 0x421   :  { %v11415_v6 = vpop.eup %10042 }
 0x422   :  { %v11417_v50 = vpop.eup %10044  ;;  %v3297_v33 = vrot.slane %v11415_v6, 7 }
 0x423   :  { %v11420_v57 = vpop.eup %10046  ;;  %v3299_v5 = vrot.slane %v11417_v50, 6 }
 0x424   :  { %v11423_v0 = vpop.eup %10048  ;;  %v3298_v23 = vsel %vm1109_vm3, %v3297_v33, %v11413_v15  ;;  %v3301_v60 = vrot.slane %v11420_v57, 5 }
 0x425   :  { %v11428_v14 = vpop.eup %10050  ;;  %v3300_v53 = vsel %vm1112_vm4, %v3299_v5, %v3298_v23  ;;  %v3303_v25 = vrot.slane %v11423_v0, 4 }
 0x426   :  { %13318 = vst [vmem:[#allocation6_spill] sm:$0xff] %v11428_v14  ;;  %v11432_v46 = vpop.eup %10052  ;;  %v3302_v22 = vsel %vm1115_vm5, %v3301_v60, %v3300_v53  ;;  %v3305_v28 = vrot.slane %v11428_v14, 3 }
 0x427   :  { %13319 = vst [vmem:[#allocation7_spill] sm:$0xff] %v11432_v46  ;;  %v11436_v12 = vpop.eup %10054  ;;  %v3304_v29 = vsel %vm1118_vm6, %v3303_v25, %v3302_v22  ;;  %v3307_v19 = vrot.slane %v11432_v46, 2 }
 0x428   :  { %13320 = vst [vmem:[#allocation8_spill] sm:$0xff] %v11436_v12  ;;  %v3306_v10 = vsel %vm1121_vm7, %v3305_v28, %v3304_v29  ;;  %v3309_v48 = vrot.slane %v11436_v12, 1 }
 0x429   :  { %v3308_v56 = vsel %vm1124_vm8, %v3307_v19, %v3306_v10 }
 0x42a   :  { %v3310_v37 = vsel %vm1127_vm9, %v3309_v48, %v3308_v56 }
 0x42b   :  { %v3327_v47 = vsel %vm1069_vm2, %v3310_v37, 0.0 }
 0x42c   :  { %3328 = vadd.xlane.f32.xlu0 %v3327_v47 }
 0x430   :  { %v3200_v31 = vpop.xlane.xlu1 %3199 }
 0x431   :  { %v3210_v33 = vrot.slane %v3200_v31, 1  ;;  %v3211_v5 = vrot.slane %v3200_v31, 2  ;;  %v3212_v23 = vrot.slane %v3200_v31, 3  ;;  %v3213_v60 = vrot.slane %v3200_v31, 4 }
 0x432   :  { %v3241_v53 = vsub.f32 %v11316_v43, %v3200_v31  ;;  %v3214_v25 = vrot.slane %v3200_v31, 5  ;;  %v3215_v22 = vrot.slane %v3200_v31, 6  ;;  %v3216_v28 = vrot.slane %v3200_v31, 7 }
 0x433   :  { %v3242_v29 = vsub.f32 %v11318_v34, %v3210_v33  ;;  %v3243_v19 = vsub.f32 %v11323_v1, %v3211_v5  ;;  %v3244_v10 = vsub.f32 %v11326_v36, %v3212_v23  ;;  %v3245_v48 = vsub.f32 %v11331_v63, %v3213_v60 }
 0x434   :  { %v3265_v56 = vmul.f32 1.442695, %v3241_v53  ;;  %v3246_v37 = vsub.f32 %v11334_v2, %v3214_v25  ;;  %v3247_v47 = vsub.f32 %v11343_v27, %v3215_v22  ;;  %v3248_v43 = vsub.f32 %v11350_v18, %v3216_v28  ;;  %v10179_v18 = vld [vmem:[%s13133_s2 + $0x98] sm:$0xff] }
 0x435   :  { %v3267_v12 = vmul.f32 1.442695, %v3242_v29  ;;  %v3269_v46 = vmul.f32 1.442695, %v3243_v19  ;;  %v3271_v14 = vmul.f32 1.442695, %v3244_v10 }
 0x436   :  { %10056 = vpow2.f32 %v3265_v56  ;;  %v3273_v31 = vmul.f32 1.442695, %v3245_v48  ;;  %v3275_v34 = vmul.f32 1.442695, %v3246_v37  ;;  %v3277_v1 = vmul.f32 1.442695, %v3247_v47 }
 0x437   :  { %10058 = vpow2.f32 %v3267_v12  ;;  %v3279_v36 = vmul.f32 1.442695, %v3248_v43 }
 0x438   :  { %10060 = vpow2.f32 %v3269_v46 }
 0x439   :  { %10062 = vpow2.f32 %v3271_v14 }
 0x43a   :  { %10064 = vpow2.f32 %v3273_v31  ;;  %v3133_v31 = vsub.f32 %v11276_v51, %v11390_v62  ;;  %v10181_v51 = vld [vmem:[%s13133_s2 + $0xd8] sm:$0xff] }
 0x43b   :  { %10066 = vpow2.f32 %v3275_v34  ;;  %v10182_v62 = vld [vmem:[%s13133_s2 + $0xf8] sm:$0xff] }
 0x43c   :  { %10068 = vpow2.f32 %v3277_v1  ;;  %v3135_v1 = vmul.f32 1.442695, %v3133_v31  ;;  %v13321_v31 = vld [vmem:[#allocation50_spill] sm:$0xff] }
 0x43d   :  { %10070 = vpow2.f32 %v3279_v36 }
 0x43e   :  { %10072 = vpow2.f32 %v3135_v1 }
 0x440   :  { %v11455_v63 = vpop.eup %10056 }
 0x441   :  { %v11457_v2 = vpop.eup %10058 }
 0x442   :  { %v11459_v27 = vpop.eup %10060  ;;  %3927 = vrot.lane.b32.xlu0 %v10179_v18, %s10251_s26  ;;  %v3311_v46 = vrot.slane %v11457_v2, 7  ;;  %v10180_v18 = vld [vmem:[%s13133_s2 + $0xc8] sm:$0xff] }
 0x443   :  { %v11466_v14 = vpop.eup %10062  ;;  %v3313_v12 = vrot.slane %v11459_v27, 6 }
 0x444   :  { %v11469_v33 = vpop.eup %10064  ;;  %v3312_v5 = vsel %vm1109_vm3, %v3311_v46, %v11455_v63  ;;  %v3315_v23 = vrot.slane %v11466_v14, 5 }
 0x445   :  { %v11474_v60 = vpop.eup %10066  ;;  %v3314_v53 = vsel %vm1112_vm4, %v3313_v12, %v3312_v5  ;;  %v3317_v25 = vrot.slane %v11469_v33, 4  ;;  %v10183_v12 = vld [vmem:[%s13133_s2 + $0xe8] sm:$0xff] }
 0x446   :  { %v11478_v22 = vpop.eup %10068  ;;  %v3316_v28 = vsel %vm1115_vm5, %v3315_v23, %v3314_v53  ;;  %v3319_v29 = vrot.slane %v11474_v60, 3  ;;  %v10184_v5 = vld [vmem:[%s13132_s1] ss:$8 sps:$4 sm:$0xff]   ;;  %v10186_v53 = vld [vmem:[%s13133_s2 + $0xb0] sm:$0xff] }
 0x447   :  { %v11482_v19 = vpop.eup %10070  ;;  %v3318_v10 = vsel %vm1118_vm6, %v3317_v25, %v3316_v28  ;;  %v3321_v48 = vrot.slane %v11478_v22, 2  ;;  %v10185_v23 = vld [vmem:[%s13133_s2 + $0xa0] sm:$0xff]  ;;  %v10188_v28 = vld [vmem:[%s13133_s2 + $0xd0] sm:$0xff] }
 0x448   :  { %v3320_v56 = vsel %vm1121_vm7, %v3319_v29, %v3318_v10  ;;  %v3323_v37 = vrot.slane %v11482_v19, 1  ;;  %v11493_v36 = vpop.eup %10072  ;;  %v10187_v25 = vld [vmem:[%s13133_s2 + $0xc0] sm:$0xff]  ;;  %v10189_v29 = vld [vmem:[%s13133_s2 + $0xf0] sm:$0xff] }
 0x449   :  { %v3322_v47 = vsel %vm1124_vm8, %v3321_v48, %v3320_v56  ;;  %v3139_v46 = vsel %vm1069_vm2, %v11493_v36, 0.0  ;;  %v10190_v10 = vld [vmem:[%s13133_s2 + $0xe0] sm:$0xff]  ;;  %v11569_v56 = vpop.permute.xlu0 %3766 }
 0x44a   :  { %v3324_v43 = vsel %vm1127_vm9, %v3323_v37, %v3322_v47  ;;  %v10191_v48 = vld [vmem:[%s13132_s1 + $0x4] ss:$8 sps:$4 sm:$0xff]  }
 0x44b   :  { %v3330_v34 = vsel %vm1069_vm2, %v3324_v43, 0.0 }
 0x44c   :  { %3331 = vadd.xlane.f32.xlu1 %v3330_v34  ;;  %v13322_v34 = vld [vmem:[#allocation16_spill] sm:$0xff] }
 0x44d   :  { %v11577_v37 = vpop.permute.xlu0 %3768 }
 0x451   :  { %v11585_v47 = vpop.permute.xlu0 %3819 }
 0x455   :  { %v11593_v43 = vpop.permute.xlu0 %3872 }
 0x459   :  { %v11601_v1 = vpop.permute.xlu0 %3874 }
 0x45d   :  { %4086 = vrot.lane.b32.xlu1 %v10180_v18, %s10251_s26  ;;  %v13323_v18 = vld [vmem:[#allocation20_spill] sm:$0xff] }
 0x461   :  { %3140 = vadd.xlane.f32.xlu0 %v3139_v46  ;;  %4139 = vrot.lane.b32.xlu1 %v10181_v51, %s10251_s26  ;;  %v11605_v46 = vpop.permute.xlu0 %3925  ;;  %v13324_v51 = vld [vmem:[#allocation24_spill] sm:$0xff] }
 0x465   :  { %4245 = vrot.lane.b32.xlu1 %v10182_v62, %s10251_s26 }
 0x469   :  { %4192 = vrot.lane.b32.xlu1 %v10183_v12, %s10251_s26  ;;  %v13325_v12 = vld [vmem:[#allocation28_spill] sm:$0xff] }
 0x46d   :  { %4391 = vrot.lane.b32.xlu1 %v10184_v5, %s10252_s4  ;;  %v13326_v5 = vld [vmem:[#allocation32_spill] sm:$0xff] }
 0x471   :  { %4389 = vrot.lane.b32.xlu1 %v10339_v20, %s10252_s4 }
 0x475   :  { %4440 = vrot.lane.b32.xlu1 %v10368_v32, %s10252_s4 }
 0x477   :  { %3978 = vrot.lane.b32.xlu0 %v10185_v23, %s10251_s26  ;;  %v13327_v23 = vld [vmem:[#allocation36_spill] sm:$0xff] }
 0x479   :  { %4490 = vrot.lane.b32.xlu1 %v10390_v38, %s10252_s4 }
 0x47b   :  { %4031 = vrot.lane.b32.xlu0 %v10186_v53, %s10251_s26 }
 0x47d   :  { %4540 = vrot.lane.b32.xlu1 %v10414_v45, %s10252_s4 }
 0x47f   :  { %4084 = vrot.lane.b32.xlu0 %v10187_v25, %s10251_s26  ;;  %v3559_v25 = vrot.slane %v11376_v4, 4 }
 0x481   :  { %4590 = vrot.lane.b32.xlu1 %v10438_v52, %s10252_s4 }
 0x483   :  { %4137 = vrot.lane.b32.xlu0 %v10188_v28, %s10251_s26  ;;  %v3558_v28 = vrot.slane %v11445_v58, 4 }
 0x485   :  { %4640 = vrot.lane.b32.xlu1 %v10462_v59, %s10252_s4  ;;  %v8751_v4 = vcombine.low %v3558_v28, %v3559_v25  ;;  %v13329_v28 = vld [vmem:[#allocation44_spill] sm:$0xff] }
 0x487   :  { %4243 = vrot.lane.b32.xlu0 %v10189_v29, %s10251_s26 }
 0x489   :  { %4690 = vrot.lane.b32.xlu1 %v10488_v7, %s10252_s4 }
 0x48b   :  { %4190 = vrot.lane.b32.xlu0 %v10190_v10, %s10251_s26 }
 0x48d   :  { %4740 = vrot.lane.b32.xlu1 %v10513_v24, %s10252_s4 }
 0x48f   :  { %4296 = vrot.lane.b32.xlu0 %v10191_v48, %s10251_s26  ;;  %v3611_v48 = vrot.slane %v11378_v16, 4 }
 0x491   :  { %4790 = vrot.lane.b32.xlu1 %v10537_v39, %s10252_s4 }
 0x493   :  { %4442 = vrot.lane.b32.xlu0 %v10299_v8, %s10252_s4 }
 0x495   :  { %4840 = vrot.lane.b32.xlu1 %v10562_v55, %s10252_s4 }
 0x497   :  { %4492 = vrot.lane.b32.xlu0 %v10326_v17, %s10252_s4 }
 0x499   :  { %4890 = vrot.lane.b32.xlu1 %v10586_v9, %s10252_s4 }
 0x49b   :  { %4542 = vrot.lane.b32.xlu0 %v10350_v26, %s10252_s4 }
 0x49d   :  { %4940 = vrot.lane.b32.xlu1 %v10610_v41, %s10252_s4  ;;  %v13328_v41 = vld [vmem:[#allocation40_spill] sm:$0xff] }
 0x49f   :  { %4592 = vrot.lane.b32.xlu0 %v10375_v35, %s10252_s4 }
 0x4a1   :  { %4990 = vrot.lane.b32.xlu1 %v10634_v13, %s10252_s4 }
 0x4a3   :  { %4642 = vrot.lane.b32.xlu0 %v10399_v42, %s10252_s4 }
 0x4a5   :  { %5040 = vrot.lane.b32.xlu1 %v10658_v61, %s10252_s4 }
 0x4a7   :  { %4692 = vrot.lane.b32.xlu0 %v10423_v49, %s10252_s4 }
 0x4a9   :  { %5090 = vrot.lane.b32.xlu1 %v13274_v54, %s10252_s4 }
 0x4ab   :  { %4742 = vrot.lane.b32.xlu0 %v13273_v3, %s10252_s4 }
 0x4ad   :  { %5140 = vrot.lane.b32.xlu1 %v13321_v31, %s10252_s4  ;;  %v3822_v31 = vpop.permute.xlu1 %3821 }
 0x4af   :  { %4792 = vrot.lane.b32.xlu0 %v13322_v34, %s10252_s4 }
 0x4b1   :  { %v11632_v16 = vpop.xlane.xlu1 %3143 }
 0x4b3   :  { %4842 = vrot.lane.b32.xlu0 %v13323_v18, %s10252_s4 }
 0x4b7   :  { %4892 = vrot.lane.b32.xlu0 %v13324_v51, %s10252_s4 }
 0x4b9   :  { %v3329_v62 = vpop.xlane.xlu0 %3328 }
 0x4ba   :  { %10074 = vrcp.f32 %v3329_v62  ;;  %v3612_v62 = vrot.slane %v11380_v44, 4 }
 0x4bb   :  { %4942 = vrot.lane.b32.xlu0 %v13325_v12, %s10252_s4 }
 0x4bc   :  { %v8753_v55 = vcombine.low %v3611_v48, %v3612_v62  ;;  %v13331_v48 = vld [vmem:[#allocation48_spill] sm:$0xff] }
 0x4bf   :  { %4992 = vrot.lane.b32.xlu0 %v13326_v5, %s10252_s4 }
 0x4c3   :  { %5042 = vrot.lane.b32.xlu0 %v13327_v23, %s10252_s4 }
 0x4c4   :  { %v11615_v53 = vpop.eup %10074 }
 0x4c5   :  { %v3367_v29 = vmul.f32 %v11615_v53, %v11413_v15  ;;  %v3337_v10 = vrot.slane %v11615_v53, 1  ;;  %v3338_v13 = vrot.slane %v11615_v53, 2  ;;  %v3339_v9 = vrot.slane %v11615_v53, 3 }
 0x4c7   :  { %v3432_v54 = vpack.c.bf16 %v3367_v29, %v3367_v29  ;;  %v3368_v61 = vmul.f32 %v11415_v6, %v3337_v10  ;;  %5092 = vrot.lane.b32.xlu0 %v13328_v41, %s10252_s4  ;;  %v3665_v6 = vrot.slane %v11384_v11, 4  ;;  %v11648_v25 = vmul.f32 %v11420_v57, %v3339_v9  ;;  %v11654_v10 = vpop.permute.xlu1 %3980 }
 0x4c8   :  { %v3341_v57 = vrot.slane %v11615_v53, 5 }
 0x4c9   :  { %9461 = vmatmul.mubr.msk.bf16.vlgmr.msra.gmra.mrb[100].mxu1 %vm1069_vm2, %v3432_v54  ;;  %v3399_v58 = vrot.slane %v3368_v61, 7  ;;  %v3433_v15 = vpack.c.bf16 %v3368_v61, %v3368_v61  ;;  %v11640_v54 = vmul.f32 %v11417_v50, %v3338_v13  ;;  %v3664_v61 = vrot.slane %v11382_v30, 4  ;;  %v13330_v13 = vld [vmem:[#allocation4_spill] sm:$0xff] }
 0x4ca   :  { %9471 = vmatpush3.bf16.msra.mxu1 %v8751_v4  ;;  %9472 = vmatprep.mubr.msk.bf16.mxu1 %vm10250_vm1, %v13264_v40  ;;  %v3718_v50 = vrot.slane %v13330_v13, 4  ;;  %v3340_v30 = vrot.slane %v11615_v53, 4  ;;  %v3435_v9 = vpack.c.bf16 %v11648_v25, %v11648_v25  ;;  %v3770_v4 = vrot.slane %v11569_v56, 4 }
 0x4cb   :  { %v11635_v44 = vsel %vm1109_vm3, %v3399_v58, %v3367_v29  ;;  %9467 = vmatmul.mubr.msk.bf16.vlgmr.msra.gmra.mrb[104].mxu0 %vm1069_vm2, %v3433_v15  ;;  %9482 = vmatprep.subr.bf16.mxu1 %v13264_v40  ;;  %v3717_v29 = vrot.slane %v11386_v21, 4  ;;  %v8755_v11 = vcombine.low %v3664_v61, %v3665_v6  ;;  %v3771_v58 = vrot.slane %v11577_v37, 4  ;;  %v11676_v15 = vpop.permute.xlu1 %4033  ;;  %v13332_v61 = vld [vmem:[#allocation6_spill] sm:$0xff] }
 0x4cc   :  { %9477 = vmatpush3.bf16.msra.mxu0 %v8753_v55  ;;  %9478 = vmatprep.mubr.msk.bf16.mxu0 %vm10250_vm1, %v13264_v40  ;;  %v3434_v55 = vpack.c.bf16 %v11640_v54, %v11640_v54  ;;  %v11670_v62 = vmul.f32 %v11423_v0, %v3340_v30  ;;  %v11680_v6 = vmul.f32 %v13332_v61, %v3341_v57  ;;  %v3823_v0 = vrot.slane %v11585_v47, 4  ;;  %v3928_v47 = vpop.permute.xlu0 %3927 }
 0x4cd   :  { %9488 = vmatprep.subr.bf16.mxu0 %v13264_v40  ;;  %5142 = vrot.lane.b32.xlu0 %v13329_v28, %s10252_s4  ;;  %v8757_v21 = vcombine.low %v3717_v29, %v3718_v50  ;;  %v13333_v29 = vld [vmem:[#allocation51_spill] sm:$0xff]  ;;  %v3824_v13 = vrot.slane %v3822_v31, 4  ;;  %v3342_v37 = vrot.slane %v11615_v53, 6  ;;  %v8759_v50 = vcombine.low %v3770_v4, %v3771_v58 }
 0x4ce   :  { %v3436_v56 = vpack.c.bf16 %v11670_v62, %v11670_v62  ;;  %v3437_v30 = vpack.c.bf16 %v11680_v6, %v11680_v6  ;;  %v13334_v31 = vld [vmem:[#allocation7_spill] sm:$0xff]  ;;  %v3877_v4 = vrot.slane %v11601_v1, 4  ;;  %v3930_v61 = vrot.slane %v3928_v47, 4 }
 0x4cf   :  { %v11697_v57 = vmul.f32 %v13334_v31, %v3342_v37  ;;  %v3929_v37 = vrot.slane %v11605_v46, 4 }
 0x4d1   :  { %9473 = vmatmul.mubr.msk.bf16.vlgmr.msra.gmra.mrb[104].mxu1 %vm1069_vm2, %v3434_v55  ;;  %5192 = vrot.lane.b32.xlu0 %v13331_v48, %s10252_s4  ;;  %v8765_v1 = vcombine.low %v3929_v37, %v3930_v61 }
 0x4d2   :  { %9483 = vmatpush3.bf16.msra.mxu1 %v8755_v11  ;;  %9484 = vmatprep.mubr.msk.bf16.mxu1 %vm10250_vm1, %v13264_v40  ;;  %v3343_v11 = vrot.slane %v11615_v53, 7  ;;  %v13335_v53 = vld [vmem:[#allocation8_spill] sm:$0xff] }
 0x4d3   :  { %9479 = vmatmul.mubr.msk.bf16.vlgmr.msra.gmra.mrb[108].mxu0 %vm1069_vm2, %v3435_v9  ;;  %9494 = vmatprep.subr.bf16.mxu1 %v13264_v40  ;;  %v8761_v9 = vcombine.low %v3823_v0, %v3824_v13  ;;  %v3438_v13 = vpack.c.bf16 %v11697_v57, %v11697_v57 }
 0x4d4   :  { %9489 = vmatpush3.bf16.msra.mxu0 %v8757_v21  ;;  %9490 = vmatprep.mubr.msk.bf16.mxu0 %vm10250_vm1, %v13264_v40  ;;  %v3876_v21 = vrot.slane %v11593_v43, 4  ;;  %v11705_v58 = vmul.f32 %v13335_v53, %v3343_v11 }
 0x4d5   :  { %9500 = vmatprep.subr.bf16.mxu0 %v13264_v40  ;;  %5190 = vrot.lane.b32.xlu0 %v13333_v29, %s10252_s4 }
 0x4d6   :  { %v3439_v43 = vpack.c.bf16 %v11705_v58, %v11705_v58 }
 0x4d9   :  { %9485 = vmatmul.mubr.msk.bf16.vlgmr.msra.gmra.mrb[108].mxu1 %vm1069_vm2, %v3436_v56  ;;  %v3332_v55 = vpop.xlane.xlu1 %3331  ;;  %v8763_v56 = vcombine.low %v3876_v21, %v3877_v4 }
 0x4da   :  { %9495 = vmatpush3.bf16.msra.mxu1 %v8759_v50  ;;  %10076 = vrcp.f32 %v3332_v55  ;;  %9496 = vmatprep.mubr.msk.bf16.mxu1 %vm10250_vm1, %v13264_v40 }
 0x4db   :  { %9491 = vmatmul.mubr.msk.bf16.vlgmr.msra.gmra.mrb[112].mxu0 %vm1069_vm2, %v3437_v30  ;;  %9506 = vmatprep.subr.bf16.mxu1 %v13264_v40 }
 0x4dc   :  { %9501 = vmatpush3.bf16.msra.mxu0 %v8761_v9  ;;  %9502 = vmatprep.mubr.msk.bf16.mxu0 %vm10250_vm1, %v13264_v40 }
 0x4dd   :  { %9512 = vmatprep.subr.bf16.mxu0 %v13264_v40  ;;  %v4087_v0 = vpop.permute.xlu1 %4086 }
 0x4de   :  { %v4089_v24 = vrot.slane %v4087_v0, 4 }
 0x4e1   :  { %9497 = vmatmul.mubr.msk.bf16.vlgmr.msra.gmra.mrb[112].mxu1 %vm1069_vm2, %v3438_v13  ;;  %v11721_v46 = vpop.permute.xlu1 %4139 }
 0x4e2   :  { %9507 = vmatpush3.bf16.msra.mxu1 %v8763_v56  ;;  %9508 = vmatprep.mubr.msk.bf16.mxu1 %vm10250_vm1, %v13264_v40 }
 0x4e3   :  { %9503 = vmatmul.mubr.msk.bf16.vlgmr.msra.gmra.mrb[116].mxu0 %vm1069_vm2, %v3439_v43  ;;  %9518 = vmatprep.subr.bf16.mxu1 %v13264_v40 }
 0x4e4   :  { %v11717_v50 = vpop.eup %10076  ;;  %9513 = vmatpush3.bf16.msra.mxu0 %v8765_v1  ;;  %9514 = vmatprep.mubr.msk.bf16.mxu0 %vm10250_vm1, %v13264_v40 }
 0x4e5   :  { %v3375_v55 = vmul.f32 %v11717_v50, %v11455_v63  ;;  %v3344_v30 = vrot.slane %v11717_v50, 1  ;;  %9524 = vmatprep.subr.bf16.mxu0 %v13264_v40  ;;  %v11731_v31 = vpop.permute.xlu1 %4245  ;;  %v3345_v21 = vrot.slane %v11717_v50, 2  ;;  %v3346_v56 = vrot.slane %v11717_v50, 3 }
 0x4e7   :  { %v3440_v11 = vpack.c.bf16 %v3375_v55, %v3375_v55  ;;  %v3376_v9 = vmul.f32 %v11457_v2, %v3344_v30  ;;  %v3983_v2 = vrot.slane %v11654_v10, 4  ;;  %v3377_v13 = vmul.f32 %v11459_v27, %v3345_v21 }
 0x4e8   :  { %v4036_v30 = vrot.slane %v11676_v15, 4  ;;  %v3378_v39 = vmul.f32 %v11466_v14, %v3346_v56  ;;  %v3347_v10 = vrot.slane %v11717_v50, 4 }
 0x4e9   :  { %9509 = vmatmul.mubr.msk.bf16.vlgmr.msra.gmra.mrb[116].mxu1 %vm1069_vm2, %v3440_v11  ;;  %v3441_v47 = vpack.c.bf16 %v3376_v9, %v3376_v9  ;;  %v11737_v4 = vpop.permute.xlu1 %4192  ;;  %v3413_v27 = vrot.slane %v3376_v9, 7  ;;  %v3415_v14 = vrot.slane %v3377_v13, 6  ;;  %v3348_v9 = vrot.slane %v11717_v50, 5 }
 0x4ea   :  { %9520 = vmatprep.mubr.msk.bf16.mxu1 %vm10250_vm1, %v13264_v40  ;;  %v3379_v56 = vmul.f32 %v11469_v33, %v3347_v10  ;;  %v3403_v33 = vrot.slane %v11648_v25, 5  ;;  %v4248_v10 = vrot.slane %v11731_v31, 4  ;;  %v3405_v25 = vrot.slane %v11670_v62, 4 }
 0x4eb   :  { %9515 = vmatmul.mubr.msk.bf16.vlgmr.msra.gmra.mrb[120].mxu0 %vm1069_vm2, %v3441_v47  ;;  %v3442_v47 = vpack.c.bf16 %v3377_v13, %v3377_v13  ;;  %v3414_v0 = vsel %vm1109_vm3, %v3413_v27, %v3375_v55  ;;  %v3349_v27 = vrot.slane %v11717_v50, 6  ;;  %v4195_v62 = vrot.slane %v11737_v4, 4 }
 0x4ec   :  { %9526 = vmatprep.mubr.msk.bf16.mxu0 %vm10250_vm1, %v13264_v40  ;;  %v3444_v55 = vpack.c.bf16 %v3379_v56, %v3379_v56 }
 0x4ed   :  { %v11742_v37 = vpop.permute.xlu1 %4391 }
 0x4ee   :  { %v3141_v63 = vpop.xlane.xlu0 %3140 }
 0x4ef   :  { %10078 = vrcp.f32 %v3141_v63 }
 0x4f0   :  { %10080 = vrcp.f32 %v11632_v16 }
 0x4f2   :  { %v3979_v53 = vpop.permute.xlu0 %3978 }
 0x4f3   :  { %v3982_v61 = vrot.slane %v3979_v53, 4  ;;  %v11748_v53 = vpop.permute.xlu1 %4389 }
 0x4f5   :  { %v8767_v43 = vcombine.low %v3982_v61, %v3983_v2  ;;  %v3401_v2 = vrot.slane %v11640_v54, 6  ;;  %v3443_v61 = vpack.c.bf16 %v3378_v39, %v3378_v39 }
 0x4f6   :  { %v4032_v1 = vpop.permute.xlu0 %4031 }
 0x4f7   :  { %v4035_v11 = vrot.slane %v4032_v1, 4  ;;  %9519 = vmatpush3.bf16.msra.mxu1 %v8767_v43  ;;  %v4142_v1 = vrot.slane %v11721_v46, 4  ;;  %v3402_v54 = vsel %vm1112_vm4, %v3401_v2, %v11635_v44  ;;  %v3380_v46 = vmul.f32 %v11474_v60, %v3348_v9 }
 0x4f8   :  { %9530 = vmatprep.subr.bf16.mxu1 %v13264_v40  ;;  %v3404_v44 = vsel %vm1115_vm5, %v3403_v33, %v3402_v54  ;;  %v3350_v2 = vrot.slane %v11717_v50, 7 }
 0x4f9   :  { %v8769_v21 = vcombine.low %v4035_v11, %v4036_v30  ;;  %v3417_v11 = vrot.slane %v3378_v39, 5  ;;  %v3419_v39 = vrot.slane %v3379_v56, 4  ;;  %v3445_v31 = vpack.c.bf16 %v3380_v46, %v3380_v46 }
 0x4fa   :  { %v4085_v7 = vpop.permute.xlu0 %4084  ;;  %9521 = vmatmul.mubr.msk.bf16.vlgmr.msra.gmra.mrb[120].mxu1 %vm1069_vm2, %v3442_v47  ;;  %v3381_v56 = vmul.f32 %v11478_v22, %v3349_v27  ;;  %v3382_v50 = vmul.f32 %v11482_v19, %v3350_v2 }
 0x4fb   :  { %v4088_v15 = vrot.slane %v4085_v7, 4  ;;  %9525 = vmatpush3.bf16.msra.mxu0 %v8769_v21  ;;  %9532 = vmatprep.mubr.msk.bf16.mxu1 %vm10250_vm1, %v13264_v40  ;;  %v11760_v7 = vpop.permute.xlu1 %4440 }
 0x4fc   :  { %9536 = vmatprep.subr.bf16.mxu0 %v13264_v40  ;;  %v3423_v22 = vrot.slane %v3381_v56, 2  ;;  %v3447_v19 = vpack.c.bf16 %v3382_v50, %v3382_v50 }
 0x4fd   :  { %v8771_v43 = vcombine.low %v4088_v15, %v4089_v24  ;;  %v3416_v24 = vsel %vm1112_vm4, %v3415_v14, %v3414_v0  ;;  %v3406_v14 = vsel %vm1118_vm6, %v3405_v25, %v3404_v44  ;;  %v3425_v44 = vrot.slane %v3382_v50, 1 }
 0x4fe   :  { %v4138_v30 = vpop.permute.xlu0 %4137  ;;  %9527 = vmatmul.mubr.msk.bf16.vlgmr.msra.gmra.mrb[124].mxu0 %vm1069_vm2, %v3443_v61  ;;  %v3418_v21 = vsel %vm1115_vm5, %v3417_v11, %v3416_v24  ;;  %v3407_v61 = vrot.slane %v11680_v6, 3  ;;  %v10079_v6 = vpop.eup %10078  ;;  %v3446_v11 = vpack.c.bf16 %v3381_v56, %v3381_v56 }
 0x4ff   :  { %v4141_v13 = vrot.slane %v4138_v30, 4  ;;  %9531 = vmatpush3.bf16.msra.mxu1 %v8771_v43  ;;  %9538 = vmatprep.mubr.msk.bf16.mxu0 %vm10250_vm1, %v13264_v40  ;;  %v11781_v15 = vpop.permute.xlu1 %4490  ;;  %v3420_v9 = vsel %vm1118_vm6, %v3419_v39, %v3418_v21  ;;  %v3409_v30 = vrot.slane %v11697_v57, 2  ;;  %v3411_v57 = vrot.slane %v11705_v58, 1  ;;  %v13336_v21 = vld [vmem:[#allocation5_spill] sm:$0xff] }
 0x500   :  { %9542 = vmatprep.subr.bf16.mxu1 %v13264_v40  ;;  %v3408_v4 = vsel %vm1121_vm7, %v3407_v61, %v3406_v14 }
 0x501   :  { %v8773_v47 = vcombine.low %v4141_v13, %v4142_v1  ;;  %v3421_v1 = vrot.slane %v3380_v46, 3  ;;  %v3147_v46 = vmul.f32 %v10079_v6, %v11493_v36 }
 0x502   :  { %v4244_v63 = vpop.permute.xlu0 %4243  ;;  %9533 = vmatmul.mubr.msk.bf16.vlgmr.msra.gmra.mrb[124].mxu1 %vm1069_vm2, %v3444_v55  ;;  %v3410_v55 = vsel %vm1124_vm8, %v3409_v30, %v3408_v4 }
 0x503   :  { %v4247_v60 = vrot.slane %v4244_v63, 4  ;;  %9537 = vmatpush3.bf16.msra.mxu0 %v8773_v47  ;;  %9544 = vmatprep.mubr.msk.bf16.mxu1 %vm10250_vm1, %v13264_v40  ;;  %v3422_v13 = vsel %vm1121_vm7, %v3421_v1, %v3420_v9  ;;  %v4541_v24 = vpop.permute.xlu1 %4540  ;;  %v4397_v63 = vsel %vm61_vm0, %v11742_v37, 0  ;;  %v3412_v36 = vsel %vm1127_vm9, %v3411_v57, %v3410_v55 }
 0x504   :  { %9548 = vmatprep.subr.bf16.mxu0 %v13264_v40  ;;  %v3424_v47 = vsel %vm1124_vm8, %v3423_v22, %v3422_v13  ;;  %v3429_v58 = vadd.f32 %v3412_v36, %v3147_v46 }
 0x505   :  { %v8777_v16 = vcombine.low %v4247_v60, %v4248_v10  ;;  %v10081_v10 = vpop.eup %10080  ;;  %v3426_v25 = vsel %vm1127_vm9, %v3425_v44, %v3424_v47 }
 0x506   :  { %v4191_v0 = vpop.permute.xlu0 %4190  ;;  %9539 = vmatmul.mubr.msk.bf16.vlgmr.msra.gmra.mrb[128].mxu0 %vm1069_vm2, %v3445_v31  ;;  %v3148_v60 = vmul.f32 %v10081_v10, %v13336_v21 }
 0x507   :  { %v4194_v43 = vrot.slane %v4191_v0, 4  ;;  %9549 = vmatpush3.bf16.msra.mxu0 %v8777_v16  ;;  %9550 = vmatprep.mubr.msk.bf16.mxu0 %vm10250_vm1, %v13264_v40  ;;  %v4591_v37 = vpop.permute.xlu1 %4590 }
 0x508   :  { %9560 = vmatprep.subr.bf16.mxu0 %v13264_v40  ;;  %v3430_v31 = vadd.f32 %v3426_v25, %v3148_v60 }
 0x509   :  { %v8775_v54 = vcombine.low %v4194_v43, %v4195_v62 }
 0x50a   :  { %v4297_v33 = vpop.permute.xlu0 %4296  ;;  %v3431_v2 = vpack.c.bf16 %v3430_v31, %v3429_v58 }
 0x50b   :  { %9543 = vmatpush3.bf16.msra.mxu1 %v8775_v54  ;;  %v4641_v62 = vpop.permute.xlu1 %4640 }
 0x50c   :  { %9554 = vmatprep.subr.bf16.mxu1 %v13264_v40 }
 0x50e   :  { %9545 = vmatmul.mubr.msk.bf16.vlgmr.msra.gmra.mrb[128].mxu1 %vm1069_vm2, %v3446_v11  ;;  %9551 = vmatmul.mubr.msk.bf16.vlgmr.msra.gmra.mrb[132].mxu0 %vm1069_vm2, %v3447_v19  ;;  %v4443_v27 = vpop.permute.xlu0 %4442 }
 0x50f   :  { %9555 = vmatpush3.bf16.msra.mxu1 %v4297_v33  ;;  %9556 = vmatprep.mubr.msk.bf16.mxu1 %vm10250_vm1, %v13264_v40  ;;  %v4448_v61 = vsel %vm61_vm0, %v4443_v27, 0  ;;  %v4691_v0 = vpop.permute.xlu1 %4690 }
 0x510   :  { %9561 = vmatpush3.bf16.xpose.msra.mxu0 %v4397_v63  ;;  %9562 = vmatprep.mubr.msk.bf16.mxu0 %vm10250_vm1, %v13264_v40 }
 0x511   :  { %9566 = vmatprep.subr.bf16.mxu1 %v13264_v40  ;;  %9572 = vmatprep.subr.bf16.mxu0 %v13264_v40 }
 0x512   :  { %v4493_v39 = vpop.permute.xlu0 %4492 }
 0x513   :  { %v4498_v14 = vsel %vm61_vm0, %v4493_v39, 0  ;;  %v4741_v50 = vpop.permute.xlu1 %4740 }
 0x516   :  { %9557 = vmatmul.mubr.msk.bf16.vlgmr.msra.gmra.mrb[132].mxu1 %vm1069_vm2, %v3431_v2  ;;  %v4543_v16 = vpop.permute.xlu0 %4542 }
 0x517   :  { %9563 = vmatmul.mubr.msk.bf16.vlgmr.msra.gmra.mrb[136].mxu0 %vm61_vm0, %v11748_v53  ;;  %9568 = vmatprep.mubr.msk.bf16.mxu1 %vm10250_vm1, %v13264_v40  ;;  %v4548_v1 = vsel %vm61_vm0, %v4543_v16, 0 }
 0x518   :  { %9567 = vmatpush3.bf16.xpose.msra.mxu1 %v4448_v61  ;;  %9573 = vmatpush3.bf16.xpose.msra.mxu0 %v4498_v14 }
 0x519   :  { %9574 = vmatprep.mubr.msk.bf16.mxu0 %vm10250_vm1, %v13264_v40  ;;  %9578 = vmatprep.subr.bf16.mxu1 %v13264_v40 }
 0x51a   :  { %v4593_v9 = vpop.permute.xlu0 %4592  ;;  %9584 = vmatprep.subr.bf16.mxu0 %v13264_v40 }
 0x51b   :  { %v4598_v56 = vsel %vm61_vm0, %v4593_v9, 0 }
 0x51e   :  { %v4643_v43 = vpop.permute.xlu0 %4642 }
 0x51f   :  { %9569 = vmatmul.mubr.msk.bf16.vlgmr.msra.gmra.mrb[136].mxu1 %vm61_vm0, %v11760_v7  ;;  %9575 = vmatmul.mubr.msk.bf16.vlgmr.msra.gmra.mrb[140].mxu0 %vm61_vm0, %v11781_v15  ;;  %v4648_v6 = vsel %vm61_vm0, %v4643_v43, 0  ;;  %v4791_v15 = vpop.permute.xlu1 %4790 }
 0x520   :  { %9579 = vmatpush3.bf16.xpose.msra.mxu1 %v4548_v1  ;;  %9585 = vmatpush3.bf16.xpose.msra.mxu0 %v4598_v56 }
 0x521   :  { %9580 = vmatprep.mubr.msk.bf16.mxu1 %vm10250_vm1, %v13264_v40  ;;  %9586 = vmatprep.mubr.msk.bf16.mxu0 %vm10250_vm1, %v13264_v40 }
 0x522   :  { %v4693_v53 = vpop.permute.xlu0 %4692  ;;  %9590 = vmatprep.subr.bf16.mxu1 %v13264_v40  ;;  %9596 = vmatprep.subr.bf16.mxu0 %v13264_v40 }
 0x523   :  { %v4698_v4 = vsel %vm61_vm0, %v4693_v53, 0  ;;  %v4841_v33 = vpop.permute.xlu1 %4840 }
 0x526   :  { %v4743_v7 = vpop.permute.xlu0 %4742 }
 0x527   :  { %9581 = vmatmul.mubr.msk.bf16.vlgmr.msra.gmra.mrb[140].mxu1 %vm61_vm0, %v4541_v24  ;;  %9587 = vmatmul.mubr.msk.bf16.vlgmr.msra.gmra.mrb[144].mxu0 %vm61_vm0, %v4591_v37  ;;  %v4748_v22 = vsel %vm61_vm0, %v4743_v7, 0  ;;  %v4891_v55 = vpop.permute.xlu1 %4890 }
 0x528   :  { %9591 = vmatpush3.bf16.xpose.msra.mxu1 %v4648_v6  ;;  %9597 = vmatpush3.bf16.xpose.msra.mxu0 %v4698_v4 }
 0x529   :  { %9592 = vmatprep.mubr.msk.bf16.mxu1 %vm10250_vm1, %v13264_v40  ;;  %9598 = vmatprep.mubr.msk.bf16.mxu0 %vm10250_vm1, %v13264_v40 }
 0x52a   :  { %v4793_v30 = vpop.permute.xlu0 %4792  ;;  %9602 = vmatprep.subr.bf16.mxu1 %v13264_v40  ;;  %9608 = vmatprep.subr.bf16.mxu0 %v13264_v40 }
 0x52b   :  { %v4798_v54 = vsel %vm61_vm0, %v4793_v30, 0  ;;  %v4941_v10 = vpop.permute.xlu1 %4940 }
 0x52e   :  { %v4843_v13 = vpop.permute.xlu0 %4842 }
 0x52f   :  { %9593 = vmatmul.mubr.msk.bf16.vlgmr.msra.gmra.mrb[144].mxu1 %vm61_vm0, %v4641_v62  ;;  %9599 = vmatmul.mubr.msk.bf16.vlgmr.msra.gmra.mrb[148].mxu0 %vm61_vm0, %v4691_v0  ;;  %v4848_v46 = vsel %vm61_vm0, %v4843_v13, 0  ;;  %v4991_v27 = vpop.permute.xlu1 %4990 }
 0x530   :  { %9603 = vmatpush3.bf16.xpose.msra.mxu1 %v4748_v22  ;;  %9609 = vmatpush3.bf16.xpose.msra.mxu0 %v4798_v54 }
 0x531   :  { %9604 = vmatprep.mubr.msk.bf16.mxu1 %vm10250_vm1, %v13264_v40  ;;  %9610 = vmatprep.mubr.msk.bf16.mxu0 %vm10250_vm1, %v13264_v40 }
 0x532   :  { %v4893_v24 = vpop.permute.xlu0 %4892  ;;  %9614 = vmatprep.subr.bf16.mxu1 %v13264_v40  ;;  %9620 = vmatprep.subr.bf16.mxu0 %v13264_v40 }
 0x533   :  { %v4898_v11 = vsel %vm61_vm0, %v4893_v24, 0  ;;  %v5041_v58 = vpop.permute.xlu1 %5040 }
 0x536   :  { %v4943_v19 = vpop.permute.xlu0 %4942 }
 0x537   :  { %9605 = vmatmul.mubr.msk.bf16.vlgmr.msra.gmra.mrb[148].mxu1 %vm61_vm0, %v4741_v50  ;;  %9611 = vmatmul.mubr.msk.bf16.vlgmr.msra.gmra.mrb[152].mxu0 %vm61_vm0, %v4791_v15  ;;  %v4948_v57 = vsel %vm61_vm0, %v4943_v19, 0  ;;  %v5091_v39 = vpop.permute.xlu1 %5090 }
 0x538   :  { %9615 = vmatpush3.bf16.xpose.msra.mxu1 %v4848_v46  ;;  %9621 = vmatpush3.bf16.xpose.msra.mxu0 %v4898_v11 }
 0x539   :  { %9616 = vmatprep.mubr.msk.bf16.mxu1 %vm10250_vm1, %v13264_v40  ;;  %9622 = vmatprep.mubr.msk.bf16.mxu0 %vm10250_vm1, %v13264_v40 }
 0x53a   :  { %v4993_v47 = vpop.permute.xlu0 %4992  ;;  %9626 = vmatprep.subr.bf16.mxu1 %v13264_v40  ;;  %9632 = vmatprep.subr.bf16.mxu0 %v13264_v40 }
 0x53b   :  { %v4998_v44 = vsel %vm61_vm0, %v4993_v47, 0  ;;  %v5141_v14 = vpop.permute.xlu1 %5140 }
 0x53e   :  { %v5043_v63 = vpop.permute.xlu0 %5042 }
 0x53f   :  { %9617 = vmatmul.mubr.msk.bf16.vlgmr.msra.gmra.mrb[152].mxu1 %vm61_vm0, %v4841_v33  ;;  %9623 = vmatmul.mubr.msk.bf16.vlgmr.msra.gmra.mrb[156].mxu0 %vm61_vm0, %v4891_v55  ;;  %v5048_v25 = vsel %vm61_vm0, %v5043_v63, 0 }
 0x540   :  { %9627 = vmatpush3.bf16.xpose.msra.mxu1 %v4948_v57  ;;  %9633 = vmatpush3.bf16.xpose.msra.mxu0 %v4998_v44 }
 0x541   :  { %9628 = vmatprep.mubr.msk.bf16.mxu1 %vm10250_vm1, %v13264_v40  ;;  %9634 = vmatprep.mubr.msk.bf16.mxu0 %vm10250_vm1, %v13264_v40 }
 0x542   :  { %v5093_v36 = vpop.permute.xlu0 %5092  ;;  %9638 = vmatprep.subr.bf16.mxu1 %v13264_v40  ;;  %9644 = vmatprep.subr.bf16.mxu0 %v13264_v40 }
 0x543   :  { %v5098_v21 = vsel %vm61_vm0, %v5093_v36, 0 }
 0x546   :  { %v5143_v60 = vpop.permute.xlu0 %5142 }
 0x547   :  { %9629 = vmatmul.mubr.msk.bf16.vlgmr.msra.gmra.mrb[156].mxu1 %vm61_vm0, %v4941_v10  ;;  %9635 = vmatmul.mubr.msk.bf16.vlgmr.msra.gmra.mrb[160].mxu0 %vm61_vm0, %v4991_v27  ;;  %v5148_v31 = vsel %vm61_vm0, %v5143_v60, 0 }
 0x548   :  { %9639 = vmatpush3.bf16.xpose.msra.mxu1 %v5048_v25  ;;  %9645 = vmatpush3.bf16.xpose.msra.mxu0 %v5098_v21 }
 0x549   :  { %9640 = vmatprep.mubr.msk.bf16.mxu1 %vm10250_vm1, %v13264_v40  ;;  %9646 = vmatprep.mubr.msk.bf16.mxu0 %vm10250_vm1, %v13264_v40 }
 0x54a   :  { %v5193_v37 = vpop.permute.xlu0 %5192  ;;  %9650 = vmatprep.subr.bf16.mxu1 %v13264_v40  ;;  %9656 = vmatprep.subr.bf16.mxu0 %v13264_v40 }
 0x54b   :  { %v5198_v2 = vsel %vm61_vm0, %v5193_v37, 0 }
 0x54e   :  { %v5191_v16 = vpop.permute.xlu0 %5190 }
 0x54f   :  { %9641 = vmatmul.mubr.msk.bf16.vlgmr.msra.gmra.mrb[160].mxu1 %vm61_vm0, %v5041_v58  ;;  %9647 = vmatmul.mubr.msk.bf16.vlgmr.msra.gmra.mrb[164].mxu0 %vm61_vm0, %v5091_v39 }
 0x550   :  { %9651 = vmatpush3.bf16.xpose.msra.mxu1 %v5148_v31  ;;  %9657 = vmatpush3.bf16.xpose.msra.mxu0 %v5198_v2 }
 0x551   :  { %9652 = vmatprep.mubr.msk.bf16.mxu1 %vm10250_vm1, %v13264_v40  ;;  %9658 = vmatprep.mubr.msk.bf16.mxu0 %vm10250_vm1, %v13264_v40 }
 0x552   :  { %9662 = vmatprep.subr.bf16.mxu1 %v13264_v40  ;;  %9668 = vmatprep.subr.bf16.mxu0 %v13264_v40 }
 0x557   :  { %9653 = vmatmul.mubr.msk.bf16.vlgmr.msra.gmra.mrb[164].mxu1 %vm61_vm0, %v5141_v14  ;;  %9659 = vmatmul.mubr.msk.bf16.vlgmr.msra.gmra.mrb[168].mxu0 %vm61_vm0, %v5191_v16 }
 0x558   :  { %9664 = vmatprep.mubr.msk.bf16.mxu1 %vm10250_vm1, %v13264_v40  ;;  %9670 = vmatprep.mubr.msk.bf16.mxu0 %vm10250_vm1, %v13264_v40 }
 0x59c   :  { %v3495_v62 = vpop.f32.mrb[100].mxu1 }
 0x59d   :  { %v9462_v61 = vpop.f32.mrb[101].mxu1 }
 0x59e   :  { %v3498_v9 = vpop.f32.mrb[102].mxu1  ;;  %v3548_v0 = vpop.f32.mrb[104].mxu0 }
 0x59f   :  { %v4315_v56 = vrot.slane %v3548_v0, 7  ;;  %v9463_v43 = vpop.f32.mrb[103].mxu1  ;;  %v9468_v1 = vpop.f32.mrb[105].mxu0 }
 0x5a0   :  { %v3551_v53 = vpop.f32.mrb[106].mxu0 }
 0x5a1   :  { %v4316_v50 = vsel %vm1109_vm3, %v4315_v56, %v3495_v62  ;;  %v9469_v4 = vpop.f32.mrb[107].mxu0 }
 0x5a4   :  { %v3601_v7 = vpop.f32.mrb[104].mxu1 }
 0x5a5   :  { %v4317_v6 = vrot.slane %v3601_v7, 6  ;;  %v9474_v15 = vpop.f32.mrb[105].mxu1 }
 0x5a6   :  { %v3604_v30 = vpop.f32.mrb[106].mxu1  ;;  %v3654_v54 = vpop.f32.mrb[108].mxu0 }
 0x5a7   :  { %v4318_v13 = vsel %vm1112_vm4, %v4317_v6, %v4316_v50  ;;  %v4319_v33 = vrot.slane %v3654_v54, 5  ;;  %v9475_v22 = vpop.f32.mrb[107].mxu1  ;;  %v9480_v24 = vpop.f32.mrb[109].mxu0 }
 0x5a8   :  { %v3657_v55 = vpop.f32.mrb[110].mxu0 }
 0x5a9   :  { %v4320_v46 = vsel %vm1115_vm5, %v4319_v33, %v4318_v13  ;;  %v9481_v11 = vpop.f32.mrb[111].mxu0 }
 0x5ac   :  { %v3707_v19 = vpop.f32.mrb[108].mxu1 }
 0x5ad   :  { %v4321_v47 = vrot.slane %v3707_v19, 4  ;;  %v9486_v10 = vpop.f32.mrb[109].mxu1 }
 0x5ae   :  { %v3710_v57 = vpop.f32.mrb[110].mxu1  ;;  %v3760_v44 = vpop.f32.mrb[112].mxu0 }
 0x5af   :  { %v4322_v63 = vsel %vm1118_vm6, %v4321_v47, %v4320_v46  ;;  %v4323_v27 = vrot.slane %v3760_v44, 3  ;;  %v9487_v36 = vpop.f32.mrb[111].mxu1  ;;  %v9492_v25 = vpop.f32.mrb[113].mxu0 }
 0x5b0   :  { %v3763_v21 = vpop.f32.mrb[114].mxu0 }
 0x5b1   :  { %v4324_v60 = vsel %vm1121_vm7, %v4323_v27, %v4322_v63  ;;  %v9493_v58 = vpop.f32.mrb[115].mxu0 }
 0x5b4   :  { %v3813_v37 = vpop.f32.mrb[112].mxu1 }
 0x5b5   :  { %v4325_v39 = vrot.slane %v3813_v37, 2  ;;  %v9498_v31 = vpop.f32.mrb[113].mxu1 }
 0x5b6   :  { %v3816_v2 = vpop.f32.mrb[114].mxu1  ;;  %v3866_v14 = vpop.f32.mrb[116].mxu0 }
 0x5b7   :  { %v4327_v16 = vrot.slane %v3866_v14, 1  ;;  %v9499_v62 = vpop.f32.mrb[115].mxu1  ;;  %v9504_v61 = vpop.f32.mrb[117].mxu0  ;;  %v4326_v9 = vsel %vm1124_vm8, %v4325_v39, %v4324_v60 }
 0x5b8   :  { %v3869_v0 = vpop.f32.mrb[118].mxu0 }
 0x5b9   :  { %v9505_v56 = vpop.f32.mrb[119].mxu0  ;;  %v4328_v43 = vsel %vm1127_vm9, %v4327_v16, %v4326_v9 }
 0x5bc   :  { %v3919_v1 = vpop.f32.mrb[116].mxu1 }
 0x5bd   :  { %v9510_v53 = vpop.f32.mrb[117].mxu1 }
 0x5be   :  { %v3922_v50 = vpop.f32.mrb[118].mxu1  ;;  %v3972_v4 = vpop.f32.mrb[120].mxu0 }
 0x5bf   :  { %v4329_v7 = vrot.slane %v3972_v4, 7  ;;  %v9511_v6 = vpop.f32.mrb[119].mxu1  ;;  %v9516_v15 = vpop.f32.mrb[121].mxu0 }
 0x5c0   :  { %v3975_v30 = vpop.f32.mrb[122].mxu0 }
 0x5c1   :  { %v4330_v54 = vsel %vm1109_vm3, %v4329_v7, %v3919_v1  ;;  %v9517_v13 = vpop.f32.mrb[123].mxu0 }
 0x5cd   :  { %v4025_v33 = vpop.f32.mrb[120].mxu1 }
 0x5ce   :  { %v4331_v22 = vrot.slane %v4025_v33, 6  ;;  %v9522_v24 = vpop.f32.mrb[121].mxu1 }
 0x5cf   :  { %v4028_v55 = vpop.f32.mrb[122].mxu1 }
 0x5d0   :  { %v4332_v46 = vsel %vm1112_vm4, %v4331_v22, %v4330_v54  ;;  %v9523_v11 = vpop.f32.mrb[123].mxu1 }
 0x5d1   :  { %v4078_v19 = vpop.f32.mrb[124].mxu0 }
 0x5d2   :  { %v4333_v47 = vrot.slane %v4078_v19, 5  ;;  %v9528_v10 = vpop.f32.mrb[125].mxu0 }
 0x5d3   :  { %v4081_v57 = vpop.f32.mrb[126].mxu0 }
 0x5d4   :  { %v4334_v44 = vsel %vm1115_vm5, %v4333_v47, %v4332_v46  ;;  %v9529_v63 = vpop.f32.mrb[127].mxu0 }
 0x5d5   :  { %v4131_v27 = vpop.f32.mrb[124].mxu1 }
 0x5d6   :  { %v4335_v36 = vrot.slane %v4131_v27, 4  ;;  %v9534_v25 = vpop.f32.mrb[125].mxu1 }
 0x5d7   :  { %v4134_v21 = vpop.f32.mrb[126].mxu1 }
 0x5d8   :  { %v4336_v60 = vsel %vm1118_vm6, %v4335_v36, %v4334_v44  ;;  %v9535_v58 = vpop.f32.mrb[127].mxu1 }
 0x5d9   :  { %v4184_v37 = vpop.f32.mrb[128].mxu0 }
 0x5da   :  { %v4337_v39 = vrot.slane %v4184_v37, 3  ;;  %v9540_v31 = vpop.f32.mrb[129].mxu0 }
 0x5db   :  { %v4187_v2 = vpop.f32.mrb[130].mxu0 }
 0x5dc   :  { %v4338_v14 = vsel %vm1121_vm7, %v4337_v39, %v4336_v60  ;;  %v9541_v16 = vpop.f32.mrb[131].mxu0 }
 0x5e1   :  { %v4237_v62 = vpop.f32.mrb[128].mxu1  ;;  %v4290_v61 = vpop.f32.mrb[132].mxu0 }
 0x5e2   :  { %v4339_v9 = vrot.slane %v4237_v62, 2  ;;  %v4341_v0 = vrot.slane %v4290_v61, 1  ;;  %v9546_v56 = vpop.f32.mrb[129].mxu1  ;;  %v9552_v1 = vpop.f32.mrb[133].mxu0 }
 0x5e3   :  { %v4240_v53 = vpop.f32.mrb[130].mxu1  ;;  %v4293_v50 = vpop.f32.mrb[134].mxu0 }
 0x5e4   :  { %v9547_v4 = vpop.f32.mrb[131].mxu1  ;;  %v9553_v7 = vpop.f32.mrb[135].mxu0  ;;  %v4340_v6 = vsel %vm1124_vm8, %v4339_v9, %v4338_v14  ;;  %v11949_v50 = vld [vmem:[%s13133_s2 + $0x8] sm:$0xff] }
 0x5e5   :  { %v4342_v15 = vsel %vm1127_vm9, %v4341_v0, %v4340_v6  ;;  %13339 = vst [vmem:[#allocation10_spill] sm:$0xff] %v11949_v50 }
 0x5e9   :  { %v4382_v30 = vpop.f32.mrb[132].mxu1 }
 0x5ea   :  { %v11917_v54 = vadd.f32 %v4382_v30, %v4328_v43  ;;  %v9558_v13 = vpop.f32.mrb[133].mxu1  ;;  %v11919_v33 = vpop.f32.mrb[136].mxu0 }
 0x5eb   :  { %v4385_v22 = vpop.f32.mrb[134].mxu1  ;;  %v9564_v24 = vpop.f32.mrb[137].mxu0  ;;  %v5240_v55 = vsel %vm1069_vm2, %v11919_v33, -inf }
 0x5ec   :  { %13337 = vst [vmem:[#allocation9_spill] sm:$0xff] %v11917_v54  ;;  %v11923_v46 = vadd.f32 %v4385_v22, %v4342_v15  ;;  %v9559_v11 = vpop.f32.mrb[135].mxu1  ;;  %5241 = vmax.xlane.f32.xlu0 %v5240_v55  ;;  %v11925_v19 = vpop.f32.mrb[138].mxu0 }
 0x5ed   :  { %v9565_v47 = vpop.f32.mrb[139].mxu0 }
 0x5ee   :  { %13338 = vst [vmem:[#allocation2_spill] sm:$0xff] %v11923_v46  ;;  %v11960_v47 = vld [vmem:[%s13133_s2 + $0x20] sm:$0xff] }
 0x5f2   :  { %v11927_v10 = vpop.f32.mrb[136].mxu1  ;;  %v11929_v57 = vpop.f32.mrb[140].mxu0 }
 0x5f3   :  { %v5278_v43 = vrot.slane %v11929_v57, 7  ;;  %v9570_v44 = vpop.f32.mrb[137].mxu1  ;;  %v9576_v63 = vpop.f32.mrb[141].mxu0 }
 0x5f4   :  { %v4487_v27 = vpop.f32.mrb[138].mxu1  ;;  %v4537_v36 = vpop.f32.mrb[142].mxu0 }
 0x5f5   :  { %v5279_v25 = vsel %vm1109_vm3, %v5278_v43, %v11927_v10  ;;  %v9571_v21 = vpop.f32.mrb[139].mxu1  ;;  %v9577_v60 = vpop.f32.mrb[143].mxu0 }
 0x5fa   :  { %v11934_v58 = vpop.f32.mrb[140].mxu1  ;;  %v11936_v37 = vpop.f32.mrb[144].mxu0 }
 0x5fb   :  { %v5280_v39 = vrot.slane %v11934_v58, 6  ;;  %v5282_v31 = vrot.slane %v11936_v37, 5  ;;  %v9582_v2 = vpop.f32.mrb[141].mxu1  ;;  %v9588_v14 = vpop.f32.mrb[145].mxu0 }
 0x5fc   :  { %v4587_v16 = vpop.f32.mrb[142].mxu1  ;;  %v4637_v62 = vpop.f32.mrb[146].mxu0 }
 0x5fd   :  { %v5281_v61 = vsel %vm1112_vm4, %v5280_v39, %v5279_v25  ;;  %v9583_v9 = vpop.f32.mrb[143].mxu1  ;;  %v9589_v0 = vpop.f32.mrb[147].mxu0 }
 0x5fe   :  { %v5283_v56 = vsel %vm1115_vm5, %v5282_v31, %v5281_v61  ;;  %v5243_v9 = vsel %vm1069_vm2, %v11925_v19, -inf }
 0x602   :  { %v11942_v1 = vpop.f32.mrb[144].mxu1  ;;  %v11944_v53 = vpop.f32.mrb[148].mxu0  ;;  %5563 = vrot.lane.b32.xlu0 %v11949_v50, %s10252_s4 }
 0x603   :  { %v5284_v4 = vrot.slane %v11942_v1, 4  ;;  %v5286_v7 = vrot.slane %v11944_v53, 3  ;;  %v9594_v6 = vpop.f32.mrb[145].mxu1  ;;  %v9600_v15 = vpop.f32.mrb[149].mxu0 }
 0x604   :  { %v4687_v30 = vpop.f32.mrb[146].mxu1  ;;  %v4737_v13 = vpop.f32.mrb[150].mxu0 }
 0x605   :  { %v5285_v22 = vsel %vm1118_vm6, %v5284_v4, %v5283_v56  ;;  %v9595_v24 = vpop.f32.mrb[147].mxu1  ;;  %v9601_v55 = vpop.f32.mrb[151].mxu0 }
 0x606   :  { %v5287_v11 = vsel %vm1121_vm7, %v5286_v7, %v5285_v22  ;;  %5667 = vrot.lane.b32.xlu0 %v11960_v47, %s10252_s4 }
 0x60a   :  { %v11964_v43 = vpop.f32.mrb[148].mxu1  ;;  %v11966_v44 = vpop.f32.mrb[152].mxu0 }
 0x60b   :  { %v5288_v63 = vrot.slane %v11964_v43, 2  ;;  %v5290_v27 = vrot.slane %v11966_v44, 1  ;;  %v9606_v36 = vpop.f32.mrb[149].mxu1  ;;  %v9612_v25 = vpop.f32.mrb[153].mxu0 }
 0x60c   :  { %v4787_v21 = vpop.f32.mrb[150].mxu1  ;;  %v4837_v60 = vpop.f32.mrb[154].mxu0 }
 0x60d   :  { %v9607_v39 = vpop.f32.mrb[151].mxu1  ;;  %v9613_v31 = vpop.f32.mrb[155].mxu0  ;;  %v5289_v2 = vsel %vm1124_vm8, %v5288_v63, %v5287_v11 }
 0x60e   :  { %v5291_v14 = vsel %vm1127_vm9, %v5290_v27, %v5289_v2 }
 0x60f   :  { %v5308_v16 = vsel %vm1069_vm2, %v5291_v14, -inf }
 0x610   :  { %5309 = vmax.xlane.f32.xlu1 %v5308_v16 }
 0x612   :  { %v11973_v62 = vpop.f32.mrb[152].mxu1  ;;  %v11975_v61 = vpop.f32.mrb[156].mxu0 }
 0x613   :  { %v9618_v0 = vpop.f32.mrb[153].mxu1  ;;  %v5292_v56 = vrot.slane %v11975_v61, 7  ;;  %v9624_v4 = vpop.f32.mrb[157].mxu0 }
 0x614   :  { %5244 = vmax.xlane.f32.xlu1 %v5243_v9  ;;  %v4887_v7 = vpop.f32.mrb[154].mxu1  ;;  %v4937_v6 = vpop.f32.mrb[158].mxu0 }
 0x615   :  { %v5293_v15 = vsel %vm1109_vm3, %v5292_v56, %v11973_v62  ;;  %v9619_v30 = vpop.f32.mrb[155].mxu1  ;;  %v9625_v13 = vpop.f32.mrb[159].mxu0 }
 0x61a   :  { %v11982_v22 = vpop.f32.mrb[156].mxu1  ;;  %v11984_v24 = vpop.f32.mrb[160].mxu0 }
 0x61b   :  { %v5294_v55 = vrot.slane %v11982_v22, 6  ;;  %v9630_v11 = vpop.f32.mrb[157].mxu1  ;;  %v5296_v63 = vrot.slane %v11984_v24, 5  ;;  %v9636_v27 = vpop.f32.mrb[161].mxu0 }
 0x61c   :  { %v4987_v36 = vpop.f32.mrb[158].mxu1  ;;  %v5037_v25 = vpop.f32.mrb[162].mxu0  ;;  %v12008_v11 = vld [vmem:[%s13133_s2 + $0x10] sm:$0xff] }
 0x61d   :  { %v5295_v21 = vsel %vm1112_vm4, %v5294_v55, %v5293_v15  ;;  %v9631_v60 = vpop.f32.mrb[159].mxu1  ;;  %v9637_v39 = vpop.f32.mrb[163].mxu0  ;;  %v12000_v15 = vld [vmem:[%s13133_s2] sm:$0xff] }
 0x61e   :  { %v5297_v31 = vsel %vm1115_vm5, %v5296_v63, %v5295_v21 }
 0x622   :  { %v11990_v2 = vpop.f32.mrb[160].mxu1  ;;  %v11992_v14 = vpop.f32.mrb[164].mxu0 }
 0x623   :  { %v5298_v16 = vrot.slane %v11990_v2, 4  ;;  %v5300_v9 = vrot.slane %v11992_v14, 3  ;;  %v9642_v0 = vpop.f32.mrb[161].mxu1  ;;  %v9648_v56 = vpop.f32.mrb[165].mxu0 }
 0x624   :  { %v5087_v4 = vpop.f32.mrb[162].mxu1  ;;  %v5137_v7 = vpop.f32.mrb[166].mxu0 }
 0x625   :  { %v5299_v6 = vsel %vm1118_vm6, %v5298_v16, %v5297_v31  ;;  %5561 = vrot.lane.b32.xlu1 %v12000_v15, %s10252_s4  ;;  %v9643_v30 = vpop.f32.mrb[163].mxu1  ;;  %v9649_v13 = vpop.f32.mrb[167].mxu0  ;;  %v12021_v16 = vld [vmem:[%s13133_s2 + $0x18] sm:$0xff] }
 0x626   :  { %v5301_v55 = vsel %vm1121_vm7, %v5300_v9, %v5299_v6  ;;  %v12031_v6 = vld [vmem:[%s13133_s2 + $0x28] sm:$0xff]  ;;  %v12038_v30 = vld [vmem:[%s13133_s2 + $0x30] sm:$0xff]  ;;  %v12045_v13 = vld [vmem:[%s13133_s2 + $0x38] sm:$0xff] }
 0x627   :  { %13340 = vst [vmem:[#allocation11_spill] sm:$0xff] %v12031_v6  ;;  %13341 = vst [vmem:[#allocation13_spill] sm:$0xff] %v12038_v30 }
 0x628   :  { %13342 = vst [vmem:[#allocation14_spill] sm:$0xff] %v12045_v13 }
 0x629   :  { %5614 = vrot.lane.b32.xlu1 %v12008_v11, %s10252_s4 }
 0x62a   :  { %v12012_v63 = vpop.f32.mrb[164].mxu1  ;;  %v12014_v27 = vpop.f32.mrb[168].mxu0 }
 0x62b   :  { %v5302_v36 = vrot.slane %v12012_v63, 2  ;;  %v5304_v25 = vrot.slane %v12014_v27, 1  ;;  %v9654_v21 = vpop.f32.mrb[165].mxu1  ;;  %v9660_v60 = vpop.f32.mrb[169].mxu0 }
 0x62c   :  { %v5187_v39 = vpop.f32.mrb[166].mxu1  ;;  %v5237_v31 = vpop.f32.mrb[170].mxu0  ;;  %v10203_v21 = vld [vmem:[%s13133_s2 + $0x70] sm:$0xff]  ;;  %v10204_v60 = vld [vmem:[%s13133_s2 + $0x58] sm:$0xff] }
 0x62d   :  { %5616 = vrot.lane.b32.xlu1 %v12021_v16, %s10252_s4  ;;  %v5303_v9 = vsel %vm1124_vm8, %v5302_v36, %v5301_v55  ;;  %v9655_v0 = vpop.f32.mrb[167].mxu1  ;;  %v9661_v56 = vpop.f32.mrb[171].mxu0  ;;  %v12052_v55 = vld [vmem:[%s13133_s2 + $0x40] sm:$0xff]  ;;  %v12059_v36 = vld [vmem:[%s13133_s2 + $0x48] sm:$0xff] }
 0x62e   :  { %v5305_v4 = vsel %vm1127_vm9, %v5304_v25, %v5303_v9  ;;  %13343 = vst [vmem:[#allocation17_spill] sm:$0xff] %v12052_v55  ;;  %13344 = vst [vmem:[#allocation18_spill] sm:$0xff] %v12059_v36  ;;  %v12066_v25 = vld [vmem:[%s13133_s2 + $0x50] sm:$0xff]  ;;  %v10205_v39 = vld [vmem:[%s13133_s2 + $0x60] sm:$0xff] }
 0x62f   :  { %v5311_v7 = vsel %vm1069_vm2, %v5305_v4, -inf  ;;  %13345 = vst [vmem:[#allocation21_spill] sm:$0xff] %v12066_v25  ;;  %v10206_v31 = vld [vmem:[%s13133_s2 + $0x68] sm:$0xff]  ;;  %v10207_v9 = vld [vmem:[%s13133_s2 + $0x78] sm:$0xff]  ;;  %v10208_v0 = vld [vmem:[%s13133_s2 + $0x80] sm:$0xff] }
 0x630   :  { %5312 = vmax.xlane.f32.xlu0 %v5311_v7  ;;  %v10209_v56 = vld [vmem:[%s13133_s2 + $0x88] sm:$0xff]  ;;  %v10210_v4 = vld [vmem:[%s13133_s2 + $0x90] sm:$0xff]  ;;  %v10211_v7 = vld [vmem:[%s13133_s2 + $0x98] sm:$0xff] }
 0x631   :  { %5669 = vrot.lane.b32.xlu1 %v12031_v6, %s10252_s4 }
 0x635   :  { %5720 = vrot.lane.b32.xlu1 %v12038_v30, %s10252_s4 }
 0x639   :  { %5722 = vrot.lane.b32.xlu1 %v12045_v13, %s10252_s4 }
 0x63d   :  { %5773 = vrot.lane.b32.xlu1 %v12052_v55, %s10252_s4 }
 0x641   :  { %5775 = vrot.lane.b32.xlu1 %v12059_v36, %s10252_s4 }
 0x645   :  { %5826 = vrot.lane.b32.xlu1 %v12066_v25, %s10252_s4 }
 0x646   :  { %5932 = vrot.lane.b32.xlu0 %v10203_v21, %s10252_s4 }
 0x649   :  { %5828 = vrot.lane.b32.xlu1 %v10204_v60, %s10252_s4 }
 0x64d   :  { %5879 = vrot.lane.b32.xlu1 %v10205_v39, %s10252_s4 }
 0x651   :  { %5881 = vrot.lane.b32.xlu1 %v10206_v31, %s10252_s4 }
 0x655   :  { %5934 = vrot.lane.b32.xlu1 %v10207_v9, %s10252_s4 }
 0x659   :  { %5985 = vrot.lane.b32.xlu1 %v10208_v0, %s10252_s4  ;;  %v10212_v0 = vld [vmem:[%s13133_s2 + $0xa8] sm:$0xff] }
 0x65d   :  { %5987 = vrot.lane.b32.xlu1 %v10209_v56, %s10252_s4 }
 0x661   :  { %6038 = vrot.lane.b32.xlu1 %v10210_v4, %s10252_s4 }
 0x665   :  { %6040 = vrot.lane.b32.xlu1 %v10211_v7, %s10252_s4 }
 0x679   :  { %v5242_v21 = vpop.xlane.xlu0 %5241 }
 0x67a   :  { %v5246_v60 = vsub.f32 %v11919_v33, %v5242_v21 }
 0x67c   :  { %v5248_v39 = vmul.f32 1.442695, %v5246_v60 }
 0x67d   :  { %v5564_v59 = vpop.permute.xlu0 %5563 }
 0x67e   :  { %10082 = vpow2.f32 %v5248_v39 }
 0x688   :  { %v12107_v31 = vpop.eup %10082 }
 0x689   :  { %13346 = vst [vmem:[#allocation22_spill] sm:$0xff] %v12107_v31  ;;  %v5252_v9 = vsel %vm1069_vm2, %v12107_v31, 0.0 }
 0x68a   :  { %5253 = vadd.xlane.f32.xlu1 %v5252_v9  ;;  %v10213_v9 = vld [vmem:[%s13133_s2 + $0xb0] sm:$0xff] }
 0x69b   :  { %6093 = vrot.lane.b32.xlu1 %v10212_v0, %s10252_s4 }
 0x69d   :  { %v5310_v56 = vpop.xlane.xlu1 %5309 }
 0x69e   :  { %v5316_v4 = vrot.slane %v5310_v56, 1  ;;  %v5317_v7 = vrot.slane %v5310_v56, 2  ;;  %v5318_v46 = vrot.slane %v5310_v56, 3  ;;  %v5319_v54 = vrot.slane %v5310_v56, 4 }
 0x69f   :  { %v5320_v33 = vrot.slane %v5310_v56, 5  ;;  %v5346_v21 = vsub.f32 %v11927_v10, %v5310_v56  ;;  %v5321_v60 = vrot.slane %v5310_v56, 6  ;;  %v5322_v39 = vrot.slane %v5310_v56, 7  ;;  %6144 = vrot.lane.b32.xlu1 %v10213_v9, %s10252_s4 }
 0x6a0   :  { %v5347_v31 = vsub.f32 %v11929_v57, %v5316_v4  ;;  %v5348_v0 = vsub.f32 %v11934_v58, %v5317_v7  ;;  %v5349_v25 = vsub.f32 %v11936_v37, %v5318_v46  ;;  %v5350_v36 = vsub.f32 %v11942_v1, %v5319_v54  ;;  %v10214_v46 = vld [vmem:[%s13133_s2 + $0xc0] sm:$0xff] }
 0x6a1   :  { %v5362_v55 = vmul.f32 1.442695, %v5346_v21  ;;  %v5245_v13 = vpop.xlane.xlu1 %5244  ;;  %v5351_v10 = vsub.f32 %v11944_v53, %v5320_v33  ;;  %v5352_v50 = vsub.f32 %v11964_v43, %v5321_v60  ;;  %v5353_v57 = vsub.f32 %v11966_v44, %v5322_v39  ;;  %v10215_v44 = vld [vmem:[%s13133_s2 + $0xd0] sm:$0xff]  ;;  %v10217_v33 = vld [vmem:[%s13133_s2 + $0xe0] sm:$0xff] }
 0x6a2   :  { %v5364_v30 = vmul.f32 1.442695, %v5347_v31  ;;  %v5366_v56 = vmul.f32 1.442695, %v5348_v0  ;;  %v5247_v6 = vsub.f32 %v11925_v19, %v5245_v13  ;;  %v5368_v9 = vmul.f32 1.442695, %v5349_v25 }
 0x6a3   :  { %10084 = vpow2.f32 %v5362_v55  ;;  %6197 = vrot.lane.b32.xlu1 %v10214_v46, %s10252_s4  ;;  %v5370_v58 = vmul.f32 1.442695, %v5350_v36  ;;  %v5372_v1 = vmul.f32 1.442695, %v5351_v10  ;;  %v5566_v19 = vrot.slane %v5564_v59, 4  ;;  %v10216_v59 = vld [vmem:[%s13133_s2 + $0xf0] sm:$0xff] }
 0x6a4   :  { %10086 = vpow2.f32 %v5364_v30  ;;  %v5250_v54 = vmul.f32 1.442695, %v5247_v6  ;;  %v5374_v43 = vmul.f32 1.442695, %v5352_v50  ;;  %v5376_v13 = vmul.f32 1.442695, %v5353_v57 }
 0x6a5   :  { %10088 = vpow2.f32 %v5366_v56  ;;  %v5562_v37 = vpop.permute.xlu1 %5561 }
 0x6a6   :  { %10090 = vpow2.f32 %v5250_v54  ;;  %v5565_v53 = vrot.slane %v5562_v37, 4  ;;  %v10218_v37 = vld [vmem:[%s13132_s1 + $0x4] ss:$8 sps:$4 sm:$0xff]  }
 0x6a7   :  { %10092 = vpow2.f32 %v5368_v9  ;;  %6250 = vrot.lane.b32.xlu1 %v10215_v44, %s10252_s4 }
 0x6a8   :  { %v8797_v55 = vcombine.low %v5565_v53, %v5566_v19  ;;  %10094 = vpow2.f32 %v5370_v58 }
 0x6a9   :  { %v5615_v30 = vpop.permute.xlu1 %5614  ;;  %10096 = vpow2.f32 %v5372_v1 }
 0x6aa   :  { %9663 = vmatpush3.bf16.msra.mxu1 %v8797_v55  ;;  %10098 = vpow2.f32 %v5374_v43  ;;  %v5618_v50 = vrot.slane %v5615_v30, 4 }
 0x6ab   :  { %10100 = vpow2.f32 %v5376_v13  ;;  %6356 = vrot.lane.b32.xlu1 %v10216_v59, %s10252_s4  ;;  %9674 = vmatprep.subr.bf16.mxu1 %v13264_v40 }
 0x6ad   :  { %v12141_v6 = vpop.eup %10084  ;;  %v5617_v36 = vpop.permute.xlu1 %5616 }
 0x6ae   :  { %v12143_v25 = vpop.eup %10086  ;;  %v5619_v31 = vrot.slane %v5617_v36, 4  ;;  %v12187_v36 = vpop.permute.xlu0 %5667 }
 0x6af   :  { %v12145_v4 = vpop.eup %10088  ;;  %v5410_v7 = vrot.slane %v12143_v25, 7  ;;  %6303 = vrot.lane.b32.xlu1 %v10217_v33, %s10252_s4 }
 0x6b0   :  { %v12152_v21 = vpop.eup %10090  ;;  %v8799_v60 = vcombine.low %v5618_v50, %v5619_v31  ;;  %v5412_v39 = vrot.slane %v12145_v4, 6 }
 0x6b1   :  { %v12155_v0 = vpop.eup %10092  ;;  %v5255_v10 = vsel %vm1069_vm2, %v12152_v21, 0.0  ;;  %v5411_v56 = vsel %vm1109_vm3, %v5410_v7, %v12141_v6 }
 0x6b2   :  { %v12161_v9 = vpop.eup %10094  ;;  %5256 = vadd.xlane.f32.xlu0 %v5255_v10  ;;  %v5413_v57 = vsel %vm1112_vm4, %v5412_v39, %v5411_v56  ;;  %v5414_v46 = vrot.slane %v12155_v0, 5  ;;  %9669 = vmatpush3.bf16.msra.mxu0 %v8799_v60 }
 0x6b3   :  { %v12165_v54 = vpop.eup %10096  ;;  %v5416_v58 = vrot.slane %v12161_v9, 4  ;;  %6409 = vrot.lane.b32.xlu1 %v10218_v37, %s10252_s4  ;;  %9680 = vmatprep.subr.bf16.mxu0 %v13264_v40 }
 0x6b4   :  { %v12173_v1 = vpop.eup %10098  ;;  %v5415_v19 = vsel %vm1115_vm5, %v5414_v46, %v5413_v57  ;;  %v5418_v53 = vrot.slane %v12165_v54, 3 }
 0x6b5   :  { %v12177_v43 = vpop.eup %10100  ;;  %v5417_v13 = vsel %vm1118_vm6, %v5416_v58, %v5415_v19  ;;  %v5420_v44 = vrot.slane %v12173_v1, 2 }
 0x6b6   :  { %v5419_v55 = vsel %vm1121_vm7, %v5418_v53, %v5417_v13  ;;  %v5422_v30 = vrot.slane %v12177_v43, 1 }
 0x6b7   :  { %v5421_v59 = vsel %vm1124_vm8, %v5420_v44, %v5419_v55  ;;  %6555 = vrot.lane.b32.xlu1 %v10299_v8, %s10253_s21 }
 0x6b8   :  { %v5423_v50 = vsel %vm1127_vm9, %v5422_v30, %v5421_v59 }
 0x6b9   :  { %v5440_v31 = vsel %vm1069_vm2, %v5423_v50, 0.0 }
 0x6ba   :  { %5441 = vadd.xlane.f32.xlu0 %v5440_v31 }
 0x6bb   :  { %6605 = vrot.lane.b32.xlu1 %v10326_v17, %s10253_s21 }
 0x6bd   :  { %v5313_v7 = vpop.xlane.xlu0 %5312 }
 0x6be   :  { %v5323_v33 = vrot.slane %v5313_v7, 1  ;;  %v5324_v60 = vrot.slane %v5313_v7, 2  ;;  %v5325_v10 = vrot.slane %v5313_v7, 3  ;;  %v5354_v57 = vsub.f32 %v11973_v62, %v5313_v7 }
 0x6bf   :  { %6655 = vrot.lane.b32.xlu1 %v10350_v26, %s10253_s21  ;;  %v5326_v46 = vrot.slane %v5313_v7, 4  ;;  %v5327_v26 = vrot.slane %v5313_v7, 5 }
 0x6c0   :  { %v5355_v39 = vsub.f32 %v11975_v61, %v5323_v33  ;;  %v5356_v8 = vsub.f32 %v11982_v22, %v5324_v60  ;;  %v5357_v17 = vsub.f32 %v11984_v24, %v5325_v10  ;;  %v5378_v37 = vmul.f32 1.442695, %v5354_v57 }
 0x6c1   :  { %v5358_v61 = vsub.f32 %v11990_v2, %v5326_v46  ;;  %v5328_v22 = vrot.slane %v5313_v7, 6  ;;  %v5359_v62 = vsub.f32 %v11992_v14, %v5327_v26  ;;  %v5329_v24 = vrot.slane %v5313_v7, 7 }
 0x6c2   :  { %v5380_v56 = vmul.f32 1.442695, %v5355_v39  ;;  %v5382_v58 = vmul.f32 1.442695, %v5356_v8 }
 0x6c3   :  { %6705 = vrot.lane.b32.xlu1 %v10375_v35, %s10253_s21  ;;  %v5384_v35 = vmul.f32 1.442695, %v5357_v17  ;;  %v5386_v19 = vmul.f32 1.442695, %v5358_v61  ;;  %v5360_v2 = vsub.f32 %v12012_v63, %v5328_v22  ;;  %v5388_v53 = vmul.f32 1.442695, %v5359_v62  ;;  %v12328_v22 = vpop.permute.xlu0 %5932 }
 0x6c4   :  { %10102 = vpow2.f32 %v5380_v56  ;;  %v5361_v14 = vsub.f32 %v12014_v27, %v5329_v24 }
 0x6c5   :  { %10104 = vpow2.f32 %v5382_v58  ;;  %v5390_v13 = vmul.f32 1.442695, %v5360_v2 }
 0x6c6   :  { %10106 = vpow2.f32 %v5378_v37  ;;  %v5392_v63 = vmul.f32 1.442695, %v5361_v14  ;;  %v13354_v14 = vld [vmem:[#allocation43_spill] sm:$0xff] }
 0x6c7   :  { %6755 = vrot.lane.b32.xlu1 %v10399_v42, %s10253_s21  ;;  %v10219_v42 = vld [vmem:[%s13133_s2 + $0xa0] sm:$0xff]  ;;  %10108 = vpow2.f32 %v5384_v35 }
 0x6c8   :  { %10110 = vpow2.f32 %v5386_v19 }
 0x6c9   :  { %10112 = vpow2.f32 %v5388_v53  ;;  %v13353_v53 = vld [vmem:[#allocation39_spill] sm:$0xff] }
 0x6ca   :  { %10114 = vpow2.f32 %v5390_v13 }
 0x6cb   :  { %6805 = vrot.lane.b32.xlu1 %v10423_v49, %s10253_s21  ;;  %10116 = vpow2.f32 %v5392_v63 }
 0x6ce   :  { %v12213_v49 = vpop.eup %10102 }
 0x6cf   :  { %6855 = vrot.lane.b32.xlu1 %v13273_v3, %s10253_s21  ;;  %v12218_v3 = vpop.eup %10104  ;;  %v5424_v44 = vrot.slane %v12213_v49, 7 }
 0x6d0   :  { %6091 = vrot.lane.b32.xlu0 %v10219_v42, %s10252_s4  ;;  %v12223_v55 = vpop.eup %10106  ;;  %v5426_v30 = vrot.slane %v12218_v3, 6  ;;  %v13352_v42 = vld [vmem:[#allocation35_spill] sm:$0xff] }
 0x6d1   :  { %v12228_v59 = vpop.eup %10108 }
 0x6d2   :  { %v12233_v50 = vpop.eup %10110 }
 0x6d3   :  { %6905 = vrot.lane.b32.xlu1 %v13322_v34, %s10253_s21  ;;  %v5425_v34 = vsel %vm1109_vm3, %v5424_v44, %v12223_v55  ;;  %v12239_v7 = vpop.eup %10112  ;;  %v5430_v33 = vrot.slane %v12233_v50, 4  ;;  %v13355_v44 = vld [vmem:[#allocation47_spill] sm:$0xff] }
 0x6d4   :  { %v5427_v27 = vsel %vm1112_vm4, %v5426_v30, %v5425_v34  ;;  %v12243_v39 = vpop.eup %10114 }
 0x6d5   :  { %v12249_v10 = vpop.eup %10116  ;;  %v5434_v56 = vrot.slane %v12243_v39, 2 }
 0x6d6   :  { %v5436_v57 = vrot.slane %v12249_v10, 1 }
 0x6d7   :  { %6955 = vrot.lane.b32.xlu1 %v13323_v18, %s10253_s21  ;;  %v5428_v18 = vrot.slane %v12228_v59, 5 }
 0x6d9   :  { %v5429_v31 = vsel %vm1115_vm5, %v5428_v18, %v5427_v27 }
 0x6da   :  { %v5431_v60 = vsel %vm1118_vm6, %v5430_v33, %v5429_v31  ;;  %v5671_v33 = vrot.slane %v12187_v36, 4 }
 0x6db   :  { %7005 = vrot.lane.b32.xlu1 %v13324_v51, %s10253_s21  ;;  %v5432_v51 = vrot.slane %v12239_v7, 3 }
 0x6dd   :  { %v5433_v8 = vsel %vm1121_vm7, %v5432_v51, %v5431_v60 }
 0x6df   :  { %7055 = vrot.lane.b32.xlu1 %v13325_v12, %s10253_s21  ;;  %v5435_v12 = vsel %vm1124_vm8, %v5434_v56, %v5433_v8 }
 0x6e0   :  { %v5437_v46 = vsel %vm1127_vm9, %v5436_v57, %v5435_v12 }
 0x6e3   :  { %7105 = vrot.lane.b32.xlu1 %v13326_v5, %s10253_s21  ;;  %v5443_v5 = vsel %vm1069_vm2, %v5437_v46, 0.0 }
 0x6e7   :  { %7155 = vrot.lane.b32.xlu1 %v13327_v23, %s10253_s21  ;;  %v10221_v23 = vld [vmem:[%s13133_s2 + $0xc8] sm:$0xff] }
 0x6eb   :  { %7205 = vrot.lane.b32.xlu1 %v13328_v41, %s10253_s21  ;;  %v10220_v41 = vld [vmem:[%s13133_s2 + $0xb8] sm:$0xff] }
 0x6ef   :  { %5444 = vadd.xlane.f32.xlu0 %v5443_v5  ;;  %7255 = vrot.lane.b32.xlu1 %v13329_v28, %s10253_s21  ;;  %v10222_v28 = vld [vmem:[%s13133_s2 + $0xd8] sm:$0xff] }
 0x6f3   :  { %7305 = vrot.lane.b32.xlu1 %v13331_v48, %s10253_s21  ;;  %v5670_v48 = vpop.permute.xlu1 %5669 }
 0x6f4   :  { %v5672_v30 = vrot.slane %v5670_v48, 4 }
 0x6f6   :  { %v8801_v5 = vcombine.low %v5671_v33, %v5672_v30 }
 0x6f7   :  { %7303 = vrot.lane.b32.xlu1 %v13333_v29, %s10253_s21  ;;  %v10223_v29 = vld [vmem:[%s13133_s2 + $0xf8] sm:$0xff] }
 0x6fb   :  { %7674 = vrot.lane.b32.xlu1 %v12000_v15, %s10253_s21  ;;  %v10224_v15 = vld [vmem:[%s13133_s2 + $0xe8] sm:$0xff] }
 0x6ff   :  { %7727 = vrot.lane.b32.xlu1 %v12008_v11, %s10253_s21 }
 0x703   :  { %7729 = vrot.lane.b32.xlu1 %v12021_v16, %s10253_s21  ;;  %v10225_v16 = vld [vmem:[%s13132_s1] ss:$8 sps:$4 sm:$0xff]  }
 0x705   :  { %6146 = vrot.lane.b32.xlu0 %v10220_v41, %s10252_s4 }
 0x707   :  { %7780 = vrot.lane.b32.xlu1 %v11960_v47, %s10253_s21  ;;  %v5721_v47 = vpop.permute.xlu1 %5720 }
 0x708   :  { %v5724_v60 = vrot.slane %v5721_v47, 4 }
 0x709   :  { %6199 = vrot.lane.b32.xlu0 %v10221_v23, %s10252_s4 }
 0x70b   :  { %v5723_v11 = vpop.permute.xlu1 %5722 }
 0x70c   :  { %v5725_v51 = vrot.slane %v5723_v11, 4  ;;  %v13357_v11 = vld [vmem:[#allocation50_spill] sm:$0xff] }
 0x70d   :  { %6252 = vrot.lane.b32.xlu0 %v10222_v28, %s10252_s4 }
 0x70e   :  { %v8803_v28 = vcombine.low %v5724_v60, %v5725_v51 }
 0x70f   :  { %v12300_v58 = vpop.permute.xlu1 %5773 }
 0x711   :  { %6358 = vrot.lane.b32.xlu0 %v10223_v29, %s10252_s4 }
 0x713   :  { %v12304_v17 = vpop.permute.xlu1 %5775 }
 0x714   :  { %v5778_v48 = vrot.slane %v12304_v17, 4 }
 0x715   :  { %6305 = vrot.lane.b32.xlu0 %v10224_v15, %s10252_s4 }
 0x717   :  { %v12310_v26 = vpop.permute.xlu1 %5826 }
 0x719   :  { %6504 = vrot.lane.b32.xlu0 %v10225_v16, %s10253_s21  ;;  %v5830_v16 = vrot.slane %v12310_v26, 4 }
 0x71b   :  { %v12314_v37 = vpop.permute.xlu1 %5828 }
 0x71d   :  { %6502 = vrot.lane.b32.xlu0 %v10339_v20, %s10253_s21  ;;  %v13347_v20 = vld [vmem:[#allocation15_spill] sm:$0xff] }
 0x71f   :  { %v12320_v61 = vpop.permute.xlu1 %5879 }
 0x721   :  { %6553 = vrot.lane.b32.xlu0 %v10368_v32, %s10253_s21  ;;  %v13348_v32 = vld [vmem:[#allocation19_spill] sm:$0xff] }
 0x723   :  { %v12324_v35 = vpop.permute.xlu1 %5881 }
 0x725   :  { %6603 = vrot.lane.b32.xlu0 %v10390_v38, %s10253_s21  ;;  %v13349_v38 = vld [vmem:[#allocation23_spill] sm:$0xff] }
 0x727   :  { %v12332_v62 = vpop.permute.xlu1 %5934 }
 0x728   :  { %v5937_v30 = vrot.slane %v12332_v62, 4 }
 0x729   :  { %6653 = vrot.lane.b32.xlu0 %v10414_v45, %s10253_s21  ;;  %v13350_v45 = vld [vmem:[#allocation27_spill] sm:$0xff] }
 0x72b   :  { %v12338_v2 = vpop.permute.xlu1 %5985 }
 0x72c   :  { %v5989_v60 = vrot.slane %v12338_v2, 4 }
 0x72d   :  { %6703 = vrot.lane.b32.xlu0 %v10438_v52, %s10253_s21  ;;  %v13351_v52 = vld [vmem:[#allocation31_spill] sm:$0xff] }
 0x72f   :  { %v12344_v13 = vpop.permute.xlu1 %5987 }
 0x731   :  { %6753 = vrot.lane.b32.xlu0 %v13347_v20, %s10253_s21 }
 0x733   :  { %v12356_v8 = vpop.permute.xlu1 %6038 }
 0x735   :  { %6803 = vrot.lane.b32.xlu0 %v13348_v32, %s10253_s21 }
 0x737   :  { %v12371_v29 = vpop.permute.xlu1 %6040 }
 0x739   :  { %6853 = vrot.lane.b32.xlu0 %v13349_v38, %s10253_s21 }
 0x73d   :  { %6903 = vrot.lane.b32.xlu0 %v13350_v45, %s10253_s21 }
 0x73f   :  { %v12334_v19 = vpop.xlane.xlu0 %5256 }
 0x741   :  { %6953 = vrot.lane.b32.xlu0 %v13351_v52, %s10253_s21  ;;  %v13358_v52 = vld [vmem:[#allocation10_spill] sm:$0xff] }
 0x745   :  { %7003 = vrot.lane.b32.xlu0 %v13352_v42, %s10253_s21 }
 0x747   :  { %v5442_v24 = vpop.xlane.xlu0 %5441 }
 0x748   :  { %10118 = vrcp.f32 %v5442_v24  ;;  %v12389_v24 = vpop.xlane.xlu1 %5253 }
 0x749   :  { %7053 = vrot.lane.b32.xlu0 %v13353_v53, %s10253_s21  ;;  %v5884_v53 = vrot.slane %v12324_v35, 4 }
 0x74d   :  { %7103 = vrot.lane.b32.xlu0 %v13354_v14, %s10253_s21 }
 0x751   :  { %7153 = vrot.lane.b32.xlu0 %v13355_v44, %s10253_s21  ;;  %v13359_v44 = vld [vmem:[#allocation11_spill] sm:$0xff] }
 0x752   :  { %v12348_v63 = vpop.eup %10118 }
 0x753   :  { %v5480_v34 = vmul.f32 %v12348_v63, %v12141_v6  ;;  %v5450_v27 = vrot.slane %v12348_v63, 1  ;;  %v5451_v18 = vrot.slane %v12348_v63, 2  ;;  %v5452_v31 = vrot.slane %v12348_v63, 3  ;;  %v13356_v6 = vld [vmem:[#allocation49_spill] sm:$0xff] }
 0x754   :  { %v5453_v20 = vrot.slane %v12348_v63, 4  ;;  %v5454_v45 = vrot.slane %v12348_v63, 5  ;;  %v5455_v35 = vrot.slane %v12348_v63, 6 }
 0x755   :  { %v5545_v56 = vpack.c.bf16 %v5480_v34, %v5480_v34  ;;  %v5481_v12 = vmul.f32 %v12143_v25, %v5450_v27  ;;  %v5482_v57 = vmul.f32 %v12145_v4, %v5451_v18  ;;  %v5483_v46 = vmul.f32 %v12155_v0, %v5452_v31  ;;  %7203 = vrot.lane.b32.xlu0 %v13356_v6, %s10253_s21  ;;  %v13360_v31 = vld [vmem:[#allocation13_spill] sm:$0xff] }
 0x756   :  { %v5777_v0 = vrot.slane %v12300_v58, 4  ;;  %v5831_v58 = vrot.slane %v12314_v37, 4  ;;  %v12396_v26 = vmul.f32 %v12161_v9, %v5453_v20  ;;  %v5883_v37 = vrot.slane %v12320_v61, 4 }
 0x757   :  { %9665 = vmatmul.mubr.msk.bf16.vlgmr.msra.gmra.mrb[168].mxu1 %vm1069_vm2, %v5545_v56  ;;  %v5512_v41 = vrot.slane %v5481_v12, 7  ;;  %v5546_v23 = vpack.c.bf16 %v5481_v12, %v5481_v12  ;;  %v5514_v36 = vrot.slane %v5482_v57, 6  ;;  %v5516_v4 = vrot.slane %v5483_v46, 5  ;;  %v13361_v56 = vld [vmem:[#allocation14_spill] sm:$0xff] }
 0x758   :  { %9675 = vmatpush3.bf16.msra.mxu1 %v8801_v5  ;;  %9676 = vmatprep.mubr.msk.bf16.mxu1 %vm10250_vm1, %v13264_v40  ;;  %v5547_v17 = vpack.c.bf16 %v5482_v57, %v5482_v57  ;;  %v8805_v32 = vcombine.low %v5777_v0, %v5778_v48  ;;  %v5548_v38 = vpack.c.bf16 %v5483_v46, %v5483_v46  ;;  %v5936_v9 = vrot.slane %v12328_v22, 4 }
 0x759   :  { %v5513_v25 = vsel %vm1109_vm3, %v5512_v41, %v5480_v34  ;;  %9671 = vmatmul.mubr.msk.bf16.vlgmr.msra.gmra.mrb[172].mxu0 %vm1069_vm2, %v5546_v23  ;;  %9686 = vmatprep.subr.bf16.mxu1 %v13264_v40  ;;  %v8807_v42 = vcombine.low %v5830_v16, %v5831_v58  ;;  %v12404_v14 = vmul.f32 %v12165_v54, %v5454_v45  ;;  %v6094_v34 = vpop.permute.xlu1 %6093  ;;  %v5456_v18 = vrot.slane %v12348_v63, 7  ;;  %v13364_v41 = vld [vmem:[#allocation21_spill] sm:$0xff]  ;;  %v6092_v23 = vpop.permute.xlu0 %6091 }
 0x75a   :  { %9681 = vmatpush3.bf16.msra.mxu0 %v8803_v28  ;;  %v5515_v47 = vsel %vm1112_vm4, %v5514_v36, %v5513_v25  ;;  %9682 = vmatprep.mubr.msk.bf16.mxu0 %vm10250_vm1, %v13264_v40  ;;  %v5549_v61 = vpack.c.bf16 %v12396_v26, %v12396_v26  ;;  %v8809_v27 = vcombine.low %v5883_v37, %v5884_v53  ;;  %v5990_v63 = vrot.slane %v12344_v13, 4 }
 0x75b   :  { %9692 = vmatprep.subr.bf16.mxu0 %v13264_v40  ;;  %v12378_v15 = vsel %vm1115_vm5, %v5516_v4, %v5515_v47  ;;  %7253 = vrot.lane.b32.xlu0 %v13357_v11, %s10253_s21  ;;  %v5550_v54 = vpack.c.bf16 %v12404_v14, %v12404_v14  ;;  %v8811_v62 = vcombine.low %v5936_v9, %v5937_v30  ;;  %v6042_v12 = vrot.slane %v12356_v8, 4  ;;  %v13363_v8 = vld [vmem:[#allocation18_spill] sm:$0xff] }
 0x75c   :  { %v12424_v33 = vmul.f32 %v12173_v1, %v5455_v35  ;;  %v12432_v51 = vmul.f32 %v12177_v43, %v5456_v18  ;;  %v6043_v1 = vrot.slane %v12371_v29, 4  ;;  %v8813_v13 = vcombine.low %v5989_v60, %v5990_v63  ;;  %v13362_v43 = vld [vmem:[#allocation17_spill] sm:$0xff] }
 0x75d   :  { %v6145_v22 = vpop.permute.xlu1 %6144  ;;  %v6096_v47 = vrot.slane %v6094_v34, 4  ;;  %v6095_v11 = vrot.slane %v6092_v23, 4 }
 0x75e   :  { %v5551_v2 = vpack.c.bf16 %v12424_v33, %v12424_v33  ;;  %v5552_v46 = vpack.c.bf16 %v12432_v51, %v12432_v51  ;;  %v8815_v6 = vcombine.low %v6042_v12, %v6043_v1  ;;  %v6148_v16 = vrot.slane %v6145_v22, 4 }
 0x75f   :  { %9677 = vmatmul.mubr.msk.bf16.vlgmr.msra.gmra.mrb[172].mxu1 %vm1069_vm2, %v5547_v17  ;;  %7676 = vrot.lane.b32.xlu0 %v13358_v52, %s10253_s21  ;;  %v8817_v37 = vcombine.low %v6095_v11, %v6096_v47 }
 0x760   :  { %9687 = vmatpush3.bf16.msra.mxu1 %v8805_v32  ;;  %9688 = vmatprep.mubr.msk.bf16.mxu1 %vm10250_vm1, %v13264_v40 }
 0x761   :  { %9683 = vmatmul.mubr.msk.bf16.vlgmr.msra.gmra.mrb[176].mxu0 %vm1069_vm2, %v5548_v38  ;;  %9698 = vmatprep.subr.bf16.mxu1 %v13264_v40  ;;  %v6198_v57 = vpop.permute.xlu1 %6197 }
 0x762   :  { %9693 = vmatpush3.bf16.msra.mxu0 %v8807_v42  ;;  %9694 = vmatprep.mubr.msk.bf16.mxu0 %vm10250_vm1, %v13264_v40 }
 0x763   :  { %9704 = vmatprep.subr.bf16.mxu0 %v13264_v40  ;;  %7782 = vrot.lane.b32.xlu0 %v13359_v44, %s10253_s21 }
 0x765   :  { %v6251_v5 = vpop.permute.xlu1 %6250 }
 0x767   :  { %9689 = vmatmul.mubr.msk.bf16.vlgmr.msra.gmra.mrb[176].mxu1 %vm1069_vm2, %v5549_v61  ;;  %7833 = vrot.lane.b32.xlu0 %v13360_v31, %s10253_s21  ;;  %v6201_v61 = vrot.slane %v6198_v57, 4 }
 0x768   :  { %9699 = vmatpush3.bf16.msra.mxu1 %v8809_v27  ;;  %9700 = vmatprep.mubr.msk.bf16.mxu1 %vm10250_vm1, %v13264_v40  ;;  %v6254_v27 = vrot.slane %v6251_v5, 4 }
 0x769   :  { %9695 = vmatmul.mubr.msk.bf16.vlgmr.msra.gmra.mrb[180].mxu0 %vm1069_vm2, %v5550_v54  ;;  %9710 = vmatprep.subr.bf16.mxu1 %v13264_v40  ;;  %v12456_v36 = vpop.permute.xlu1 %6356 }
 0x76a   :  { %9705 = vmatpush3.bf16.msra.mxu0 %v8811_v62  ;;  %9706 = vmatprep.mubr.msk.bf16.mxu0 %vm10250_vm1, %v13264_v40 }
 0x76b   :  { %9716 = vmatprep.subr.bf16.mxu0 %v13264_v40  ;;  %7835 = vrot.lane.b32.xlu0 %v13361_v56, %s10253_s21 }
 0x76d   :  { %v12458_v4 = vpop.permute.xlu1 %6303 }
 0x76f   :  { %9701 = vmatmul.mubr.msk.bf16.vlgmr.msra.gmra.mrb[180].mxu1 %vm1069_vm2, %v5551_v2  ;;  %7886 = vrot.lane.b32.xlu0 %v13362_v43, %s10253_s21  ;;  %v6307_v43 = vrot.slane %v12458_v4, 4 }
 0x770   :  { %9711 = vmatpush3.bf16.msra.mxu1 %v8813_v13  ;;  %9712 = vmatprep.mubr.msk.bf16.mxu1 %vm10250_vm1, %v13264_v40 }
 0x771   :  { %9707 = vmatmul.mubr.msk.bf16.vlgmr.msra.gmra.mrb[184].mxu0 %vm1069_vm2, %v5552_v46  ;;  %9722 = vmatprep.subr.bf16.mxu1 %v13264_v40  ;;  %v12460_v48 = vpop.permute.xlu1 %6409 }
 0x772   :  { %9717 = vmatpush3.bf16.msra.mxu0 %v8815_v6  ;;  %9718 = vmatprep.mubr.msk.bf16.mxu0 %vm10250_vm1, %v13264_v40 }
 0x773   :  { %9728 = vmatprep.subr.bf16.mxu0 %v13264_v40  ;;  %7888 = vrot.lane.b32.xlu0 %v13363_v8, %s10253_s21  ;;  %v6360_v8 = vrot.slane %v12456_v36, 4 }
 0x775   :  { %v12468_v45 = vpop.permute.xlu1 %6555 }
 0x777   :  { %7939 = vrot.lane.b32.xlu0 %v13364_v41, %s10253_s21 }
 0x77c   :  { %v5445_v28 = vpop.xlane.xlu0 %5444 }
 0x77d   :  { %10120 = vrcp.f32 %v5445_v28 }
 0x77e   :  { %10122 = vrcp.f32 %v12334_v19  ;;  %v5518_v19 = vrot.slane %v12396_v26, 4 }
 0x77f   :  { %10124 = vrcp.f32 %v12389_v24 }
 0x780   :  { %v6147_v25 = vpop.permute.xlu0 %6146 }
 0x781   :  { %v6149_v58 = vrot.slane %v6147_v25, 4 }
 0x783   :  { %v8819_v53 = vcombine.low %v6148_v16, %v6149_v58 }
 0x784   :  { %v6200_v0 = vpop.permute.xlu0 %6199 }
 0x785   :  { %v6202_v35 = vrot.slane %v6200_v0, 4 }
 0x787   :  { %v12462_v29 = vpop.eup %10120  ;;  %v8821_v60 = vcombine.low %v6201_v61, %v6202_v35 }
 0x788   :  { %v5488_v17 = vmul.f32 %v12462_v29, %v12223_v55  ;;  %v5457_v20 = vrot.slane %v12462_v29, 1  ;;  %v6253_v32 = vpop.permute.xlu0 %6252  ;;  %v5458_v38 = vrot.slane %v12462_v29, 2  ;;  %v5459_v9 = vrot.slane %v12462_v29, 3 }
 0x789   :  { %v6255_v54 = vrot.slane %v6253_v32, 4  ;;  %v5460_v62 = vrot.slane %v12462_v29, 4  ;;  %v5461_v12 = vrot.slane %v12462_v29, 5  ;;  %v5462_v5 = vrot.slane %v12462_v29, 6 }
 0x78a   :  { %v5553_v52 = vpack.c.bf16 %v5488_v17, %v5488_v17  ;;  %v5489_v42 = vmul.f32 %v12213_v49, %v5457_v20  ;;  %v5490_v30 = vmul.f32 %v12218_v3, %v5458_v38  ;;  %v12478_v49 = vpop.permute.xlu1 %6605  ;;  %v5491_v18 = vmul.f32 %v12228_v59, %v5459_v9 }
 0x78b   :  { %v8823_v56 = vcombine.low %v6254_v27, %v6255_v54  ;;  %v5492_v13 = vmul.f32 %v12233_v50, %v5460_v62  ;;  %v5493_v23 = vmul.f32 %v12239_v7, %v5461_v12  ;;  %v5463_v4 = vrot.slane %v12462_v29, 7  ;;  %v13365_v54 = vld [vmem:[#allocation22_spill] sm:$0xff] }
 0x78c   :  { %9713 = vmatmul.mubr.msk.bf16.vlgmr.msra.gmra.mrb[184].mxu1 %vm1069_vm2, %v5553_v52  ;;  %v5554_v44 = vpack.c.bf16 %v5489_v42, %v5489_v42  ;;  %v6359_v55 = vpop.permute.xlu0 %6358  ;;  %v5526_v34 = vrot.slane %v5489_v42, 7  ;;  %v5528_v3 = vrot.slane %v5490_v30, 6  ;;  %v5555_v63 = vpack.c.bf16 %v5490_v30, %v5490_v30  ;;  %v10123_v42 = vpop.eup %10122 }
 0x78d   :  { %9723 = vmatpush3.bf16.msra.mxu1 %v8817_v37  ;;  %9724 = vmatprep.mubr.msk.bf16.mxu1 %vm10250_vm1, %v13264_v40  ;;  %v5556_v2 = vpack.c.bf16 %v5491_v18, %v5491_v18  ;;  %v5530_v46 = vrot.slane %v5491_v18, 5  ;;  %v6361_v41 = vrot.slane %v6359_v55, 4  ;;  %v5532_v28 = vrot.slane %v5492_v13, 4  ;;  %v10125_v30 = vpop.eup %10124 }
 0x78e   :  { %9719 = vmatmul.mubr.msk.bf16.vlgmr.msra.gmra.mrb[188].mxu0 %vm1069_vm2, %v5554_v44  ;;  %9734 = vmatprep.subr.bf16.mxu1 %v13264_v40  ;;  %v5527_v22 = vsel %vm1109_vm3, %v5526_v34, %v5488_v17  ;;  %v12490_v57 = vpop.permute.xlu1 %6655  ;;  %v5557_v47 = vpack.c.bf16 %v5492_v13, %v5492_v13  ;;  %v5494_v11 = vmul.f32 %v12243_v39, %v5462_v5  ;;  %v5534_v58 = vrot.slane %v5493_v23, 3 }
 0x78f   :  { %9729 = vmatpush3.bf16.msra.mxu0 %v8819_v53  ;;  %9730 = vmatprep.mubr.msk.bf16.mxu0 %vm10250_vm1, %v13264_v40  ;;  %v5529_v1 = vsel %vm1112_vm4, %v5528_v3, %v5527_v22  ;;  %v8827_v7 = vcombine.low %v6360_v8, %v6361_v41  ;;  %v5519_v17 = vsel %vm1118_vm6, %v5518_v19, %v12378_v15  ;;  %v5520_v29 = vrot.slane %v12404_v14, 3 }
 0x790   :  { %9740 = vmatprep.subr.bf16.mxu0 %v13264_v40  ;;  %v6306_v31 = vpop.permute.xlu0 %6305  ;;  %v5531_v50 = vsel %vm1115_vm5, %v5530_v46, %v5529_v1  ;;  %v5558_v24 = vpack.c.bf16 %v5493_v23, %v5493_v23  ;;  %v5495_v26 = vmul.f32 %v12249_v10, %v5463_v4  ;;  %v5536_v32 = vrot.slane %v5494_v11, 2 }
 0x791   :  { %v6308_v6 = vrot.slane %v6306_v31, 4  ;;  %v5533_v0 = vsel %vm1118_vm6, %v5532_v28, %v5531_v50  ;;  %v5521_v15 = vsel %vm1121_vm7, %v5520_v29, %v5519_v17  ;;  %v5522_v14 = vrot.slane %v12424_v33, 2 }
 0x792   :  { %v12512_v16 = vpop.permute.xlu1 %6705  ;;  %v5535_v39 = vsel %vm1121_vm7, %v5534_v58, %v5533_v0  ;;  %v5538_v37 = vrot.slane %v5495_v26, 1  ;;  %v5559_v53 = vpack.c.bf16 %v5494_v11, %v5494_v11  ;;  %v5524_v9 = vrot.slane %v12432_v51, 1 }
 0x793   :  { %v8825_v36 = vcombine.low %v6307_v43, %v6308_v6  ;;  %v5537_v38 = vsel %vm1124_vm8, %v5536_v32, %v5535_v39  ;;  %v5523_v44 = vsel %vm1124_vm8, %v5522_v14, %v5521_v15  ;;  %v5261_v34 = vmul.f32 %v10123_v42, %v12152_v21 }
 0x794   :  { %9725 = vmatmul.mubr.msk.bf16.vlgmr.msra.gmra.mrb[188].mxu1 %vm1069_vm2, %v5555_v63  ;;  %v6505_v59 = vpop.permute.xlu0 %6504  ;;  %v5539_v55 = vsel %vm1127_vm9, %v5538_v37, %v5537_v38  ;;  %v5560_v33 = vpack.c.bf16 %v5495_v26, %v5495_v26  ;;  %v5525_v27 = vsel %vm1127_vm9, %v5524_v9, %v5523_v44  ;;  %v5260_v3 = vmul.f32 %v10125_v30, %v13365_v54 }
 0x795   :  { %9735 = vmatpush3.bf16.msra.mxu1 %v8821_v60  ;;  %9736 = vmatprep.mubr.msk.bf16.mxu1 %vm10250_vm1, %v13264_v40  ;;  %v6510_v35 = vsel %vm61_vm0, %v6505_v59, 0  ;;  %v5543_v51 = vadd.f32 %v5539_v55, %v5261_v34  ;;  %v6561_v22 = vsel %vm61_vm0, %v12468_v45, 0  ;;  %v6611_v60 = vsel %vm61_vm0, %v12478_v49, 0 }
 0x796   :  { %9731 = vmatmul.mubr.msk.bf16.vlgmr.msra.gmra.mrb[192].mxu0 %vm1069_vm2, %v5556_v2  ;;  %9746 = vmatprep.subr.bf16.mxu1 %v13264_v40  ;;  %v6756_v52 = vpop.permute.xlu1 %6755  ;;  %v6661_v49 = vsel %vm61_vm0, %v12490_v57, 0  ;;  %v6711_v12 = vsel %vm61_vm0, %v12512_v16, 0 }
 0x797   :  { %9741 = vmatpush3.bf16.msra.mxu0 %v8823_v56  ;;  %9742 = vmatprep.mubr.msk.bf16.mxu0 %vm10250_vm1, %v13264_v40  ;;  %v6761_v13 = vsel %vm61_vm0, %v6756_v52, 0 }
 0x798   :  { %9752 = vmatprep.subr.bf16.mxu0 %v13264_v40  ;;  %v12505_v25 = vpop.permute.xlu0 %6502 }
 0x79a   :  { %v6806_v21 = vpop.permute.xlu1 %6805 }
 0x79b   :  { %v6811_v59 = vsel %vm61_vm0, %v6806_v21, 0 }
 0x79c   :  { %9737 = vmatmul.mubr.msk.bf16.vlgmr.msra.gmra.mrb[192].mxu1 %vm1069_vm2, %v5557_v47  ;;  %v6554_v20 = vpop.permute.xlu0 %6553 }
 0x79d   :  { %9747 = vmatpush3.bf16.msra.mxu1 %v8825_v36  ;;  %9748 = vmatprep.mubr.msk.bf16.mxu1 %vm10250_vm1, %v13264_v40 }
 0x79e   :  { %9743 = vmatmul.mubr.msk.bf16.vlgmr.msra.gmra.mrb[196].mxu0 %vm1069_vm2, %v5558_v24  ;;  %9758 = vmatprep.subr.bf16.mxu1 %v13264_v40  ;;  %v6856_v62 = vpop.permute.xlu1 %6855 }
 0x79f   :  { %9753 = vmatpush3.bf16.msra.mxu0 %v8827_v7  ;;  %9754 = vmatprep.mubr.msk.bf16.mxu0 %vm10250_vm1, %v13264_v40  ;;  %v6861_v6 = vsel %vm61_vm0, %v6856_v62, 0 }
 0x7a0   :  { %9764 = vmatprep.subr.bf16.mxu0 %v13264_v40  ;;  %v6604_v10 = vpop.permute.xlu0 %6603 }
 0x7a2   :  { %v6906_v45 = vpop.permute.xlu1 %6905 }
 0x7a3   :  { %v6911_v8 = vsel %vm61_vm0, %v6906_v45, 0 }
 0x7a4   :  { %9749 = vmatmul.mubr.msk.bf16.vlgmr.msra.gmra.mrb[196].mxu1 %vm1069_vm2, %v5559_v53  ;;  %v6654_v61 = vpop.permute.xlu0 %6653 }
 0x7a5   :  { %9759 = vmatpush3.bf16.msra.mxu1 %v12460_v48  ;;  %9760 = vmatprep.mubr.msk.bf16.mxu1 %vm10250_vm1, %v13264_v40  ;;  %v5542_v48 = vadd.f32 %v5525_v27, %v5260_v3 }
 0x7a6   :  { %9755 = vmatmul.mubr.msk.bf16.vlgmr.msra.gmra.mrb[200].mxu0 %vm1069_vm2, %v5560_v33  ;;  %9770 = vmatprep.subr.bf16.mxu1 %v13264_v40  ;;  %v6956_v1 = vpop.permute.xlu1 %6955 }
 0x7a7   :  { %9766 = vmatprep.mubr.msk.bf16.mxu0 %vm10250_vm1, %v13264_v40  ;;  %v5544_v31 = vpack.c.bf16 %v5543_v51, %v5542_v48  ;;  %v6961_v41 = vsel %vm61_vm0, %v6956_v1, 0 }
 0x7a8   :  { %9765 = vmatpush3.bf16.xpose.msra.mxu0 %v6510_v35  ;;  %v6704_v18 = vpop.permute.xlu0 %6703 }
 0x7a9   :  { %9776 = vmatprep.subr.bf16.mxu0 %v13264_v40 }
 0x7aa   :  { %v7006_v57 = vpop.permute.xlu1 %7005 }
 0x7ab   :  { %v7011_v28 = vsel %vm61_vm0, %v7006_v57, 0 }
 0x7ac   :  { %9761 = vmatmul.mubr.msk.bf16.vlgmr.msra.gmra.mrb[200].mxu1 %vm1069_vm2, %v5544_v31  ;;  %v6754_v63 = vpop.permute.xlu0 %6753 }
 0x7ad   :  { %9772 = vmatprep.mubr.msk.bf16.mxu1 %vm10250_vm1, %v13264_v40 }
 0x7ae   :  { %9771 = vmatpush3.bf16.xpose.msra.mxu1 %v6561_v22  ;;  %v7056_v43 = vpop.permute.xlu1 %7055 }
 0x7af   :  { %9767 = vmatmul.mubr.msk.bf16.vlgmr.msra.gmra.mrb[204].mxu0 %vm61_vm0, %v12505_v25  ;;  %9782 = vmatprep.subr.bf16.mxu1 %v13264_v40  ;;  %v7061_v4 = vsel %vm61_vm0, %v7056_v43, 0 }
 0x7b0   :  { %9777 = vmatpush3.bf16.xpose.msra.mxu0 %v6611_v60  ;;  %9778 = vmatprep.mubr.msk.bf16.mxu0 %vm10250_vm1, %v13264_v40  ;;  %v6804_v56 = vpop.permute.xlu0 %6803 }
 0x7b1   :  { %9788 = vmatprep.subr.bf16.mxu0 %v13264_v40 }
 0x7b2   :  { %v7106_v50 = vpop.permute.xlu1 %7105 }
 0x7b3   :  { %v7111_v19 = vsel %vm61_vm0, %v7106_v50, 0 }
 0x7b4   :  { %v6854_v2 = vpop.permute.xlu0 %6853 }
 0x7b5   :  { %9773 = vmatmul.mubr.msk.bf16.vlgmr.msra.gmra.mrb[204].mxu1 %vm61_vm0, %v6554_v20 }
 0x7b6   :  { %9783 = vmatpush3.bf16.xpose.msra.mxu1 %v6661_v49  ;;  %9784 = vmatprep.mubr.msk.bf16.mxu1 %vm10250_vm1, %v13264_v40  ;;  %v7156_v25 = vpop.permute.xlu1 %7155 }
 0x7b7   :  { %9779 = vmatmul.mubr.msk.bf16.vlgmr.msra.gmra.mrb[208].mxu0 %vm61_vm0, %v6604_v10  ;;  %9794 = vmatprep.subr.bf16.mxu1 %v13264_v40  ;;  %v7161_v11 = vsel %vm61_vm0, %v7156_v25, 0 }
 0x7b8   :  { %9789 = vmatpush3.bf16.xpose.msra.mxu0 %v6711_v12  ;;  %9790 = vmatprep.mubr.msk.bf16.mxu0 %vm10250_vm1, %v13264_v40  ;;  %v6904_v46 = vpop.permute.xlu0 %6903 }
 0x7b9   :  { %9800 = vmatprep.subr.bf16.mxu0 %v13264_v40 }
 0x7ba   :  { %v7206_v0 = vpop.permute.xlu1 %7205 }
 0x7bb   :  { %v7211_v7 = vsel %vm61_vm0, %v7206_v0, 0 }
 0x7bc   :  { %v6954_v5 = vpop.permute.xlu0 %6953 }
 0x7bd   :  { %9785 = vmatmul.mubr.msk.bf16.vlgmr.msra.gmra.mrb[208].mxu1 %vm61_vm0, %v6654_v61 }
 0x7be   :  { %9795 = vmatpush3.bf16.xpose.msra.mxu1 %v6761_v13  ;;  %9796 = vmatprep.mubr.msk.bf16.mxu1 %vm10250_vm1, %v13264_v40  ;;  %v7256_v16 = vpop.permute.xlu1 %7255 }
 0x7bf   :  { %9791 = vmatmul.mubr.msk.bf16.vlgmr.msra.gmra.mrb[212].mxu0 %vm61_vm0, %v6704_v18  ;;  %9806 = vmatprep.subr.bf16.mxu1 %v13264_v40  ;;  %v7261_v24 = vsel %vm61_vm0, %v7256_v16, 0 }
 0x7c0   :  { %9801 = vmatpush3.bf16.xpose.msra.mxu0 %v6811_v59  ;;  %9802 = vmatprep.mubr.msk.bf16.mxu0 %vm10250_vm1, %v13264_v40  ;;  %v7004_v23 = vpop.permute.xlu0 %7003 }
 0x7c1   :  { %9812 = vmatprep.subr.bf16.mxu0 %v13264_v40 }
 0x7c2   :  { %v7306_v17 = vpop.permute.xlu1 %7305 }
 0x7c3   :  { %v7311_v29 = vsel %vm61_vm0, %v7306_v17, 0 }
 0x7c4   :  { %v7054_v36 = vpop.permute.xlu0 %7053 }
 0x7c5   :  { %9797 = vmatmul.mubr.msk.bf16.vlgmr.msra.gmra.mrb[212].mxu1 %vm61_vm0, %v6754_v63 }
 0x7c6   :  { %9807 = vmatpush3.bf16.xpose.msra.mxu1 %v6861_v6  ;;  %9808 = vmatprep.mubr.msk.bf16.mxu1 %vm10250_vm1, %v13264_v40  ;;  %v7304_v39 = vpop.permute.xlu1 %7303 }
 0x7c7   :  { %9803 = vmatmul.mubr.msk.bf16.vlgmr.msra.gmra.mrb[216].mxu0 %vm61_vm0, %v6804_v56  ;;  %9818 = vmatprep.subr.bf16.mxu1 %v13264_v40 }
 0x7c8   :  { %9813 = vmatpush3.bf16.xpose.msra.mxu0 %v6911_v8  ;;  %9814 = vmatprep.mubr.msk.bf16.mxu0 %vm10250_vm1, %v13264_v40  ;;  %v7104_v47 = vpop.permute.xlu0 %7103 }
 0x7c9   :  { %9824 = vmatprep.subr.bf16.mxu0 %v13264_v40 }
 0x7cc   :  { %v7154_v58 = vpop.permute.xlu0 %7153 }
 0x7cd   :  { %9809 = vmatmul.mubr.msk.bf16.vlgmr.msra.gmra.mrb[216].mxu1 %vm61_vm0, %v6854_v2 }
 0x7ce   :  { %9819 = vmatpush3.bf16.xpose.msra.mxu1 %v6961_v41  ;;  %9820 = vmatprep.mubr.msk.bf16.mxu1 %vm10250_vm1, %v13264_v40 }
 0x7cf   :  { %9815 = vmatmul.mubr.msk.bf16.vlgmr.msra.gmra.mrb[220].mxu0 %vm61_vm0, %v6904_v46  ;;  %9830 = vmatprep.subr.bf16.mxu1 %v13264_v40 }
 0x7d0   :  { %9825 = vmatpush3.bf16.xpose.msra.mxu0 %v7011_v28  ;;  %9826 = vmatprep.mubr.msk.bf16.mxu0 %vm10250_vm1, %v13264_v40  ;;  %v7204_v20 = vpop.permute.xlu0 %7203  ;;  %v7675_v28 = vpop.permute.xlu1 %7674 }
 0x7d1   :  { %9836 = vmatprep.subr.bf16.mxu0 %v13264_v40  ;;  %v7678_v25 = vrot.slane %v7675_v28, 4 }
 0x7d4   :  { %v7254_v26 = vpop.permute.xlu0 %7253 }
 0x7d5   :  { %9821 = vmatmul.mubr.msk.bf16.vlgmr.msra.gmra.mrb[220].mxu1 %vm61_vm0, %v6954_v5 }
 0x7d6   :  { %9831 = vmatpush3.bf16.xpose.msra.mxu1 %v7061_v4  ;;  %9832 = vmatprep.mubr.msk.bf16.mxu1 %vm10250_vm1, %v13264_v40 }
 0x7d7   :  { %9827 = vmatmul.mubr.msk.bf16.vlgmr.msra.gmra.mrb[224].mxu0 %vm61_vm0, %v7004_v23  ;;  %9842 = vmatprep.subr.bf16.mxu1 %v13264_v40 }
 0x7d8   :  { %9837 = vmatpush3.bf16.xpose.msra.mxu0 %v7111_v19  ;;  %9838 = vmatprep.mubr.msk.bf16.mxu0 %vm10250_vm1, %v13264_v40  ;;  %v7728_v19 = vpop.permute.xlu1 %7727 }
 0x7d9   :  { %9848 = vmatprep.subr.bf16.mxu0 %v13264_v40 }
 0x7dc   :  { %v7730_v16 = vpop.permute.xlu1 %7729 }
 0x7dd   :  { %9833 = vmatmul.mubr.msk.bf16.vlgmr.msra.gmra.mrb[224].mxu1 %vm61_vm0, %v7054_v36  ;;  %v7677_v36 = vpop.permute.xlu0 %7676 }
 0x7de   :  { %9843 = vmatpush3.bf16.xpose.msra.mxu1 %v7161_v11  ;;  %9844 = vmatprep.mubr.msk.bf16.mxu1 %vm10250_vm1, %v13264_v40  ;;  %v7679_v4 = vrot.slane %v7677_v36, 4  ;;  %v7731_v11 = vrot.slane %v7728_v19, 4 }
 0x7df   :  { %9839 = vmatmul.mubr.msk.bf16.vlgmr.msra.gmra.mrb[228].mxu0 %vm61_vm0, %v7104_v47  ;;  %9854 = vmatprep.subr.bf16.mxu1 %v13264_v40 }
 0x7e0   :  { %9849 = vmatpush3.bf16.xpose.msra.mxu0 %v7211_v7  ;;  %9850 = vmatprep.mubr.msk.bf16.mxu0 %vm10250_vm1, %v13264_v40  ;;  %v8847_v0 = vcombine.low %v7678_v25, %v7679_v4  ;;  %v7732_v7 = vrot.slane %v7730_v16, 4 }
 0x7e1   :  { %9860 = vmatprep.subr.bf16.mxu0 %v13264_v40  ;;  %v12646_v47 = vpop.permute.xlu0 %7782 }
 0x7e2   :  { %v8849_v17 = vcombine.low %v7731_v11, %v7732_v7 }
 0x7e5   :  { %9845 = vmatmul.mubr.msk.bf16.vlgmr.msra.gmra.mrb[228].mxu1 %vm61_vm0, %v7154_v58  ;;  %v7834_v58 = vpop.permute.xlu0 %7833 }
 0x7e6   :  { %9855 = vmatpush3.bf16.xpose.msra.mxu1 %v7261_v24  ;;  %9856 = vmatprep.mubr.msk.bf16.mxu1 %vm10250_vm1, %v13264_v40  ;;  %v7837_v24 = vrot.slane %v7834_v58, 4 }
 0x7e7   :  { %9851 = vmatmul.mubr.msk.bf16.vlgmr.msra.gmra.mrb[232].mxu0 %vm61_vm0, %v7204_v20  ;;  %9866 = vmatprep.subr.bf16.mxu1 %v13264_v40 }
 0x7e8   :  { %9861 = vmatpush3.bf16.xpose.msra.mxu0 %v7311_v29  ;;  %9862 = vmatprep.mubr.msk.bf16.mxu0 %vm10250_vm1, %v13264_v40 }
 0x7e9   :  { %9872 = vmatprep.subr.bf16.mxu0 %v13264_v40  ;;  %v7836_v20 = vpop.permute.xlu0 %7835 }
 0x7ea   :  { %v7838_v29 = vrot.slane %v7836_v20, 4 }
 0x7ed   :  { %9857 = vmatmul.mubr.msk.bf16.vlgmr.msra.gmra.mrb[232].mxu1 %vm61_vm0, %v7254_v26  ;;  %v12650_v26 = vcombine.low %v7837_v24, %v7838_v29 }
 0x7ee   :  { %9868 = vmatprep.mubr.msk.bf16.mxu1 %vm10250_vm1, %v13264_v40  ;;  %9867 = vmatpush3.bf16.msra.mxu1 %v8847_v0 }
 0x7ef   :  { %9863 = vmatmul.mubr.msk.bf16.vlgmr.msra.gmra.mrb[236].mxu0 %vm61_vm0, %v7304_v39  ;;  %9878 = vmatprep.subr.bf16.mxu1 %v13264_v40  ;;  %v7887_v39 = vpop.permute.xlu0 %7886 }
 0x7f0   :  { %9874 = vmatprep.mubr.msk.bf16.mxu0 %vm10250_vm1, %v13264_v40  ;;  %9873 = vmatpush3.bf16.msra.mxu0 %v8849_v17 }
 0x7f1   :  { %9884 = vmatprep.subr.bf16.mxu0 %v13264_v40 }
 0x82a   :  { %v5608_v32 = vpop.f32.mrb[168].mxu1 }
 0x82b   :  { %v9666_v15 = vpop.f32.mrb[169].mxu1 }
 0x82c   :  { %v5611_v14 = vpop.f32.mrb[170].mxu1  ;;  %v5661_v38 = vpop.f32.mrb[172].mxu0 }
 0x82d   :  { %v6428_v10 = vrot.slane %v5661_v38, 7  ;;  %v9667_v52 = vpop.f32.mrb[171].mxu1  ;;  %v9672_v42 = vpop.f32.mrb[173].mxu0 }
 0x82e   :  { %v5664_v37 = vpop.f32.mrb[174].mxu0  ;;  %v7889_v15 = vpop.permute.xlu0 %7888 }
 0x82f   :  { %v6429_v53 = vsel %vm1109_vm3, %v6428_v10, %v5608_v32  ;;  %v9673_v44 = vpop.f32.mrb[175].mxu0  ;;  %v7890_v32 = vrot.slane %v7887_v39, 4  ;;  %v7891_v14 = vrot.slane %v7889_v15, 4 }
 0x831   :  { %v12652_v10 = vcombine.low %v7890_v32, %v7891_v14 }
 0x832   :  { %v5714_v30 = vpop.f32.mrb[172].mxu1 }
 0x833   :  { %v6430_v9 = vrot.slane %v5714_v30, 6  ;;  %v9678_v55 = vpop.f32.mrb[173].mxu1 }
 0x834   :  { %v5717_v34 = vpop.f32.mrb[174].mxu1  ;;  %v5767_v33 = vpop.f32.mrb[176].mxu0 }
 0x835   :  { %v6431_v61 = vsel %vm1112_vm4, %v6430_v9, %v6429_v53  ;;  %v6432_v35 = vrot.slane %v5767_v33, 5  ;;  %v9679_v27 = vpop.f32.mrb[175].mxu1  ;;  %v9684_v54 = vpop.f32.mrb[177].mxu0 }
 0x836   :  { %v5770_v3 = vpop.f32.mrb[178].mxu0 }
 0x837   :  { %v6433_v51 = vsel %vm1115_vm5, %v6432_v35, %v6431_v61  ;;  %v9685_v21 = vpop.f32.mrb[179].mxu0 }
 0x83a   :  { %v5820_v48 = vpop.f32.mrb[176].mxu1 }
 0x83b   :  { %v6434_v18 = vrot.slane %v5820_v48, 4  ;;  %v9690_v31 = vpop.f32.mrb[177].mxu1 }
 0x83c   :  { %v5823_v62 = vpop.f32.mrb[178].mxu1  ;;  %v5873_v22 = vpop.f32.mrb[180].mxu0 }
 0x83d   :  { %v6435_v60 = vsel %vm1118_vm6, %v6434_v18, %v6433_v51  ;;  %v6436_v63 = vrot.slane %v5873_v22, 3  ;;  %v9691_v45 = vpop.f32.mrb[179].mxu1  ;;  %v9696_v56 = vpop.f32.mrb[181].mxu0 }
 0x83e   :  { %v5876_v49 = vpop.f32.mrb[182].mxu0 }
 0x83f   :  { %v6437_v12 = vsel %vm1121_vm7, %v6436_v63, %v6435_v60  ;;  %v9697_v1 = vpop.f32.mrb[183].mxu0 }
 0x842   :  { %v5926_v2 = vpop.f32.mrb[180].mxu1 }
 0x843   :  { %v6438_v13 = vrot.slane %v5926_v2, 2  ;;  %v9702_v59 = vpop.f32.mrb[181].mxu1 }
 0x844   :  { %v5929_v57 = vpop.f32.mrb[182].mxu1  ;;  %v5979_v46 = vpop.f32.mrb[184].mxu0 }
 0x845   :  { %v6440_v43 = vrot.slane %v5979_v46, 1  ;;  %v9703_v6 = vpop.f32.mrb[183].mxu1  ;;  %v9708_v8 = vpop.f32.mrb[185].mxu0  ;;  %v6439_v5 = vsel %vm1124_vm8, %v6438_v13, %v6437_v12 }
 0x846   :  { %v5982_v50 = vpop.f32.mrb[186].mxu0 }
 0x847   :  { %v9709_v41 = vpop.f32.mrb[187].mxu0  ;;  %v12644_v23 = vsel %vm1127_vm9, %v6440_v43, %v6439_v5 }
 0x85f   :  { %v6032_v38 = vpop.f32.mrb[184].mxu1 }
 0x860   :  { %v9714_v52 = vpop.f32.mrb[185].mxu1 }
 0x861   :  { %v6035_v42 = vpop.f32.mrb[186].mxu1  ;;  %v6085_v37 = vpop.f32.mrb[188].mxu0 }
 0x862   :  { %v6442_v53 = vrot.slane %v6085_v37, 7  ;;  %v9715_v44 = vpop.f32.mrb[187].mxu1  ;;  %v9720_v30 = vpop.f32.mrb[189].mxu0 }
 0x863   :  { %v6088_v9 = vpop.f32.mrb[190].mxu0 }
 0x864   :  { %v6443_v55 = vsel %vm1109_vm3, %v6442_v53, %v6032_v38  ;;  %v9721_v34 = vpop.f32.mrb[191].mxu0 }
 0x867   :  { %v6138_v33 = vpop.f32.mrb[188].mxu1 }
 0x868   :  { %v6444_v61 = vrot.slane %v6138_v33, 6  ;;  %v9726_v35 = vpop.f32.mrb[189].mxu1 }
 0x869   :  { %v6141_v27 = vpop.f32.mrb[190].mxu1  ;;  %v6191_v54 = vpop.f32.mrb[192].mxu0 }
 0x86a   :  { %v6445_v3 = vsel %vm1112_vm4, %v6444_v61, %v6443_v55  ;;  %v6446_v51 = vrot.slane %v6191_v54, 5  ;;  %v9727_v21 = vpop.f32.mrb[191].mxu1  ;;  %v9732_v48 = vpop.f32.mrb[193].mxu0 }
 0x86b   :  { %v6194_v18 = vpop.f32.mrb[194].mxu0 }
 0x86c   :  { %v6447_v31 = vsel %vm1115_vm5, %v6446_v51, %v6445_v3  ;;  %v9733_v62 = vpop.f32.mrb[195].mxu0 }
 0x86f   :  { %v6244_v22 = vpop.f32.mrb[192].mxu1 }
 0x870   :  { %v6448_v60 = vrot.slane %v6244_v22, 4  ;;  %v9738_v63 = vpop.f32.mrb[193].mxu1 }
 0x871   :  { %v6247_v45 = vpop.f32.mrb[194].mxu1  ;;  %v6297_v56 = vpop.f32.mrb[196].mxu0 }
 0x872   :  { %v6449_v49 = vsel %vm1118_vm6, %v6448_v60, %v6447_v31  ;;  %v6450_v12 = vrot.slane %v6297_v56, 3  ;;  %v9739_v1 = vpop.f32.mrb[195].mxu1  ;;  %v9744_v2 = vpop.f32.mrb[197].mxu0 }
 0x873   :  { %v6300_v13 = vpop.f32.mrb[198].mxu0 }
 0x874   :  { %v6451_v59 = vsel %vm1121_vm7, %v6450_v12, %v6449_v49  ;;  %v9745_v57 = vpop.f32.mrb[199].mxu0 }
 0x877   :  { %v6350_v46 = vpop.f32.mrb[196].mxu1 }
 0x878   :  { %v6452_v43 = vrot.slane %v6350_v46, 2  ;;  %v9750_v6 = vpop.f32.mrb[197].mxu1 }
 0x879   :  { %v6353_v8 = vpop.f32.mrb[198].mxu1  ;;  %v6403_v5 = vpop.f32.mrb[200].mxu0 }
 0x87a   :  { %v6454_v50 = vrot.slane %v6403_v5, 1  ;;  %v9751_v41 = vpop.f32.mrb[199].mxu1  ;;  %v9756_v28 = vpop.f32.mrb[201].mxu0  ;;  %v6453_v25 = vsel %vm1124_vm8, %v6452_v43, %v6451_v59 }
 0x87b   :  { %v6406_v36 = vpop.f32.mrb[202].mxu0 }
 0x87c   :  { %v9757_v4 = vpop.f32.mrb[203].mxu0  ;;  %v6455_v19 = vsel %vm1127_vm9, %v6454_v50, %v6453_v25 }
 0x87f   :  { %v6495_v0 = vpop.f32.mrb[200].mxu1 }
 0x880   :  { %v12662_v11 = vadd.f32 %v6495_v0, %v12644_v23  ;;  %v9762_v16 = vpop.f32.mrb[201].mxu1 }
 0x881   :  { %v6498_v7 = vpop.f32.mrb[202].mxu1 }
 0x882   :  { %v12664_v58 = vadd.f32 %v6498_v7, %v6455_v19  ;;  %v12666_v17 = vpop.f32.mrb[204].mxu0  ;;  %v9763_v24 = vpop.f32.mrb[203].mxu1 }
 0x883   :  { %v9768_v20 = vpop.f32.mrb[205].mxu0  ;;  %v7353_v29 = vsel %vm1069_vm2, %v12666_v17, -inf }
 0x884   :  { %7354 = vmax.xlane.f32.xlu0 %v7353_v29  ;;  %v12670_v39 = vpop.f32.mrb[206].mxu0 }
 0x885   :  { %v9769_v32 = vpop.f32.mrb[207].mxu0  ;;  %v7356_v15 = vsel %vm1069_vm2, %v12670_v39, -inf }
 0x888   :  { %v12674_v23 = vpop.f32.mrb[204].mxu1  ;;  %7357 = vmax.xlane.f32.xlu0 %v7356_v15 }
 0x889   :  { %v9774_v14 = vpop.f32.mrb[205].mxu1 }
 0x88a   :  { %v6600_v38 = vpop.f32.mrb[206].mxu1  ;;  %v12676_v52 = vpop.f32.mrb[208].mxu0 }
 0x88b   :  { %v7391_v42 = vrot.slane %v12676_v52, 7  ;;  %v9775_v37 = vpop.f32.mrb[207].mxu1  ;;  %v9780_v53 = vpop.f32.mrb[209].mxu0 }
 0x88c   :  { %v6650_v44 = vpop.f32.mrb[210].mxu0 }
 0x88d   :  { %v7392_v30 = vsel %vm1109_vm3, %v7391_v42, %v12674_v23  ;;  %v9781_v9 = vpop.f32.mrb[211].mxu0 }
 0x890   :  { %v12681_v55 = vpop.f32.mrb[208].mxu1 }
 0x891   :  { %v7393_v34 = vrot.slane %v12681_v55, 6  ;;  %v9786_v33 = vpop.f32.mrb[209].mxu1 }
 0x892   :  { %v6700_v61 = vpop.f32.mrb[210].mxu1  ;;  %v12684_v35 = vpop.f32.mrb[212].mxu0 }
 0x893   :  { %v7394_v27 = vsel %vm1112_vm4, %v7393_v34, %v7392_v30  ;;  %v7395_v54 = vrot.slane %v12684_v35, 5  ;;  %v9787_v3 = vpop.f32.mrb[211].mxu1  ;;  %v9792_v51 = vpop.f32.mrb[213].mxu0 }
 0x894   :  { %v6750_v21 = vpop.f32.mrb[214].mxu0 }
 0x895   :  { %v7396_v48 = vsel %vm1115_vm5, %v7395_v54, %v7394_v27  ;;  %v9793_v18 = vpop.f32.mrb[215].mxu0 }
 0x898   :  { %v12689_v31 = vpop.f32.mrb[212].mxu1 }
 0x899   :  { %v7397_v62 = vrot.slane %v12689_v31, 4  ;;  %v9798_v22 = vpop.f32.mrb[213].mxu1 }
 0x89a   :  { %v6800_v60 = vpop.f32.mrb[214].mxu1  ;;  %v12692_v63 = vpop.f32.mrb[216].mxu0 }
 0x89b   :  { %v7398_v45 = vsel %vm1118_vm6, %v7397_v62, %v7396_v48  ;;  %v7399_v56 = vrot.slane %v12692_v63, 3  ;;  %v9799_v49 = vpop.f32.mrb[215].mxu1  ;;  %v9804_v12 = vpop.f32.mrb[217].mxu0 }
 0x89c   :  { %v6850_v1 = vpop.f32.mrb[218].mxu0 }
 0x89d   :  { %v7400_v2 = vsel %vm1121_vm7, %v7399_v56, %v7398_v45  ;;  %v9805_v13 = vpop.f32.mrb[219].mxu0  ;;  %v10226_v1 = vld [vmem:[%s13133_s2 + $0x58] sm:$0xff] }
 0x8a0   :  { %v12697_v59 = vpop.f32.mrb[216].mxu1 }
 0x8a1   :  { %v7401_v57 = vrot.slane %v12697_v59, 2  ;;  %v9810_v46 = vpop.f32.mrb[217].mxu1 }
 0x8a2   :  { %v6900_v43 = vpop.f32.mrb[218].mxu1  ;;  %v12700_v6 = vpop.f32.mrb[220].mxu0  ;;  %v10227_v46 = vld [vmem:[%s13133_s2 + $0x60] sm:$0xff] }
 0x8a3   :  { %v7403_v8 = vrot.slane %v12700_v6, 1  ;;  %v9811_v5 = vpop.f32.mrb[219].mxu1  ;;  %v9816_v50 = vpop.f32.mrb[221].mxu0  ;;  %v7402_v41 = vsel %vm1124_vm8, %v7401_v57, %v7400_v2 }
 0x8a4   :  { %v6950_v28 = vpop.f32.mrb[222].mxu0 }
 0x8a5   :  { %v9817_v25 = vpop.f32.mrb[223].mxu0  ;;  %v7404_v36 = vsel %vm1127_vm9, %v7403_v8, %v7402_v41 }
 0x8a6   :  { %v7421_v4 = vsel %vm1069_vm2, %v7404_v36, -inf }
 0x8a7   :  { %7422 = vmax.xlane.f32.xlu0 %v7421_v4 }
 0x8a8   :  { %v12706_v19 = vpop.f32.mrb[220].mxu1 }
 0x8a9   :  { %v9822_v0 = vpop.f32.mrb[221].mxu1 }
 0x8aa   :  { %v12708_v16 = vpop.f32.mrb[224].mxu0  ;;  %v7000_v7 = vpop.f32.mrb[222].mxu1  ;;  %v10228_v0 = vld [vmem:[%s13133_s2 + $0x68] sm:$0xff] }
 0x8ab   :  { %v7405_v24 = vrot.slane %v12708_v16, 7  ;;  %v9828_v20 = vpop.f32.mrb[225].mxu0  ;;  %v9823_v29 = vpop.f32.mrb[223].mxu1 }
 0x8ac   :  { %v7050_v32 = vpop.f32.mrb[226].mxu0  ;;  %v10230_v20 = vld [vmem:[%s13133_s2 + $0x80] sm:$0xff]  ;;  %v10231_v29 = vld [vmem:[%s13133_s2 + $0x88] sm:$0xff] }
 0x8ad   :  { %v7406_v15 = vsel %vm1109_vm3, %v7405_v24, %v12706_v19  ;;  %v9829_v14 = vpop.f32.mrb[227].mxu0  ;;  %v10229_v24 = vld [vmem:[%s13133_s2 + $0x70] sm:$0xff] }
 0x8ae   :  { %v10232_v32 = vld [vmem:[%s13133_s2 + $0x90] sm:$0xff]  ;;  %v12770_v14 = vpop.permute.xlu0 %7939 }
 0x8b0   :  { %v12713_v38 = vpop.f32.mrb[224].mxu1 }
 0x8b1   :  { %v7407_v42 = vrot.slane %v12713_v38, 6  ;;  %v9834_v37 = vpop.f32.mrb[225].mxu1 }
 0x8b2   :  { %v12716_v53 = vpop.f32.mrb[228].mxu0  ;;  %v7100_v44 = vpop.f32.mrb[226].mxu1 }
 0x8b3   :  { %v7408_v30 = vsel %vm1112_vm4, %v7407_v42, %v7406_v15  ;;  %v7409_v9 = vrot.slane %v12716_v53, 5  ;;  %v9835_v34 = vpop.f32.mrb[227].mxu1  ;;  %v9840_v33 = vpop.f32.mrb[229].mxu0  ;;  %v10233_v15 = vld [vmem:[%s13133_s2 + $0x78] sm:$0xff] }
 0x8b4   :  { %v7150_v61 = vpop.f32.mrb[230].mxu0 }
 0x8b5   :  { %v7410_v27 = vsel %vm1115_vm5, %v7409_v9, %v7408_v30  ;;  %v9841_v54 = vpop.f32.mrb[231].mxu0 }
 0x8b8   :  { %v12721_v3 = vpop.f32.mrb[228].mxu1 }
 0x8b9   :  { %v7411_v51 = vrot.slane %v12721_v3, 4  ;;  %v9846_v21 = vpop.f32.mrb[229].mxu1 }
 0x8ba   :  { %v12724_v48 = vpop.f32.mrb[232].mxu0  ;;  %v7200_v18 = vpop.f32.mrb[230].mxu1 }
 0x8bb   :  { %v7412_v62 = vsel %vm1118_vm6, %v7411_v51, %v7410_v27  ;;  %v7413_v22 = vrot.slane %v12724_v48, 3  ;;  %v9847_v60 = vpop.f32.mrb[231].mxu1  ;;  %v9852_v45 = vpop.f32.mrb[233].mxu0 }
 0x8bc   :  { %v7250_v56 = vpop.f32.mrb[234].mxu0 }
 0x8bd   :  { %v7414_v49 = vsel %vm1121_vm7, %v7413_v22, %v7412_v62  ;;  %v9853_v12 = vpop.f32.mrb[235].mxu0  ;;  %7941 = vrot.lane.b32.xlu0 %v10226_v1, %s10253_s21 }
 0x8be   :  { %v10234_v12 = vld [vmem:[%s13133_s2 + $0xa8] sm:$0xff] }
 0x8c0   :  { %v12733_v2 = vpop.f32.mrb[232].mxu1 }
 0x8c1   :  { %v7415_v13 = vrot.slane %v12733_v2, 2  ;;  %v9858_v57 = vpop.f32.mrb[233].mxu1  ;;  %7992 = vrot.lane.b32.xlu0 %v10227_v46, %s10253_s21 }
 0x8c2   :  { %v12740_v43 = vpop.f32.mrb[236].mxu0  ;;  %v7300_v8 = vpop.f32.mrb[234].mxu1 }
 0x8c3   :  { %v7417_v5 = vrot.slane %v12740_v43, 1  ;;  %v7416_v50 = vsel %vm1124_vm8, %v7415_v13, %v7414_v49  ;;  %v9864_v41 = vpop.f32.mrb[237].mxu0  ;;  %v9859_v28 = vpop.f32.mrb[235].mxu1 }
 0x8c4   :  { %v7350_v25 = vpop.f32.mrb[238].mxu0 }
 0x8c5   :  { %v7418_v36 = vsel %vm1127_vm9, %v7417_v5, %v7416_v50  ;;  %v9865_v4 = vpop.f32.mrb[239].mxu0  ;;  %7994 = vrot.lane.b32.xlu0 %v10228_v0, %s10253_s21 }
 0x8c6   :  { %v7424_v7 = vsel %vm1069_vm2, %v7418_v36, -inf }
 0x8c7   :  { %7425 = vmax.xlane.f32.xlu1 %v7424_v7 }
 0x8c9   :  { %8045 = vrot.lane.b32.xlu0 %v10229_v24, %s10253_s21 }
 0x8cd   :  { %8098 = vrot.lane.b32.xlu0 %v10230_v20, %s10253_s21 }
 0x8d1   :  { %8100 = vrot.lane.b32.xlu0 %v10231_v29, %s10253_s21 }
 0x8d5   :  { %8151 = vrot.lane.b32.xlu0 %v10232_v32, %s10253_s21 }
 0x8d8   :  { %8047 = vrot.lane.b32.xlu1 %v10233_v15, %s10253_s21 }
 0x911   :  { %v12772_v42 = vpop.xlane.xlu0 %7354 }
 0x912   :  { %v7359_v37 = vsub.f32 %v12666_v17, %v12772_v42  ;;  %v10238_v17 = vld [vmem:[%s13133_s2 + $0xd8] sm:$0xff]  ;;  %v10239_v42 = vld [vmem:[%s13133_s2 + $0xe8] sm:$0xff] }
 0x915   :  { %v7358_v44 = vpop.xlane.xlu0 %7357 }
 0x916   :  { %v7360_v30 = vsub.f32 %v12670_v39, %v7358_v44 }
 0x918   :  { %v7363_v9 = vmul.f32 1.442695, %v7360_v30 }
 0x91a   :  { %10126 = vpow2.f32 %v7363_v9 }
 0x924   :  { %v12777_v34 = vpop.eup %10126 }
 0x925   :  { %v7368_v33 = vsel %vm1069_vm2, %v12777_v34, 0.0 }
 0x926   :  { %7369 = vadd.xlane.f32.xlu1 %v7368_v33 }
 0x934   :  { %v7423_v61 = vpop.xlane.xlu0 %7422 }
 0x935   :  { %v7429_v27 = vrot.slane %v7423_v61, 1  ;;  %v7430_v54 = vrot.slane %v7423_v61, 2  ;;  %v7431_v51 = vrot.slane %v7423_v61, 3  ;;  %v7432_v21 = vrot.slane %v7423_v61, 4 }
 0x936   :  { %v7433_v18 = vrot.slane %v7423_v61, 5  ;;  %v7434_v62 = vrot.slane %v7423_v61, 6  ;;  %v7435_v22 = vrot.slane %v7423_v61, 7  ;;  %v7459_v60 = vsub.f32 %v12674_v23, %v7423_v61 }
 0x937   :  { %v7460_v39 = vsub.f32 %v12676_v52, %v7429_v27  ;;  %v7461_v45 = vsub.f32 %v12681_v55, %v7430_v54  ;;  %v7462_v56 = vsub.f32 %v12684_v35, %v7431_v51  ;;  %v7463_v49 = vsub.f32 %v12689_v31, %v7432_v21  ;;  %8206 = vrot.lane.b32.xlu1 %v10234_v12, %s10253_s21  ;;  %v12825_v51 = vpop.permute.xlu1 %7780 }
 0x938   :  { %v7464_v1 = vsub.f32 %v12692_v63, %v7433_v18  ;;  %v7475_v13 = vmul.f32 1.442695, %v7459_v60  ;;  %v7465_v57 = vsub.f32 %v12697_v59, %v7434_v62  ;;  %v7466_v55 = vsub.f32 %v12700_v6, %v7435_v22 }
 0x939   :  { %v7477_v23 = vmul.f32 1.442695, %v7460_v39  ;;  %v7479_v46 = vmul.f32 1.442695, %v7461_v45  ;;  %v7481_v52 = vmul.f32 1.442695, %v7462_v56 }
 0x93a   :  { %10128 = vpow2.f32 %v7475_v13  ;;  %v7483_v35 = vmul.f32 1.442695, %v7463_v49  ;;  %v7485_v31 = vmul.f32 1.442695, %v7464_v1  ;;  %v7487_v8 = vmul.f32 1.442695, %v7465_v57 }
 0x93b   :  { %10130 = vpow2.f32 %v7477_v23  ;;  %v7489_v5 = vmul.f32 1.442695, %v7466_v55 }
 0x93c   :  { %10132 = vpow2.f32 %v7479_v46 }
 0x93d   :  { %10134 = vpow2.f32 %v7481_v52 }
 0x93e   :  { %10136 = vpow2.f32 %v7483_v35 }
 0x93f   :  { %10138 = vpow2.f32 %v7485_v31 }
 0x940   :  { %10140 = vpow2.f32 %v7487_v8 }
 0x941   :  { %10142 = vpow2.f32 %v7489_v5 }
 0x944   :  { %v12793_v63 = vpop.eup %10128 }
 0x945   :  { %v12795_v59 = vpop.eup %10130 }
 0x946   :  { %v12797_v50 = vpop.eup %10132  ;;  %v7523_v6 = vrot.slane %v12795_v59, 7 }
 0x947   :  { %v12800_v41 = vpop.eup %10134  ;;  %v7525_v28 = vrot.slane %v12797_v50, 6 }
 0x948   :  { %v12803_v25 = vpop.eup %10136  ;;  %v7524_v36 = vsel %vm1109_vm3, %v7523_v6, %v12793_v63  ;;  %v7527_v4 = vrot.slane %v12800_v41, 5 }
 0x949   :  { %v12808_v0 = vpop.eup %10138  ;;  %v7526_v7 = vsel %vm1112_vm4, %v7525_v28, %v7524_v36  ;;  %v7529_v24 = vrot.slane %v12803_v25, 4 }
 0x94a   :  { %v12812_v20 = vpop.eup %10140  ;;  %v7528_v29 = vsel %vm1115_vm5, %v7527_v4, %v7526_v7  ;;  %v7531_v32 = vrot.slane %v12808_v0, 3 }
 0x94b   :  { %v12816_v15 = vpop.eup %10142  ;;  %v7530_v44 = vsel %vm1118_vm6, %v7529_v24, %v7528_v29  ;;  %v7533_v30 = vrot.slane %v12812_v20, 2 }
 0x94c   :  { %v7532_v9 = vsel %vm1121_vm7, %v7531_v32, %v7530_v44  ;;  %v7535_v33 = vrot.slane %v12816_v15, 1 }
 0x94d   :  { %v7534_v61 = vsel %vm1124_vm8, %v7533_v30, %v7532_v9 }
 0x94e   :  { %v7536_v27 = vsel %vm1127_vm9, %v7535_v33, %v7534_v61 }
 0x94f   :  { %v7553_v54 = vsel %vm1069_vm2, %v7536_v27, 0.0 }
 0x950   :  { %7554 = vadd.xlane.f32.xlu0 %v7553_v54 }
 0x954   :  { %v7426_v21 = vpop.xlane.xlu1 %7425 }
 0x955   :  { %v7436_v18 = vrot.slane %v7426_v21, 1  ;;  %v7437_v62 = vrot.slane %v7426_v21, 2  ;;  %v7438_v22 = vrot.slane %v7426_v21, 3  ;;  %v7439_v60 = vrot.slane %v7426_v21, 4 }
 0x956   :  { %v7440_v39 = vrot.slane %v7426_v21, 5  ;;  %v7441_v45 = vrot.slane %v7426_v21, 6  ;;  %v7442_v56 = vrot.slane %v7426_v21, 7  ;;  %v7467_v49 = vsub.f32 %v12706_v19, %v7426_v21 }
 0x957   :  { %v7468_v12 = vsub.f32 %v12708_v16, %v7436_v18  ;;  %v7469_v1 = vsub.f32 %v12713_v38, %v7437_v62  ;;  %v7470_v13 = vsub.f32 %v12716_v53, %v7438_v22  ;;  %v7471_v57 = vsub.f32 %v12721_v3, %v7439_v60 }
 0x958   :  { %v7472_v23 = vsub.f32 %v12724_v48, %v7440_v39  ;;  %v7491_v46 = vmul.f32 1.442695, %v7467_v49  ;;  %v7473_v52 = vsub.f32 %v12733_v2, %v7441_v45  ;;  %v7474_v8 = vsub.f32 %v12740_v43, %v7442_v56  ;;  %v10235_v43 = vld [vmem:[%s13133_s2 + $0x98] sm:$0xff]  ;;  %v10237_v49 = vld [vmem:[%s13133_s2 + $0xc8] sm:$0xff] }
 0x959   :  { %v7493_v55 = vmul.f32 1.442695, %v7468_v12  ;;  %v7495_v35 = vmul.f32 1.442695, %v7469_v1  ;;  %v7497_v31 = vmul.f32 1.442695, %v7470_v13 }
 0x95a   :  { %10144 = vpow2.f32 %v7491_v46  ;;  %v7499_v19 = vmul.f32 1.442695, %v7471_v57  ;;  %v7501_v16 = vmul.f32 1.442695, %v7472_v23  ;;  %v7503_v38 = vmul.f32 1.442695, %v7473_v52 }
 0x95b   :  { %10146 = vpow2.f32 %v7493_v55  ;;  %v7505_v53 = vmul.f32 1.442695, %v7474_v8  ;;  %v7361_v60 = vmul.f32 1.442695, %v7359_v37  ;;  %v10236_v45 = vld [vmem:[%s13133_s2 + $0xb8] sm:$0xff]  ;;  %v10241_v1 = vld [vmem:[%s13133_s2 + $0xa0] sm:$0xff] }
 0x95c   :  { %10148 = vpow2.f32 %v7495_v35  ;;  %v10240_v37 = vld [vmem:[%s13133_s2 + $0xf8] sm:$0xff]  ;;  %v10242_v13 = vld [vmem:[%s13133_s2 + $0xb0] sm:$0xff]  ;;  %v10243_v57 = vld [vmem:[%s13133_s2 + $0xc0] sm:$0xff]  ;;  %v7942_v35 = vpop.permute.xlu0 %7941 }
 0x95d   :  { %10150 = vpow2.f32 %v7497_v31  ;;  %v13366_v12 = vld [vmem:[#allocation9_spill] sm:$0xff]  ;;  %v10245_v23 = vld [vmem:[%s13133_s2 + $0xe0] sm:$0xff]  ;;  %v10246_v46 = vld [vmem:[%s13133_s2 + $0xf0] sm:$0xff] }
 0x95e   :  { %10152 = vpow2.f32 %v7499_v19  ;;  %v10247_v52 = vld [vmem:[%s13132_s1 + $0x4] ss:$8 sps:$4 sm:$0xff]  }
 0x95f   :  { %10154 = vpow2.f32 %v7501_v16  ;;  %v13367_v55 = vld [vmem:[#allocation2_spill] sm:$0xff] }
 0x960   :  { %10156 = vpow2.f32 %v7503_v38  ;;  %v7993_v31 = vpop.permute.xlu0 %7992 }
 0x961   :  { %10158 = vpow2.f32 %v7505_v53 }
 0x962   :  { %10160 = vpow2.f32 %v7361_v60 }
 0x964   :  { %v12835_v3 = vpop.eup %10144  ;;  %v7995_v8 = vpop.permute.xlu0 %7994 }
 0x965   :  { %v12837_v48 = vpop.eup %10146  ;;  %v7997_v60 = vrot.slane %v7995_v8, 4 }
 0x966   :  { %v12839_v2 = vpop.eup %10148  ;;  %8153 = vrot.lane.b32.xlu0 %v10235_v43, %s10253_s21  ;;  %v7537_v5 = vrot.slane %v12837_v48, 7 }
 0x967   :  { %v12846_v6 = vpop.eup %10150  ;;  %v7539_v28 = vrot.slane %v12839_v2, 6 }
 0x968   :  { %v12849_v36 = vpop.eup %10152  ;;  %v7538_v4 = vsel %vm1109_vm3, %v7537_v5, %v12835_v3  ;;  %v7541_v7 = vrot.slane %v12846_v6, 5  ;;  %v8046_v19 = vpop.permute.xlu0 %8045 }
 0x969   :  { %v12854_v24 = vpop.eup %10154  ;;  %v7540_v29 = vsel %vm1112_vm4, %v7539_v28, %v7538_v4  ;;  %v7543_v32 = vrot.slane %v12849_v36, 4  ;;  %v7785_v28 = vrot.slane %v12646_v47, 4  ;;  %v7784_v4 = vrot.slane %v12825_v51, 4 }
 0x96a   :  { %v12858_v44 = vpop.eup %10156  ;;  %v7542_v30 = vsel %vm1115_vm5, %v7541_v7, %v7540_v29  ;;  %v7545_v9 = vrot.slane %v12854_v24, 3 }
 0x96b   :  { %v12862_v33 = vpop.eup %10158  ;;  %v7544_v61 = vsel %vm1118_vm6, %v7543_v32, %v7542_v30  ;;  %v7547_v27 = vrot.slane %v12858_v44, 2 }
 0x96c   :  { %v7546_v54 = vsel %vm1121_vm7, %v7545_v9, %v7544_v61  ;;  %v7549_v21 = vrot.slane %v12862_v33, 1  ;;  %v12874_v39 = vpop.eup %10160  ;;  %v12934_v16 = vpop.permute.xlu0 %8098  ;;  %v8851_v9 = vcombine.low %v7784_v4, %v7785_v28 }
 0x96d   :  { %v7548_v18 = vsel %vm1124_vm8, %v7547_v27, %v7546_v54  ;;  %v7365_v56 = vsel %vm1069_vm2, %v12874_v39, 0.0  ;;  %v7944_v27 = vrot.slane %v7942_v35, 4 }
 0x96e   :  { %v7550_v62 = vsel %vm1127_vm9, %v7549_v21, %v7548_v18 }
 0x96f   :  { %v7556_v22 = vsel %vm1069_vm2, %v7550_v62, 0.0 }
 0x970   :  { %7557 = vadd.xlane.f32.xlu1 %v7556_v22  ;;  %v12936_v38 = vpop.permute.xlu0 %8100 }
 0x974   :  { %v12938_v53 = vpop.permute.xlu0 %8151 }
 0x981   :  { %8259 = vrot.lane.b32.xlu1 %v10236_v45, %s10253_s21 }
 0x985   :  { %7366 = vadd.xlane.f32.xlu0 %v7365_v56  ;;  %8312 = vrot.lane.b32.xlu1 %v10237_v49, %s10253_s21  ;;  %v8049_v56 = vrot.slane %v8046_v19, 4 }
 0x989   :  { %8365 = vrot.lane.b32.xlu1 %v10238_v17, %s10253_s21 }
 0x98d   :  { %8418 = vrot.lane.b32.xlu1 %v10239_v42, %s10253_s21 }
 0x991   :  { %8471 = vrot.lane.b32.xlu1 %v10240_v37, %s10253_s21 }
 0x995   :  { %8617 = vrot.lane.b32.xlu1 %v13366_v12, %s10253_s21 }
 0x999   :  { %8625 = vrot.lane.b32.xlu1 %v12662_v11, %s10252_s4  ;;  %v10244_v11 = vld [vmem:[%s13133_s2 + $0xd0] sm:$0xff] }
 0x99b   :  { %8204 = vrot.lane.b32.xlu0 %v10241_v1, %s10253_s21 }
 0x99f   :  { %8257 = vrot.lane.b32.xlu0 %v10242_v13, %s10253_s21 }
 0x9a3   :  { %8310 = vrot.lane.b32.xlu0 %v10243_v57, %s10253_s21 }
 0x9a7   :  { %8363 = vrot.lane.b32.xlu0 %v10244_v11, %s10253_s21  ;;  %v8102_v11 = vrot.slane %v12934_v16, 4 }
 0x9ab   :  { %8416 = vrot.lane.b32.xlu0 %v10245_v23, %s10253_s21  ;;  %v8103_v23 = vrot.slane %v12936_v38, 4 }
 0x9ad   :  { %v8863_v35 = vcombine.low %v8102_v11, %v8103_v23 }
 0x9af   :  { %8469 = vrot.lane.b32.xlu0 %v10246_v46, %s10253_s21 }
 0x9b3   :  { %8522 = vrot.lane.b32.xlu0 %v10247_v52, %s10253_s21 }
 0x9b7   :  { %8619 = vrot.lane.b32.xlu0 %v13367_v55, %s10253_s21 }
 0x9bb   :  { %8627 = vrot.lane.b32.xlu0 %v12664_v58, %s10252_s4 }
 0x9dd   :  { %v7555_v43 = vpop.xlane.xlu0 %7554 }
 0x9de   :  { %10162 = vrcp.f32 %v7555_v43 }
 0x9e8   :  { %v12940_v5 = vpop.eup %10162 }
 0x9e9   :  { %v12946_v58 = vmul.f32 %v12940_v5, %v12793_v63  ;;  %v7563_v7 = vrot.slane %v12940_v5, 1  ;;  %v7564_v30 = vrot.slane %v12940_v5, 2  ;;  %v7565_v51 = vrot.slane %v12940_v5, 3 }
 0x9ea   :  { %v7566_v21 = vrot.slane %v12940_v5, 4  ;;  %v7567_v62 = vrot.slane %v12940_v5, 5  ;;  %v7569_v1 = vrot.slane %v12940_v5, 7 }
 0x9eb   :  { %v7658_v29 = vpack.c.bf16 %v12946_v58, %v12946_v58  ;;  %v12952_v32 = vmul.f32 %v12795_v59, %v7563_v7  ;;  %v12964_v63 = vmul.f32 %v12797_v50, %v7564_v30  ;;  %v8048_v59 = vpop.permute.xlu1 %8047  ;;  %v12971_v61 = vmul.f32 %v12800_v41, %v7565_v51 }
 0x9ec   :  { %v7943_v50 = vrot.slane %v12770_v14, 4  ;;  %v12989_v14 = vmul.f32 %v12803_v25, %v7566_v21  ;;  %v7996_v41 = vrot.slane %v7993_v31, 4  ;;  %v8050_v49 = vrot.slane %v8048_v59, 4 }
 0x9ed   :  { %9869 = vmatmul.mubr.msk.bf16.vlgmr.msra.gmra.mrb[236].mxu1 %vm1069_vm2, %v7658_v29  ;;  %v7659_v47 = vpack.c.bf16 %v12952_v32, %v12952_v32  ;;  %v7660_v54 = vpack.c.bf16 %v12964_v63, %v12964_v63  ;;  %v7568_v25 = vrot.slane %v12940_v5, 6  ;;  %v13019_v46 = vmul.f32 %v12816_v15, %v7569_v1 }
 0x9ee   :  { %9879 = vmatpush3.bf16.msra.mxu1 %v8851_v9  ;;  %9880 = vmatprep.mubr.msk.bf16.mxu1 %vm10250_vm1, %v13264_v40  ;;  %v8857_v22 = vcombine.low %v7943_v50, %v7944_v27  ;;  %v7662_v17 = vpack.c.bf16 %v12989_v14, %v12989_v14  ;;  %v8859_v42 = vcombine.low %v7996_v41, %v7997_v60  ;;  %v7625_v29 = vrot.slane %v12952_v32, 7 }
 0x9ef   :  { %9875 = vmatmul.mubr.msk.bf16.vlgmr.msra.gmra.mrb[240].mxu0 %vm1069_vm2, %v7659_v47  ;;  %9890 = vmatprep.subr.bf16.mxu1 %v13264_v40  ;;  %v12977_v18 = vpop.xlane.xlu1 %7369  ;;  %v8861_v13 = vcombine.low %v8049_v56, %v8050_v49  ;;  %v13011_v57 = vmul.f32 %v12812_v20, %v7568_v25  ;;  %v8155_v20 = vrot.slane %v12938_v53, 4  ;;  %v7665_v31 = vpack.c.bf16 %v13019_v46, %v13019_v46 }
 0x9f0   :  { %9885 = vmatpush3.bf16.msra.mxu0 %v12650_v26  ;;  %9886 = vmatprep.mubr.msk.bf16.mxu0 %vm10250_vm1, %v13264_v40  ;;  %v7661_v26 = vpack.c.bf16 %v12971_v61, %v12971_v61  ;;  %v7626_v21 = vsel %vm1109_vm3, %v7625_v29, %v12946_v58  ;;  %v7627_v50 = vrot.slane %v12964_v63, 6 }
 0x9f1   :  { %9896 = vmatprep.subr.bf16.mxu0 %v13264_v40  ;;  %v7664_v55 = vpack.c.bf16 %v13011_v57, %v13011_v57  ;;  %v7635_v29 = vrot.slane %v13011_v57, 2  ;;  %v7637_v57 = vrot.slane %v13019_v46, 1 }
 0x9f2   :  { %v7628_v58 = vsel %vm1112_vm4, %v7627_v50, %v7626_v21 }
 0x9f3   :  { %v12993_v45 = vpop.permute.xlu1 %8206 }
 0x9f5   :  { %9881 = vmatmul.mubr.msk.bf16.vlgmr.msra.gmra.mrb[240].mxu1 %vm1069_vm2, %v7660_v54 }
 0x9f6   :  { %9891 = vmatpush3.bf16.msra.mxu1 %v12652_v10  ;;  %9892 = vmatprep.mubr.msk.bf16.mxu1 %vm10250_vm1, %v13264_v40  ;;  %v12997_v10 = vmul.f32 %v12808_v0, %v7567_v62  ;;  %v8154_v0 = vpop.permute.xlu0 %8153 }
 0x9f7   :  { %9887 = vmatmul.mubr.msk.bf16.vlgmr.msra.gmra.mrb[244].mxu0 %vm1069_vm2, %v7661_v26  ;;  %9902 = vmatprep.subr.bf16.mxu1 %v13264_v40  ;;  %v8156_v52 = vrot.slane %v8154_v0, 4 }
 0x9f8   :  { %9897 = vmatpush3.bf16.msra.mxu0 %v8857_v22  ;;  %9898 = vmatprep.mubr.msk.bf16.mxu0 %vm10250_vm1, %v13264_v40  ;;  %v7663_v12 = vpack.c.bf16 %v12997_v10, %v12997_v10 }
 0x9f9   :  { %9908 = vmatprep.subr.bf16.mxu0 %v13264_v40  ;;  %v8865_v8 = vcombine.low %v8155_v20, %v8156_v52 }
 0x9fd   :  { %9893 = vmatmul.mubr.msk.bf16.vlgmr.msra.gmra.mrb[244].mxu1 %vm1069_vm2, %v7662_v17  ;;  %v7558_v37 = vpop.xlane.xlu1 %7557 }
 0x9fe   :  { %9903 = vmatpush3.bf16.msra.mxu1 %v8859_v42  ;;  %10164 = vrcp.f32 %v7558_v37  ;;  %9904 = vmatprep.mubr.msk.bf16.mxu1 %vm10250_vm1, %v13264_v40 }
 0x9ff   :  { %9899 = vmatmul.mubr.msk.bf16.vlgmr.msra.gmra.mrb[248].mxu0 %vm1069_vm2, %v7663_v12  ;;  %9914 = vmatprep.subr.bf16.mxu1 %v13264_v40 }
 0xa00   :  { %9909 = vmatpush3.bf16.msra.mxu0 %v8861_v13  ;;  %9910 = vmatprep.mubr.msk.bf16.mxu0 %vm10250_vm1, %v13264_v40 }
 0xa01   :  { %9920 = vmatprep.subr.bf16.mxu0 %v13264_v40  ;;  %v8260_v5 = vpop.permute.xlu1 %8259 }
 0xa02   :  { %v8262_v51 = vrot.slane %v8260_v5, 4 }
 0xa05   :  { %9905 = vmatmul.mubr.msk.bf16.vlgmr.msra.gmra.mrb[248].mxu1 %vm1069_vm2, %v7664_v55  ;;  %v8313_v4 = vpop.permute.xlu1 %8312 }
 0xa06   :  { %9915 = vmatpush3.bf16.msra.mxu1 %v8863_v35  ;;  %9916 = vmatprep.mubr.msk.bf16.mxu1 %vm10250_vm1, %v13264_v40 }
 0xa07   :  { %9911 = vmatmul.mubr.msk.bf16.vlgmr.msra.gmra.mrb[252].mxu0 %vm1069_vm2, %v7665_v31  ;;  %9926 = vmatprep.subr.bf16.mxu1 %v13264_v40 }
 0xa08   :  { %v13031_v15 = vpop.eup %10164  ;;  %9921 = vmatpush3.bf16.msra.mxu0 %v8865_v8  ;;  %9922 = vmatprep.mubr.msk.bf16.mxu0 %vm10250_vm1, %v13264_v40 }
 0xa09   :  { %v7570_v19 = vrot.slane %v13031_v15, 1  ;;  %v7601_v16 = vmul.f32 %v13031_v15, %v12835_v3  ;;  %9932 = vmatprep.subr.bf16.mxu0 %v13264_v40  ;;  %v7571_v3 = vrot.slane %v13031_v15, 2  ;;  %v7572_v9 = vrot.slane %v13031_v15, 3  ;;  %v8366_v62 = vpop.permute.xlu1 %8365 }
 0xa0a   :  { %v7573_v60 = vrot.slane %v13031_v15, 4  ;;  %v7574_v63 = vrot.slane %v13031_v15, 5  ;;  %v8368_v12 = vrot.slane %v8366_v62, 4  ;;  %v7575_v23 = vrot.slane %v13031_v15, 6 }
 0xa0b   :  { %v7602_v38 = vmul.f32 %v12837_v48, %v7570_v19  ;;  %v7666_v53 = vpack.c.bf16 %v7601_v16, %v7601_v16  ;;  %v8209_v48 = vrot.slane %v12993_v45, 4  ;;  %v7603_v47 = vmul.f32 %v12839_v2, %v7571_v3 }
 0xa0c   :  { %v7604_v22 = vmul.f32 %v12846_v6, %v7572_v9  ;;  %v8315_v2 = vrot.slane %v8313_v4, 4  ;;  %v7629_v6 = vrot.slane %v12971_v61, 5  ;;  %v7605_v37 = vmul.f32 %v12849_v36, %v7573_v60 }
 0xa0d   :  { %v7667_v43 = vpack.c.bf16 %v7602_v38, %v7602_v38  ;;  %9917 = vmatmul.mubr.msk.bf16.vlgmr.msra.gmra.mrb[252].mxu1 %vm1069_vm2, %v7666_v53  ;;  %v7639_v59 = vrot.slane %v7602_v38, 7  ;;  %v7641_v32 = vrot.slane %v7603_v47, 6  ;;  %v7668_v41 = vpack.c.bf16 %v7603_v47, %v7603_v47  ;;  %v8419_v11 = vpop.permute.xlu1 %8418 }
 0xa0e   :  { %9928 = vmatprep.mubr.msk.bf16.mxu1 %vm10250_vm1, %v13264_v40  ;;  %v7669_v42 = vpack.c.bf16 %v7604_v22, %v7604_v22  ;;  %v7643_v1 = vrot.slane %v7604_v22, 5  ;;  %v7630_v0 = vsel %vm1115_vm5, %v7629_v6, %v7628_v58  ;;  %v7631_v61 = vrot.slane %v12989_v14, 4 }
 0xa0f   :  { %9923 = vmatmul.mubr.msk.bf16.vlgmr.msra.gmra.mrb[0].mxu0 %vm1069_vm2, %v7667_v43  ;;  %v7640_v45 = vsel %vm1109_vm3, %v7639_v59, %v7601_v16  ;;  %v7606_v36 = vmul.f32 %v12854_v24, %v7574_v63  ;;  %v7670_v20 = vpack.c.bf16 %v7605_v37, %v7605_v37  ;;  %v8421_v8 = vrot.slane %v8419_v11, 4 }
 0xa10   :  { %9934 = vmatprep.mubr.msk.bf16.mxu0 %vm10250_vm1, %v13264_v40  ;;  %v7642_v25 = vsel %vm1112_vm4, %v7641_v32, %v7640_v45  ;;  %v7632_v31 = vsel %vm1118_vm6, %v7631_v61, %v7630_v0  ;;  %v7576_v19 = vrot.slane %v13031_v15, 7  ;;  %v7633_v14 = vrot.slane %v12997_v10, 3 }
 0xa11   :  { %v7644_v55 = vsel %vm1115_vm5, %v7643_v1, %v7642_v25  ;;  %v7607_v38 = vmul.f32 %v12858_v44, %v7575_v23  ;;  %v7647_v43 = vrot.slane %v7606_v36, 3  ;;  %v7671_v15 = vpack.c.bf16 %v7606_v36, %v7606_v36 }
 0xa12   :  { %v7367_v28 = vpop.xlane.xlu0 %7366  ;;  %v7634_v3 = vsel %vm1121_vm7, %v7633_v14, %v7632_v31  ;;  %v7608_v44 = vmul.f32 %v12862_v33, %v7576_v19 }
 0xa13   :  { %10166 = vrcp.f32 %v7367_v28  ;;  %v8472_v28 = vpop.permute.xlu1 %8471  ;;  %v7636_v59 = vsel %vm1124_vm8, %v7635_v29, %v7634_v3 }
 0xa14   :  { %10168 = vrcp.f32 %v12977_v18  ;;  %v7645_v18 = vrot.slane %v7605_v37, 4  ;;  %v8474_v4 = vrot.slane %v8472_v28, 4  ;;  %v7651_v21 = vrot.slane %v7608_v44, 1 }
 0xa15   :  { %v7638_v62 = vsel %vm1127_vm9, %v7637_v57, %v7636_v59 }
 0xa16   :  { %v8205_v7 = vpop.permute.xlu0 %8204  ;;  %v7646_v24 = vsel %vm1118_vm6, %v7645_v18, %v7644_v55 }
 0xa17   :  { %v8208_v30 = vrot.slane %v8205_v7, 4  ;;  %v7648_v7 = vsel %vm1121_vm7, %v7647_v43, %v7646_v24 }
 0xa19   :  { %v8867_v27 = vcombine.low %v8208_v30, %v8209_v48  ;;  %v7649_v30 = vrot.slane %v7607_v38, 2 }
 0xa1a   :  { %v8258_v54 = vpop.permute.xlu0 %8257 }
 0xa1b   :  { %v8261_v26 = vrot.slane %v8258_v54, 4  ;;  %9927 = vmatpush3.bf16.msra.mxu1 %v8867_v27  ;;  %v7650_v33 = vsel %vm1124_vm8, %v7649_v30, %v7648_v7  ;;  %v7672_v54 = vpack.c.bf16 %v7607_v38, %v7607_v38 }
 0xa1c   :  { %9938 = vmatprep.subr.bf16.mxu1 %v13264_v40  ;;  %v7652_v22 = vsel %vm1127_vm9, %v7651_v21, %v7650_v33 }
 0xa1d   :  { %v8869_v56 = vcombine.low %v8261_v26, %v8262_v51  ;;  %v10167_v10 = vpop.eup %10166 }
 0xa1e   :  { %v8311_v49 = vpop.permute.xlu0 %8310  ;;  %9929 = vmatmul.mubr.msk.bf16.vlgmr.msra.gmra.mrb[0].mxu1 %vm1069_vm2, %v7668_v41  ;;  %v10169_v51 = vpop.eup %10168  ;;  %v7373_v27 = vmul.f32 %v10167_v10, %v12874_v39  ;;  %v7673_v41 = vpack.c.bf16 %v7608_v44, %v7608_v44 }
 0xa1f   :  { %v8314_v17 = vrot.slane %v8311_v49, 4  ;;  %9933 = vmatpush3.bf16.msra.mxu0 %v8869_v56  ;;  %9940 = vmatprep.mubr.msk.bf16.mxu1 %vm10250_vm1, %v13264_v40  ;;  %v7374_v39 = vmul.f32 %v10169_v51, %v12777_v34 }
 0xa20   :  { %9944 = vmatprep.subr.bf16.mxu0 %v13264_v40  ;;  %v7655_v32 = vadd.f32 %v7638_v62, %v7373_v27 }
 0xa21   :  { %v8871_v13 = vcombine.low %v8314_v17, %v8315_v2  ;;  %v7656_v60 = vadd.f32 %v7652_v22, %v7374_v39 }
 0xa22   :  { %v8364_v52 = vpop.permute.xlu0 %8363  ;;  %9935 = vmatmul.mubr.msk.bf16.vlgmr.msra.gmra.mrb[4].mxu0 %vm1069_vm2, %v7669_v42 }
 0xa23   :  { %v8367_v35 = vrot.slane %v8364_v52, 4  ;;  %9939 = vmatpush3.bf16.msra.mxu1 %v8871_v13  ;;  %9946 = vmatprep.mubr.msk.bf16.mxu0 %vm10250_vm1, %v13264_v40  ;;  %v7657_v46 = vpack.c.bf16 %v7656_v60, %v7655_v32 }
 0xa24   :  { %9950 = vmatprep.subr.bf16.mxu1 %v13264_v40 }
 0xa25   :  { %v8873_v16 = vcombine.low %v8367_v35, %v8368_v12 }
 0xa26   :  { %v8417_v53 = vpop.permute.xlu0 %8416  ;;  %9941 = vmatmul.mubr.msk.bf16.vlgmr.msra.gmra.mrb[4].mxu1 %vm1069_vm2, %v7670_v20 }
 0xa27   :  { %v8420_v5 = vrot.slane %v8417_v53, 4  ;;  %9945 = vmatpush3.bf16.msra.mxu0 %v8873_v16  ;;  %9952 = vmatprep.mubr.msk.bf16.mxu1 %vm10250_vm1, %v13264_v40 }
 0xa28   :  { %9956 = vmatprep.subr.bf16.mxu0 %v13264_v40 }
 0xa29   :  { %v8875_v48 = vcombine.low %v8420_v5, %v8421_v8 }
 0xa2a   :  { %v8470_v9 = vpop.permute.xlu0 %8469  ;;  %9947 = vmatmul.mubr.msk.bf16.vlgmr.msra.gmra.mrb[8].mxu0 %vm1069_vm2, %v7671_v15 }
 0xa2b   :  { %v8473_v47 = vrot.slane %v8470_v9, 4  ;;  %9951 = vmatpush3.bf16.msra.mxu1 %v8875_v48  ;;  %9958 = vmatprep.mubr.msk.bf16.mxu0 %vm10250_vm1, %v13264_v40 }
 0xa2c   :  { %9962 = vmatprep.subr.bf16.mxu1 %v13264_v40 }
 0xa2d   :  { %v8877_v50 = vcombine.low %v8473_v47, %v8474_v4 }
 0xa2e   :  { %v8523_v26 = vpop.permute.xlu0 %8522  ;;  %9953 = vmatmul.mubr.msk.bf16.vlgmr.msra.gmra.mrb[8].mxu1 %vm1069_vm2, %v7672_v54 }
 0xa2f   :  { %9957 = vmatpush3.bf16.msra.mxu0 %v8877_v50  ;;  %9963 = vmatpush3.bf16.msra.mxu1 %v8523_v26 }
 0xa30   :  { %9964 = vmatprep.mubr.msk.bf16.mxu1 %vm10250_vm1, %v13264_v40 }
 0xa32   :  { %9959 = vmatmul.mubr.msk.bf16.vlgmr.msra.gmra.mrb[12].mxu0 %vm1069_vm2, %v7673_v41 }
 0xa36   :  { %9965 = vmatmul.mubr.msk.bf16.vlgmr.msra.gmra.mrb[12].mxu1 %vm1069_vm2, %v7657_v46 }
 0xac0   :  { %v7721_v2 = vpop.f32.mrb[236].mxu1 }
 0xac1   :  { %v9870_v45 = vpop.f32.mrb[237].mxu1 }
 0xac2   :  { %v7724_v56 = vpop.f32.mrb[238].mxu1  ;;  %v7774_v49 = vpop.f32.mrb[240].mxu0 }
 0xac3   :  { %v8541_v58 = vrot.slane %v7774_v49, 7  ;;  %v9871_v63 = vpop.f32.mrb[239].mxu1  ;;  %v9876_v17 = vpop.f32.mrb[241].mxu0 }
 0xac4   :  { %v7777_v6 = vpop.f32.mrb[242].mxu0 }
 0xac5   :  { %v8542_v34 = vsel %vm1109_vm3, %v8541_v58, %v7721_v2  ;;  %v9877_v25 = vpop.f32.mrb[243].mxu0 }
 0xac8   :  { %v7827_v42 = vpop.f32.mrb[240].mxu1 }
 0xac9   :  { %v8543_v37 = vrot.slane %v7827_v42, 6  ;;  %v9882_v40 = vpop.f32.mrb[241].mxu1 }
 0xaca   :  { %v7830_v12 = vpop.f32.mrb[242].mxu1  ;;  %v7880_v1 = vpop.f32.mrb[244].mxu0 }
 0xacb   :  { %v8544_v13 = vsel %vm1112_vm4, %v8543_v37, %v8542_v34  ;;  %v8545_v0 = vrot.slane %v7880_v1, 5  ;;  %v9883_v11 = vpop.f32.mrb[243].mxu1  ;;  %v9888_v23 = vpop.f32.mrb[245].mxu0 }
 0xacc   :  { %v7883_v52 = vpop.f32.mrb[246].mxu0 }
 0xacd   :  { %v8546_v61 = vsel %vm1115_vm5, %v8545_v0, %v8544_v13  ;;  %v9889_v55 = vpop.f32.mrb[247].mxu0 }
 0xad0   :  { %v7933_v36 = vpop.f32.mrb[244].mxu1 }
 0xad1   :  { %v8547_v35 = vrot.slane %v7933_v36, 4  ;;  %v9894_v18 = vpop.f32.mrb[245].mxu1 }
 0xad2   :  { %v7936_v20 = vpop.f32.mrb[246].mxu1  ;;  %v7986_v31 = vpop.f32.mrb[248].mxu0 }
 0xad3   :  { %v8548_v8 = vsel %vm1118_vm6, %v8547_v35, %v8546_v61  ;;  %v8549_v19 = vrot.slane %v7986_v31, 3  ;;  %v9895_v16 = vpop.f32.mrb[247].mxu1  ;;  %v9900_v14 = vpop.f32.mrb[249].mxu0 }
 0xad4   :  { %v7989_v38 = vpop.f32.mrb[250].mxu0 }
 0xad5   :  { %v8550_v24 = vsel %vm1121_vm7, %v8549_v19, %v8548_v8  ;;  %v9901_v53 = vpop.f32.mrb[251].mxu0 }
 0xad8   :  { %v8039_v43 = vpop.f32.mrb[248].mxu1 }
 0xad9   :  { %v8551_v5 = vrot.slane %v8039_v43, 2  ;;  %v9906_v28 = vpop.f32.mrb[249].mxu1  ;;  %v8618_v43 = vpop.permute.xlu1 %8617 }
 0xada   :  { %v8042_v3 = vpop.f32.mrb[250].mxu1  ;;  %v8092_v15 = vpop.f32.mrb[252].mxu0 }
 0xadb   :  { %v8553_v10 = vrot.slane %v8092_v15, 1  ;;  %v9907_v4 = vpop.f32.mrb[251].mxu1  ;;  %v9912_v44 = vpop.f32.mrb[253].mxu0  ;;  %v8552_v7 = vsel %vm1124_vm8, %v8551_v5, %v8550_v24  ;;  %v13368_v15 = vld [vmem:[#allocation12_spill] sm:$0xff] }
 0xadc   :  { %v8095_v48 = vpop.f32.mrb[254].mxu0  ;;  %v8620_v5 = vpop.permute.xlu0 %8619 }
 0xadd   :  { %v9913_v29 = vpop.f32.mrb[255].mxu0  ;;  %v8554_v30 = vsel %vm1127_vm9, %v8553_v10, %v8552_v7  ;;  %v8626_v28 = vpop.permute.xlu1 %8625  ;;  %v8639_v10 = vsel %vm61_vm0, %v13368_v15, %v8618_v43  ;;  %v13369_v7 = vld [vmem:[#allocation3_spill] sm:$0xff] }
 0xade   :  { %v8642_v4 = vsel %vm8641_vm10, %v8639_v10, %v8626_v28  ;;  %v8640_v48 = vsel %vm61_vm0, %v13369_v7, %v8620_v5 }
 0xae0   :  { %v8145_v9 = vpop.f32.mrb[252].mxu1  ;;  %v8628_v3 = vpop.permute.xlu0 %8627 }
 0xae1   :  { %v9918_v47 = vpop.f32.mrb[253].mxu1 }
 0xae2   :  { %v8148_v51 = vpop.f32.mrb[254].mxu1  ;;  %v8198_v59 = vpop.f32.mrb[0].mxu0 }
 0xae3   :  { %v8555_v27 = vrot.slane %v8198_v59, 7  ;;  %v9919_v33 = vpop.f32.mrb[255].mxu1  ;;  %v9924_v54 = vpop.f32.mrb[1].mxu0 }
 0xae4   :  { %v8201_v57 = vpop.f32.mrb[2].mxu0 }
 0xae5   :  { %v8556_v21 = vsel %vm1109_vm3, %v8555_v27, %v8145_v9  ;;  %v9925_v50 = vpop.f32.mrb[3].mxu0 }
 0xaf1   :  { %v8251_v26 = vpop.f32.mrb[0].mxu1 }
 0xaf2   :  { %v8557_v62 = vrot.slane %v8251_v26, 6  ;;  %v9930_v22 = vpop.f32.mrb[1].mxu1 }
 0xaf3   :  { %v8254_v39 = vpop.f32.mrb[2].mxu1 }
 0xaf4   :  { %v8558_v32 = vsel %vm1112_vm4, %v8557_v62, %v8556_v21  ;;  %v9931_v41 = vpop.f32.mrb[3].mxu1 }
 0xaf5   :  { %v8304_v60 = vpop.f32.mrb[4].mxu0 }
 0xaf6   :  { %v8559_v46 = vrot.slane %v8304_v60, 5  ;;  %v9936_v2 = vpop.f32.mrb[5].mxu0 }
 0xaf7   :  { %v8307_v45 = vpop.f32.mrb[6].mxu0 }
 0xaf8   :  { %v8560_v56 = vsel %vm1115_vm5, %v8559_v46, %v8558_v32  ;;  %v9937_v49 = vpop.f32.mrb[7].mxu0 }
 0xaf9   :  { %v8357_v58 = vpop.f32.mrb[4].mxu1 }
 0xafa   :  { %v8561_v63 = vrot.slane %v8357_v58, 4  ;;  %v9942_v17 = vpop.f32.mrb[5].mxu1 }
 0xafb   :  { %v8360_v6 = vpop.f32.mrb[6].mxu1 }
 0xafc   :  { %v8562_v34 = vsel %vm1118_vm6, %v8561_v63, %v8560_v56  ;;  %v9943_v25 = vpop.f32.mrb[7].mxu1 }
 0xafd   :  { %v8410_v42 = vpop.f32.mrb[8].mxu0 }
 0xafe   :  { %v8563_v37 = vrot.slane %v8410_v42, 3  ;;  %v9948_v40 = vpop.f32.mrb[9].mxu0 }
 0xaff   :  { %v8413_v12 = vpop.f32.mrb[10].mxu0 }
 0xb00   :  { %v8564_v1 = vsel %vm1121_vm7, %v8563_v37, %v8562_v34  ;;  %v9949_v13 = vpop.f32.mrb[11].mxu0 }
 0xb01   :  { %v8463_v0 = vpop.f32.mrb[8].mxu1 }
 0xb02   :  { %v8565_v11 = vrot.slane %v8463_v0, 2  ;;  %v9954_v23 = vpop.f32.mrb[9].mxu1 }
 0xb03   :  { %v8466_v52 = vpop.f32.mrb[10].mxu1 }
 0xb04   :  { %v9955_v61 = vpop.f32.mrb[11].mxu1  ;;  %v8566_v55 = vsel %vm1124_vm8, %v8565_v11, %v8564_v1 }
 0xb05   :  { %v8516_v36 = vpop.f32.mrb[12].mxu0 }
 0xb06   :  { %v8567_v35 = vrot.slane %v8516_v36, 1  ;;  %v9960_v18 = vpop.f32.mrb[13].mxu0 }
 0xb07   :  { %v8519_v20 = vpop.f32.mrb[14].mxu0 }
 0xb08   :  { %v9961_v31 = vpop.f32.mrb[15].mxu0  ;;  %v8568_v8 = vsel %vm1127_vm9, %v8567_v35, %v8566_v55 }
 0xb09   :  { %v8608_v19 = vpop.f32.mrb[12].mxu1 }
 0xb0a   :  { %v8609_v16 = vadd.f32 %v8608_v19, %v8554_v30  ;;  %v9966_v14 = vpop.f32.mrb[13].mxu1  ;;  %v8643_v30 = vsel %vm8641_vm10, %v8640_v48, %v8628_v3 }
 0xb0b   :  { %v8611_v38 = vpop.f32.mrb[14].mxu1 }
 0xb0c   :  { %v8612_v24 = vadd.f32 %v8611_v38, %v8568_v8  ;;  %v9967_v53 = vpop.f32.mrb[15].mxu1  ;;  %8633 = vrot.lane.b32.xlu1 %v8609_v16, %s10251_s26 }
 0xb0e   :  { %8635 = vrot.lane.b32.xlu0 %v8612_v24, %s10251_s26 }
 0xb7e   :  { %v8634_v44 = vpop.permute.xlu1 %8633 }
 0xb7f   :  { %v8645_v29 = vsel %vm8644_vm11, %v8642_v4, %v8634_v44 }
 0xb80   :  { %8647 = vst [vmem:[%s13135_s3] sm:$0xff] %v8645_v29  ;;  %v8636_v9 = vpop.permute.xlu0 %8635 }
 0xb81   :  { %v8646_v47 = vsel %vm8644_vm11, %v8643_v30, %v8636_v9 }
 0xb82   :  { %8648 = vst [vmem:[%s13135_s3 + $0x8] sm:$0xff] %v8646_v47 }

</bundles_post_ra>
